<compile_context>
chip_gen: v7x
topology: tpu7x:2x2x1
jax: 0.10.0
libtpu: 0.0.40
codegen_flags: <defaults>
</compile_context>

<pallas_src>
import functools

import jax
import jax.numpy as jnp
from jax.experimental import pallas as pl
from jax.experimental.pallas import tpu as pltpu


def _round_up(x, m):
    return (x + m - 1) // m * m


def _pick_tile(padded_dim, candidates):
    """Largest candidate tile that evenly divides the (128-padded) dimension."""
    for t in candidates:
        if padded_dim % t == 0:
            return t
    return 128  # unreachable: padded_dim is always a multiple of 128


# ---------------------------------------------------------------------------
# Pallas kernel: tiled matmul + bias + (optional) ReLU      (convs & linears)
# ---------------------------------------------------------------------------
def _matmul_bias_act_kernel(a_ref, b_ref, bias_ref, o_ref, acc_ref, *, apply_relu):
    @pl.when(pl.program_id(2) == 0)
    def _():
        acc_ref[...] = jnp.zeros_like(acc_ref)

    acc_ref[...] += jnp.dot(a_ref[...], b_ref[...],
                            preferred_element_type=jnp.float32)

    @pl.when(pl.program_id(2) == pl.num_programs(2) - 1)
    def _():
        r = acc_ref[...] + bias_ref[...]          # bias broadcast over rows (f32)
        if apply_relu:
            r = jnp.maximum(r, 0.0)
        o_ref[...] = r.astype(o_ref.dtype)


def matmul_bias_act(a, b_p, bias_p, n_out, *, apply_relu):
    """act(a @ b + bias).

    a       : (M, K)  any float dtype (cast to bf16 here)
    b_p     : (Kp, Np) bf16, pre-transposed and pre-padded at init
    bias_p  : (1, Np)  f32, pre-padded at init
    returns : (M, n_out) f32
    """
    M, K = a.shape
    Kp, Np = b_p.shape

    tk = _pick_tile(Kp, (1024, 512, 384, 256, 128))
    tn = _pick_tile(Np, (512, 384, 256, 128))

    Mp8 = _round_up(M, 8)
    if Mp8 <= 256:
        tm, Mp = Mp8, Mp8                 # small-M (FC / tiny batch): one M tile
    else:
        tm, Mp = 256, _round_up(M, 256)   # tile M -> bounded VMEM + parallelism

    a_p = jnp.pad(a.astype(jnp.bfloat16), ((0, Mp - M), (0, Kp - K)))

    grid = (Mp // tm, Np // tn, Kp // tk)
    kernel = functools.partial(_matmul_bias_act_kernel, apply_relu=apply_relu)

    out = pl.pallas_call(
        kernel,
        out_shape=jax.ShapeDtypeStruct((Mp, Np), jnp.float32),
        grid_spec=pltpu.PrefetchScalarGridSpec(
            num_scalar_prefetch=0,
            grid=grid,
            in_specs=[
                pl.BlockSpec((tm, tk), lambda i, j, k: (i, k)),
                pl.BlockSpec((tk, tn), lambda i, j, k: (k, j)),
                pl.BlockSpec((1, tn), lambda i, j, k: (0, j)),
            ],
            out_specs=pl.BlockSpec((tm, tn), lambda i, j, k: (i, j)),
            scratch_shapes=[pltpu.VMEM((tm, tn), jnp.float32)],
        ),
        compiler_params=pltpu.CompilerParams(
            dimension_semantics=("parallel", "parallel", "arbitrary"),
            vmem_limit_bytes=32 * 1024 * 1024,
        ),
    )(a_p, b_p, bias_p)

    return out[:M, :n_out]


# ---------------------------------------------------------------------------
# Glue (pure data movement / tiny memory-bound ops)
# ---------------------------------------------------------------------------
def _im2col(x_nhwc, kh, kw, stride, pad):
    """NHWC -> (N*OH*OW, kh*kw*C) bf16 patch matrix (K order = kh, kw, cin)."""
    N, H, W, C = x_nhwc.shape
    x = x_nhwc.astype(jnp.bfloat16)
    xp = jnp.pad(x, ((0, 0), (pad, pad), (pad, pad), (0, 0)))
    OH = (H + 2 * pad - kh) // stride + 1
    OW = (W + 2 * pad - kw) // stride + 1
    patches = []
    for ki in range(kh):
        for kj in range(kw):
            patches.append(
                xp[:, ki:ki + stride * (OH - 1) + 1:stride,
                      kj:kj + stride * (OW - 1) + 1:stride, :])
    p = jnp.stack(patches, axis=3)                    # (N, OH, OW, kh*kw, C)
    return p.reshape(N * OH * OW, kh * kw * C), OH, OW


def conv2d_relu(x_nhwc, w_p, bias_p, *, cout, kh, kw, stride, pad, relu=True):
    N = x_nhwc.shape[0]
    patches, OH, OW = _im2col(x_nhwc, kh, kw, stride, pad)
    out = matmul_bias_act(patches, w_p, bias_p, cout, apply_relu=relu)
    return out.reshape(N, OH, OW, cout)


def maxpool_3x3_s2(x_nhwc):
    # Pairwise max accumulation over the 9 strided windows (no 9x HBM stack).
    N, H, W, C = x_nhwc.shape
    OH = (H - 3) // 2 + 1
    OW = (W - 3) // 2 + 1
    out = None
    for ki in range(3):
        for kj in range(3):
            win = x_nhwc[:, ki:ki + 2 * (OH - 1) + 1:2,
                            kj:kj + 2 * (OW - 1) + 1:2, :]
            out = win if out is None else jnp.maximum(out, win)
    return out


def adaptive_avg_pool2d(x_nhwc, out_h, out_w):
    # Matches torch.nn.AdaptiveAvgPool2d bin semantics (tiny tensor -> glue).
    N, H, W, C = x_nhwc.shape
    rows = []
    for i in range(out_h):
        hs, he = (i * H) // out_h, -(-((i + 1) * H) // out_h)
        cols = []
        for j in range(out_w):
            ws, we = (j * W) // out_w, -(-((j + 1) * W) // out_w)
            cols.append(jnp.mean(x_nhwc[:, hs:he, ws:we, :], axis=(1, 2)))
        rows.append(jnp.stack(cols, axis=1))           # (N, out_w, C)
    return jnp.stack(rows, axis=1)                     # (N, out_h, out_w, C)


# ---------------------------------------------------------------------------
# AlexNet parameters + forward
# ---------------------------------------------------------------------------
def init_params(key, num_classes=4):
    """PyTorch-layout parameters (Conv: OIHW, Linear: (out, in))."""
    specs = {
        "conv1_w": (64, 1, 11, 11),  "conv1_b": (64,),
        "conv2_w": (192, 64, 5, 5),  "conv2_b": (192,),
        "conv3_w": (384, 192, 3, 3), "conv3_b": (384,),
        "conv4_w": (256, 384, 3, 3), "conv4_b": (256,),
        "conv5_w": (256, 256, 3, 3), "conv5_b": (256,),
        "fc1_w": (4096, 256 * 6 * 6), "fc1_b": (4096,),
        "fc2_w": (4096, 4096),        "fc2_b": (4096,),
        "fc3_w": (num_classes, 4096), "fc3_b": (num_classes,),
    }
    params = {}
    keys = jax.random.split(key, len(specs))
    for k_rng, (name, shape) in zip(keys, specs.items()):
        if name.endswith("_b"):
            params[name] = jnp.zeros(shape, jnp.float32)
        else:
            params[name] = 0.01 * jax.random.normal(k_rng, shape, jnp.float32)
    return params


def prepare_params(params):
    """One-time (outside jit) transpose/pad/cast of weights into kernel layout.

    Conv weights: OIHW -> (KH*KW*Cin, Cout), padded to 128 multiples, bf16.
    FC weights:   (N, K) -> (K, N), padded to 128 multiples, bf16.
    Biases:       (1, Np) f32.
    """
    prep = {}
    for name in ("conv1", "conv2", "conv3", "conv4", "conv5"):
        w = params[name + "_w"]                     # (Cout, Cin, KH, KW)
        cout, cin, kh, kw = w.shape
        k = kh * kw * cin
        w_mat = jnp.transpose(w, (2, 3, 1, 0)).reshape(k, cout)
        kp, np_ = _round_up(k, 128), _round_up(cout, 128)
        prep[name + "_w"] = jnp.pad(
            w_mat, ((0, kp - k), (0, np_ - cout))).astype(jnp.bfloat16)
        prep[name + "_b"] = jnp.pad(
            params[name + "_b"].astype(jnp.float32).reshape(1, cout),
            ((0, 0), (0, np_ - cout)))
    for name in ("fc1", "fc2", "fc3"):
        w = params[name + "_w"]                     # (N, K) torch layout
        n, k = w.shape
        kp, np_ = _round_up(k, 128), _round_up(n, 128)
        prep[name + "_w"] = jnp.pad(
            w.T, ((0, kp - k), (0, np_ - n))).astype(jnp.bfloat16)
        prep[name + "_b"] = jnp.pad(
            params[name + "_b"].astype(jnp.float32).reshape(1, n),
            ((0, 0), (0, np_ - n)))
    return prep


@functools.partial(jax.jit, static_argnums=(2,))
def alexnet_forward(prep, x_nchw, num_classes):
    x = jnp.transpose(x_nchw, (0, 2, 3, 1)).astype(jnp.float32)   # -> NHWC

    # features
    x = conv2d_relu(x, prep["conv1_w"], prep["conv1_b"],
                    cout=64, kh=11, kw=11, stride=4, pad=2)
    x = maxpool_3x3_s2(x)
    x = conv2d_relu(x, prep["conv2_w"], prep["conv2_b"],
                    cout=192, kh=5, kw=5, stride=1, pad=2)
    x = maxpool_3x3_s2(x)
    x = conv2d_relu(x, prep["conv3_w"], prep["conv3_b"],
                    cout=384, kh=3, kw=3, stride=1, pad=1)
    x = conv2d_relu(x, prep["conv4_w"], prep["conv4_b"],
                    cout=256, kh=3, kw=3, stride=1, pad=1)
    x = conv2d_relu(x, prep["conv5_w"], prep["conv5_b"],
                    cout=256, kh=3, kw=3, stride=1, pad=1)
    x = maxpool_3x3_s2(x)

    # avgpool + flatten (flatten in NCHW order to match torch.flatten(x, 1))
    x = adaptive_avg_pool2d(x, 6, 6)                                # (N,6,6,256)
    x = jnp.transpose(x, (0, 3, 1, 2)).reshape(x.shape[0], -1)      # (N, 9216)

    # classifier (dropout == identity at inference)
    x = matmul_bias_act(x, prep["fc1_w"], prep["fc1_b"], 4096, apply_relu=True)
    x = matmul_bias_act(x, prep["fc2_w"], prep["fc2_b"], 4096, apply_relu=True)
    x = matmul_bias_act(x, prep["fc3_w"], prep["fc3_b"], num_classes,
                        apply_relu=False)
    return x


if __name__ == "__main__":
    key = jax.random.PRNGKey(0)
    k_param, k_input = jax.random.split(key)

    params = init_params(k_param, num_classes=4)
    prep = prepare_params(params)          # one-time weight layout/cast (no per-call cost)

    # Smallest spatial size the feature stack supports is 63; use 64x64, NCHW.
    x = jax.random.normal(k_input, (2, 1, 64, 64), jnp.float32)

    out = alexnet_forward(prep, x, 4)
    out = jax.block_until_ready(out)
    assert out.shape == (2, 4), out.shape
    print("KERNEL_OK")
</pallas_src>

<mosaic_0001>
module attributes {stable_mosaic.version = 11 : i64} {
  func.func @_matmul_bias_act_kernel(%arg0: i32, %arg1: i32, %arg2: i32, %arg3: memref<256x128xbf16, #tpu.memory_space<vmem>>, %arg4: memref<128x128xbf16, #tpu.memory_space<vmem>>, %arg5: memref<1x128xf32, #tpu.memory_space<vmem>>, %arg6: memref<256x128xf32, #tpu.memory_space<vmem>>, %arg7: memref<256x128xf32, #tpu.memory_space<vmem>>) attributes {dimension_semantics = [#tpu.dimension_semantics<parallel>, #tpu.dimension_semantics<parallel>, #tpu.dimension_semantics<arbitrary>], iteration_bounds = array<i64: 2, 1, 1>, scalar_prefetch = 0 : i64, scratch_operands = 1 : i64, tpu.core_type = #tpu.core_type<tc>, window_params = [{transform_indices = @transform_0, window_bounds = array<i64: 256, 128>}, {transform_indices = @transform_1, window_bounds = array<i64: 128, 128>}, {transform_indices = @transform_2, window_bounds = array<i64: 1, 128>}, {transform_indices = @transform_3, window_bounds = array<i64: 256, 128>}]} {
    %c0_i32 = arith.constant 0 : i32
    %0 = arith.cmpi eq, %arg2, %c0_i32 : i32
    %1 = arith.extui %0 : i1 to i32
    %c0_i32_0 = arith.constant 0 : i32
    %2 = arith.cmpi ne, %1, %c0_i32_0 : i32
    scf.if %2 {
      %cst_10 = arith.constant 0.000000e+00 : f32
      %12 = vector.broadcast %cst_10 : f32 to vector<256x128xf32>
      %c0_11 = arith.constant 0 : index
      %c0_12 = arith.constant 0 : index
      %13 = vector.load %arg7[%c0_11, %c0_12] : memref<256x128xf32, #tpu.memory_space<vmem>>, vector<256x128xf32>
      tpu.vector_store %arg7[%c0_11, %c0_12], %12 {strides = array<i32>} : memref<256x128xf32, #tpu.memory_space<vmem>>, vector<256x128xf32>,
    } else {
    }
    %c0 = arith.constant 0 : index
    %c0_1 = arith.constant 0 : index
    %3 = vector.load %arg7[%c0, %c0_1] : memref<256x128xf32, #tpu.memory_space<vmem>>, vector<256x128xf32>
    %c0_2 = arith.constant 0 : index
    %c0_3 = arith.constant 0 : index
    %4 = vector.load %arg3[%c0_2, %c0_3] : memref<256x128xbf16, #tpu.memory_space<vmem>>, vector<256x128xbf16>
    %c0_4 = arith.constant 0 : index
    %c0_5 = arith.constant 0 : index
    %5 = vector.load %arg4[%c0_4, %c0_5] : memref<128x128xbf16, #tpu.memory_space<vmem>>, vector<128x128xbf16>
    %cst = arith.constant dense<0.000000e+00> : vector<256x128xf32>
    %6 = tpu.matmul %4, %5, %cst {dimension_numbers = #tpu.dot_dimension_numbers<[1], [0], [0], [1], [0, 0, 1, 1], [], []>} : vector<256x128xbf16>, vector<128x128xbf16>, vector<256x128xf32> -> vector<256x128xf32>
    %7 = arith.addf %3, %6 : vector<256x128xf32>
    %c0_6 = arith.constant 0 : index
    %c0_7 = arith.constant 0 : index
    %8 = vector.load %arg7[%c0_6, %c0_7] : memref<256x128xf32, #tpu.memory_space<vmem>>, vector<256x128xf32>
    tpu.vector_store %arg7[%c0_6, %c0_7], %7 {strides = array<i32>} : memref<256x128xf32, #tpu.memory_space<vmem>>, vector<256x128xf32>,
    %c0_i32_8 = arith.constant 0 : i32
    %9 = arith.cmpi eq, %arg2, %c0_i32_8 : i32
    %10 = arith.extui %9 : i1 to i32
    %c0_i32_9 = arith.constant 0 : i32
    %11 = arith.cmpi ne, %10, %c0_i32_9 : i32
    scf.if %11 {
      %c0_10 = arith.constant 0 : index
      %c0_11 = arith.constant 0 : index
      %12 = vector.load %arg7[%c0_10, %c0_11] : memref<256x128xf32, #tpu.memory_space<vmem>>, vector<256x128xf32>
      %c0_12 = arith.constant 0 : index
      %c0_13 = arith.constant 0 : index
      %13 = vector.load %arg5[%c0_12, %c0_13] : memref<1x128xf32, #tpu.memory_space<vmem>>, vector<1x128xf32>
      %14 = vector.broadcast %13 : vector<1x128xf32> to vector<256x128xf32>
      %15 = arith.addf %12, %14 : vector<256x128xf32>
      %cst_14 = arith.constant 0.000000e+00 : f32
      %16 = vector.broadcast %cst_14 : f32 to vector<256x128xf32>
      %17 = arith.maximumf %15, %16 : vector<256x128xf32>
      %c0_15 = arith.constant 0 : index
      %c0_16 = arith.constant 0 : index
      %18 = vector.load %arg6[%c0_15, %c0_16] : memref<256x128xf32, #tpu.memory_space<vmem>>, vector<256x128xf32>
      tpu.vector_store %arg6[%c0_15, %c0_16], %17 {strides = array<i32>} : memref<256x128xf32, #tpu.memory_space<vmem>>, vector<256x128xf32>,
    } else {
    }
    return
  }
  func.func @transform_0(%arg0: i32, %arg1: i32, %arg2: i32) -> (i32, i32) {
    %c0_i32 = arith.constant 0 : i32
    return %arg0, %arg2 : i32, i32
  }
  func.func @transform_1(%arg0: i32, %arg1: i32, %arg2: i32) -> (i32, i32) {
    %c0_i32 = arith.constant 0 : i32
    return %arg2, %arg1 : i32, i32
  }
  func.func @transform_2(%arg0: i32, %arg1: i32, %arg2: i32) -> (i32, i32) {
    %c0_i32 = arith.constant 0 : i32
    %c0_i32_0 = arith.constant 0 : i32
    return %c0_i32, %arg1 : i32, i32
  }
  func.func @transform_3(%arg0: i32, %arg1: i32, %arg2: i32) -> (i32, i32) {
    %c0_i32 = arith.constant 0 : i32
    return %arg0, %arg1 : i32, i32
  }
}

module attributes {stable_mosaic.version = 11 : i64} {
  func.func @_matmul_bias_act_kernel(%arg0: i32, %arg1: i32, %arg2: i32, %arg3: memref<104x128xbf16, #tpu.memory_space<vmem>>, %arg4: memref<128x256xbf16, #tpu.memory_space<vmem>>, %arg5: memref<1x256xf32, #tpu.memory_space<vmem>>, %arg6: memref<104x256xf32, #tpu.memory_space<vmem>>, %arg7: memref<104x256xf32, #tpu.memory_space<vmem>>) attributes {dimension_semantics = [#tpu.dimension_semantics<parallel>, #tpu.dimension_semantics<parallel>, #tpu.dimension_semantics<arbitrary>], iteration_bounds = array<i64: 1, 1, 13>, scalar_prefetch = 0 : i64, scratch_operands = 1 : i64, tpu.core_type = #tpu.core_type<tc>, window_params = [{transform_indices = @transform_0, window_bounds = array<i64: 104, 128>}, {transform_indices = @transform_1, window_bounds = array<i64: 128, 256>}, {transform_indices = @transform_2, window_bounds = array<i64: 1, 256>}, {transform_indices = @transform_3, window_bounds = array<i64: 104, 256>}]} {
    %c0_i32 = arith.constant 0 : i32
    %0 = arith.cmpi eq, %arg2, %c0_i32 : i32
    %1 = arith.extui %0 : i1 to i32
    %c0_i32_0 = arith.constant 0 : i32
    %2 = arith.cmpi ne, %1, %c0_i32_0 : i32
    scf.if %2 {
      %cst_9 = arith.constant 0.000000e+00 : f32
      %12 = vector.broadcast %cst_9 : f32 to vector<104x256xf32>
      %c0_10 = arith.constant 0 : index
      %c0_11 = arith.constant 0 : index
      %13 = vector.load %arg7[%c0_10, %c0_11] : memref<104x256xf32, #tpu.memory_space<vmem>>, vector<104x256xf32>
      tpu.vector_store %arg7[%c0_10, %c0_11], %12 {strides = array<i32>} : memref<104x256xf32, #tpu.memory_space<vmem>>, vector<104x256xf32>,
    } else {
    }
    %c0 = arith.constant 0 : index
    %c0_1 = arith.constant 0 : index
    %3 = vector.load %arg7[%c0, %c0_1] : memref<104x256xf32, #tpu.memory_space<vmem>>, vector<104x256xf32>
    %c0_2 = arith.constant 0 : index
    %c0_3 = arith.constant 0 : index
    %4 = vector.load %arg3[%c0_2, %c0_3] : memref<104x128xbf16, #tpu.memory_space<vmem>>, vector<104x128xbf16>
    %c0_4 = arith.constant 0 : index
    %c0_5 = arith.constant 0 : index
    %5 = vector.load %arg4[%c0_4, %c0_5] : memref<128x256xbf16, #tpu.memory_space<vmem>>, vector<128x256xbf16>
    %cst = arith.constant dense<0.000000e+00> : vector<104x256xf32>
    %6 = tpu.matmul %4, %5, %cst {dimension_numbers = #tpu.dot_dimension_numbers<[1], [0], [0], [1], [0, 0, 1, 1], [], []>} : vector<104x128xbf16>, vector<128x256xbf16>, vector<104x256xf32> -> vector<104x256xf32>
    %7 = arith.addf %3, %6 : vector<104x256xf32>
    %c0_6 = arith.constant 0 : index
    %c0_7 = arith.constant 0 : index
    %8 = vector.load %arg7[%c0_6, %c0_7] : memref<104x256xf32, #tpu.memory_space<vmem>>, vector<104x256xf32>
    tpu.vector_store %arg7[%c0_6, %c0_7], %7 {strides = array<i32>} : memref<104x256xf32, #tpu.memory_space<vmem>>, vector<104x256xf32>,
    %c12_i32 = arith.constant 12 : i32
    %9 = arith.cmpi eq, %arg2, %c12_i32 : i32
    %10 = arith.extui %9 : i1 to i32
    %c0_i32_8 = arith.constant 0 : i32
    %11 = arith.cmpi ne, %10, %c0_i32_8 : i32
    scf.if %11 {
      %c0_9 = arith.constant 0 : index
      %c0_10 = arith.constant 0 : index
      %12 = vector.load %arg7[%c0_9, %c0_10] : memref<104x256xf32, #tpu.memory_space<vmem>>, vector<104x256xf32>
      %c0_11 = arith.constant 0 : index
      %c0_12 = arith.constant 0 : index
      %13 = vector.load %arg5[%c0_11, %c0_12] : memref<1x256xf32, #tpu.memory_space<vmem>>, vector<1x256xf32>
      %14 = vector.broadcast %13 : vector<1x256xf32> to vector<104x256xf32>
      %15 = arith.addf %12, %14 : vector<104x256xf32>
      %cst_13 = arith.constant 0.000000e+00 : f32
      %16 = vector.broadcast %cst_13 : f32 to vector<104x256xf32>
      %17 = arith.maximumf %15, %16 : vector<104x256xf32>
      %c0_14 = arith.constant 0 : index
      %c0_15 = arith.constant 0 : index
      %18 = vector.load %arg6[%c0_14, %c0_15] : memref<104x256xf32, #tpu.memory_space<vmem>>, vector<104x256xf32>
      tpu.vector_store %arg6[%c0_14, %c0_15], %17 {strides = array<i32>} : memref<104x256xf32, #tpu.memory_space<vmem>>, vector<104x256xf32>,
    } else {
    }
    return
  }
  func.func @transform_0(%arg0: i32, %arg1: i32, %arg2: i32) -> (i32, i32) {
    %c0_i32 = arith.constant 0 : i32
    return %arg0, %arg2 : i32, i32
  }
  func.func @transform_1(%arg0: i32, %arg1: i32, %arg2: i32) -> (i32, i32) {
    %c0_i32 = arith.constant 0 : i32
    return %arg2, %arg1 : i32, i32
  }
  func.func @transform_2(%arg0: i32, %arg1: i32, %arg2: i32) -> (i32, i32) {
    %c0_i32 = arith.constant 0 : i32
    %c0_i32_0 = arith.constant 0 : i32
    return %c0_i32, %arg1 : i32, i32
  }
  func.func @transform_3(%arg0: i32, %arg1: i32, %arg2: i32) -> (i32, i32) {
    %c0_i32 = arith.constant 0 : i32
    return %arg0, %arg1 : i32, i32
  }
}

module attributes {stable_mosaic.version = 11 : i64} {
  func.func @_matmul_bias_act_kernel(%arg0: i32, %arg1: i32, %arg2: i32, %arg3: memref<24x256xbf16, #tpu.memory_space<vmem>>, %arg4: memref<256x384xbf16, #tpu.memory_space<vmem>>, %arg5: memref<1x384xf32, #tpu.memory_space<vmem>>, %arg6: memref<24x384xf32, #tpu.memory_space<vmem>>, %arg7: memref<24x384xf32, #tpu.memory_space<vmem>>) attributes {dimension_semantics = [#tpu.dimension_semantics<parallel>, #tpu.dimension_semantics<parallel>, #tpu.dimension_semantics<arbitrary>], iteration_bounds = array<i64: 1, 1, 7>, scalar_prefetch = 0 : i64, scratch_operands = 1 : i64, tpu.core_type = #tpu.core_type<tc>, window_params = [{transform_indices = @transform_0, window_bounds = array<i64: 24, 256>}, {transform_indices = @transform_1, window_bounds = array<i64: 256, 384>}, {transform_indices = @transform_2, window_bounds = array<i64: 1, 384>}, {transform_indices = @transform_3, window_bounds = array<i64: 24, 384>}]} {
    %c0_i32 = arith.constant 0 : i32
    %0 = arith.cmpi eq, %arg2, %c0_i32 : i32
    %1 = arith.extui %0 : i1 to i32
    %c0_i32_0 = arith.constant 0 : i32
    %2 = arith.cmpi ne, %1, %c0_i32_0 : i32
    scf.if %2 {
      %cst_9 = arith.constant 0.000000e+00 : f32
      %12 = vector.broadcast %cst_9 : f32 to vector<24x384xf32>
      %c0_10 = arith.constant 0 : index
      %c0_11 = arith.constant 0 : index
      %13 = vector.load %arg7[%c0_10, %c0_11] : memref<24x384xf32, #tpu.memory_space<vmem>>, vector<24x384xf32>
      tpu.vector_store %arg7[%c0_10, %c0_11], %12 {strides = array<i32>} : memref<24x384xf32, #tpu.memory_space<vmem>>, vector<24x384xf32>,
    } else {
    }
    %c0 = arith.constant 0 : index
    %c0_1 = arith.constant 0 : index
    %3 = vector.load %arg7[%c0, %c0_1] : memref<24x384xf32, #tpu.memory_space<vmem>>, vector<24x384xf32>
    %c0_2 = arith.constant 0 : index
    %c0_3 = arith.constant 0 : index
    %4 = vector.load %arg3[%c0_2, %c0_3] : memref<24x256xbf16, #tpu.memory_space<vmem>>, vector<24x256xbf16>
    %c0_4 = arith.constant 0 : index
    %c0_5 = arith.constant 0 : index
    %5 = vector.load %arg4[%c0_4, %c0_5] : memref<256x384xbf16, #tpu.memory_space<vmem>>, vector<256x384xbf16>
    %cst = arith.constant dense<0.000000e+00> : vector<24x384xf32>
    %6 = tpu.matmul %4, %5, %cst {dimension_numbers = #tpu.dot_dimension_numbers<[1], [0], [0], [1], [0, 0, 1, 1], [], []>} : vector<24x256xbf16>, vector<256x384xbf16>, vector<24x384xf32> -> vector<24x384xf32>
    %7 = arith.addf %3, %6 : vector<24x384xf32>
    %c0_6 = arith.constant 0 : index
    %c0_7 = arith.constant 0 : index
    %8 = vector.load %arg7[%c0_6, %c0_7] : memref<24x384xf32, #tpu.memory_space<vmem>>, vector<24x384xf32>
    tpu.vector_store %arg7[%c0_6, %c0_7], %7 {strides = array<i32>} : memref<24x384xf32, #tpu.memory_space<vmem>>, vector<24x384xf32>,
    %c6_i32 = arith.constant 6 : i32
    %9 = arith.cmpi eq, %arg2, %c6_i32 : i32
    %10 = arith.extui %9 : i1 to i32
    %c0_i32_8 = arith.constant 0 : i32
    %11 = arith.cmpi ne, %10, %c0_i32_8 : i32
    scf.if %11 {
      %c0_9 = arith.constant 0 : index
      %c0_10 = arith.constant 0 : index
      %12 = vector.load %arg7[%c0_9, %c0_10] : memref<24x384xf32, #tpu.memory_space<vmem>>, vector<24x384xf32>
      %c0_11 = arith.constant 0 : index
      %c0_12 = arith.constant 0 : index
      %13 = vector.load %arg5[%c0_11, %c0_12] : memref<1x384xf32, #tpu.memory_space<vmem>>, vector<1x384xf32>
      %14 = vector.broadcast %13 : vector<1x384xf32> to vector<24x384xf32>
      %15 = arith.addf %12, %14 : vector<24x384xf32>
      %cst_13 = arith.constant 0.000000e+00 : f32
      %16 = vector.broadcast %cst_13 : f32 to vector<24x384xf32>
      %17 = arith.maximumf %15, %16 : vector<24x384xf32>
      %c0_14 = arith.constant 0 : index
      %c0_15 = arith.constant 0 : index
      %18 = vector.load %arg6[%c0_14, %c0_15] : memref<24x384xf32, #tpu.memory_space<vmem>>, vector<24x384xf32>
      tpu.vector_store %arg6[%c0_14, %c0_15], %17 {strides = array<i32>} : memref<24x384xf32, #tpu.memory_space<vmem>>, vector<24x384xf32>,
    } else {
    }
    return
  }
  func.func @transform_0(%arg0: i32, %arg1: i32, %arg2: i32) -> (i32, i32) {
    %c0_i32 = arith.constant 0 : i32
    return %arg0, %arg2 : i32, i32
  }
  func.func @transform_1(%arg0: i32, %arg1: i32, %arg2: i32) -> (i32, i32) {
    %c0_i32 = arith.constant 0 : i32
    return %arg2, %arg1 : i32, i32
  }
  func.func @transform_2(%arg0: i32, %arg1: i32, %arg2: i32) -> (i32, i32) {
    %c0_i32 = arith.constant 0 : i32
    %c0_i32_0 = arith.constant 0 : i32
    return %c0_i32, %arg1 : i32, i32
  }
  func.func @transform_3(%arg0: i32, %arg1: i32, %arg2: i32) -> (i32, i32) {
    %c0_i32 = arith.constant 0 : i32
    return %arg0, %arg1 : i32, i32
  }
}

module attributes {stable_mosaic.version = 11 : i64} {
  func.func @_matmul_bias_act_kernel(%arg0: i32, %arg1: i32, %arg2: i32, %arg3: memref<24x384xbf16, #tpu.memory_space<vmem>>, %arg4: memref<384x256xbf16, #tpu.memory_space<vmem>>, %arg5: memref<1x256xf32, #tpu.memory_space<vmem>>, %arg6: memref<24x256xf32, #tpu.memory_space<vmem>>, %arg7: memref<24x256xf32, #tpu.memory_space<vmem>>) attributes {dimension_semantics = [#tpu.dimension_semantics<parallel>, #tpu.dimension_semantics<parallel>, #tpu.dimension_semantics<arbitrary>], iteration_bounds = array<i64: 1, 1, 9>, scalar_prefetch = 0 : i64, scratch_operands = 1 : i64, tpu.core_type = #tpu.core_type<tc>, window_params = [{transform_indices = @transform_0, window_bounds = array<i64: 24, 384>}, {transform_indices = @transform_1, window_bounds = array<i64: 384, 256>}, {transform_indices = @transform_2, window_bounds = array<i64: 1, 256>}, {transform_indices = @transform_3, window_bounds = array<i64: 24, 256>}]} {
    %c0_i32 = arith.constant 0 : i32
    %0 = arith.cmpi eq, %arg2, %c0_i32 : i32
    %1 = arith.extui %0 : i1 to i32
    %c0_i32_0 = arith.constant 0 : i32
    %2 = arith.cmpi ne, %1, %c0_i32_0 : i32
    scf.if %2 {
      %cst_9 = arith.constant 0.000000e+00 : f32
      %12 = vector.broadcast %cst_9 : f32 to vector<24x256xf32>
      %c0_10 = arith.constant 0 : index
      %c0_11 = arith.constant 0 : index
      %13 = vector.load %arg7[%c0_10, %c0_11] : memref<24x256xf32, #tpu.memory_space<vmem>>, vector<24x256xf32>
      tpu.vector_store %arg7[%c0_10, %c0_11], %12 {strides = array<i32>} : memref<24x256xf32, #tpu.memory_space<vmem>>, vector<24x256xf32>,
    } else {
    }
    %c0 = arith.constant 0 : index
    %c0_1 = arith.constant 0 : index
    %3 = vector.load %arg7[%c0, %c0_1] : memref<24x256xf32, #tpu.memory_space<vmem>>, vector<24x256xf32>
    %c0_2 = arith.constant 0 : index
    %c0_3 = arith.constant 0 : index
    %4 = vector.load %arg3[%c0_2, %c0_3] : memref<24x384xbf16, #tpu.memory_space<vmem>>, vector<24x384xbf16>
    %c0_4 = arith.constant 0 : index
    %c0_5 = arith.constant 0 : index
    %5 = vector.load %arg4[%c0_4, %c0_5] : memref<384x256xbf16, #tpu.memory_space<vmem>>, vector<384x256xbf16>
    %cst = arith.constant dense<0.000000e+00> : vector<24x256xf32>
    %6 = tpu.matmul %4, %5, %cst {dimension_numbers = #tpu.dot_dimension_numbers<[1], [0], [0], [1], [0, 0, 1, 1], [], []>} : vector<24x384xbf16>, vector<384x256xbf16>, vector<24x256xf32> -> vector<24x256xf32>
    %7 = arith.addf %3, %6 : vector<24x256xf32>
    %c0_6 = arith.constant 0 : index
    %c0_7 = arith.constant 0 : index
    %8 = vector.load %arg7[%c0_6, %c0_7] : memref<24x256xf32, #tpu.memory_space<vmem>>, vector<24x256xf32>
    tpu.vector_store %arg7[%c0_6, %c0_7], %7 {strides = array<i32>} : memref<24x256xf32, #tpu.memory_space<vmem>>, vector<24x256xf32>,
    %c8_i32 = arith.constant 8 : i32
    %9 = arith.cmpi eq, %arg2, %c8_i32 : i32
    %10 = arith.extui %9 : i1 to i32
    %c0_i32_8 = arith.constant 0 : i32
    %11 = arith.cmpi ne, %10, %c0_i32_8 : i32
    scf.if %11 {
      %c0_9 = arith.constant 0 : index
      %c0_10 = arith.constant 0 : index
      %12 = vector.load %arg7[%c0_9, %c0_10] : memref<24x256xf32, #tpu.memory_space<vmem>>, vector<24x256xf32>
      %c0_11 = arith.constant 0 : index
      %c0_12 = arith.constant 0 : index
      %13 = vector.load %arg5[%c0_11, %c0_12] : memref<1x256xf32, #tpu.memory_space<vmem>>, vector<1x256xf32>
      %14 = vector.broadcast %13 : vector<1x256xf32> to vector<24x256xf32>
      %15 = arith.addf %12, %14 : vector<24x256xf32>
      %cst_13 = arith.constant 0.000000e+00 : f32
      %16 = vector.broadcast %cst_13 : f32 to vector<24x256xf32>
      %17 = arith.maximumf %15, %16 : vector<24x256xf32>
      %c0_14 = arith.constant 0 : index
      %c0_15 = arith.constant 0 : index
      %18 = vector.load %arg6[%c0_14, %c0_15] : memref<24x256xf32, #tpu.memory_space<vmem>>, vector<24x256xf32>
      tpu.vector_store %arg6[%c0_14, %c0_15], %17 {strides = array<i32>} : memref<24x256xf32, #tpu.memory_space<vmem>>, vector<24x256xf32>,
    } else {
    }
    return
  }
  func.func @transform_0(%arg0: i32, %arg1: i32, %arg2: i32) -> (i32, i32) {
    %c0_i32 = arith.constant 0 : i32
    return %arg0, %arg2 : i32, i32
  }
  func.func @transform_1(%arg0: i32, %arg1: i32, %arg2: i32) -> (i32, i32) {
    %c0_i32 = arith.constant 0 : i32
    return %arg2, %arg1 : i32, i32
  }
  func.func @transform_2(%arg0: i32, %arg1: i32, %arg2: i32) -> (i32, i32) {
    %c0_i32 = arith.constant 0 : i32
    %c0_i32_0 = arith.constant 0 : i32
    return %c0_i32, %arg1 : i32, i32
  }
  func.func @transform_3(%arg0: i32, %arg1: i32, %arg2: i32) -> (i32, i32) {
    %c0_i32 = arith.constant 0 : i32
    return %arg0, %arg1 : i32, i32
  }
}

module attributes {stable_mosaic.version = 11 : i64} {
  func.func @_matmul_bias_act_kernel(%arg0: i32, %arg1: i32, %arg2: i32, %arg3: memref<24x384xbf16, #tpu.memory_space<vmem>>, %arg4: memref<384x256xbf16, #tpu.memory_space<vmem>>, %arg5: memref<1x256xf32, #tpu.memory_space<vmem>>, %arg6: memref<24x256xf32, #tpu.memory_space<vmem>>, %arg7: memref<24x256xf32, #tpu.memory_space<vmem>>) attributes {dimension_semantics = [#tpu.dimension_semantics<parallel>, #tpu.dimension_semantics<parallel>, #tpu.dimension_semantics<arbitrary>], iteration_bounds = array<i64: 1, 1, 6>, scalar_prefetch = 0 : i64, scratch_operands = 1 : i64, tpu.core_type = #tpu.core_type<tc>, window_params = [{transform_indices = @transform_0, window_bounds = array<i64: 24, 384>}, {transform_indices = @transform_1, window_bounds = array<i64: 384, 256>}, {transform_indices = @transform_2, window_bounds = array<i64: 1, 256>}, {transform_indices = @transform_3, window_bounds = array<i64: 24, 256>}]} {
    %c0_i32 = arith.constant 0 : i32
    %0 = arith.cmpi eq, %arg2, %c0_i32 : i32
    %1 = arith.extui %0 : i1 to i32
    %c0_i32_0 = arith.constant 0 : i32
    %2 = arith.cmpi ne, %1, %c0_i32_0 : i32
    scf.if %2 {
      %cst_9 = arith.constant 0.000000e+00 : f32
      %12 = vector.broadcast %cst_9 : f32 to vector<24x256xf32>
      %c0_10 = arith.constant 0 : index
      %c0_11 = arith.constant 0 : index
      %13 = vector.load %arg7[%c0_10, %c0_11] : memref<24x256xf32, #tpu.memory_space<vmem>>, vector<24x256xf32>
      tpu.vector_store %arg7[%c0_10, %c0_11], %12 {strides = array<i32>} : memref<24x256xf32, #tpu.memory_space<vmem>>, vector<24x256xf32>,
    } else {
    }
    %c0 = arith.constant 0 : index
    %c0_1 = arith.constant 0 : index
    %3 = vector.load %arg7[%c0, %c0_1] : memref<24x256xf32, #tpu.memory_space<vmem>>, vector<24x256xf32>
    %c0_2 = arith.constant 0 : index
    %c0_3 = arith.constant 0 : index
    %4 = vector.load %arg3[%c0_2, %c0_3] : memref<24x384xbf16, #tpu.memory_space<vmem>>, vector<24x384xbf16>
    %c0_4 = arith.constant 0 : index
    %c0_5 = arith.constant 0 : index
    %5 = vector.load %arg4[%c0_4, %c0_5] : memref<384x256xbf16, #tpu.memory_space<vmem>>, vector<384x256xbf16>
    %cst = arith.constant dense<0.000000e+00> : vector<24x256xf32>
    %6 = tpu.matmul %4, %5, %cst {dimension_numbers = #tpu.dot_dimension_numbers<[1], [0], [0], [1], [0, 0, 1, 1], [], []>} : vector<24x384xbf16>, vector<384x256xbf16>, vector<24x256xf32> -> vector<24x256xf32>
    %7 = arith.addf %3, %6 : vector<24x256xf32>
    %c0_6 = arith.constant 0 : index
    %c0_7 = arith.constant 0 : index
    %8 = vector.load %arg7[%c0_6, %c0_7] : memref<24x256xf32, #tpu.memory_space<vmem>>, vector<24x256xf32>
    tpu.vector_store %arg7[%c0_6, %c0_7], %7 {strides = array<i32>} : memref<24x256xf32, #tpu.memory_space<vmem>>, vector<24x256xf32>,
    %c5_i32 = arith.constant 5 : i32
    %9 = arith.cmpi eq, %arg2, %c5_i32 : i32
    %10 = arith.extui %9 : i1 to i32
    %c0_i32_8 = arith.constant 0 : i32
    %11 = arith.cmpi ne, %10, %c0_i32_8 : i32
    scf.if %11 {
      %c0_9 = arith.constant 0 : index
      %c0_10 = arith.constant 0 : index
      %12 = vector.load %arg7[%c0_9, %c0_10] : memref<24x256xf32, #tpu.memory_space<vmem>>, vector<24x256xf32>
      %c0_11 = arith.constant 0 : index
      %c0_12 = arith.constant 0 : index
      %13 = vector.load %arg5[%c0_11, %c0_12] : memref<1x256xf32, #tpu.memory_space<vmem>>, vector<1x256xf32>
      %14 = vector.broadcast %13 : vector<1x256xf32> to vector<24x256xf32>
      %15 = arith.addf %12, %14 : vector<24x256xf32>
      %cst_13 = arith.constant 0.000000e+00 : f32
      %16 = vector.broadcast %cst_13 : f32 to vector<24x256xf32>
      %17 = arith.maximumf %15, %16 : vector<24x256xf32>
      %c0_14 = arith.constant 0 : index
      %c0_15 = arith.constant 0 : index
      %18 = vector.load %arg6[%c0_14, %c0_15] : memref<24x256xf32, #tpu.memory_space<vmem>>, vector<24x256xf32>
      tpu.vector_store %arg6[%c0_14, %c0_15], %17 {strides = array<i32>} : memref<24x256xf32, #tpu.memory_space<vmem>>, vector<24x256xf32>,
    } else {
    }
    return
  }
  func.func @transform_0(%arg0: i32, %arg1: i32, %arg2: i32) -> (i32, i32) {
    %c0_i32 = arith.constant 0 : i32
    return %arg0, %arg2 : i32, i32
  }
  func.func @transform_1(%arg0: i32, %arg1: i32, %arg2: i32) -> (i32, i32) {
    %c0_i32 = arith.constant 0 : i32
    return %arg2, %arg1 : i32, i32
  }
  func.func @transform_2(%arg0: i32, %arg1: i32, %arg2: i32) -> (i32, i32) {
    %c0_i32 = arith.constant 0 : i32
    %c0_i32_0 = arith.constant 0 : i32
    return %c0_i32, %arg1 : i32, i32
  }
  func.func @transform_3(%arg0: i32, %arg1: i32, %arg2: i32) -> (i32, i32) {
    %c0_i32 = arith.constant 0 : i32
    return %arg0, %arg1 : i32, i32
  }
}

module attributes {stable_mosaic.version = 11 : i64} {
  func.func @_matmul_bias_act_kernel(%arg0: i32, %arg1: i32, %arg2: i32, %arg3: memref<8x1024xbf16, #tpu.memory_space<vmem>>, %arg4: memref<1024x512xbf16, #tpu.memory_space<vmem>>, %arg5: memref<1x512xf32, #tpu.memory_space<vmem>>, %arg6: memref<8x512xf32, #tpu.memory_space<vmem>>, %arg7: memref<8x512xf32, #tpu.memory_space<vmem>>) attributes {dimension_semantics = [#tpu.dimension_semantics<parallel>, #tpu.dimension_semantics<parallel>, #tpu.dimension_semantics<arbitrary>], iteration_bounds = array<i64: 1, 8, 9>, scalar_prefetch = 0 : i64, scratch_operands = 1 : i64, tpu.core_type = #tpu.core_type<tc>, window_params = [{transform_indices = @transform_0, window_bounds = array<i64: 8, 1024>}, {transform_indices = @transform_1, window_bounds = array<i64: 1024, 512>}, {transform_indices = @transform_2, window_bounds = array<i64: 1, 512>}, {transform_indices = @transform_3, window_bounds = array<i64: 8, 512>}]} {
    %c0_i32 = arith.constant 0 : i32
    %0 = arith.cmpi eq, %arg2, %c0_i32 : i32
    %1 = arith.extui %0 : i1 to i32
    %c0_i32_0 = arith.constant 0 : i32
    %2 = arith.cmpi ne, %1, %c0_i32_0 : i32
    scf.if %2 {
      %cst_9 = arith.constant 0.000000e+00 : f32
      %12 = vector.broadcast %cst_9 : f32 to vector<8x512xf32>
      %c0_10 = arith.constant 0 : index
      %c0_11 = arith.constant 0 : index
      %13 = vector.load %arg7[%c0_10, %c0_11] : memref<8x512xf32, #tpu.memory_space<vmem>>, vector<8x512xf32>
      tpu.vector_store %arg7[%c0_10, %c0_11], %12 {strides = array<i32>} : memref<8x512xf32, #tpu.memory_space<vmem>>, vector<8x512xf32>,
    } else {
    }
    %c0 = arith.constant 0 : index
    %c0_1 = arith.constant 0 : index
    %3 = vector.load %arg7[%c0, %c0_1] : memref<8x512xf32, #tpu.memory_space<vmem>>, vector<8x512xf32>
    %c0_2 = arith.constant 0 : index
    %c0_3 = arith.constant 0 : index
    %4 = vector.load %arg3[%c0_2, %c0_3] : memref<8x1024xbf16, #tpu.memory_space<vmem>>, vector<8x1024xbf16>
    %c0_4 = arith.constant 0 : index
    %c0_5 = arith.constant 0 : index
    %5 = vector.load %arg4[%c0_4, %c0_5] : memref<1024x512xbf16, #tpu.memory_space<vmem>>, vector<1024x512xbf16>
    %cst = arith.constant dense<0.000000e+00> : vector<8x512xf32>
    %6 = tpu.matmul %4, %5, %cst {dimension_numbers = #tpu.dot_dimension_numbers<[1], [0], [0], [1], [0, 0, 1, 1], [], []>} : vector<8x1024xbf16>, vector<1024x512xbf16>, vector<8x512xf32> -> vector<8x512xf32>
    %7 = arith.addf %3, %6 : vector<8x512xf32>
    %c0_6 = arith.constant 0 : index
    %c0_7 = arith.constant 0 : index
    %8 = vector.load %arg7[%c0_6, %c0_7] : memref<8x512xf32, #tpu.memory_space<vmem>>, vector<8x512xf32>
    tpu.vector_store %arg7[%c0_6, %c0_7], %7 {strides = array<i32>} : memref<8x512xf32, #tpu.memory_space<vmem>>, vector<8x512xf32>,
    %c8_i32 = arith.constant 8 : i32
    %9 = arith.cmpi eq, %arg2, %c8_i32 : i32
    %10 = arith.extui %9 : i1 to i32
    %c0_i32_8 = arith.constant 0 : i32
    %11 = arith.cmpi ne, %10, %c0_i32_8 : i32
    scf.if %11 {
      %c0_9 = arith.constant 0 : index
      %c0_10 = arith.constant 0 : index
      %12 = vector.load %arg7[%c0_9, %c0_10] : memref<8x512xf32, #tpu.memory_space<vmem>>, vector<8x512xf32>
      %c0_11 = arith.constant 0 : index
      %c0_12 = arith.constant 0 : index
      %13 = vector.load %arg5[%c0_11, %c0_12] : memref<1x512xf32, #tpu.memory_space<vmem>>, vector<1x512xf32>
      %14 = vector.broadcast %13 : vector<1x512xf32> to vector<8x512xf32>
      %15 = arith.addf %12, %14 : vector<8x512xf32>
      %cst_13 = arith.constant 0.000000e+00 : f32
      %16 = vector.broadcast %cst_13 : f32 to vector<8x512xf32>
      %17 = arith.maximumf %15, %16 : vector<8x512xf32>
      %c0_14 = arith.constant 0 : index
      %c0_15 = arith.constant 0 : index
      %18 = vector.load %arg6[%c0_14, %c0_15] : memref<8x512xf32, #tpu.memory_space<vmem>>, vector<8x512xf32>
      tpu.vector_store %arg6[%c0_14, %c0_15], %17 {strides = array<i32>} : memref<8x512xf32, #tpu.memory_space<vmem>>, vector<8x512xf32>,
    } else {
    }
    return
  }
  func.func @transform_0(%arg0: i32, %arg1: i32, %arg2: i32) -> (i32, i32) {
    %c0_i32 = arith.constant 0 : i32
    return %arg0, %arg2 : i32, i32
  }
  func.func @transform_1(%arg0: i32, %arg1: i32, %arg2: i32) -> (i32, i32) {
    %c0_i32 = arith.constant 0 : i32
    return %arg2, %arg1 : i32, i32
  }
  func.func @transform_2(%arg0: i32, %arg1: i32, %arg2: i32) -> (i32, i32) {
    %c0_i32 = arith.constant 0 : i32
    %c0_i32_0 = arith.constant 0 : i32
    return %c0_i32, %arg1 : i32, i32
  }
  func.func @transform_3(%arg0: i32, %arg1: i32, %arg2: i32) -> (i32, i32) {
    %c0_i32 = arith.constant 0 : i32
    return %arg0, %arg1 : i32, i32
  }
}

module attributes {stable_mosaic.version = 11 : i64} {
  func.func @_matmul_bias_act_kernel(%arg0: i32, %arg1: i32, %arg2: i32, %arg3: memref<8x1024xbf16, #tpu.memory_space<vmem>>, %arg4: memref<1024x512xbf16, #tpu.memory_space<vmem>>, %arg5: memref<1x512xf32, #tpu.memory_space<vmem>>, %arg6: memref<8x512xf32, #tpu.memory_space<vmem>>, %arg7: memref<8x512xf32, #tpu.memory_space<vmem>>) attributes {dimension_semantics = [#tpu.dimension_semantics<parallel>, #tpu.dimension_semantics<parallel>, #tpu.dimension_semantics<arbitrary>], iteration_bounds = array<i64: 1, 8, 4>, scalar_prefetch = 0 : i64, scratch_operands = 1 : i64, tpu.core_type = #tpu.core_type<tc>, window_params = [{transform_indices = @transform_0, window_bounds = array<i64: 8, 1024>}, {transform_indices = @transform_1, window_bounds = array<i64: 1024, 512>}, {transform_indices = @transform_2, window_bounds = array<i64: 1, 512>}, {transform_indices = @transform_3, window_bounds = array<i64: 8, 512>}]} {
    %c0_i32 = arith.constant 0 : i32
    %0 = arith.cmpi eq, %arg2, %c0_i32 : i32
    %1 = arith.extui %0 : i1 to i32
    %c0_i32_0 = arith.constant 0 : i32
    %2 = arith.cmpi ne, %1, %c0_i32_0 : i32
    scf.if %2 {
      %cst_9 = arith.constant 0.000000e+00 : f32
      %12 = vector.broadcast %cst_9 : f32 to vector<8x512xf32>
      %c0_10 = arith.constant 0 : index
      %c0_11 = arith.constant 0 : index
      %13 = vector.load %arg7[%c0_10, %c0_11] : memref<8x512xf32, #tpu.memory_space<vmem>>, vector<8x512xf32>
      tpu.vector_store %arg7[%c0_10, %c0_11], %12 {strides = array<i32>} : memref<8x512xf32, #tpu.memory_space<vmem>>, vector<8x512xf32>,
    } else {
    }
    %c0 = arith.constant 0 : index
    %c0_1 = arith.constant 0 : index
    %3 = vector.load %arg7[%c0, %c0_1] : memref<8x512xf32, #tpu.memory_space<vmem>>, vector<8x512xf32>
    %c0_2 = arith.constant 0 : index
    %c0_3 = arith.constant 0 : index
    %4 = vector.load %arg3[%c0_2, %c0_3] : memref<8x1024xbf16, #tpu.memory_space<vmem>>, vector<8x1024xbf16>
    %c0_4 = arith.constant 0 : index
    %c0_5 = arith.constant 0 : index
    %5 = vector.load %arg4[%c0_4, %c0_5] : memref<1024x512xbf16, #tpu.memory_space<vmem>>, vector<1024x512xbf16>
    %cst = arith.constant dense<0.000000e+00> : vector<8x512xf32>
    %6 = tpu.matmul %4, %5, %cst {dimension_numbers = #tpu.dot_dimension_numbers<[1], [0], [0], [1], [0, 0, 1, 1], [], []>} : vector<8x1024xbf16>, vector<1024x512xbf16>, vector<8x512xf32> -> vector<8x512xf32>
    %7 = arith.addf %3, %6 : vector<8x512xf32>
    %c0_6 = arith.constant 0 : index
    %c0_7 = arith.constant 0 : index
    %8 = vector.load %arg7[%c0_6, %c0_7] : memref<8x512xf32, #tpu.memory_space<vmem>>, vector<8x512xf32>
    tpu.vector_store %arg7[%c0_6, %c0_7], %7 {strides = array<i32>} : memref<8x512xf32, #tpu.memory_space<vmem>>, vector<8x512xf32>,
    %c3_i32 = arith.constant 3 : i32
    %9 = arith.cmpi eq, %arg2, %c3_i32 : i32
    %10 = arith.extui %9 : i1 to i32
    %c0_i32_8 = arith.constant 0 : i32
    %11 = arith.cmpi ne, %10, %c0_i32_8 : i32
    scf.if %11 {
      %c0_9 = arith.constant 0 : index
      %c0_10 = arith.constant 0 : index
      %12 = vector.load %arg7[%c0_9, %c0_10] : memref<8x512xf32, #tpu.memory_space<vmem>>, vector<8x512xf32>
      %c0_11 = arith.constant 0 : index
      %c0_12 = arith.constant 0 : index
      %13 = vector.load %arg5[%c0_11, %c0_12] : memref<1x512xf32, #tpu.memory_space<vmem>>, vector<1x512xf32>
      %14 = vector.broadcast %13 : vector<1x512xf32> to vector<8x512xf32>
      %15 = arith.addf %12, %14 : vector<8x512xf32>
      %cst_13 = arith.constant 0.000000e+00 : f32
      %16 = vector.broadcast %cst_13 : f32 to vector<8x512xf32>
      %17 = arith.maximumf %15, %16 : vector<8x512xf32>
      %c0_14 = arith.constant 0 : index
      %c0_15 = arith.constant 0 : index
      %18 = vector.load %arg6[%c0_14, %c0_15] : memref<8x512xf32, #tpu.memory_space<vmem>>, vector<8x512xf32>
      tpu.vector_store %arg6[%c0_14, %c0_15], %17 {strides = array<i32>} : memref<8x512xf32, #tpu.memory_space<vmem>>, vector<8x512xf32>,
    } else {
    }
    return
  }
  func.func @transform_0(%arg0: i32, %arg1: i32, %arg2: i32) -> (i32, i32) {
    %c0_i32 = arith.constant 0 : i32
    return %arg0, %arg2 : i32, i32
  }
  func.func @transform_1(%arg0: i32, %arg1: i32, %arg2: i32) -> (i32, i32) {
    %c0_i32 = arith.constant 0 : i32
    return %arg2, %arg1 : i32, i32
  }
  func.func @transform_2(%arg0: i32, %arg1: i32, %arg2: i32) -> (i32, i32) {
    %c0_i32 = arith.constant 0 : i32
    %c0_i32_0 = arith.constant 0 : i32
    return %c0_i32, %arg1 : i32, i32
  }
  func.func @transform_3(%arg0: i32, %arg1: i32, %arg2: i32) -> (i32, i32) {
    %c0_i32 = arith.constant 0 : i32
    return %arg0, %arg1 : i32, i32
  }
}

module attributes {stable_mosaic.version = 11 : i64} {
  func.func @_matmul_bias_act_kernel(%arg0: i32, %arg1: i32, %arg2: i32, %arg3: memref<8x1024xbf16, #tpu.memory_space<vmem>>, %arg4: memref<1024x128xbf16, #tpu.memory_space<vmem>>, %arg5: memref<1x128xf32, #tpu.memory_space<vmem>>, %arg6: memref<8x128xf32, #tpu.memory_space<vmem>>, %arg7: memref<8x128xf32, #tpu.memory_space<vmem>>) attributes {dimension_semantics = [#tpu.dimension_semantics<parallel>, #tpu.dimension_semantics<parallel>, #tpu.dimension_semantics<arbitrary>], iteration_bounds = array<i64: 1, 1, 4>, scalar_prefetch = 0 : i64, scratch_operands = 1 : i64, tpu.core_type = #tpu.core_type<tc>, window_params = [{transform_indices = @transform_0, window_bounds = array<i64: 8, 1024>}, {transform_indices = @transform_1, window_bounds = array<i64: 1024, 128>}, {transform_indices = @transform_2, window_bounds = array<i64: 1, 128>}, {transform_indices = @transform_3, window_bounds = array<i64: 8, 128>}]} {
    %c0_i32 = arith.constant 0 : i32
    %0 = arith.cmpi eq, %arg2, %c0_i32 : i32
    %1 = arith.extui %0 : i1 to i32
    %c0_i32_0 = arith.constant 0 : i32
    %2 = arith.cmpi ne, %1, %c0_i32_0 : i32
    scf.if %2 {
      %cst_9 = arith.constant 0.000000e+00 : f32
      %12 = vector.broadcast %cst_9 : f32 to vector<8x128xf32>
      %c0_10 = arith.constant 0 : index
      %c0_11 = arith.constant 0 : index
      %13 = vector.load %arg7[%c0_10, %c0_11] : memref<8x128xf32, #tpu.memory_space<vmem>>, vector<8x128xf32>
      tpu.vector_store %arg7[%c0_10, %c0_11], %12 {strides = array<i32>} : memref<8x128xf32, #tpu.memory_space<vmem>>, vector<8x128xf32>,
    } else {
    }
    %c0 = arith.constant 0 : index
    %c0_1 = arith.constant 0 : index
    %3 = vector.load %arg7[%c0, %c0_1] : memref<8x128xf32, #tpu.memory_space<vmem>>, vector<8x128xf32>
    %c0_2 = arith.constant 0 : index
    %c0_3 = arith.constant 0 : index
    %4 = vector.load %arg3[%c0_2, %c0_3] : memref<8x1024xbf16, #tpu.memory_space<vmem>>, vector<8x1024xbf16>
    %c0_4 = arith.constant 0 : index
    %c0_5 = arith.constant 0 : index
    %5 = vector.load %arg4[%c0_4, %c0_5] : memref<1024x128xbf16, #tpu.memory_space<vmem>>, vector<1024x128xbf16>
    %cst = arith.constant dense<0.000000e+00> : vector<8x128xf32>
    %6 = tpu.matmul %4, %5, %cst {dimension_numbers = #tpu.dot_dimension_numbers<[1], [0], [0], [1], [0, 0, 1, 1], [], []>} : vector<8x1024xbf16>, vector<1024x128xbf16>, vector<8x128xf32> -> vector<8x128xf32>
    %7 = arith.addf %3, %6 : vector<8x128xf32>
    %c0_6 = arith.constant 0 : index
    %c0_7 = arith.constant 0 : index
    %8 = vector.load %arg7[%c0_6, %c0_7] : memref<8x128xf32, #tpu.memory_space<vmem>>, vector<8x128xf32>
    tpu.vector_store %arg7[%c0_6, %c0_7], %7 {strides = array<i32>} : memref<8x128xf32, #tpu.memory_space<vmem>>, vector<8x128xf32>,
    %c3_i32 = arith.constant 3 : i32
    %9 = arith.cmpi eq, %arg2, %c3_i32 : i32
    %10 = arith.extui %9 : i1 to i32
    %c0_i32_8 = arith.constant 0 : i32
    %11 = arith.cmpi ne, %10, %c0_i32_8 : i32
    scf.if %11 {
      %c0_9 = arith.constant 0 : index
      %c0_10 = arith.constant 0 : index
      %12 = vector.load %arg7[%c0_9, %c0_10] : memref<8x128xf32, #tpu.memory_space<vmem>>, vector<8x128xf32>
      %c0_11 = arith.constant 0 : index
      %c0_12 = arith.constant 0 : index
      %13 = vector.load %arg5[%c0_11, %c0_12] : memref<1x128xf32, #tpu.memory_space<vmem>>, vector<1x128xf32>
      %14 = vector.broadcast %13 : vector<1x128xf32> to vector<8x128xf32>
      %15 = arith.addf %12, %14 : vector<8x128xf32>
      %c0_13 = arith.constant 0 : index
      %c0_14 = arith.constant 0 : index
      %16 = vector.load %arg6[%c0_13, %c0_14] : memref<8x128xf32, #tpu.memory_space<vmem>>, vector<8x128xf32>
      tpu.vector_store %arg6[%c0_13, %c0_14], %15 {strides = array<i32>} : memref<8x128xf32, #tpu.memory_space<vmem>>, vector<8x128xf32>,
    } else {
    }
    return
  }
  func.func @transform_0(%arg0: i32, %arg1: i32, %arg2: i32) -> (i32, i32) {
    %c0_i32 = arith.constant 0 : i32
    return %arg0, %arg2 : i32, i32
  }
  func.func @transform_1(%arg0: i32, %arg1: i32, %arg2: i32) -> (i32, i32) {
    %c0_i32 = arith.constant 0 : i32
    return %arg2, %arg1 : i32, i32
  }
  func.func @transform_2(%arg0: i32, %arg1: i32, %arg2: i32) -> (i32, i32) {
    %c0_i32 = arith.constant 0 : i32
    %c0_i32_0 = arith.constant 0 : i32
    return %c0_i32, %arg1 : i32, i32
  }
  func.func @transform_3(%arg0: i32, %arg1: i32, %arg2: i32) -> (i32, i32) {
    %c0_i32 = arith.constant 0 : i32
    return %arg0, %arg1 : i32, i32
  }
}

</mosaic_0001>

<bundles_post_ra>
// kernel: alexnet_forward.8
= control target key start
LH: loop header
LB: loop body
LE: loop exit
PB: predicated region body
PF: predicated region fallthrough
CT: control target
= control target key end

     0   :  { %s1212_s12 = smov 0   ;;  %s1214_s13 = smov 0   ;;  %s1362_s0 = inlined_call_operand.vmem [shape: bf16[512,128], index: 0, kind: input, shape index: {}]   ;;  %s1363_s1 = inlined_call_operand.vmem [shape: bf16[128,128], index: 1, kind: input, shape index: {}]   ;;  %s1364_s2 = inlined_call_operand.vmem [shape: f32[1,128], index: 2, kind: input, shape index: {}]   ;;  %s1365_s3 = inlined_call_operand.vmem [shape: f32[512,128], index: 3, kind: output, shape index: {}]  }
   0x1   :  { %s1216_s14 = smov 0  }
   0x2 LB: > { %s32_s15 = sadd.s32 1, %s1186_s13  ;;  %p1000_p0 = scmp.ge.s32.totalorder %s1190_s14, 1  ;;  %s1190_s14 = sphi %s1216_s14, %s13_s14   ;;  %s1186_s13 = sphi %s1214_s13, %s1367_s13   ;;  %s1182_s12 = sphi %s1212_s12, %s1366_s12  }
   0x3   : > { %p34_p1 = scmp.ge.s32.totalorder %s32_s15, 2  ;;  %p188_p2 = scmp.lt.s32.totalorder %s1190_s14, 3 }
   0x5   : > { %s1369_s15 = smov (%p34_p1, %s32_s15), 0  ;;  %p189_p3 = pnand %p1000_p0, %p188_p2 }
   0x6   : > { %v1144_v0 = vld [vmem:[%s1363_s1] sm:$0xff] (!%p189_p3)   ;;  %s1001_s18 = sshll.u32 (!%p189_p3), %s1182_s12, 5  ;;  %v1145_v1 = vld [vmem:[%s1363_s1 + $0x8] sm:$0xff] (!%p189_p3)   ;;  %v1146_v2 = vld [vmem:[%s1363_s1 + $0x10] sm:$0xff] (!%p189_p3)  }
   0x7   : > { %192 = sbr.rel (%p189_p3) target bundleno = 283 (0x11b), region = 32  ;;  %p230_p4 = scmp.lt.s32.totalorder (!%p189_p3), %s1001_s18, 63  ;;  %1056 = vmatprep.subr.bf16.mxu0 (!%p189_p3), %v1144_v0  ;;  %1104 = vmatprep.subr.bf16.mxu1 (!%p189_p3), %v1144_v0  ;;  %v1147_v3 = vld [vmem:[%s1363_s1 + $0x18] sm:$0xff] (!%p189_p3)   ;;  %v1148_v6 = vld [vmem:[%s1363_s1 + $0x20] sm:$0xff] (!%p189_p3)   ;;  %v1149_v7 = vld [vmem:[%s1363_s1 + $0x28] sm:$0xff] (!%p189_p3)  }
   0x8   : > { %1057 = vmatpush3.bf16.msra.mxu0 (!%p189_p3), %v1144_v0  ;;  %1112 = vmatpush3.bf16.msra.mxu1 (!%p189_p3), %v1144_v0  ;;  %v1150_v8 = vld [vmem:[%s1363_s1 + $0x30] sm:$0xff] (!%p189_p3)   ;;  %v1151_v9 = vld [vmem:[%s1363_s1 + $0x38] sm:$0xff] (!%p189_p3)   ;;  %v1281_v24 = vld [vmem:[%s1364_s2] ss:$0 sm:$0xff] (!%p189_p3) }
   0x9   : > { %1058 = vmatprep.subr.bf16.mxu0 (!%p189_p3), %v1145_v1  ;;  %1105 = vmatprep.subr.bf16.mxu1 (!%p189_p3), %v1145_v1 }
   0xc   : > { %1059 = vmatpush3.bf16.msra.mxu0 (!%p189_p3), %v1145_v1  ;;  %1113 = vmatpush3.bf16.msra.mxu1 (!%p189_p3), %v1145_v1 }
   0xd   : > { %1060 = vmatprep.subr.bf16.mxu0 (!%p189_p3), %v1146_v2  ;;  %1106 = vmatprep.subr.bf16.mxu1 (!%p189_p3), %v1146_v2 }
   0xe   : > { %s1371_s18 = smov (!%p230_p4, %s1001_s18), 63 }
   0xf   : > { %s1002_s23 = sshll.u32 %s1371_s18, 2  ;;  %s1004_s12 = sshll.u32 %s1371_s18, 3 }
  0x10   : > { %s1245_s26 = scalar_lea.vmem %s1362_s0, %s1002_s23  ;;  %1061 = vmatpush3.bf16.msra.mxu0 %v1146_v2  ;;  %1114 = vmatpush3.bf16.msra.mxu1 %v1146_v2  ;;  %s1289_s19 = scalar_lea.vmem %s1365_s3, %s1004_s12 }
  0x11   : > { %v1152_v4 = vld [vmem:[%s1245_s26] sm:$0xff]   ;;  %1062 = vmatprep.subr.bf16.mxu0 %v1147_v3  ;;  %1107 = vmatprep.subr.bf16.mxu1 %v1147_v3  ;;  %v1154_v10 = vld [vmem:[%s1245_s26 + $0x8] sm:$0xff]   ;;  %v1156_v12 = vld [vmem:[%s1245_s26 + $0x10] sm:$0xff]  }
  0x12   : > { %v1153_v5 = vld [vmem:[%s1245_s26 + $0x40] sm:$0xff]   ;;  %1072 = vmatprep.mubr.bf16.mxu0 %v1152_v4  ;;  %v1155_v11 = vld [vmem:[%s1245_s26 + $0x48] sm:$0xff]   ;;  %v1157_v13 = vld [vmem:[%s1245_s26 + $0x50] sm:$0xff]  }
  0x13   : > { %1088 = vmatprep.mubr.bf16.mxu1 %v1153_v5  ;;  %v1158_v14 = vld [vmem:[%s1245_s26 + $0x18] sm:$0xff]   ;;  %v1160_v16 = vld [vmem:[%s1245_s26 + $0x20] sm:$0xff]   ;;  %v1162_v18 = vld [vmem:[%s1245_s26 + $0x28] sm:$0xff]  }
  0x14   : > { %1063 = vmatpush3.bf16.msra.mxu0 %v1147_v3  ;;  %1115 = vmatpush3.bf16.msra.mxu1 %v1147_v3  ;;  %v1159_v15 = vld [vmem:[%s1245_s26 + $0x58] sm:$0xff]   ;;  %v1161_v17 = vld [vmem:[%s1245_s26 + $0x60] sm:$0xff]   ;;  %v1163_v19 = vld [vmem:[%s1245_s26 + $0x68] sm:$0xff]  }
  0x15   : > { %1064 = vmatprep.subr.bf16.mxu0 %v1148_v6  ;;  %1108 = vmatprep.subr.bf16.mxu1 %v1148_v6  ;;  %v1164_v20 = vld [vmem:[%s1245_s26 + $0x30] sm:$0xff]   ;;  %v1166_v22 = vld [vmem:[%s1245_s26 + $0x38] sm:$0xff]  }
  0x16   : > { %v1165_v21 = vld [vmem:[%s1245_s26 + $0x70] sm:$0xff]   ;;  %v1167_v23 = vld [vmem:[%s1245_s26 + $0x78] sm:$0xff]  }
  0x18   : > { %1065 = vmatpush3.bf16.msra.mxu0 %v1148_v6  ;;  %1116 = vmatpush3.bf16.msra.mxu1 %v1148_v6 }
  0x19   : > { %1066 = vmatprep.subr.bf16.mxu0 %v1149_v7  ;;  %1109 = vmatprep.subr.bf16.mxu1 %v1149_v7 }
  0x1c   : > { %1067 = vmatpush3.bf16.msra.mxu0 %v1149_v7  ;;  %1117 = vmatpush3.bf16.msra.mxu1 %v1149_v7 }
  0x1d   : > { %1068 = vmatprep.subr.bf16.mxu0 %v1150_v8  ;;  %1110 = vmatprep.subr.bf16.mxu1 %v1150_v8 }
  0x20   : > { %1069 = vmatpush3.bf16.msra.mxu0 %v1150_v8  ;;  %1118 = vmatpush3.bf16.msra.mxu1 %v1150_v8 }
  0x21   : > { %1070 = vmatprep.subr.bf16.mxu0 %v1151_v9  ;;  %1111 = vmatprep.subr.bf16.mxu1 %v1151_v9 }
  0x24   : > { %1071 = vmatpush3.bf16.msra.mxu0 %v1151_v9  ;;  %1119 = vmatpush3.bf16.msra.mxu1 %v1151_v9 }
  0x27   : > { %1073 = vmatmul.mubr.bf16.vlgmr.msra.gmra.mrb[0].mxu0 %v1154_v10  ;;  %1089 = vmatmul.mubr.bf16.vlgmr.msra.gmra.mrb[0].mxu1 %v1155_v11 }
  0x28   : > { %1076 = vmatprep.mubr.bf16.mxu0 %v1156_v12  ;;  %1092 = vmatprep.mubr.bf16.mxu1 %v1157_v13 }
  0x2f   : > { %1077 = vmatmul.mubr.bf16.gmra.mrb[4].mxu0 %v1158_v14  ;;  %1093 = vmatmul.mubr.bf16.gmra.mrb[4].mxu1 %v1159_v15 }
  0x30   : > { %1080 = vmatprep.mubr.bf16.mxu0 %v1160_v16  ;;  %1096 = vmatprep.mubr.bf16.mxu1 %v1161_v17 }
  0x37   : > { %1081 = vmatmul.mubr.bf16.gmra.mrb[8].mxu0 %v1162_v18  ;;  %1097 = vmatmul.mubr.bf16.gmra.mrb[8].mxu1 %v1163_v19 }
  0x38   : > { %1084 = vmatprep.mubr.bf16.mxu0 %v1164_v20  ;;  %1100 = vmatprep.mubr.bf16.mxu1 %v1165_v21 }
  0x3f   : > { %1085 = vmatmul.mubr.bf16.gmra.mrb[12].mxu0 %v1166_v22  ;;  %1101 = vmatmul.mubr.bf16.gmra.mrb[12].mxu1 %v1167_v23 }
  0xfa   : > { %v1074_v25 = vpop.f32.mrb[0].mxu0  ;;  %v1090_v26 = vpop.f32.mrb[0].mxu1 }
  0xfb   : > { %v789_v27 = vadd.f32 %v1074_v25, %v1281_v24  ;;  %v805_v28 = vadd.f32 %v1090_v26, %v1281_v24  ;;  %v554_v29 = vpop.f32.mrb[1].mxu0  ;;  %v618_v30 = vpop.f32.mrb[1].mxu1 }
  0xfc   : > { %v787_v31 = vadd.f32 %v1281_v24, %v554_v29  ;;  %v803_v32 = vadd.f32 %v1281_v24, %v618_v30  ;;  %v1075_v33 = vpop.f32.mrb[2].mxu0  ;;  %v1091_v34 = vpop.f32.mrb[2].mxu1 }
  0xfd   : > { %v821_v35 = vmax.f32 %v789_v27, 0.0  ;;  %v837_v36 = vmax.f32 %v805_v28, 0.0  ;;  %v790_v37 = vadd.f32 %v1075_v33, %v1281_v24  ;;  %v806_v38 = vadd.f32 %v1091_v34, %v1281_v24  ;;  %v557_v39 = vpop.f32.mrb[3].mxu0  ;;  %v621_v40 = vpop.f32.mrb[3].mxu1 }
  0xfe   : > { %v819_v41 = vmax.f32 %v787_v31, 0.0  ;;  %v835_v42 = vmax.f32 %v803_v32, 0.0  ;;  %v788_v43 = vadd.f32 %v1281_v24, %v557_v39  ;;  %v804_v44 = vadd.f32 %v1281_v24, %v621_v40 }
  0xff   : > { %853 = vst [vmem:[%s1289_s19 + $0x10] sm:$0xff] %v821_v35  ;;  %869 = vst [vmem:[%s1289_s19 + $0x90] sm:$0xff] %v837_v36  ;;  %v822_v45 = vmax.f32 %v790_v37, 0.0  ;;  %v838_v46 = vmax.f32 %v806_v38, 0.0 }
 0x100   : > { %851 = vst [vmem:[%s1289_s19] sm:$0xff] %v819_v41  ;;  %867 = vst [vmem:[%s1289_s19 + $0x80] sm:$0xff] %v835_v42  ;;  %v820_v47 = vmax.f32 %v788_v43, 0.0  ;;  %v836_v48 = vmax.f32 %v804_v44, 0.0 }
 0x101   : > { %854 = vst [vmem:[%s1289_s19 + $0x18] sm:$0xff] %v822_v45  ;;  %870 = vst [vmem:[%s1289_s19 + $0x98] sm:$0xff] %v838_v46 }
 0x102   : > { %852 = vst [vmem:[%s1289_s19 + $0x8] sm:$0xff] %v820_v47  ;;  %868 = vst [vmem:[%s1289_s19 + $0x88] sm:$0xff] %v836_v48  ;;  %v1078_v49 = vpop.f32.mrb[4].mxu0  ;;  %v1094_v50 = vpop.f32.mrb[4].mxu1 }
 0x103   : > { %v793_v51 = vadd.f32 %v1078_v49, %v1281_v24  ;;  %v809_v52 = vadd.f32 %v1094_v50, %v1281_v24  ;;  %v570_v53 = vpop.f32.mrb[5].mxu0  ;;  %v634_v54 = vpop.f32.mrb[5].mxu1 }
 0x104   : > { %v791_v55 = vadd.f32 %v1281_v24, %v570_v53  ;;  %v807_v56 = vadd.f32 %v1281_v24, %v634_v54  ;;  %v1079_v57 = vpop.f32.mrb[6].mxu0  ;;  %v1095_v58 = vpop.f32.mrb[6].mxu1 }
 0x105   : > { %v825_v59 = vmax.f32 %v793_v51, 0.0  ;;  %v841_v60 = vmax.f32 %v809_v52, 0.0  ;;  %v794_v61 = vadd.f32 %v1079_v57, %v1281_v24  ;;  %v810_v62 = vadd.f32 %v1095_v58, %v1281_v24  ;;  %v573_v63 = vpop.f32.mrb[7].mxu0  ;;  %v637_v0 = vpop.f32.mrb[7].mxu1 }
 0x106   : > { %v823_v1 = vmax.f32 %v791_v55, 0.0  ;;  %v839_v2 = vmax.f32 %v807_v56, 0.0  ;;  %v792_v3 = vadd.f32 %v1281_v24, %v573_v63  ;;  %v808_v4 = vadd.f32 %v1281_v24, %v637_v0 }
 0x107   : > { %857 = vst [vmem:[%s1289_s19 + $0x30] sm:$0xff] %v825_v59  ;;  %873 = vst [vmem:[%s1289_s19 + $0xb0] sm:$0xff] %v841_v60  ;;  %v826_v5 = vmax.f32 %v794_v61, 0.0  ;;  %v842_v6 = vmax.f32 %v810_v62, 0.0 }
 0x108   : > { %855 = vst [vmem:[%s1289_s19 + $0x20] sm:$0xff] %v823_v1  ;;  %871 = vst [vmem:[%s1289_s19 + $0xa0] sm:$0xff] %v839_v2  ;;  %v824_v7 = vmax.f32 %v792_v3, 0.0  ;;  %v840_v8 = vmax.f32 %v808_v4, 0.0 }
 0x109   : > { %858 = vst [vmem:[%s1289_s19 + $0x38] sm:$0xff] %v826_v5  ;;  %874 = vst [vmem:[%s1289_s19 + $0xb8] sm:$0xff] %v842_v6 }
 0x10a   : > { %856 = vst [vmem:[%s1289_s19 + $0x28] sm:$0xff] %v824_v7  ;;  %872 = vst [vmem:[%s1289_s19 + $0xa8] sm:$0xff] %v840_v8  ;;  %v1082_v9 = vpop.f32.mrb[8].mxu0  ;;  %v1098_v10 = vpop.f32.mrb[8].mxu1 }
 0x10b   : > { %v797_v11 = vadd.f32 %v1082_v9, %v1281_v24  ;;  %v813_v12 = vadd.f32 %v1098_v10, %v1281_v24  ;;  %v586_v13 = vpop.f32.mrb[9].mxu0  ;;  %v650_v14 = vpop.f32.mrb[9].mxu1 }
 0x10c   : > { %v795_v15 = vadd.f32 %v1281_v24, %v586_v13  ;;  %v811_v16 = vadd.f32 %v1281_v24, %v650_v14  ;;  %v1083_v17 = vpop.f32.mrb[10].mxu0  ;;  %v1099_v18 = vpop.f32.mrb[10].mxu1 }
 0x10d   : > { %v829_v19 = vmax.f32 %v797_v11, 0.0  ;;  %v845_v20 = vmax.f32 %v813_v12, 0.0  ;;  %v798_v21 = vadd.f32 %v1083_v17, %v1281_v24  ;;  %v814_v22 = vadd.f32 %v1099_v18, %v1281_v24  ;;  %v589_v23 = vpop.f32.mrb[11].mxu0  ;;  %v653_v25 = vpop.f32.mrb[11].mxu1 }
 0x10e   : > { %v827_v26 = vmax.f32 %v795_v15, 0.0  ;;  %v843_v27 = vmax.f32 %v811_v16, 0.0  ;;  %v796_v28 = vadd.f32 %v1281_v24, %v589_v23  ;;  %v812_v29 = vadd.f32 %v1281_v24, %v653_v25 }
 0x10f   : > { %861 = vst [vmem:[%s1289_s19 + $0x50] sm:$0xff] %v829_v19  ;;  %877 = vst [vmem:[%s1289_s19 + $0xd0] sm:$0xff] %v845_v20  ;;  %v830_v30 = vmax.f32 %v798_v21, 0.0  ;;  %v846_v31 = vmax.f32 %v814_v22, 0.0 }
 0x110   : > { %859 = vst [vmem:[%s1289_s19 + $0x40] sm:$0xff] %v827_v26  ;;  %875 = vst [vmem:[%s1289_s19 + $0xc0] sm:$0xff] %v843_v27  ;;  %v828_v32 = vmax.f32 %v796_v28, 0.0  ;;  %v844_v33 = vmax.f32 %v812_v29, 0.0 }
 0x111   : > { %862 = vst [vmem:[%s1289_s19 + $0x58] sm:$0xff] %v830_v30  ;;  %878 = vst [vmem:[%s1289_s19 + $0xd8] sm:$0xff] %v846_v31 }
 0x112   : > { %860 = vst [vmem:[%s1289_s19 + $0x48] sm:$0xff] %v828_v32  ;;  %876 = vst [vmem:[%s1289_s19 + $0xc8] sm:$0xff] %v844_v33  ;;  %v1086_v34 = vpop.f32.mrb[12].mxu0  ;;  %v1102_v35 = vpop.f32.mrb[12].mxu1 }
 0x113   : > { %v801_v36 = vadd.f32 %v1086_v34, %v1281_v24  ;;  %v817_v37 = vadd.f32 %v1102_v35, %v1281_v24  ;;  %v602_v38 = vpop.f32.mrb[13].mxu0  ;;  %v666_v39 = vpop.f32.mrb[13].mxu1 }
 0x114   : > { %v799_v40 = vadd.f32 %v1281_v24, %v602_v38  ;;  %v815_v41 = vadd.f32 %v1281_v24, %v666_v39  ;;  %v1087_v42 = vpop.f32.mrb[14].mxu0  ;;  %v1103_v43 = vpop.f32.mrb[14].mxu1 }
 0x115   : > { %v833_v44 = vmax.f32 %v801_v36, 0.0  ;;  %v849_v45 = vmax.f32 %v817_v37, 0.0  ;;  %v802_v46 = vadd.f32 %v1087_v42, %v1281_v24  ;;  %v818_v47 = vadd.f32 %v1103_v43, %v1281_v24  ;;  %v605_v48 = vpop.f32.mrb[15].mxu0  ;;  %v669_v49 = vpop.f32.mrb[15].mxu1 }
 0x116   : > { %v831_v50 = vmax.f32 %v799_v40, 0.0  ;;  %v847_v51 = vmax.f32 %v815_v41, 0.0  ;;  %v800_v52 = vadd.f32 %v1281_v24, %v605_v48  ;;  %v816_v53 = vadd.f32 %v1281_v24, %v669_v49 }
 0x117   : > { %865 = vst [vmem:[%s1289_s19 + $0x70] sm:$0xff] %v833_v44  ;;  %881 = vst [vmem:[%s1289_s19 + $0xf0] sm:$0xff] %v849_v45  ;;  %v834_v54 = vmax.f32 %v802_v46, 0.0  ;;  %v850_v55 = vmax.f32 %v818_v47, 0.0 }
 0x118   : > { %863 = vst [vmem:[%s1289_s19 + $0x60] sm:$0xff] %v831_v50  ;;  %879 = vst [vmem:[%s1289_s19 + $0xe0] sm:$0xff] %v847_v51  ;;  %v832_v56 = vmax.f32 %v800_v52, 0.0  ;;  %v848_v57 = vmax.f32 %v816_v53, 0.0 }
 0x119   : > { %866 = vst [vmem:[%s1289_s19 + $0x78] sm:$0xff] %v834_v54  ;;  %882 = vst [vmem:[%s1289_s19 + $0xf8] sm:$0xff] %v850_v55 }
 0x11a   : > { %864 = vst [vmem:[%s1289_s19 + $0x68] sm:$0xff] %v832_v56  ;;  %880 = vst [vmem:[%s1289_s19 + $0xe8] sm:$0xff] %v848_v57 }
 0x11b PF: > { %s13_s14 = sadd.s32 1, %s1190_s14   ;;  %s1366_s12 = smov %s1186_s13 }
 0x11c   : > { %p10_p5 = scmp.ge.s32.totalorder %s13_s14, 4   ;;  %s1367_s13 = smov %s1369_s15 }
 0x11e   :  { %12 = sbr.rel (!%p10_p5) target bundleno = 2 (0x2), region = 76 }

// kernel: alexnet_forward.9
= control target key start
LH: loop header
LB: loop body
LE: loop exit
PB: predicated region body
PF: predicated region fallthrough
CT: control target
= control target key end

     0   :  { %s1152_s12 = smov 0   ;;  %s1154_s13 = smov 0   ;;  %s1364_s0 = inlined_call_operand.vmem [shape: bf16[104,1664], index: 0, kind: input, shape index: {}]   ;;  %s1365_s1 = inlined_call_operand.vmem [shape: bf16[1664,256], index: 1, kind: input, shape index: {}]   ;;  %s1366_s2 = inlined_call_operand.vmem [shape: f32[1,256], index: 2, kind: input, shape index: {}]   ;;  %s1367_s3 = inlined_call_operand.vmem [shape: f32[104,256], index: 3, kind: output, shape index: {}]  }
   0x1   :  { %s1156_s14 = smov 0   ;;  %s1158_s15 = smov 0  }
   0x2   :  { %s1160_s16 = smov 0  }
   0x3 LB: > { %s25_s17 = sadd.s32 1, %s1124_s15  ;;  %p48_p1 = scmp.ne.s32.totalorder %s1116_s13, %s1112_s12  ;;  %s1128_s16 = sphi %s1160_s16, %s13_s16   ;;  %s1124_s15 = sphi %s1158_s15, %s1371_s15   ;;  %s1120_s14 = sphi %s1156_s14, %s1370_s14   ;;  %s1116_s13 = sphi %s1154_s13, %s1369_s13   ;;  %s1112_s12 = sphi %s1152_s12, %s1368_s12  }
   0x4   : > { %p26_p0 = scmp.ge.s32.totalorder %s25_s17, 13  ;;  %p49_p2 = scmp.eq.s32.totalorder %s1128_s16, 0 }
   0x5   : > { %s41_s19 = sadd.s32 1, %s1116_s13  ;;  %p963_p5 = scmp.ge.s32.totalorder %s1128_s16, 13 }
   0x6   : > { %s1373_s17 = smov (%p26_p0, %s25_s17), 0  ;;  %p50_p3 = por %p49_p2, %p48_p1 }
   0x7   : > { %s37_s18 = ssub.s32 %s1124_s15, %s1373_s17  ;;  %164 = sbr.rel (%p963_p5) target bundleno = 27 (0x1b), region = 20 }
   0x8   : > { %p39_p4 = scmp.eq.s32.totalorder %s37_s18, 0 }
   0xa   : > { %s1187_s20 = scalar_select %p39_p4, %s1116_s13, %s41_s19  }
   0xe   : > { %167 = sbr.rel (!%p50_p3) target bundleno = 27 (0x1b), region = 24  ;;  %s169_s21 = sand.u32 (%p50_p3), 1, %s1116_s13  }
   0xf   : > { %s964_s22 = sshll.u32 (%p50_p3), %s1124_s15, 2  ;;  %s1015_s23 = smul.u32 (%p50_p3), 52, %s169_s21 }
  0x10   : > { %s176_s26 = scalar_lea.vmem (%p50_p3), %s1364_s0, %s964_s22 }
  0x11   : > { %v192_v0 = vld [vmem:[%s176_s26] sm:$0xf] (%p50_p3)  ;;  %v194_v1 = vld [vmem:[%s176_s26 + $0x34] sm:$0xf] (%p50_p3)  ;;  %v196_v2 = vld [vmem:[%s176_s26 + $0x68] sm:$0xf] (%p50_p3) }
  0x12   : > { %v198_v3 = vld [vmem:[%s176_s26 + $0x9c] sm:$0xf] (%p50_p3)  ;;  %v200_v4 = vld [vmem:[%s176_s26 + $0xd0] sm:$0xf] (%p50_p3)  ;;  %s171_s27 = scalar_lea.vmem (%p50_p3), [#allocation3], %s1015_s23 }
  0x13   : > { %193 = vst [vmem:[%s171_s27] sm:$0xf] (%p50_p3), %v192_v0  ;;  %195 = vst [vmem:[%s171_s27 + $0x4] sm:$0xf] (%p50_p3), %v194_v1  ;;  %v202_v5 = vld [vmem:[%s176_s26 + $0x104] sm:$0xf] (%p50_p3) }
  0x14   : > { %197 = vst [vmem:[%s171_s27 + $0x8] sm:$0xf] (%p50_p3), %v196_v2  ;;  %199 = vst [vmem:[%s171_s27 + $0xc] sm:$0xf] (%p50_p3), %v198_v3  ;;  %v204_v6 = vld [vmem:[%s176_s26 + $0x138] sm:$0xf] (%p50_p3) }
  0x15   : > { %201 = vst [vmem:[%s171_s27 + $0x10] sm:$0xf] %v200_v4  ;;  %v206_v7 = vld [vmem:[%s176_s26 + $0x16c] sm:$0xf]  ;;  %203 = vst [vmem:[%s171_s27 + $0x14] sm:$0xf] %v202_v5 }
  0x16   : > { %205 = vst [vmem:[%s171_s27 + $0x18] sm:$0xf] %v204_v6  ;;  %207 = vst [vmem:[%s171_s27 + $0x1c] sm:$0xf] %v206_v7  ;;  %v208_v8 = vld [vmem:[%s176_s26 + $0x1a0] sm:$0xf] }
  0x17   : > { %v210_v9 = vld [vmem:[%s176_s26 + $0x1d4] sm:$0xf]  ;;  %v212_v10 = vld [vmem:[%s176_s26 + $0x208] sm:$0xf]  ;;  %209 = vst [vmem:[%s171_s27 + $0x20] sm:$0xf] %v208_v8 }
  0x18   : > { %211 = vst [vmem:[%s171_s27 + $0x24] sm:$0xf] %v210_v9  ;;  %213 = vst [vmem:[%s171_s27 + $0x28] sm:$0xf] %v212_v10  ;;  %v214_v11 = vld [vmem:[%s176_s26 + $0x23c] sm:$0xf] }
  0x19   : > { %v216_v12 = vld [vmem:[%s176_s26 + $0x270] sm:$0xf]  ;;  %215 = vst [vmem:[%s171_s27 + $0x2c] sm:$0xf] %v214_v11 }
  0x1a   : > { %217 = vst [vmem:[%s171_s27 + $0x30] sm:$0xf] %v216_v12 }
  0x1b PF: > { %p965_p6 = scmp.ge.s32.totalorder %s1128_s16, 1  ;;  %p280_p7 = scmp.lt.s32.totalorder %s1128_s16, 14 }
  0x1d   : > { %p281_p8 = pnand %p965_p6, %p280_p7 }
  0x1e   : > { %s287_s28 = sand.u32 (!%p281_p8), 1, %s1112_s12   ;;  %s966_s29 = sshll.u32 (!%p281_p8), %s1120_s14, 4 }
  0x1f   : > { %284 = sbr.rel (%p281_p8) target bundleno = 341 (0x155), region = 69  ;;  %p332_p9 = scmp.lt.s32.totalorder (!%p281_p8), %s966_s29, 207 }
  0x20   : > { %s1016_s30 = smul.u32 (!%p281_p8), 52, %s287_s28  ;;  %p969_p10 = scmp.ne.s32.totalorder (!%p281_p8), %s1120_s14, 0 }
  0x22   : > { %s1204_s8 = scalar_lea.vmem (!%p281_p8), [#allocation3], %s1016_s30 }
  0x26   : > { %s1375_s29 = smov (!%p332_p9, %s966_s29), 207  ;;  %363 = sbr.rel (%p969_p10) target bundleno = 53 (0x35), region = 77 }
  0x27   : > { %s998_s4 = sshll.u32 %s1375_s29, 3  ;;  %v1130_v13 = vmov (!%p969_p10), 0.0  }
  0x28   : > { %s1202_s7 = scalar_lea.vmem %s1365_s1, %s998_s4  ;;  %364 = vst [vmem:[#allocation2] sm:$0xff] (!%p969_p10), %v1130_v13  ;;  %365 = vst [vmem:[#allocation2 + $0x8] sm:$0xff] (!%p969_p10), %v1130_v13 }
  0x29   : > { %366 = vst [vmem:[#allocation2 + $0x10] sm:$0xff] (!%p969_p10), %v1130_v13  ;;  %367 = vst [vmem:[#allocation2 + $0x18] sm:$0xff] (!%p969_p10), %v1130_v13 }
  0x2a   : > { %368 = vst [vmem:[#allocation2 + $0x20] sm:$0xff] (!%p969_p10), %v1130_v13  ;;  %369 = vst [vmem:[#allocation2 + $0x28] sm:$0xff] (!%p969_p10), %v1130_v13 }
  0x2b   : > { %370 = vst [vmem:[#allocation2 + $0x30] sm:$0xff] (!%p969_p10), %v1130_v13  ;;  %371 = vst [vmem:[#allocation2 + $0x38] sm:$0xff] (!%p969_p10), %v1130_v13 }
  0x2c   : > { %372 = vst [vmem:[#allocation2 + $0x40] sm:$0xff] (!%p969_p10), %v1130_v13  ;;  %373 = vst [vmem:[#allocation2 + $0x48] sm:$0xff] (!%p969_p10), %v1130_v13 }
  0x2d   : > { %374 = vst [vmem:[#allocation2 + $0x50] sm:$0xff] %v1130_v13  ;;  %375 = vst [vmem:[#allocation2 + $0x58] sm:$0xff] %v1130_v13 }
  0x2e   : > { %376 = vst [vmem:[#allocation2 + $0x60] sm:$0xff] %v1130_v13  ;;  %377 = vst [vmem:[#allocation2 + $0x68] sm:$0xff] %v1130_v13 }
  0x2f   : > { %378 = vst [vmem:[#allocation2 + $0x70] sm:$0xff] %v1130_v13  ;;  %379 = vst [vmem:[#allocation2 + $0x78] sm:$0xff] %v1130_v13 }
  0x30   : > { %380 = vst [vmem:[#allocation2 + $0x80] sm:$0xff] %v1130_v13  ;;  %381 = vst [vmem:[#allocation2 + $0x88] sm:$0xff] %v1130_v13 }
  0x31   : > { %382 = vst [vmem:[#allocation2 + $0x90] sm:$0xff] %v1130_v13  ;;  %383 = vst [vmem:[#allocation2 + $0x98] sm:$0xff] %v1130_v13 }
  0x32   : > { %384 = vst [vmem:[#allocation2 + $0xa0] sm:$0xff] %v1130_v13  ;;  %385 = vst [vmem:[#allocation2 + $0xa8] sm:$0xff] %v1130_v13 }
  0x33   : > { %386 = vst [vmem:[#allocation2 + $0xb0] sm:$0xff] %v1130_v13  ;;  %387 = vst [vmem:[#allocation2 + $0xb8] sm:$0xff] %v1130_v13 }
  0x34   : > { %388 = vst [vmem:[#allocation2 + $0xc0] sm:$0xff] %v1130_v13  ;;  %389 = vst [vmem:[#allocation2 + $0xc8] sm:$0xff] %v1130_v13 }
  0x35 PF: > { %v1059_v14 = vld [vmem:[%s1202_s7 + $0x4] ss:$8 sps:$4 sm:$0xff]   ;;  %v1061_v15 = vld [vmem:[%s1202_s7] ss:$8 sps:$4 sm:$0xff]   ;;  %v1131_v16 = vmov 0   ;;  %p993_p11 = scmp.ne.s32.totalorder %s1120_s14, 12 }
  0x36   : > { %597 = vmatprep.mubr.bf16.mxu0 %v1131_v16  ;;  %637 = vmatprep.mubr.bf16.mxu1 %v1131_v16  ;;  %v1062_v17 = vld [vmem:[%s1202_s7 + $0x14] ss:$8 sps:$4 sm:$0xff]   ;;  %v1064_v18 = vld [vmem:[%s1202_s7 + $0x10] ss:$8 sps:$4 sm:$0xff]   ;;  %v1065_v19 = vld [vmem:[%s1202_s7 + $0x24] ss:$8 sps:$4 sm:$0xff]  }
  0x37   : > { %565 = vmatprep.subr.bf16.mxu0 %v1059_v14  ;;  %999 = vmatprep.subr.bf16.mxu1 %v1059_v14  ;;  %v1067_v20 = vld [vmem:[%s1202_s7 + $0x20] ss:$8 sps:$4 sm:$0xff]   ;;  %v1068_v21 = vld [vmem:[%s1202_s7 + $0x34] ss:$8 sps:$4 sm:$0xff]   ;;  %v1070_v22 = vld [vmem:[%s1202_s7 + $0x30] ss:$8 sps:$4 sm:$0xff]  }
  0x38   : > { %566 = vmatpush1.bf16.msra.mxu0 %v1061_v15  ;;  %1007 = vmatpush1.bf16.msra.mxu1 %v1061_v15  ;;  %v1071_v23 = vld [vmem:[%s1202_s7 + $0x44] ss:$8 sps:$4 sm:$0xff]   ;;  %v1073_v24 = vld [vmem:[%s1202_s7 + $0x40] ss:$8 sps:$4 sm:$0xff]   ;;  %v1074_v25 = vld [vmem:[%s1202_s7 + $0x54] ss:$8 sps:$4 sm:$0xff]  }
  0x39   : > { %567 = vmatprep.subr.bf16.mxu0 %v1062_v17  ;;  %1000 = vmatprep.subr.bf16.mxu1 %v1062_v17  ;;  %v1076_v26 = vld [vmem:[%s1202_s7 + $0x50] ss:$8 sps:$4 sm:$0xff]   ;;  %v1077_v27 = vld [vmem:[%s1202_s7 + $0x64] ss:$8 sps:$4 sm:$0xff]   ;;  %v1079_v28 = vld [vmem:[%s1202_s7 + $0x60] ss:$8 sps:$4 sm:$0xff]  }
  0x3a   : > { %v1080_v29 = vld [vmem:[%s1202_s7 + $0x74] ss:$8 sps:$4 sm:$0xff]   ;;  %v1082_v30 = vld [vmem:[%s1202_s7 + $0x70] ss:$8 sps:$4 sm:$0xff]   ;;  %v390_v38 = vld [vmem:[#allocation2] sm:$0xff] }
  0x3b   : > { %v1083_v31 = vld [vmem:[%s1204_s8] sm:$0xff]   ;;  %v1085_v33 = vld [vmem:[%s1204_s8 + $0x8] sm:$0xff]   ;;  %v1087_v35 = vld [vmem:[%s1204_s8 + $0x10] sm:$0xff]  }
  0x3c   : > { %568 = vmatpush1.bf16.msra.mxu0 %v1064_v18  ;;  %1008 = vmatpush1.bf16.msra.mxu1 %v1064_v18  ;;  %v1084_v32 = vld [vmem:[%s1204_s8 + $0x20] sm:$0xff]   ;;  %v1086_v34 = vld [vmem:[%s1204_s8 + $0x28] sm:$0xff]   ;;  %v1088_v36 = vld [vmem:[%s1204_s8 + $0x30] ss:$0 sps:$4 sm:$0xff]  }
  0x3d   : > { %569 = vmatprep.subr.bf16.mxu0 %v1065_v19  ;;  %1001 = vmatprep.subr.bf16.mxu1 %v1065_v19  ;;  %v1089_v37 = vld [vmem:[%s1204_s8 + $0x18] sm:$0xff]   ;;  %v392_v43 = vld [vmem:[#allocation2 + $0x10] sm:$0xff] }
  0x3e   : > { %v406_v39 = vld [vmem:[#allocation2 + $0x80] sm:$0xff]  ;;  %v391_v40 = vld [vmem:[#allocation2 + $0x8] sm:$0xff]  ;;  %v408_v45 = vld [vmem:[#allocation2 + $0x90] sm:$0xff] }
  0x3f   : > { %v407_v41 = vld [vmem:[#allocation2 + $0x88] sm:$0xff]  ;;  %v393_v48 = vld [vmem:[#allocation2 + $0x18] sm:$0xff]  ;;  %v394_v62 = vld [vmem:[#allocation2 + $0x20] sm:$0xff] }
  0x40   : > { %570 = vmatpush1.bf16.msra.mxu0 %v1067_v20  ;;  %1009 = vmatpush1.bf16.msra.mxu1 %v1067_v20  ;;  %v409_v51 = vld [vmem:[#allocation2 + $0x98] sm:$0xff]  ;;  %v410_v63 = vld [vmem:[#allocation2 + $0xa0] sm:$0xff]  ;;  %v395_v0 = vld [vmem:[#allocation2 + $0x28] sm:$0xff] }
  0x41   : > { %571 = vmatprep.subr.bf16.mxu0 %v1068_v21  ;;  %1002 = vmatprep.subr.bf16.mxu1 %v1068_v21  ;;  %v411_v1 = vld [vmem:[#allocation2 + $0xa8] sm:$0xff]  ;;  %v396_v3 = vld [vmem:[#allocation2 + $0x30] sm:$0xff]  ;;  %v397_v8 = vld [vmem:[#allocation2 + $0x38] sm:$0xff] }
  0x42   : > { %v412_v5 = vld [vmem:[#allocation2 + $0xb0] sm:$0xff]  ;;  %v413_v11 = vld [vmem:[#allocation2 + $0xb8] sm:$0xff] }
  0x44   : > { %572 = vmatpush1.bf16.msra.mxu0 %v1070_v22  ;;  %1010 = vmatpush1.bf16.msra.mxu1 %v1070_v22  ;;  %v398_v22 = vld [vmem:[#allocation2 + $0x40] sm:$0xff] }
  0x45   : > { %573 = vmatprep.subr.bf16.mxu0 %v1071_v23  ;;  %1003 = vmatprep.subr.bf16.mxu1 %v1071_v23  ;;  %v414_v23 = vld [vmem:[#allocation2 + $0xc0] sm:$0xff] }
  0x48   : > { %574 = vmatpush1.bf16.msra.mxu0 %v1073_v24  ;;  %1011 = vmatpush1.bf16.msra.mxu1 %v1073_v24  ;;  %v399_v24 = vld [vmem:[#allocation2 + $0x48] sm:$0xff] }
  0x49   : > { %575 = vmatprep.subr.bf16.mxu0 %v1074_v25  ;;  %1004 = vmatprep.subr.bf16.mxu1 %v1074_v25  ;;  %v415_v25 = vld [vmem:[#allocation2 + $0xc8] sm:$0xff] }
  0x4c   : > { %576 = vmatpush1.bf16.msra.mxu0 %v1076_v26  ;;  %1012 = vmatpush1.bf16.msra.mxu1 %v1076_v26 }
  0x4d   : > { %577 = vmatprep.subr.bf16.mxu0 %v1077_v27  ;;  %1005 = vmatprep.subr.bf16.mxu1 %v1077_v27  ;;  %v400_v27 = vld [vmem:[#allocation2 + $0x50] sm:$0xff] }
  0x50   : > { %578 = vmatpush1.bf16.msra.mxu0 %v1079_v28  ;;  %1013 = vmatpush1.bf16.msra.mxu1 %v1079_v28 }
  0x51   : > { %579 = vmatprep.subr.bf16.mxu0 %v1080_v29  ;;  %1006 = vmatprep.subr.bf16.mxu1 %v1080_v29 }
  0x54   : > { %580 = vmatpush1.bf16.msra.mxu0 %v1082_v30  ;;  %1014 = vmatpush1.bf16.msra.mxu1 %v1082_v30 }
  0x57   : > { %598 = vmatmul.mubr.bf16.vlgmr.msra.gmra.mrb[0].mxu0 %v1083_v31  ;;  %638 = vmatmul.mubr.bf16.vlgmr.msra.gmra.mrb[0].mxu1 %v1084_v32  ;;  %v401_v31 = vld [vmem:[#allocation2 + $0x58] sm:$0xff] }
  0x58   : > { %607 = vmatprep.mubr.bf16.mxu0 %v1131_v16  ;;  %647 = vmatprep.mubr.bf16.mxu1 %v1131_v16 }
  0x5f   : > { %608 = vmatmul.mubr.bf16.gmra.mrb[4].mxu0 %v1085_v33  ;;  %648 = vmatmul.mubr.bf16.gmra.mrb[4].mxu1 %v1086_v34 }
  0x60   : > { %617 = vmatprep.mubr.bf16.mxu0 %v1131_v16  ;;  %657 = vmatprep.mubr.bf16.mxu1 %v1131_v16 }
  0x67   : > { %618 = vmatmul.mubr.bf16.gmra.mrb[8].mxu0 %v1087_v35  ;;  %658 = vmatmul.mubr.bf16.gmra.mrb[8].mxu1 %v1088_v36 }
  0x68   : > { %627 = vmatprep.mubr.bf16.mxu0 %v1131_v16 }
  0x6f   : > { %628 = vmatmul.mubr.bf16.gmra.mrb[12].mxu0 %v1089_v37 }
 0x12a   : > { %v599_v42 = vpop.f32.mrb[0].mxu0  ;;  %v639_v44 = vpop.f32.mrb[0].mxu1 }
 0x12b   : > { %v666_v46 = vadd.f32 %v599_v42, %v390_v38  ;;  %v601_v47 = vpop.f32.mrb[1].mxu0  ;;  %v682_v49 = vadd.f32 %v639_v44, %v406_v39  ;;  %v641_v50 = vpop.f32.mrb[1].mxu1  ;;  %v402_v42 = vld [vmem:[#allocation2 + $0x60] sm:$0xff] }
 0x12c   : > { %v667_v52 = vadd.f32 %v601_v47, %v391_v40  ;;  %v603_v53 = vpop.f32.mrb[2].mxu0  ;;  %v683_v54 = vadd.f32 %v641_v50, %v407_v41  ;;  %v643_v55 = vpop.f32.mrb[2].mxu1 }
 0x12d   : > { %692 = vst [vmem:[#allocation2] sm:$0xff] %v666_v46  ;;  %v668_v56 = vadd.f32 %v603_v53, %v392_v43  ;;  %v605_v57 = vpop.f32.mrb[3].mxu0  ;;  %708 = vst [vmem:[#allocation2 + $0x80] sm:$0xff] %v682_v49  ;;  %v684_v58 = vadd.f32 %v643_v55, %v408_v45  ;;  %v645_v59 = vpop.f32.mrb[3].mxu1  ;;  %v403_v43 = vld [vmem:[#allocation2 + $0x68] sm:$0xff]  ;;  %v404_v45 = vld [vmem:[#allocation2 + $0x70] sm:$0xff] }
 0x12e   : > { %693 = vst [vmem:[#allocation2 + $0x8] sm:$0xff] %v667_v52  ;;  %v669_v60 = vadd.f32 %v605_v57, %v393_v48  ;;  %709 = vst [vmem:[#allocation2 + $0x88] sm:$0xff] %v683_v54  ;;  %v685_v61 = vadd.f32 %v645_v59, %v409_v51  ;;  %v405_v48 = vld [vmem:[#allocation2 + $0x78] sm:$0xff]  ;;  %v750_v54 = vlaneseq (!%p993_p11) }
 0x12f   : > { %694 = vst [vmem:[#allocation2 + $0x10] sm:$0xff] %v668_v56  ;;  %710 = vst [vmem:[#allocation2 + $0x90] sm:$0xff] %v684_v58  ;;  %v748_v56 = vld [vmem:[%s1366_s2] sm:$0x3] (!%p993_p11) }
 0x130   : > { %695 = vst [vmem:[#allocation2 + $0x18] sm:$0xff] %v669_v60  ;;  %711 = vst [vmem:[#allocation2 + $0x98] sm:$0xff] %v685_v61  ;;  %v751_v55 = vshrl.u32 (!%p993_p11), %v750_v54, 7 }
 0x132   : > { %v609_v2 = vpop.f32.mrb[4].mxu0  ;;  %v649_v4 = vpop.f32.mrb[4].mxu1  ;;  %v752_v58 = vsub.s32 (!%p993_p11), 0, %v751_v55  ;;  %v756_v60 = vsub.s32 (!%p993_p11), 1, %v751_v55 }
 0x133   : > { %v670_v6 = vadd.f32 %v609_v2, %v394_v62  ;;  %v611_v7 = vpop.f32.mrb[5].mxu0  ;;  %v686_v9 = vadd.f32 %v649_v4, %v410_v63  ;;  %v651_v10 = vpop.f32.mrb[5].mxu1 }
 0x134   : > { %v671_v12 = vadd.f32 %v611_v7, %v395_v0  ;;  %v613_v13 = vpop.f32.mrb[6].mxu0  ;;  %v687_v14 = vadd.f32 %v651_v10, %v411_v1  ;;  %v653_v15 = vpop.f32.mrb[6].mxu1  ;;  %v722_v57 = vld [vmem:[#allocation2] sm:$0xff] (!%p993_p11)  ;;  %v1241_v0 = vrot.slane (!%p993_p11), %v748_v56, %v752_v58  ;;  %v1243_v1 = vrot.slane (!%p993_p11), %v748_v56, %v756_v60 }
 0x135   : > { %696 = vst [vmem:[#allocation2 + $0x20] sm:$0xff] %v670_v6  ;;  %v672_v16 = vadd.f32 %v613_v13, %v396_v3  ;;  %v615_v17 = vpop.f32.mrb[7].mxu0  ;;  %712 = vst [vmem:[#allocation2 + $0xa0] sm:$0xff] %v686_v9  ;;  %v688_v18 = vadd.f32 %v653_v15, %v412_v5  ;;  %v655_v19 = vpop.f32.mrb[7].mxu1  ;;  %v723_v59 = vld [vmem:[#allocation2 + $0x8] sm:$0xff] (!%p993_p11) }
 0x136   : > { %697 = vst [vmem:[#allocation2 + $0x28] sm:$0xff] %v671_v12  ;;  %v673_v20 = vadd.f32 %v615_v17, %v397_v8  ;;  %713 = vst [vmem:[#allocation2 + $0xa8] sm:$0xff] %v687_v14  ;;  %v689_v21 = vadd.f32 %v655_v19, %v413_v11  ;;  %v724_v61 = vld [vmem:[#allocation2 + $0x10] sm:$0xff] (!%p993_p11)  ;;  %v760_v5 = vadd.f32 (!%p993_p11), %v1241_v0, %v722_v57 }
 0x137   : > { %698 = vst [vmem:[#allocation2 + $0x30] sm:$0xff] %v672_v16  ;;  %714 = vst [vmem:[#allocation2 + $0xb0] sm:$0xff] %v688_v18  ;;  %v725_v62 = vld [vmem:[#allocation2 + $0x18] sm:$0xff] (!%p993_p11)  ;;  %v761_v6 = vadd.f32 (!%p993_p11), %v1243_v1, %v723_v59  ;;  %v762_v7 = vadd.f32 (!%p993_p11), %v1241_v0, %v724_v61 }
 0x138   : > { %699 = vst [vmem:[#allocation2 + $0x38] sm:$0xff] %v673_v20  ;;  %715 = vst [vmem:[#allocation2 + $0xb8] sm:$0xff] %v689_v21  ;;  %v763_v8 = vadd.f32 (!%p993_p11), %v1243_v1, %v725_v62  ;;  %v786_v19 = vmax.f32 (!%p993_p11), %v760_v5, 0.0 }
 0x139   : > { %v787_v20 = vmax.f32 (!%p993_p11), %v761_v6, 0.0  ;;  %v788_v21 = vmax.f32 (!%p993_p11), %v762_v7, 0.0 }
 0x13a   : > { %v619_v26 = vpop.f32.mrb[8].mxu0  ;;  %v659_v28 = vpop.f32.mrb[8].mxu1  ;;  %812 = vst [vmem:[%s1367_s3] sm:$0xff] (!%p993_p11), %v786_v19 }
 0x13b   : > { %v674_v29 = vadd.f32 %v619_v26, %v398_v22  ;;  %v621_v30 = vpop.f32.mrb[9].mxu0  ;;  %v690_v32 = vadd.f32 %v659_v28, %v414_v23  ;;  %v661_v33 = vpop.f32.mrb[9].mxu1  ;;  %v789_v22 = vmax.f32 (!%p993_p11), %v763_v8, 0.0  ;;  %813 = vst [vmem:[%s1367_s3 + $0x8] sm:$0xff] (!%p993_p11), %v787_v20  ;;  %814 = vst [vmem:[%s1367_s3 + $0x10] sm:$0xff] (!%p993_p11), %v788_v21 }
 0x13c   : > { %v675_v34 = vadd.f32 %v621_v30, %v399_v24  ;;  %v623_v35 = vpop.f32.mrb[10].mxu0  ;;  %v691_v36 = vadd.f32 %v661_v33, %v415_v25  ;;  %v663_v37 = vpop.f32.mrb[10].mxu1  ;;  %v726_v63 = vld [vmem:[#allocation2 + $0x20] sm:$0xff] (!%p993_p11) }
 0x13d   : > { %700 = vst [vmem:[#allocation2 + $0x40] sm:$0xff] %v674_v29  ;;  %v676_v38 = vadd.f32 %v623_v35, %v400_v27  ;;  %v625_v39 = vpop.f32.mrb[11].mxu0  ;;  %716 = vst [vmem:[#allocation2 + $0xc0] sm:$0xff] %v690_v32  ;;  %v664_v40 = vpop.f32.mrb[11].mxu1  ;;  %v727_v2 = vld [vmem:[#allocation2 + $0x28] sm:$0xff] (!%p993_p11)  ;;  %v764_v12 = vadd.f32 (!%p993_p11), %v1241_v0, %v726_v63  ;;  %v738_v33 = vld [vmem:[#allocation2 + $0x80] sm:$0xff] (!%p993_p11) }
 0x13e   : > { %701 = vst [vmem:[#allocation2 + $0x48] sm:$0xff] %v675_v34  ;;  %v677_v41 = vadd.f32 %v625_v39, %v401_v31  ;;  %717 = vst [vmem:[#allocation2 + $0xc8] sm:$0xff] %v691_v36  ;;  %v728_v3 = vld [vmem:[#allocation2 + $0x30] sm:$0xff] (!%p993_p11)  ;;  %v765_v13 = vadd.f32 (!%p993_p11), %v1243_v1, %v727_v2  ;;  %v739_v34 = vld [vmem:[#allocation2 + $0x88] sm:$0xff] (!%p993_p11) }
 0x13f   : > { %702 = vst [vmem:[#allocation2 + $0x50] sm:$0xff] %v676_v38  ;;  %v729_v4 = vld [vmem:[#allocation2 + $0x38] sm:$0xff] (!%p993_p11)  ;;  %v766_v14 = vadd.f32 (!%p993_p11), %v1241_v0, %v728_v3  ;;  %v790_v25 = vmax.f32 (!%p993_p11), %v764_v12, 0.0  ;;  %815 = vst [vmem:[%s1367_s3 + $0x18] sm:$0xff] (!%p993_p11), %v789_v22  ;;  %v740_v35 = vld [vmem:[#allocation2 + $0x90] sm:$0xff] (!%p993_p11)  ;;  %v777_v54 = vadd.f32 (!%p993_p11), %v1243_v1, %v739_v34 }
 0x140   : > { %703 = vst [vmem:[#allocation2 + $0x58] sm:$0xff] %v677_v41  ;;  %v767_v15 = vadd.f32 (!%p993_p11), %v1243_v1, %v729_v4  ;;  %v791_v26 = vmax.f32 (!%p993_p11), %v765_v13, 0.0  ;;  %v741_v40 = vld [vmem:[#allocation2 + $0x98] sm:$0xff] (!%p993_p11)  ;;  %v742_v41 = vld [vmem:[#allocation2 + $0xa0] sm:$0xff] (!%p993_p11)  ;;  %v778_v55 = vadd.f32 (!%p993_p11), %v1241_v0, %v740_v35 }
 0x141   : > { %v792_v27 = vmax.f32 (!%p993_p11), %v766_v14, 0.0  ;;  %816 = vst [vmem:[%s1367_s3 + $0x20] sm:$0xff] (!%p993_p11), %v790_v25  ;;  %v779_v56 = vadd.f32 (!%p993_p11), %v1243_v1, %v741_v40  ;;  %v780_v57 = vadd.f32 (!%p993_p11), %v1241_v0, %v742_v41  ;;  %v803_v2 = vmax.f32 (!%p993_p11), %v777_v54, 0.0 }
 0x142   : > { %v629_v44 = vpop.f32.mrb[12].mxu0  ;;  %721 = sbr.rel (%p993_p11) target bundleno = 341 (0x155), region = 81  ;;  %v793_v28 = vmax.f32 (!%p993_p11), %v767_v15, 0.0  ;;  %817 = vst [vmem:[%s1367_s3 + $0x28] sm:$0xff] (!%p993_p11), %v791_v26  ;;  %v804_v3 = vmax.f32 (!%p993_p11), %v778_v55, 0.0 }
 0x143   : > { %v678_v46 = vadd.f32 %v629_v44, %v402_v42  ;;  %v631_v47 = vpop.f32.mrb[13].mxu0  ;;  %818 = vst [vmem:[%s1367_s3 + $0x30] sm:$0xff] (!%p993_p11), %v792_v27  ;;  %v743_v42 = vld [vmem:[#allocation2 + $0xa8] sm:$0xff] (!%p993_p11)  ;;  %v805_v4 = vmax.f32 (!%p993_p11), %v779_v56, 0.0  ;;  %v806_v5 = vmax.f32 (!%p993_p11), %v780_v57, 0.0  ;;  %829 = vst [vmem:[%s1367_s3 + $0x88] sm:$0xff] (!%p993_p11), %v803_v2 }
 0x144   : > { %v679_v49 = vadd.f32 %v631_v47, %v403_v43  ;;  %v633_v50 = vpop.f32.mrb[14].mxu0  ;;  %v730_v9 = vld [vmem:[#allocation2 + $0x40] sm:$0xff] (!%p993_p11)  ;;  %819 = vst [vmem:[%s1367_s3 + $0x38] sm:$0xff] (!%p993_p11), %v793_v28  ;;  %v744_v47 = vld [vmem:[#allocation2 + $0xb0] sm:$0xff] (!%p993_p11)  ;;  %v781_v58 = vadd.f32 (!%p993_p11), %v1243_v1, %v743_v42  ;;  %830 = vst [vmem:[%s1367_s3 + $0x90] sm:$0xff] (!%p993_p11), %v804_v3 }
 0x145   : > { %704 = vst [vmem:[#allocation2 + $0x60] sm:$0xff] %v678_v46  ;;  %v680_v51 = vadd.f32 %v633_v50, %v404_v45  ;;  %v635_v52 = vpop.f32.mrb[15].mxu0  ;;  %v731_v10 = vld [vmem:[#allocation2 + $0x48] sm:$0xff] (!%p993_p11)  ;;  %v768_v29 = vadd.f32 (!%p993_p11), %v1241_v0, %v730_v9  ;;  %v782_v59 = vadd.f32 (!%p993_p11), %v1241_v0, %v744_v47  ;;  %v746_v61 = vld [vmem:[#allocation2 + $0xc0] sm:$0xff] (!%p993_p11)  ;;  %831 = vst [vmem:[%s1367_s3 + $0x98] sm:$0xff] (!%p993_p11), %v805_v4 }
 0x146   : > { %705 = vst [vmem:[#allocation2 + $0x68] sm:$0xff] %v679_v49  ;;  %v681_v53 = vadd.f32 %v635_v52, %v405_v48  ;;  %v732_v11 = vld [vmem:[#allocation2 + $0x50] sm:$0xff] (!%p993_p11)  ;;  %v769_v30 = vadd.f32 (!%p993_p11), %v1243_v1, %v731_v10  ;;  %v745_v48 = vld [vmem:[#allocation2 + $0xb8] sm:$0xff] (!%p993_p11)  ;;  %v747_v62 = vld [vmem:[#allocation2 + $0xc8] sm:$0xff] (!%p993_p11)  ;;  %v807_v6 = vmax.f32 (!%p993_p11), %v781_v58, 0.0  ;;  %v784_v9 = vadd.f32 (!%p993_p11), %v1241_v0, %v746_v61 }
 0x147   : > { %706 = vst [vmem:[#allocation2 + $0x70] sm:$0xff] %v680_v51  ;;  %v733_v16 = vld [vmem:[#allocation2 + $0x58] sm:$0xff] (!%p993_p11)  ;;  %v770_v31 = vadd.f32 (!%p993_p11), %v1241_v0, %v732_v11  ;;  %v794_v43 = vmax.f32 (!%p993_p11), %v768_v29, 0.0  ;;  %v783_v60 = vadd.f32 (!%p993_p11), %v1243_v1, %v745_v48  ;;  %v808_v7 = vmax.f32 (!%p993_p11), %v782_v59, 0.0  ;;  %832 = vst [vmem:[%s1367_s3 + $0xa0] sm:$0xff] (!%p993_p11), %v806_v5 }
 0x148   : > { %707 = vst [vmem:[#allocation2 + $0x78] sm:$0xff] %v681_v53  ;;  %v771_v32 = vadd.f32 (!%p993_p11), %v1243_v1, %v733_v16  ;;  %v795_v44 = vmax.f32 (!%p993_p11), %v769_v30, 0.0  ;;  %v776_v53 = vadd.f32 (!%p993_p11), %v1241_v0, %v738_v33  ;;  %v785_v10 = vadd.f32 (!%p993_p11), %v1243_v1, %v747_v62  ;;  %833 = vst [vmem:[%s1367_s3 + $0xa8] sm:$0xff] (!%p993_p11), %v807_v6 }
 0x149   : > { %v796_v45 = vmax.f32 %v770_v31, 0.0  ;;  %820 = vst [vmem:[%s1367_s3 + $0x40] sm:$0xff] %v794_v43  ;;  %v809_v8 = vmax.f32 %v783_v60, 0.0  ;;  %834 = vst [vmem:[%s1367_s3 + $0xb0] sm:$0xff] %v808_v7  ;;  %v810_v11 = vmax.f32 %v784_v9, 0.0 }
 0x14a   : > { %v797_v46 = vmax.f32 %v771_v32, 0.0  ;;  %821 = vst [vmem:[%s1367_s3 + $0x48] sm:$0xff] %v795_v44  ;;  %v802_v63 = vmax.f32 %v776_v53, 0.0 }
 0x14b   : > { %822 = vst [vmem:[%s1367_s3 + $0x50] sm:$0xff] %v796_v45  ;;  %835 = vst [vmem:[%s1367_s3 + $0xb8] sm:$0xff] %v809_v8 }
 0x14c   : > { %v734_v17 = vld [vmem:[#allocation2 + $0x60] sm:$0xff]  ;;  %823 = vst [vmem:[%s1367_s3 + $0x58] sm:$0xff] %v797_v46  ;;  %828 = vst [vmem:[%s1367_s3 + $0x80] sm:$0xff] %v802_v63 }
 0x14d   : > { %v735_v18 = vld [vmem:[#allocation2 + $0x68] sm:$0xff]  ;;  %v772_v36 = vadd.f32 %v1241_v0, %v734_v17  ;;  %836 = vst [vmem:[%s1367_s3 + $0xc0] sm:$0xff] %v810_v11 }
 0x14e   : > { %v736_v23 = vld [vmem:[#allocation2 + $0x70] sm:$0xff]  ;;  %v773_v37 = vadd.f32 %v1243_v1, %v735_v18 }
 0x14f   : > { %v737_v24 = vld [vmem:[#allocation2 + $0x78] sm:$0xff]  ;;  %v774_v38 = vadd.f32 %v1241_v0, %v736_v23  ;;  %v798_v49 = vmax.f32 %v772_v36, 0.0  ;;  %v811_v0 = vmax.f32 %v785_v10, 0.0 }
 0x150   : > { %v775_v39 = vadd.f32 %v1243_v1, %v737_v24  ;;  %v799_v50 = vmax.f32 %v773_v37, 0.0 }
 0x151   : > { %v800_v51 = vmax.f32 %v774_v38, 0.0  ;;  %824 = vst [vmem:[%s1367_s3 + $0x60] sm:$0xff] %v798_v49  ;;  %837 = vst [vmem:[%s1367_s3 + $0xc8] sm:$0xff] %v811_v0 }
 0x152   : > { %v801_v52 = vmax.f32 %v775_v39, 0.0  ;;  %825 = vst [vmem:[%s1367_s3 + $0x68] sm:$0xff] %v799_v50 }
 0x153   : > { %826 = vst [vmem:[%s1367_s3 + $0x70] sm:$0xff] %v800_v51 }
 0x154   : > { %827 = vst [vmem:[%s1367_s3 + $0x78] sm:$0xff] %v801_v52 }
 0x155 PF: > { %s13_s16 = sadd.s32 1, %s1128_s16   ;;  %s1368_s12 = smov %s1116_s13 }
 0x156   : > { %p10_p12 = scmp.ge.s32.totalorder %s13_s16, 15   ;;  %s1369_s13 = smov %s1187_s20 }
 0x157   : > { %s1370_s14 = smov %s1124_s15  ;;  %s1371_s15 = smov %s1373_s17 }
 0x158   :  { %12 = sbr.rel (!%p10_p12) target bundleno = 3 (0x3), region = 122 }

// kernel: alexnet_forward.10
= control target key start
LH: loop header
LB: loop body
LE: loop exit
PB: predicated region body
PF: predicated region fallthrough
CT: control target
= control target key end

     0   :  { %s1244_s12 = smov 0   ;;  %s1246_s13 = smov 0   ;;  %s1396_s0 = inlined_call_operand.vmem [shape: bf16[24,1792], index: 0, kind: input, shape index: {}]   ;;  %s1397_s1 = inlined_call_operand.vmem [shape: bf16[1792,384], index: 1, kind: input, shape index: {}]   ;;  %s1398_s2 = inlined_call_operand.vmem [shape: f32[1,384], index: 2, kind: input, shape index: {}]   ;;  %s1399_s3 = inlined_call_operand.vmem [shape: f32[24,384], index: 3, kind: output, shape index: {}]  }
   0x1   :  { %s1248_s14 = smov 0   ;;  %s1250_s15 = smov 0  }
   0x2   :  { %s1252_s16 = smov 0  }
   0x3 LB: > { %s25_s17 = sadd.s32 1, %s1217_s15  ;;  %p48_p1 = scmp.ne.s32.totalorder %s1209_s13, %s1205_s12  ;;  %s1221_s16 = sphi %s1252_s16, %s13_s16   ;;  %s1217_s15 = sphi %s1250_s15, %s1403_s15   ;;  %s1213_s14 = sphi %s1248_s14, %s1402_s14   ;;  %s1209_s13 = sphi %s1246_s13, %s1401_s13   ;;  %s1205_s12 = sphi %s1244_s12, %s1400_s12  }
   0x4   : > { %p26_p0 = scmp.ge.s32.totalorder %s25_s17, 7  ;;  %p49_p2 = scmp.eq.s32.totalorder %s1221_s16, 0 }
   0x5   : > { %s41_s19 = sadd.s32 1, %s1209_s13  ;;  %p977_p5 = scmp.ge.s32.totalorder %s1221_s16, 7 }
   0x6   : > { %s1405_s17 = smov (%p26_p0, %s25_s17), 0  ;;  %p50_p3 = por %p49_p2, %p48_p1 }
   0x7   : > { %s37_s18 = ssub.s32 %s1217_s15, %s1405_s17  ;;  %164 = sbr.rel (%p977_p5) target bundleno = 21 (0x15), region = 20 }
   0x8   : > { %p39_p4 = scmp.eq.s32.totalorder %s37_s18, 0 }
   0xa   : > { %s1279_s20 = scalar_select %p39_p4, %s1209_s13, %s41_s19  }
   0xe   : > { %167 = sbr.rel (!%p50_p3) target bundleno = 21 (0x15), region = 24  ;;  %s169_s21 = sand.u32 (%p50_p3), 1, %s1209_s13  }
   0xf   : > { %s1041_s22 = sshll.u32 (%p50_p3), %s1217_s15, 3  ;;  %s1070_s23 = smul.u32 (%p50_p3), 24, %s169_s21 }
  0x10   : > { %s177_s26 = scalar_lea.vmem (%p50_p3), %s1396_s0, %s1041_s22 }
  0x11   : > { %v209_v0 = vld [vmem:[%s177_s26] sm:$0xff] (%p50_p3)  ;;  %v211_v1 = vld [vmem:[%s177_s26 + $0x38] sm:$0xff] (%p50_p3)  ;;  %v213_v2 = vld [vmem:[%s177_s26 + $0x70] sm:$0xff] (%p50_p3)  ;;  %s171_s27 = scalar_lea.vmem (%p50_p3), [#allocation3], %s1070_s23 }
  0x12   : > { %210 = vst [vmem:[%s171_s27] sm:$0xff] (%p50_p3), %v209_v0  ;;  %212 = vst [vmem:[%s171_s27 + $0x8] sm:$0xff] (%p50_p3), %v211_v1 }
  0x13   : > { %214 = vst [vmem:[%s171_s27 + $0x10] sm:$0xff] (%p50_p3), %v213_v2 }
  0x15 PF: > { %p980_p6 = scmp.ge.s32.totalorder %s1221_s16, 1  ;;  %p234_p7 = scmp.lt.s32.totalorder %s1221_s16, 8 }
  0x17   : > { %p235_p8 = pnand %p980_p6, %p234_p7 }
  0x18   : > { %s241_s28 = sand.u32 (!%p235_p8), 1, %s1205_s12   ;;  %s981_s29 = sshll.u32 (!%p235_p8), %s1213_s14, 5 }
  0x19   : > { %238 = sbr.rel (%p235_p8) target bundleno = 340 (0x154), region = 66  ;;  %p287_p9 = scmp.lt.s32.totalorder (!%p235_p8), %s981_s29, 223 }
  0x1a   : > { %s1071_s30 = smul.u32 (!%p235_p8), 24, %s241_s28  ;;  %p983_p10 = scmp.ne.s32.totalorder (!%p235_p8), %s1213_s14, 0 }
  0x1c   : > { %s1296_s8 = scalar_lea.vmem (!%p235_p8), [#allocation3], %s1071_s30 }
  0x20   : > { %s1407_s29 = smov (!%p287_p9, %s981_s29), 223  ;;  %318 = sbr.rel (%p983_p10) target bundleno = 39 (0x27), region = 74 }
  0x21   : > { %s1072_s4 = smul.u32 12, %s1407_s29  ;;  %v1223_v3 = vmov (!%p983_p10), 0.0  }
  0x22   : > { %319 = vst [vmem:[#allocation2] sm:$0xff] (!%p983_p10), %v1223_v3  ;;  %320 = vst [vmem:[#allocation2 + $0x8] sm:$0xff] (!%p983_p10), %v1223_v3 }
  0x23   : > { %s1294_s7 = scalar_lea.vmem %s1397_s1, %s1072_s4  ;;  %321 = vst [vmem:[#allocation2 + $0x10] sm:$0xff] (!%p983_p10), %v1223_v3  ;;  %322 = vst [vmem:[#allocation2 + $0x18] sm:$0xff] (!%p983_p10), %v1223_v3 }
  0x24   : > { %323 = vst [vmem:[#allocation2 + $0x20] sm:$0xff] (!%p983_p10), %v1223_v3  ;;  %324 = vst [vmem:[#allocation2 + $0x28] sm:$0xff] (!%p983_p10), %v1223_v3 }
  0x25   : > { %325 = vst [vmem:[#allocation2 + $0x30] sm:$0xff] (!%p983_p10), %v1223_v3  ;;  %326 = vst [vmem:[#allocation2 + $0x38] sm:$0xff] (!%p983_p10), %v1223_v3 }
  0x26   : > { %327 = vst [vmem:[#allocation2 + $0x40] sm:$0xff] (!%p983_p10), %v1223_v3 }
  0x27 PF: > { %v1114_v4 = vld [vmem:[%s1294_s7 + $0x4] ss:$12 sps:$4 sm:$0xff]   ;;  %v1116_v5 = vld [vmem:[%s1294_s7] ss:$12 sps:$4 sm:$0xff]   ;;  %v1117_v6 = vld [vmem:[%s1294_s7 + $0x1c] ss:$12 sps:$4 sm:$0xff]  }
  0x28   : > { %677 = vmatprep.subr.bf16.mxu0 %v1114_v4  ;;  %v1119_v7 = vld [vmem:[%s1294_s7 + $0x18] ss:$12 sps:$4 sm:$0xff]   ;;  %v1120_v8 = vld [vmem:[%s1294_s7 + $0x34] ss:$12 sps:$4 sm:$0xff]   ;;  %v1122_v9 = vld [vmem:[%s1294_s7 + $0x30] ss:$12 sps:$4 sm:$0xff]  }
  0x29   : > { %678 = vmatpush1.bf16.msra.mxu0 %v1116_v5  ;;  %v1123_v10 = vld [vmem:[%s1294_s7 + $0x4c] ss:$12 sps:$4 sm:$0xff]   ;;  %v1135_v11 = vld [vmem:[%s1294_s7 + $0xc8] ss:$12 sps:$4 sm:$0xff]   ;;  %v1126_v13 = vld [vmem:[%s1294_s7 + $0x64] ss:$12 sps:$4 sm:$0xff]  }
  0x2a   : > { %679 = vmatprep.subr.bf16.mxu0 %v1117_v6  ;;  %v1125_v12 = vld [vmem:[%s1294_s7 + $0x48] ss:$12 sps:$4 sm:$0xff]   ;;  %1042 = vmatprep.subr.bf16.mxu1 %v1135_v11  ;;  %v1140_v15 = vld [vmem:[%s1294_s7 + $0xe0] ss:$12 sps:$4 sm:$0xff]   ;;  %v1145_v19 = vld [vmem:[%s1294_s7 + $0xf8] ss:$12 sps:$4 sm:$0xff]  }
  0x2b   : > { %v1138_v14 = vld [vmem:[%s1294_s7 + $0x8] ss:$12 sps:$4 sm:$0xff]   ;;  %v1128_v16 = vld [vmem:[%s1294_s7 + $0x60] ss:$12 sps:$4 sm:$0xff]   ;;  %v1131_v20 = vld [vmem:[%s1294_s7 + $0x78] ss:$12 sps:$4 sm:$0xff]  }
  0x2c   : > { %1043 = vmatpush3.bf16.msra.mxu1 %v1138_v14  ;;  %v1129_v17 = vld [vmem:[%s1294_s7 + $0x7c] ss:$12 sps:$4 sm:$0xff]   ;;  %v1143_v18 = vld [vmem:[%s1294_s7 + $0x20] ss:$12 sps:$4 sm:$0xff]   ;;  %v1148_v21 = vld [vmem:[%s1294_s7 + $0x38] ss:$12 sps:$4 sm:$0xff]  }
  0x2d   : > { %680 = vmatpush1.bf16.msra.mxu0 %v1119_v7  ;;  %1044 = vmatprep.subr.bf16.mxu1 %v1140_v15  ;;  %v1132_v22 = vld [vmem:[%s1294_s7 + $0x94] ss:$12 sps:$4 sm:$0xff]   ;;  %v1150_v23 = vld [vmem:[%s1294_s7 + $0x110] ss:$12 sps:$4 sm:$0xff]   ;;  %v1136_v27 = vld [vmem:[%s1294_s7 + $0xac] ss:$12 sps:$4 sm:$0xff]  }
  0x2e   : > { %681 = vmatprep.subr.bf16.mxu0 %v1120_v8  ;;  %v1134_v24 = vld [vmem:[%s1294_s7 + $0x90] ss:$12 sps:$4 sm:$0xff]   ;;  %v1155_v26 = vld [vmem:[%s1294_s7 + $0x128] ss:$12 sps:$4 sm:$0xff]   ;;  %v1160_v30 = vld [vmem:[%s1294_s7 + $0x140] ss:$12 sps:$4 sm:$0xff]  }
  0x2f   : > { %v1153_v25 = vld [vmem:[%s1294_s7 + $0x50] ss:$12 sps:$4 sm:$0xff]   ;;  %v1139_v28 = vld [vmem:[%s1294_s7 + $0xa8] ss:$12 sps:$4 sm:$0xff]   ;;  %v1144_v32 = vld [vmem:[%s1294_s7 + $0xc0] ss:$12 sps:$4 sm:$0xff]  }
  0x30   : > { %1045 = vmatpush3.bf16.msra.mxu1 %v1143_v18  ;;  %v1158_v29 = vld [vmem:[%s1294_s7 + $0x68] ss:$12 sps:$4 sm:$0xff]   ;;  %v1141_v31 = vld [vmem:[%s1294_s7 + $0xc4] ss:$12 sps:$4 sm:$0xff]   ;;  %v1163_v33 = vld [vmem:[%s1294_s7 + $0x80] ss:$12 sps:$4 sm:$0xff]  }
  0x31   : > { %682 = vmatpush1.bf16.msra.mxu0 %v1122_v9  ;;  %1046 = vmatprep.subr.bf16.mxu1 %v1145_v19  ;;  %v1165_v34 = vld [vmem:[%s1294_s7 + $0x158] ss:$12 sps:$4 sm:$0xff]   ;;  %v1146_v35 = vld [vmem:[%s1294_s7 + $0xdc] ss:$12 sps:$4 sm:$0xff]   ;;  %v1151_v39 = vld [vmem:[%s1294_s7 + $0xf4] ss:$12 sps:$4 sm:$0xff]  }
  0x32   : > { %683 = vmatprep.subr.bf16.mxu0 %v1123_v10  ;;  %v1168_v36 = vld [vmem:[%s1294_s7 + $0x98] ss:$12 sps:$4 sm:$0xff]   ;;  %v1170_v38 = vld [vmem:[%s1294_s7 + $0x170] ss:$12 sps:$4 sm:$0xff]   ;;  %v1159_v47 = vld [vmem:[%s1294_s7 + $0x108] ss:$12 sps:$4 sm:$0xff]  }
  0x33   : > { %v1149_v37 = vld [vmem:[%s1294_s7 + $0xd8] ss:$12 sps:$4 sm:$0xff]   ;;  %v1173_v41 = vld [vmem:[%s1294_s7 + $0xb0] ss:$12 sps:$4 sm:$0xff]   ;;  %v1164_v49 = vld [vmem:[%s1294_s7 + $0x120] ss:$12 sps:$4 sm:$0xff]  }
  0x34   : > { %1047 = vmatpush3.bf16.msra.mxu1 %v1148_v21  ;;  %v1177_v40 = vld [vmem:[%s1296_s8 + $0x4] ss:$8 sps:$4 sm:$0xff]   ;;  %v1154_v42 = vld [vmem:[%s1294_s7 + $0xf0] ss:$12 sps:$4 sm:$0xff]   ;;  %p1036_p11 = scmp.ne.s32.totalorder %s1213_s14, 6 }
  0x35   : > { %684 = vmatpush1.bf16.msra.mxu0 %v1125_v12  ;;  %1048 = vmatprep.subr.bf16.mxu1 %v1150_v23  ;;  %v339_v43 = vld [vmem:[%s1296_s8 + $0x10] sm:$0xff]  ;;  %v1175_v45 = vld [vmem:[%s1296_s8] ss:$8 sps:$4 sm:$0xff]  }
  0x36   : > { %685 = vmatprep.subr.bf16.mxu0 %v1126_v13  ;;  %v1156_v44 = vld [vmem:[%s1294_s7 + $0x10c] ss:$12 sps:$4 sm:$0xff]   ;;  %760 = vmatprep.mubr.bf16.mxu1 %v1177_v40  ;;  %v987_v46 = vcombine.high %v339_v43, %v339_v43  ;;  %v1161_v48 = vld [vmem:[%s1294_s7 + $0x124] ss:$12 sps:$4 sm:$0xff]   ;;  %v1166_v50 = vld [vmem:[%s1294_s7 + $0x13c] ss:$12 sps:$4 sm:$0xff]   ;;  %v986_v51 = vcombine.low %v339_v43, %v339_v43 }
  0x37   : > { %709 = vmatprep.mubr.bf16.mxu0 %v1177_v40  ;;  %v1169_v52 = vld [vmem:[%s1294_s7 + $0x138] ss:$12 sps:$4 sm:$0xff]   ;;  %v1171_v53 = vld [vmem:[%s1294_s7 + $0x154] ss:$12 sps:$4 sm:$0xff]   ;;  %v1174_v54 = vld [vmem:[%s1294_s7 + $0x150] ss:$12 sps:$4 sm:$0xff]  }
  0x38   : > { %1049 = vmatpush3.bf16.msra.mxu1 %v1153_v25  ;;  %v1178_v55 = vld [vmem:[%s1294_s7 + $0x16c] ss:$12 sps:$4 sm:$0xff]   ;;  %v1180_v56 = vld [vmem:[%s1294_s7 + $0x168] ss:$12 sps:$4 sm:$0xff]   ;;  %v336_v4 = vld [vmem:[#allocation2 + $0x40] sm:$0xff] }
  0x39   : > { %686 = vmatpush1.bf16.msra.mxu0 %v1128_v16  ;;  %1050 = vmatprep.subr.bf16.mxu1 %v1155_v26  ;;  %v330_v58 = vld [vmem:[#allocation2 + $0x10] sm:$0xff]  ;;  %v333_v62 = vld [vmem:[#allocation2 + $0x28] sm:$0xff]  ;;  %v328_v10 = vld [vmem:[#allocation2] sm:$0xff] }
  0x3a   : > { %687 = vmatprep.subr.bf16.mxu0 %v1129_v17  ;;  %v329_v11 = vld [vmem:[#allocation2 + $0x8] sm:$0xff]  ;;  %v331_v13 = vld [vmem:[#allocation2 + $0x18] sm:$0xff]  ;;  %v332_v16 = vld [vmem:[#allocation2 + $0x20] sm:$0xff] }
  0x3b   : > { %v335_v23 = vld [vmem:[#allocation2 + $0x38] sm:$0xff] }
  0x3c   : > { %1051 = vmatpush3.bf16.msra.mxu1 %v1158_v29 }
  0x3d   : > { %688 = vmatpush1.bf16.msra.mxu0 %v1131_v20  ;;  %1052 = vmatprep.subr.bf16.mxu1 %v1160_v30  ;;  %v809_v30 = vlaneseq (!%p1036_p11) }
  0x3e   : > { %689 = vmatprep.subr.bf16.mxu0 %v1132_v22  ;;  %v334_v22 = vld [vmem:[#allocation2 + $0x30] sm:$0xff] }
  0x40   : > { %1053 = vmatpush3.bf16.msra.mxu1 %v1163_v33 }
  0x41   : > { %690 = vmatpush1.bf16.msra.mxu0 %v1134_v24  ;;  %1054 = vmatprep.subr.bf16.mxu1 %v1165_v34 }
  0x42   : > { %691 = vmatprep.subr.bf16.mxu0 %v1136_v27 }
  0x44   : > { %1055 = vmatpush3.bf16.msra.mxu1 %v1168_v36 }
  0x45   : > { %692 = vmatpush1.bf16.msra.mxu0 %v1139_v28  ;;  %1056 = vmatprep.subr.bf16.mxu1 %v1170_v38 }
  0x46   : > { %693 = vmatprep.subr.bf16.mxu0 %v1141_v31  ;;  %v810_v31 = vshrl.u32 (!%p1036_p11), %v809_v30, 7 }
  0x48   : > { %1057 = vmatpush3.bf16.msra.mxu1 %v1173_v41  ;;  %v811_v34 = vsub.s32 (!%p1036_p11), 0, %v810_v31  ;;  %v815_v36 = vsub.s32 (!%p1036_p11), 1, %v810_v31 }
  0x49   : > { %694 = vmatpush1.bf16.msra.mxu0 %v1144_v32  ;;  %v807_v32 = vld [vmem:[%s1398_s2] sm:$0x7] (!%p1036_p11) }
  0x4a   : > { %695 = vmatprep.subr.bf16.mxu0 %v1146_v35  ;;  %v812_v41 = vrot.slane (!%p1036_p11), %v807_v32, %v811_v34 }
  0x4b   : > { %761 = vmatmul.mubr.bf16.vlgmr.msra.gmra.mrb[0].mxu1 %v1175_v45 }
  0x4c   : > { %768 = vmatprep.mubr.bf16.mxu1 %v987_v46 }
  0x4d   : > { %696 = vmatpush1.bf16.msra.mxu0 %v1149_v37  ;;  %v819_v37 = vsub.s32 (!%p1036_p11), 2, %v810_v31 }
  0x4e   : > { %697 = vmatprep.subr.bf16.mxu0 %v1151_v39 }
  0x4f   : > { %v820_v43 = vrot.slane (!%p1036_p11), %v807_v32, %v819_v37 }
  0x51   : > { %698 = vmatpush1.bf16.msra.mxu0 %v1154_v42  ;;  %v816_v42 = vrot.slane (!%p1036_p11), %v807_v32, %v815_v36 }
  0x52   : > { %699 = vmatprep.subr.bf16.mxu0 %v1156_v44 }
  0x53   : > { %769 = vmatmul.mubr.bf16.gmra.mrb[4].mxu1 %v986_v51 }
  0x55   : > { %700 = vmatpush1.bf16.msra.mxu0 %v1159_v47 }
  0x56   : > { %701 = vmatprep.subr.bf16.mxu0 %v1161_v48 }
  0x59   : > { %702 = vmatpush1.bf16.msra.mxu0 %v1164_v49 }
  0x5a   : > { %703 = vmatprep.subr.bf16.mxu0 %v1166_v50 }
  0x5d   : > { %704 = vmatpush1.bf16.msra.mxu0 %v1169_v52 }
  0x5e   : > { %705 = vmatprep.subr.bf16.mxu0 %v1171_v53 }
  0x61   : > { %706 = vmatpush1.bf16.msra.mxu0 %v1174_v54 }
  0x62   : > { %707 = vmatprep.subr.bf16.mxu0 %v1178_v55 }
  0x65   : > { %708 = vmatpush1.bf16.msra.mxu0 %v1180_v56 }
  0x68   : > { %710 = vmatmul.mubr.bf16.vlgmr.msra.gmra.mrb[0].mxu0 %v1175_v45 }
  0x69   : > { %719 = vmatprep.mubr.bf16.mxu0 %v987_v46 }
  0x70   : > { %720 = vmatmul.mubr.bf16.gmra.mrb[4].mxu0 %v986_v51 }
 0x11e   : > { %v1058_v57 = vpop.f32.mrb[0].mxu1 }
 0x11f   : > { %v1059_v59 = vpop.f32.mrb[1].mxu1 }
 0x120   : > { %v1060_v60 = vadd.f32 %v1059_v59, %v1058_v57  ;;  %v1061_v61 = vpop.f32.mrb[2].mxu1 }
 0x121   : > { %v1062_v63 = vpop.f32.mrb[3].mxu1 }
 0x122   : > { %v778_v0 = vadd.f32 %v1060_v60, %v330_v58  ;;  %v1063_v1 = vadd.f32 %v1062_v63, %v1061_v61 }
 0x124   : > { %787 = vst [vmem:[#allocation2 + $0x10] sm:$0xff] %v778_v0  ;;  %v781_v2 = vadd.f32 %v1063_v1, %v333_v62 }
 0x126   : > { %790 = vst [vmem:[#allocation2 + $0x28] sm:$0xff] %v781_v2  ;;  %v1064_v3 = vpop.f32.mrb[4].mxu1 }
 0x127   : > { %v1065_v5 = vpop.f32.mrb[5].mxu1 }
 0x128   : > { %v1066_v6 = vadd.f32 %v1065_v5, %v1064_v3  ;;  %v1067_v7 = vpop.f32.mrb[6].mxu1 }
 0x129   : > { %v1068_v8 = vpop.f32.mrb[7].mxu1 }
 0x12a   : > { %v784_v9 = vadd.f32 %v1066_v6, %v336_v4 }
 0x12b   : > { %v800_v38 = vld [vmem:[#allocation2 + $0x10] sm:$0xff] (!%p1036_p11) }
 0x12c   : > { %793 = vst [vmem:[#allocation2 + $0x40] sm:$0xff] %v784_v9  ;;  %v826_v49 = vadd.f32 (!%p1036_p11), %v820_v43, %v800_v38 }
 0x12d   : > { %v803_v44 = vld [vmem:[#allocation2 + $0x28] sm:$0xff] (!%p1036_p11) }
 0x12e   : > { %v829_v52 = vadd.f32 (!%p1036_p11), %v820_v43, %v803_v44  ;;  %v835_v58 = vmax.f32 (!%p1036_p11), %v826_v49, 0.0 }
 0x130   : > { %v838_v61 = vmax.f32 (!%p1036_p11), %v829_v52, 0.0  ;;  %844 = vst [vmem:[%s1399_s3 + $0x10] sm:$0xff] (!%p1036_p11), %v835_v58 }
 0x132   : > { %847 = vst [vmem:[%s1399_s3 + $0x28] sm:$0xff] (!%p1036_p11), %v838_v61 }
 0x133   : > { %v806_v55 = vld [vmem:[#allocation2 + $0x40] sm:$0xff] (!%p1036_p11) }
 0x134   : > { %v832_v0 = vadd.f32 (!%p1036_p11), %v820_v43, %v806_v55 }
 0x136   : > { %v841_v1 = vmax.f32 (!%p1036_p11), %v832_v0, 0.0 }
 0x138   : > { %850 = vst [vmem:[%s1399_s3 + $0x40] sm:$0xff] (!%p1036_p11), %v841_v1 }
 0x13b   : > { %v711_v12 = vpop.f32.mrb[0].mxu0 }
 0x13c   : > { %v776_v14 = vadd.f32 %v711_v12, %v328_v10  ;;  %v713_v15 = vpop.f32.mrb[1].mxu0 }
 0x13d   : > { %v777_v17 = vadd.f32 %v713_v15, %v329_v11  ;;  %v715_v18 = vpop.f32.mrb[2].mxu0 }
 0x13e   : > { %785 = vst [vmem:[#allocation2] sm:$0xff] %v776_v14  ;;  %v779_v19 = vadd.f32 %v715_v18, %v331_v13  ;;  %v717_v20 = vpop.f32.mrb[3].mxu0 }
 0x13f   : > { %786 = vst [vmem:[#allocation2 + $0x8] sm:$0xff] %v777_v17  ;;  %v780_v21 = vadd.f32 %v717_v20, %v332_v16 }
 0x140   : > { %788 = vst [vmem:[#allocation2 + $0x18] sm:$0xff] %v779_v19 }
 0x141   : > { %789 = vst [vmem:[#allocation2 + $0x20] sm:$0xff] %v780_v21  ;;  %797 = sbr.rel (%p1036_p11) target bundleno = 340 (0x154), region = 78 }
 0x143   : > { %v721_v24 = vpop.f32.mrb[4].mxu0 }
 0x144   : > { %v782_v25 = vadd.f32 %v721_v24, %v334_v22  ;;  %v723_v26 = vpop.f32.mrb[5].mxu0 }
 0x145   : > { %v783_v27 = vadd.f32 %v723_v26, %v335_v23  ;;  %v725_v28 = vpop.f32.mrb[6].mxu0  ;;  %v798_v33 = vld [vmem:[#allocation2] sm:$0xff] (!%p1036_p11) }
 0x146   : > { %791 = vst [vmem:[#allocation2 + $0x30] sm:$0xff] %v782_v25  ;;  %v726_v29 = vpop.f32.mrb[7].mxu0  ;;  %v799_v35 = vld [vmem:[#allocation2 + $0x8] sm:$0xff] (!%p1036_p11)  ;;  %v824_v47 = vadd.f32 (!%p1036_p11), %v812_v41, %v798_v33 }
 0x147   : > { %792 = vst [vmem:[#allocation2 + $0x38] sm:$0xff] %v783_v27  ;;  %v801_v39 = vld [vmem:[#allocation2 + $0x18] sm:$0xff] (!%p1036_p11)  ;;  %v825_v48 = vadd.f32 (!%p1036_p11), %v816_v42, %v799_v35 }
 0x148   : > { %v802_v40 = vld [vmem:[#allocation2 + $0x20] sm:$0xff]  ;;  %v827_v50 = vadd.f32 %v812_v41, %v801_v39  ;;  %v833_v56 = vmax.f32 %v824_v47, 0.0 }
 0x149   : > { %v828_v51 = vadd.f32 %v816_v42, %v802_v40  ;;  %v834_v57 = vmax.f32 %v825_v48, 0.0 }
 0x14a   : > { %v836_v59 = vmax.f32 %v827_v50, 0.0  ;;  %842 = vst [vmem:[%s1399_s3] sm:$0xff] %v833_v56 }
 0x14b   : > { %v837_v60 = vmax.f32 %v828_v51, 0.0  ;;  %843 = vst [vmem:[%s1399_s3 + $0x8] sm:$0xff] %v834_v57 }
 0x14c   : > { %845 = vst [vmem:[%s1399_s3 + $0x18] sm:$0xff] %v836_v59 }
 0x14d   : > { %v804_v45 = vld [vmem:[#allocation2 + $0x30] sm:$0xff]  ;;  %846 = vst [vmem:[%s1399_s3 + $0x20] sm:$0xff] %v837_v60 }
 0x14e   : > { %v805_v46 = vld [vmem:[#allocation2 + $0x38] sm:$0xff]  ;;  %v830_v53 = vadd.f32 %v812_v41, %v804_v45 }
 0x14f   : > { %v831_v54 = vadd.f32 %v816_v42, %v805_v46 }
 0x150   : > { %v839_v62 = vmax.f32 %v830_v53, 0.0 }
 0x151   : > { %v840_v63 = vmax.f32 %v831_v54, 0.0 }
 0x152   : > { %848 = vst [vmem:[%s1399_s3 + $0x30] sm:$0xff] %v839_v62 }
 0x153   : > { %849 = vst [vmem:[%s1399_s3 + $0x38] sm:$0xff] %v840_v63 }
 0x154 PF: > { %s13_s16 = sadd.s32 1, %s1221_s16   ;;  %s1400_s12 = smov %s1209_s13 }
 0x155   : > { %p10_p12 = scmp.ge.s32.totalorder %s13_s16, 9   ;;  %s1401_s13 = smov %s1279_s20 }
 0x156   : > { %s1402_s14 = smov %s1217_s15  ;;  %s1403_s15 = smov %s1405_s17 }
 0x157   :  { %12 = sbr.rel (!%p10_p12) target bundleno = 3 (0x3), region = 119 }

// kernel: alexnet_forward.11
= control target key start
LH: loop header
LB: loop body
LE: loop exit
PB: predicated region body
PF: predicated region fallthrough
CT: control target
= control target key end

     0   :  { %s1194_s12 = smov 0   ;;  %s1196_s13 = smov 0   ;;  %s1341_s0 = inlined_call_operand.vmem [shape: bf16[24,3456], index: 0, kind: input, shape index: {}]   ;;  %s1342_s1 = inlined_call_operand.vmem [shape: bf16[3456,256], index: 1, kind: input, shape index: {}]   ;;  %s1343_s2 = inlined_call_operand.vmem [shape: f32[1,256], index: 2, kind: input, shape index: {}]   ;;  %s1344_s3 = inlined_call_operand.vmem [shape: f32[24,256], index: 3, kind: output, shape index: {}]  }
   0x1   :  { %s1198_s14 = smov 0   ;;  %s1200_s15 = smov 0  }
   0x2   :  { %s1202_s16 = smov 0  }
   0x3 LB: > { %s25_s17 = sadd.s32 1, %s1166_s15  ;;  %p48_p1 = scmp.ne.s32.totalorder %s1158_s13, %s1154_s12  ;;  %s1170_s16 = sphi %s1202_s16, %s13_s16   ;;  %s1166_s15 = sphi %s1200_s15, %s1348_s15   ;;  %s1162_s14 = sphi %s1198_s14, %s1347_s14   ;;  %s1158_s13 = sphi %s1196_s13, %s1346_s13   ;;  %s1154_s12 = sphi %s1194_s12, %s1345_s12  }
   0x4   : > { %p26_p0 = scmp.ge.s32.totalorder %s25_s17, 9  ;;  %p49_p2 = scmp.eq.s32.totalorder %s1170_s16, 0 }
   0x5   : > { %s41_s19 = sadd.s32 1, %s1158_s13  ;;  %p932_p5 = scmp.ge.s32.totalorder %s1170_s16, 9 }
   0x6   : > { %s1350_s17 = smov (%p26_p0, %s25_s17), 0  ;;  %p50_p3 = por %p49_p2, %p48_p1 }
   0x7   : > { %s37_s18 = ssub.s32 %s1166_s15, %s1350_s17  ;;  %164 = sbr.rel (%p932_p5) target bundleno = 22 (0x16), region = 20 }
   0x8   : > { %p39_p4 = scmp.eq.s32.totalorder %s37_s18, 0 }
   0xa   : > { %s1229_s20 = scalar_select %p39_p4, %s1158_s13, %s41_s19  }
   0xe   : > { %167 = sbr.rel (!%p50_p3) target bundleno = 22 (0x16), region = 24  ;;  %s169_s21 = sand.u32 (%p50_p3), 1, %s1158_s13  }
   0xf   : > { %s1003_s22 = smul.u32 (%p50_p3), 12, %s1166_s15 }
  0x10   : > { %s1009_s23 = smul.u32 (%p50_p3), 36, %s169_s21 }
  0x11   : > { %s177_s26 = scalar_lea.vmem (%p50_p3), %s1341_s0, %s1003_s22 }
  0x12   : > { %v192_v0 = vld [vmem:[%s177_s26] sm:$0xff] (%p50_p3)  ;;  %v194_v1 = vld [vmem:[%s177_s26 + $0x6c] sm:$0xff] (%p50_p3)  ;;  %v196_v2 = vld [vmem:[%s177_s26 + $0xd8] sm:$0xff] (%p50_p3)  ;;  %s171_s27 = scalar_lea.vmem (%p50_p3), [#allocation3], %s1009_s23 }
  0x13   : > { %193 = vst [vmem:[%s171_s27] sm:$0xff] (%p50_p3), %v192_v0  ;;  %195 = vst [vmem:[%s171_s27 + $0xc] sm:$0xff] (%p50_p3), %v194_v1  ;;  %v934_v3 = vld [vmem:[%s177_s26 + $0x8] sm:$0xf] (%p50_p3)  ;;  %v936_v4 = vld [vmem:[%s177_s26 + $0x74] sm:$0xf] (%p50_p3) }
  0x14   : > { %197 = vst [vmem:[%s171_s27 + $0x18] sm:$0xff] (%p50_p3), %v196_v2  ;;  %v938_v5 = vld [vmem:[%s177_s26 + $0xe0] sm:$0xf] (%p50_p3)  ;;  %935 = vst [vmem:[%s171_s27 + $0x8] sm:$0xf] (%p50_p3), %v934_v3 }
  0x15   : > { %937 = vst [vmem:[%s171_s27 + $0x14] sm:$0xf] %v936_v4  ;;  %939 = vst [vmem:[%s171_s27 + $0x20] sm:$0xf] %v938_v5 }
  0x16 PF: > { %p940_p6 = scmp.ge.s32.totalorder %s1170_s16, 1  ;;  %p230_p7 = scmp.lt.s32.totalorder %s1170_s16, 10 }
  0x18   : > { %p231_p8 = pnand %p940_p6, %p230_p7 }
  0x19   : > { %s237_s28 = sand.u32 (!%p231_p8), 1, %s1154_s12   ;;  %s281_s29 = smul.u32 (!%p231_p8), 48, %s1162_s14 }
  0x1a   : > { %234 = sbr.rel (%p231_p8) target bundleno = 343 (0x157), region = 54  ;;  %p943_p10 = scmp.ne.s32.totalorder (!%p231_p8), %s1162_s14, 0 }
  0x1b   : > { %s1010_s30 = smul.u32 (!%p231_p8), 36, %s237_s28  ;;  %p283_p9 = scmp.lt.s32.totalorder (!%p231_p8), %s281_s29, 431 }
  0x1d   : > { %s1246_s8 = scalar_lea.vmem (!%p231_p8), [#allocation3], %s1010_s30 }
  0x21   : > { %s1352_s29 = smov (!%p283_p9, %s281_s29), 431  ;;  %314 = sbr.rel (%p943_p10) target bundleno = 40 (0x28), region = 62 }
  0x22   : > { %s1004_s4 = sshll.u32 %s1352_s29, 3  ;;  %v1172_v6 = vmov (!%p943_p10), 0.0  }
  0x23   : > { %s1244_s7 = scalar_lea.vmem %s1342_s1, %s1004_s4  ;;  %315 = vst [vmem:[#allocation2] sm:$0xff] (!%p943_p10), %v1172_v6  ;;  %316 = vst [vmem:[#allocation2 + $0x8] sm:$0xff] (!%p943_p10), %v1172_v6 }
  0x24   : > { %317 = vst [vmem:[#allocation2 + $0x10] sm:$0xff] (!%p943_p10), %v1172_v6  ;;  %318 = vst [vmem:[#allocation2 + $0x18] sm:$0xff] (!%p943_p10), %v1172_v6 }
  0x25   : > { %319 = vst [vmem:[#allocation2 + $0x20] sm:$0xff] (!%p943_p10), %v1172_v6  ;;  %320 = vst [vmem:[#allocation2 + $0x28] sm:$0xff] (!%p943_p10), %v1172_v6 }
  0x28 PF: > { %v1053_v7 = vld [vmem:[%s1244_s7 + $0x4] ss:$8 sps:$4 sm:$0xff]   ;;  %v1055_v8 = vld [vmem:[%s1244_s7] ss:$8 sps:$4 sm:$0xff]   ;;  %v1173_v9 = vmov 0   ;;  %p998_p11 = scmp.ne.s32.totalorder %s1162_s14, 8 }
  0x29   : > { %731 = vmatprep.mubr.bf16.mxu0 %v1173_v9  ;;  %648 = vmatprep.subr.bf16.mxu1 %v1053_v7  ;;  %v1056_v10 = vld [vmem:[%s1244_s7 + $0x14] ss:$8 sps:$4 sm:$0xff]   ;;  %v1058_v11 = vld [vmem:[%s1244_s7 + $0x10] ss:$8 sps:$4 sm:$0xff]   ;;  %v1059_v12 = vld [vmem:[%s1244_s7 + $0x24] ss:$8 sps:$4 sm:$0xff]  }
  0x2a   : > { %649 = vmatpush1.bf16.msra.mxu1 %v1055_v8  ;;  %v1061_v13 = vld [vmem:[%s1244_s7 + $0x20] ss:$8 sps:$4 sm:$0xff]   ;;  %v1062_v14 = vld [vmem:[%s1244_s7 + $0x34] ss:$8 sps:$4 sm:$0xff]   ;;  %v1064_v15 = vld [vmem:[%s1244_s7 + $0x30] ss:$8 sps:$4 sm:$0xff]  }
  0x2b   : > { %650 = vmatprep.subr.bf16.mxu1 %v1056_v10  ;;  %v1077_v16 = vld [vmem:[%s1244_s7 + $0x104] ss:$8 sps:$4 sm:$0xff]   ;;  %v1079_v17 = vld [vmem:[%s1244_s7 + $0x100] ss:$8 sps:$4 sm:$0xff]   ;;  %v1083_v19 = vld [vmem:[%s1244_s7 + $0x114] ss:$8 sps:$4 sm:$0xff]  }
  0x2c   : > { %v1065_v18 = vld [vmem:[%s1244_s7 + $0x44] ss:$8 sps:$4 sm:$0xff]   ;;  %699 = vmatprep.subr.bf16.mxu0 %v1077_v16  ;;  %v1085_v20 = vld [vmem:[%s1244_s7 + $0x110] ss:$8 sps:$4 sm:$0xff]   ;;  %v1067_v21 = vld [vmem:[%s1244_s7 + $0x40] ss:$8 sps:$4 sm:$0xff]  }
  0x2d   : > { %700 = vmatpush1.bf16.msra.mxu0 %v1079_v17  ;;  %v1068_v22 = vld [vmem:[%s1244_s7 + $0x54] ss:$8 sps:$4 sm:$0xff]   ;;  %v1089_v23 = vld [vmem:[%s1244_s7 + $0x124] ss:$8 sps:$4 sm:$0xff]   ;;  %v1091_v24 = vld [vmem:[%s1244_s7 + $0x120] ss:$8 sps:$4 sm:$0xff]  }
  0x2e   : > { %651 = vmatpush1.bf16.msra.mxu1 %v1058_v11  ;;  %701 = vmatprep.subr.bf16.mxu0 %v1083_v19  ;;  %v1070_v25 = vld [vmem:[%s1244_s7 + $0x50] ss:$8 sps:$4 sm:$0xff]   ;;  %v1095_v26 = vld [vmem:[%s1244_s7 + $0x134] ss:$8 sps:$4 sm:$0xff]   ;;  %v1071_v27 = vld [vmem:[%s1244_s7 + $0x64] ss:$8 sps:$4 sm:$0xff]  }
  0x2f   : > { %652 = vmatprep.subr.bf16.mxu1 %v1059_v12  ;;  %v1097_v28 = vld [vmem:[%s1244_s7 + $0x130] ss:$8 sps:$4 sm:$0xff]   ;;  %v1073_v29 = vld [vmem:[%s1244_s7 + $0x60] ss:$8 sps:$4 sm:$0xff]   ;;  %v1101_v30 = vld [vmem:[%s1244_s7 + $0x144] ss:$8 sps:$4 sm:$0xff]  }
  0x30   : > { %v1074_v31 = vld [vmem:[%s1244_s7 + $0x74] ss:$8 sps:$4 sm:$0xff]   ;;  %v1103_v32 = vld [vmem:[%s1244_s7 + $0x140] ss:$8 sps:$4 sm:$0xff]   ;;  %v1076_v33 = vld [vmem:[%s1244_s7 + $0x70] ss:$8 sps:$4 sm:$0xff]  }
  0x31   : > { %702 = vmatpush1.bf16.msra.mxu0 %v1085_v20  ;;  %v1107_v34 = vld [vmem:[%s1244_s7 + $0x154] ss:$8 sps:$4 sm:$0xff]   ;;  %v1080_v35 = vld [vmem:[%s1244_s7 + $0x84] ss:$8 sps:$4 sm:$0xff]   ;;  %v1109_v36 = vld [vmem:[%s1244_s7 + $0x150] ss:$8 sps:$4 sm:$0xff]  }
  0x32   : > { %653 = vmatpush1.bf16.msra.mxu1 %v1061_v13  ;;  %703 = vmatprep.subr.bf16.mxu0 %v1089_v23  ;;  %v1082_v37 = vld [vmem:[%s1244_s7 + $0x80] ss:$8 sps:$4 sm:$0xff]   ;;  %v1113_v38 = vld [vmem:[%s1244_s7 + $0x164] ss:$8 sps:$4 sm:$0xff]   ;;  %v1086_v39 = vld [vmem:[%s1244_s7 + $0x94] ss:$8 sps:$4 sm:$0xff]  }
  0x33   : > { %654 = vmatprep.subr.bf16.mxu1 %v1062_v14  ;;  %v1115_v40 = vld [vmem:[%s1244_s7 + $0x160] ss:$8 sps:$4 sm:$0xff]   ;;  %v1088_v42 = vld [vmem:[%s1244_s7 + $0x90] ss:$8 sps:$4 sm:$0xff]   ;;  %v1119_v43 = vld [vmem:[%s1244_s7 + $0x174] ss:$8 sps:$4 sm:$0xff]  }
  0x34   : > { %v1128_v41 = vld [vmem:[%s1246_s8 + $0x4] ss:$12 sps:$4 sm:$0xff]   ;;  %v1125_v48 = vld [vmem:[%s1246_s8 + $0x8] ss:$12 sps:$4 sm:$0xff]   ;;  %v1129_v53 = vld [vmem:[%s1246_s8 + $0x20] ss:$0 sps:$4 sm:$0xff]  }
  0x35   : > { %704 = vmatpush1.bf16.msra.mxu0 %v1091_v24  ;;  %v1092_v44 = vld [vmem:[%s1244_s7 + $0xa4] ss:$8 sps:$4 sm:$0xff]   ;;  %680 = vmatprep.mubr.bf16.mxu1 %v1128_v41  ;;  %v1121_v45 = vld [vmem:[%s1244_s7 + $0x170] ss:$8 sps:$4 sm:$0xff]   ;;  %v1094_v46 = vld [vmem:[%s1244_s7 + $0xa0] ss:$8 sps:$4 sm:$0xff]  }
  0x36   : > { %655 = vmatpush1.bf16.msra.mxu1 %v1064_v15  ;;  %705 = vmatprep.subr.bf16.mxu0 %v1095_v26  ;;  %v1098_v47 = vld [vmem:[%s1244_s7 + $0xb4] ss:$8 sps:$4 sm:$0xff]   ;;  %v1100_v49 = vld [vmem:[%s1244_s7 + $0xb0] ss:$8 sps:$4 sm:$0xff]   ;;  %v1104_v50 = vld [vmem:[%s1244_s7 + $0xc4] ss:$8 sps:$4 sm:$0xff]  }
  0x37   : > { %656 = vmatprep.subr.bf16.mxu1 %v1065_v18  ;;  %v1106_v51 = vld [vmem:[%s1244_s7 + $0xc0] ss:$8 sps:$4 sm:$0xff]   ;;  %v1110_v52 = vld [vmem:[%s1244_s7 + $0xd4] ss:$8 sps:$4 sm:$0xff]   ;;  %v1112_v54 = vld [vmem:[%s1244_s7 + $0xd0] ss:$8 sps:$4 sm:$0xff]  }
  0x38   : > { %v1116_v55 = vld [vmem:[%s1244_s7 + $0xe4] ss:$8 sps:$4 sm:$0xff]   ;;  %v1118_v56 = vld [vmem:[%s1244_s7 + $0xe0] ss:$8 sps:$4 sm:$0xff]   ;;  %v1122_v57 = vld [vmem:[%s1244_s7 + $0xf4] ss:$8 sps:$4 sm:$0xff]  }
  0x39   : > { %706 = vmatpush1.bf16.msra.mxu0 %v1097_v28  ;;  %v1124_v58 = vld [vmem:[%s1244_s7 + $0xf0] ss:$8 sps:$4 sm:$0xff]   ;;  %v321_v7 = vld [vmem:[#allocation2] sm:$0xff]  ;;  %v322_v10 = vld [vmem:[#allocation2 + $0x8] sm:$0xff] }
  0x3a   : > { %657 = vmatpush1.bf16.msra.mxu1 %v1067_v21  ;;  %707 = vmatprep.subr.bf16.mxu0 %v1101_v30  ;;  %v331_v59 = vld [vmem:[%s1246_s8 + $0x18] sm:$0xff]  ;;  %v1126_v60 = vld [vmem:[%s1246_s8] ss:$12 sps:$4 sm:$0xff]  }
  0x3b   : > { %658 = vmatprep.subr.bf16.mxu1 %v1068_v22  ;;  %v948_v61 = vcombine.high %v331_v59, %v331_v59  ;;  %v947_v62 = vcombine.low %v331_v59, %v331_v59  ;;  %v323_v13 = vld [vmem:[#allocation2 + $0x10] sm:$0xff]  ;;  %v324_v17 = vld [vmem:[#allocation2 + $0x18] sm:$0xff]  ;;  %v325_v23 = vld [vmem:[#allocation2 + $0x20] sm:$0xff] }
  0x3c   : > { %v326_v26 = vld [vmem:[#allocation2 + $0x28] sm:$0xff] }
  0x3d   : > { %708 = vmatpush1.bf16.msra.mxu0 %v1103_v32 }
  0x3e   : > { %659 = vmatpush1.bf16.msra.mxu1 %v1070_v25  ;;  %709 = vmatprep.subr.bf16.mxu0 %v1107_v34 }
  0x3f   : > { %660 = vmatprep.subr.bf16.mxu1 %v1071_v27 }
  0x41   : > { %710 = vmatpush1.bf16.msra.mxu0 %v1109_v36 }
  0x42   : > { %661 = vmatpush1.bf16.msra.mxu1 %v1073_v29  ;;  %711 = vmatprep.subr.bf16.mxu0 %v1113_v38 }
  0x43   : > { %662 = vmatprep.subr.bf16.mxu1 %v1074_v31 }
  0x45   : > { %712 = vmatpush1.bf16.msra.mxu0 %v1115_v40 }
  0x46   : > { %663 = vmatpush1.bf16.msra.mxu1 %v1076_v33  ;;  %713 = vmatprep.subr.bf16.mxu0 %v1119_v43  ;;  %v774_v33 = vlaneseq (!%p998_p11) }
  0x47   : > { %664 = vmatprep.subr.bf16.mxu1 %v1080_v35  ;;  %v772_v35 = vld [vmem:[%s1343_s2] sm:$0x3] (!%p998_p11) }
  0x48   : > { %v775_v34 = vshrl.u32 (!%p998_p11), %v774_v33, 7 }
  0x49   : > { %714 = vmatpush1.bf16.msra.mxu0 %v1121_v45 }
  0x4a   : > { %665 = vmatpush1.bf16.msra.mxu1 %v1082_v37  ;;  %v776_v37 = vsub.s32 (!%p998_p11), 0, %v775_v34  ;;  %v780_v38 = vsub.s32 (!%p998_p11), 1, %v775_v34 }
  0x4b   : > { %666 = vmatprep.subr.bf16.mxu1 %v1086_v39 }
  0x4c   : > { %732 = vmatmul.mubr.bf16.vlgmr.msra.gmra.mrb[0].mxu0 %v1125_v48  ;;  %v781_v43 = vrot.slane (!%p998_p11), %v772_v35, %v780_v38 }
  0x4d   : > { %741 = vmatprep.mubr.bf16.mxu0 %v1173_v9 }
  0x4e   : > { %667 = vmatpush1.bf16.msra.mxu1 %v1088_v42  ;;  %v777_v42 = vrot.slane (!%p998_p11), %v772_v35, %v776_v37 }
  0x4f   : > { %668 = vmatprep.subr.bf16.mxu1 %v1092_v44 }
  0x52   : > { %669 = vmatpush1.bf16.msra.mxu1 %v1094_v46 }
  0x53   : > { %670 = vmatprep.subr.bf16.mxu1 %v1098_v47 }
  0x54   : > { %742 = vmatmul.mubr.bf16.gmra.mrb[4].mxu0 %v1129_v53 }
  0x56   : > { %671 = vmatpush1.bf16.msra.mxu1 %v1100_v49 }
  0x57   : > { %672 = vmatprep.subr.bf16.mxu1 %v1104_v50 }
  0x5a   : > { %673 = vmatpush1.bf16.msra.mxu1 %v1106_v51 }
  0x5b   : > { %674 = vmatprep.subr.bf16.mxu1 %v1110_v52 }
  0x5e   : > { %675 = vmatpush1.bf16.msra.mxu1 %v1112_v54 }
  0x5f   : > { %676 = vmatprep.subr.bf16.mxu1 %v1116_v55 }
  0x62   : > { %677 = vmatpush1.bf16.msra.mxu1 %v1118_v56 }
  0x63   : > { %678 = vmatprep.subr.bf16.mxu1 %v1122_v57 }
  0x66   : > { %679 = vmatpush1.bf16.msra.mxu1 %v1124_v58 }
  0x69   : > { %681 = vmatmul.mubr.bf16.vlgmr.msra.gmra.mrb[0].mxu1 %v1126_v60 }
  0x6a   : > { %690 = vmatprep.mubr.bf16.mxu1 %v948_v61 }
  0x71   : > { %691 = vmatmul.mubr.bf16.gmra.mrb[4].mxu1 %v947_v62 }
 0x11f   : > { %v733_v63 = vpop.f32.mrb[0].mxu0 }
 0x120   : > { %v735_v0 = vpop.f32.mrb[1].mxu0 }
 0x121   : > { %v737_v1 = vpop.f32.mrb[2].mxu0 }
 0x122   : > { %v739_v2 = vpop.f32.mrb[3].mxu0 }
 0x127   : > { %v743_v3 = vpop.f32.mrb[4].mxu0 }
 0x128   : > { %v745_v4 = vpop.f32.mrb[5].mxu0 }
 0x129   : > { %v747_v5 = vpop.f32.mrb[6].mxu0 }
 0x12a   : > { %v748_v6 = vpop.f32.mrb[7].mxu0 }
 0x13c   : > { %v682_v8 = vpop.f32.mrb[0].mxu1 }
 0x13d   : > { %v734_v9 = vadd.f32 %v733_v63, %v682_v8  ;;  %v684_v11 = vpop.f32.mrb[1].mxu1 }
 0x13e   : > { %v736_v12 = vadd.f32 %v735_v0, %v684_v11  ;;  %v686_v14 = vpop.f32.mrb[2].mxu1 }
 0x13f   : > { %v750_v15 = vadd.f32 %v734_v9, %v321_v7  ;;  %v738_v16 = vadd.f32 %v737_v1, %v686_v14  ;;  %v688_v18 = vpop.f32.mrb[3].mxu1 }
 0x140   : > { %v751_v19 = vadd.f32 %v736_v12, %v322_v10  ;;  %v740_v20 = vadd.f32 %v739_v2, %v688_v18 }
 0x141   : > { %756 = vst [vmem:[#allocation2] sm:$0xff] %v750_v15  ;;  %v752_v21 = vadd.f32 %v738_v16, %v323_v13 }
 0x142   : > { %757 = vst [vmem:[#allocation2 + $0x8] sm:$0xff] %v751_v19  ;;  %v753_v22 = vadd.f32 %v740_v20, %v324_v17 }
 0x143   : > { %758 = vst [vmem:[#allocation2 + $0x10] sm:$0xff] %v752_v21 }
 0x144   : > { %759 = vst [vmem:[#allocation2 + $0x18] sm:$0xff] %v753_v22  ;;  %v692_v24 = vpop.f32.mrb[4].mxu1  ;;  %765 = sbr.rel (%p998_p11) target bundleno = 343 (0x157), region = 66 }
 0x145   : > { %v744_v25 = vadd.f32 %v743_v3, %v692_v24  ;;  %v694_v27 = vpop.f32.mrb[5].mxu1 }
 0x146   : > { %v746_v28 = vadd.f32 %v745_v4, %v694_v27  ;;  %v696_v29 = vpop.f32.mrb[6].mxu1 }
 0x147   : > { %v754_v30 = vadd.f32 %v744_v25, %v325_v23  ;;  %v697_v31 = vpop.f32.mrb[7].mxu1 }
 0x148   : > { %v755_v32 = vadd.f32 %v746_v28, %v326_v26  ;;  %v766_v36 = vld [vmem:[#allocation2] sm:$0xff] (!%p998_p11) }
 0x149   : > { %760 = vst [vmem:[#allocation2 + $0x20] sm:$0xff] %v754_v30  ;;  %v767_v39 = vld [vmem:[#allocation2 + $0x8] sm:$0xff] (!%p998_p11)  ;;  %v784_v46 = vadd.f32 (!%p998_p11), %v777_v42, %v766_v36 }
 0x14a   : > { %761 = vst [vmem:[#allocation2 + $0x28] sm:$0xff] %v755_v32  ;;  %v768_v40 = vld [vmem:[#allocation2 + $0x10] sm:$0xff] (!%p998_p11)  ;;  %v785_v47 = vadd.f32 (!%p998_p11), %v781_v43, %v767_v39 }
 0x14b   : > { %v769_v41 = vld [vmem:[#allocation2 + $0x18] sm:$0xff]  ;;  %v786_v48 = vadd.f32 %v777_v42, %v768_v40  ;;  %v790_v52 = vmax.f32 %v784_v46, 0.0 }
 0x14c   : > { %v787_v49 = vadd.f32 %v781_v43, %v769_v41  ;;  %v791_v53 = vmax.f32 %v785_v47, 0.0 }
 0x14d   : > { %v792_v54 = vmax.f32 %v786_v48, 0.0  ;;  %796 = vst [vmem:[%s1344_s3] sm:$0xff] %v790_v52 }
 0x14e   : > { %v793_v55 = vmax.f32 %v787_v49, 0.0  ;;  %797 = vst [vmem:[%s1344_s3 + $0x8] sm:$0xff] %v791_v53 }
 0x14f   : > { %798 = vst [vmem:[%s1344_s3 + $0x10] sm:$0xff] %v792_v54 }
 0x150   : > { %v770_v44 = vld [vmem:[#allocation2 + $0x20] sm:$0xff]  ;;  %799 = vst [vmem:[%s1344_s3 + $0x18] sm:$0xff] %v793_v55 }
 0x151   : > { %v771_v45 = vld [vmem:[#allocation2 + $0x28] sm:$0xff]  ;;  %v788_v50 = vadd.f32 %v777_v42, %v770_v44 }
 0x152   : > { %v789_v51 = vadd.f32 %v781_v43, %v771_v45 }
 0x153   : > { %v794_v56 = vmax.f32 %v788_v50, 0.0 }
 0x154   : > { %v795_v57 = vmax.f32 %v789_v51, 0.0 }
 0x155   : > { %800 = vst [vmem:[%s1344_s3 + $0x20] sm:$0xff] %v794_v56 }
 0x156   : > { %801 = vst [vmem:[%s1344_s3 + $0x28] sm:$0xff] %v795_v57 }
 0x157 PF: > { %s13_s16 = sadd.s32 1, %s1170_s16   ;;  %s1345_s12 = smov %s1158_s13 }
 0x158   : > { %p10_p12 = scmp.ge.s32.totalorder %s13_s16, 11   ;;  %s1346_s13 = smov %s1229_s20 }
 0x159   : > { %s1347_s14 = smov %s1166_s15  ;;  %s1348_s15 = smov %s1350_s17 }
 0x15a   :  { %12 = sbr.rel (!%p10_p12) target bundleno = 3 (0x3), region = 113 }

// kernel: alexnet_forward.12
= control target key start
LH: loop header
LB: loop body
LE: loop exit
PB: predicated region body
PF: predicated region fallthrough
CT: control target
= control target key end

     0   :  { %s1194_s12 = smov 0   ;;  %s1196_s13 = smov 0   ;;  %s1341_s0 = inlined_call_operand.vmem [shape: bf16[24,2304], index: 0, kind: input, shape index: {}]   ;;  %s1342_s1 = inlined_call_operand.vmem [shape: bf16[2304,256], index: 1, kind: input, shape index: {}]   ;;  %s1343_s2 = inlined_call_operand.vmem [shape: f32[1,256], index: 2, kind: input, shape index: {}]   ;;  %s1344_s3 = inlined_call_operand.vmem [shape: f32[24,256], index: 3, kind: output, shape index: {}]  }
   0x1   :  { %s1198_s14 = smov 0   ;;  %s1200_s15 = smov 0  }
   0x2   :  { %s1202_s16 = smov 0  }
   0x3 LB: > { %s25_s17 = sadd.s32 1, %s1166_s15  ;;  %p48_p1 = scmp.ne.s32.totalorder %s1158_s13, %s1154_s12  ;;  %s1170_s16 = sphi %s1202_s16, %s13_s16   ;;  %s1166_s15 = sphi %s1200_s15, %s1348_s15   ;;  %s1162_s14 = sphi %s1198_s14, %s1347_s14   ;;  %s1158_s13 = sphi %s1196_s13, %s1346_s13   ;;  %s1154_s12 = sphi %s1194_s12, %s1345_s12  }
   0x4   : > { %p26_p0 = scmp.ge.s32.totalorder %s25_s17, 6  ;;  %p49_p2 = scmp.eq.s32.totalorder %s1170_s16, 0 }
   0x5   : > { %s41_s19 = sadd.s32 1, %s1158_s13  ;;  %p932_p5 = scmp.ge.s32.totalorder %s1170_s16, 6 }
   0x6   : > { %s1350_s17 = smov (%p26_p0, %s25_s17), 0  ;;  %p50_p3 = por %p49_p2, %p48_p1 }
   0x7   : > { %s37_s18 = ssub.s32 %s1166_s15, %s1350_s17  ;;  %164 = sbr.rel (%p932_p5) target bundleno = 22 (0x16), region = 20 }
   0x8   : > { %p39_p4 = scmp.eq.s32.totalorder %s37_s18, 0 }
   0xa   : > { %s1229_s20 = scalar_select %p39_p4, %s1158_s13, %s41_s19  }
   0xe   : > { %167 = sbr.rel (!%p50_p3) target bundleno = 22 (0x16), region = 24  ;;  %s169_s21 = sand.u32 (%p50_p3), 1, %s1158_s13  }
   0xf   : > { %s1003_s22 = smul.u32 (%p50_p3), 12, %s1166_s15 }
  0x10   : > { %s1009_s23 = smul.u32 (%p50_p3), 36, %s169_s21 }
  0x11   : > { %s177_s26 = scalar_lea.vmem (%p50_p3), %s1341_s0, %s1003_s22 }
  0x12   : > { %v192_v0 = vld [vmem:[%s177_s26] sm:$0xff] (%p50_p3)  ;;  %v194_v1 = vld [vmem:[%s177_s26 + $0x48] sm:$0xff] (%p50_p3)  ;;  %v196_v2 = vld [vmem:[%s177_s26 + $0x90] sm:$0xff] (%p50_p3)  ;;  %s171_s27 = scalar_lea.vmem (%p50_p3), [#allocation3], %s1009_s23 }
  0x13   : > { %193 = vst [vmem:[%s171_s27] sm:$0xff] (%p50_p3), %v192_v0  ;;  %195 = vst [vmem:[%s171_s27 + $0xc] sm:$0xff] (%p50_p3), %v194_v1  ;;  %v934_v3 = vld [vmem:[%s177_s26 + $0x8] sm:$0xf] (%p50_p3)  ;;  %v936_v4 = vld [vmem:[%s177_s26 + $0x50] sm:$0xf] (%p50_p3) }
  0x14   : > { %197 = vst [vmem:[%s171_s27 + $0x18] sm:$0xff] (%p50_p3), %v196_v2  ;;  %v938_v5 = vld [vmem:[%s177_s26 + $0x98] sm:$0xf] (%p50_p3)  ;;  %935 = vst [vmem:[%s171_s27 + $0x8] sm:$0xf] (%p50_p3), %v934_v3 }
  0x15   : > { %937 = vst [vmem:[%s171_s27 + $0x14] sm:$0xf] %v936_v4  ;;  %939 = vst [vmem:[%s171_s27 + $0x20] sm:$0xf] %v938_v5 }
  0x16 PF: > { %p940_p6 = scmp.ge.s32.totalorder %s1170_s16, 1  ;;  %p230_p7 = scmp.lt.s32.totalorder %s1170_s16, 7 }
  0x18   : > { %p231_p8 = pnand %p940_p6, %p230_p7 }
  0x19   : > { %s237_s28 = sand.u32 (!%p231_p8), 1, %s1154_s12   ;;  %s281_s29 = smul.u32 (!%p231_p8), 48, %s1162_s14 }
  0x1a   : > { %234 = sbr.rel (%p231_p8) target bundleno = 343 (0x157), region = 54  ;;  %p943_p10 = scmp.ne.s32.totalorder (!%p231_p8), %s1162_s14, 0 }
  0x1b   : > { %s1010_s30 = smul.u32 (!%p231_p8), 36, %s237_s28  ;;  %p283_p9 = scmp.lt.s32.totalorder (!%p231_p8), %s281_s29, 287 }
  0x1d   : > { %s1246_s8 = scalar_lea.vmem (!%p231_p8), [#allocation3], %s1010_s30 }
  0x21   : > { %s1352_s29 = smov (!%p283_p9, %s281_s29), 287  ;;  %314 = sbr.rel (%p943_p10) target bundleno = 40 (0x28), region = 62 }
  0x22   : > { %s1004_s4 = sshll.u32 %s1352_s29, 3  ;;  %v1172_v6 = vmov (!%p943_p10), 0.0  }
  0x23   : > { %s1244_s7 = scalar_lea.vmem %s1342_s1, %s1004_s4  ;;  %315 = vst [vmem:[#allocation2] sm:$0xff] (!%p943_p10), %v1172_v6  ;;  %316 = vst [vmem:[#allocation2 + $0x8] sm:$0xff] (!%p943_p10), %v1172_v6 }
  0x24   : > { %317 = vst [vmem:[#allocation2 + $0x10] sm:$0xff] (!%p943_p10), %v1172_v6  ;;  %318 = vst [vmem:[#allocation2 + $0x18] sm:$0xff] (!%p943_p10), %v1172_v6 }
  0x25   : > { %319 = vst [vmem:[#allocation2 + $0x20] sm:$0xff] (!%p943_p10), %v1172_v6  ;;  %320 = vst [vmem:[#allocation2 + $0x28] sm:$0xff] (!%p943_p10), %v1172_v6 }
  0x28 PF: > { %v1053_v7 = vld [vmem:[%s1244_s7 + $0x4] ss:$8 sps:$4 sm:$0xff]   ;;  %v1055_v8 = vld [vmem:[%s1244_s7] ss:$8 sps:$4 sm:$0xff]   ;;  %v1173_v9 = vmov 0   ;;  %p998_p11 = scmp.ne.s32.totalorder %s1162_s14, 5 }
  0x29   : > { %731 = vmatprep.mubr.bf16.mxu0 %v1173_v9  ;;  %648 = vmatprep.subr.bf16.mxu1 %v1053_v7  ;;  %v1056_v10 = vld [vmem:[%s1244_s7 + $0x14] ss:$8 sps:$4 sm:$0xff]   ;;  %v1058_v11 = vld [vmem:[%s1244_s7 + $0x10] ss:$8 sps:$4 sm:$0xff]   ;;  %v1059_v12 = vld [vmem:[%s1244_s7 + $0x24] ss:$8 sps:$4 sm:$0xff]  }
  0x2a   : > { %649 = vmatpush1.bf16.msra.mxu1 %v1055_v8  ;;  %v1061_v13 = vld [vmem:[%s1244_s7 + $0x20] ss:$8 sps:$4 sm:$0xff]   ;;  %v1062_v14 = vld [vmem:[%s1244_s7 + $0x34] ss:$8 sps:$4 sm:$0xff]   ;;  %v1064_v15 = vld [vmem:[%s1244_s7 + $0x30] ss:$8 sps:$4 sm:$0xff]  }
  0x2b   : > { %650 = vmatprep.subr.bf16.mxu1 %v1056_v10  ;;  %v1077_v16 = vld [vmem:[%s1244_s7 + $0x104] ss:$8 sps:$4 sm:$0xff]   ;;  %v1079_v17 = vld [vmem:[%s1244_s7 + $0x100] ss:$8 sps:$4 sm:$0xff]   ;;  %v1083_v19 = vld [vmem:[%s1244_s7 + $0x114] ss:$8 sps:$4 sm:$0xff]  }
  0x2c   : > { %v1065_v18 = vld [vmem:[%s1244_s7 + $0x44] ss:$8 sps:$4 sm:$0xff]   ;;  %699 = vmatprep.subr.bf16.mxu0 %v1077_v16  ;;  %v1085_v20 = vld [vmem:[%s1244_s7 + $0x110] ss:$8 sps:$4 sm:$0xff]   ;;  %v1067_v21 = vld [vmem:[%s1244_s7 + $0x40] ss:$8 sps:$4 sm:$0xff]  }
  0x2d   : > { %700 = vmatpush1.bf16.msra.mxu0 %v1079_v17  ;;  %v1068_v22 = vld [vmem:[%s1244_s7 + $0x54] ss:$8 sps:$4 sm:$0xff]   ;;  %v1089_v23 = vld [vmem:[%s1244_s7 + $0x124] ss:$8 sps:$4 sm:$0xff]   ;;  %v1091_v24 = vld [vmem:[%s1244_s7 + $0x120] ss:$8 sps:$4 sm:$0xff]  }
  0x2e   : > { %651 = vmatpush1.bf16.msra.mxu1 %v1058_v11  ;;  %701 = vmatprep.subr.bf16.mxu0 %v1083_v19  ;;  %v1070_v25 = vld [vmem:[%s1244_s7 + $0x50] ss:$8 sps:$4 sm:$0xff]   ;;  %v1095_v26 = vld [vmem:[%s1244_s7 + $0x134] ss:$8 sps:$4 sm:$0xff]   ;;  %v1071_v27 = vld [vmem:[%s1244_s7 + $0x64] ss:$8 sps:$4 sm:$0xff]  }
  0x2f   : > { %652 = vmatprep.subr.bf16.mxu1 %v1059_v12  ;;  %v1097_v28 = vld [vmem:[%s1244_s7 + $0x130] ss:$8 sps:$4 sm:$0xff]   ;;  %v1073_v29 = vld [vmem:[%s1244_s7 + $0x60] ss:$8 sps:$4 sm:$0xff]   ;;  %v1101_v30 = vld [vmem:[%s1244_s7 + $0x144] ss:$8 sps:$4 sm:$0xff]  }
  0x30   : > { %v1074_v31 = vld [vmem:[%s1244_s7 + $0x74] ss:$8 sps:$4 sm:$0xff]   ;;  %v1103_v32 = vld [vmem:[%s1244_s7 + $0x140] ss:$8 sps:$4 sm:$0xff]   ;;  %v1076_v33 = vld [vmem:[%s1244_s7 + $0x70] ss:$8 sps:$4 sm:$0xff]  }
  0x31   : > { %702 = vmatpush1.bf16.msra.mxu0 %v1085_v20  ;;  %v1107_v34 = vld [vmem:[%s1244_s7 + $0x154] ss:$8 sps:$4 sm:$0xff]   ;;  %v1080_v35 = vld [vmem:[%s1244_s7 + $0x84] ss:$8 sps:$4 sm:$0xff]   ;;  %v1109_v36 = vld [vmem:[%s1244_s7 + $0x150] ss:$8 sps:$4 sm:$0xff]  }
  0x32   : > { %653 = vmatpush1.bf16.msra.mxu1 %v1061_v13  ;;  %703 = vmatprep.subr.bf16.mxu0 %v1089_v23  ;;  %v1082_v37 = vld [vmem:[%s1244_s7 + $0x80] ss:$8 sps:$4 sm:$0xff]   ;;  %v1113_v38 = vld [vmem:[%s1244_s7 + $0x164] ss:$8 sps:$4 sm:$0xff]   ;;  %v1086_v39 = vld [vmem:[%s1244_s7 + $0x94] ss:$8 sps:$4 sm:$0xff]  }
  0x33   : > { %654 = vmatprep.subr.bf16.mxu1 %v1062_v14  ;;  %v1115_v40 = vld [vmem:[%s1244_s7 + $0x160] ss:$8 sps:$4 sm:$0xff]   ;;  %v1088_v42 = vld [vmem:[%s1244_s7 + $0x90] ss:$8 sps:$4 sm:$0xff]   ;;  %v1119_v43 = vld [vmem:[%s1244_s7 + $0x174] ss:$8 sps:$4 sm:$0xff]  }
  0x34   : > { %v1128_v41 = vld [vmem:[%s1246_s8 + $0x4] ss:$12 sps:$4 sm:$0xff]   ;;  %v1125_v48 = vld [vmem:[%s1246_s8 + $0x8] ss:$12 sps:$4 sm:$0xff]   ;;  %v1129_v53 = vld [vmem:[%s1246_s8 + $0x20] ss:$0 sps:$4 sm:$0xff]  }
  0x35   : > { %704 = vmatpush1.bf16.msra.mxu0 %v1091_v24  ;;  %v1092_v44 = vld [vmem:[%s1244_s7 + $0xa4] ss:$8 sps:$4 sm:$0xff]   ;;  %680 = vmatprep.mubr.bf16.mxu1 %v1128_v41  ;;  %v1121_v45 = vld [vmem:[%s1244_s7 + $0x170] ss:$8 sps:$4 sm:$0xff]   ;;  %v1094_v46 = vld [vmem:[%s1244_s7 + $0xa0] ss:$8 sps:$4 sm:$0xff]  }
  0x36   : > { %655 = vmatpush1.bf16.msra.mxu1 %v1064_v15  ;;  %705 = vmatprep.subr.bf16.mxu0 %v1095_v26  ;;  %v1098_v47 = vld [vmem:[%s1244_s7 + $0xb4] ss:$8 sps:$4 sm:$0xff]   ;;  %v1100_v49 = vld [vmem:[%s1244_s7 + $0xb0] ss:$8 sps:$4 sm:$0xff]   ;;  %v1104_v50 = vld [vmem:[%s1244_s7 + $0xc4] ss:$8 sps:$4 sm:$0xff]  }
  0x37   : > { %656 = vmatprep.subr.bf16.mxu1 %v1065_v18  ;;  %v1106_v51 = vld [vmem:[%s1244_s7 + $0xc0] ss:$8 sps:$4 sm:$0xff]   ;;  %v1110_v52 = vld [vmem:[%s1244_s7 + $0xd4] ss:$8 sps:$4 sm:$0xff]   ;;  %v1112_v54 = vld [vmem:[%s1244_s7 + $0xd0] ss:$8 sps:$4 sm:$0xff]  }
  0x38   : > { %v1116_v55 = vld [vmem:[%s1244_s7 + $0xe4] ss:$8 sps:$4 sm:$0xff]   ;;  %v1118_v56 = vld [vmem:[%s1244_s7 + $0xe0] ss:$8 sps:$4 sm:$0xff]   ;;  %v1122_v57 = vld [vmem:[%s1244_s7 + $0xf4] ss:$8 sps:$4 sm:$0xff]  }
  0x39   : > { %706 = vmatpush1.bf16.msra.mxu0 %v1097_v28  ;;  %v1124_v58 = vld [vmem:[%s1244_s7 + $0xf0] ss:$8 sps:$4 sm:$0xff]   ;;  %v321_v7 = vld [vmem:[#allocation2] sm:$0xff]  ;;  %v322_v10 = vld [vmem:[#allocation2 + $0x8] sm:$0xff] }
  0x3a   : > { %657 = vmatpush1.bf16.msra.mxu1 %v1067_v21  ;;  %707 = vmatprep.subr.bf16.mxu0 %v1101_v30  ;;  %v331_v59 = vld [vmem:[%s1246_s8 + $0x18] sm:$0xff]  ;;  %v1126_v60 = vld [vmem:[%s1246_s8] ss:$12 sps:$4 sm:$0xff]  }
  0x3b   : > { %658 = vmatprep.subr.bf16.mxu1 %v1068_v22  ;;  %v948_v61 = vcombine.high %v331_v59, %v331_v59  ;;  %v947_v62 = vcombine.low %v331_v59, %v331_v59  ;;  %v323_v13 = vld [vmem:[#allocation2 + $0x10] sm:$0xff]  ;;  %v324_v17 = vld [vmem:[#allocation2 + $0x18] sm:$0xff]  ;;  %v325_v23 = vld [vmem:[#allocation2 + $0x20] sm:$0xff] }
  0x3c   : > { %v326_v26 = vld [vmem:[#allocation2 + $0x28] sm:$0xff] }
  0x3d   : > { %708 = vmatpush1.bf16.msra.mxu0 %v1103_v32 }
  0x3e   : > { %659 = vmatpush1.bf16.msra.mxu1 %v1070_v25  ;;  %709 = vmatprep.subr.bf16.mxu0 %v1107_v34 }
  0x3f   : > { %660 = vmatprep.subr.bf16.mxu1 %v1071_v27 }
  0x41   : > { %710 = vmatpush1.bf16.msra.mxu0 %v1109_v36 }
  0x42   : > { %661 = vmatpush1.bf16.msra.mxu1 %v1073_v29  ;;  %711 = vmatprep.subr.bf16.mxu0 %v1113_v38 }
  0x43   : > { %662 = vmatprep.subr.bf16.mxu1 %v1074_v31 }
  0x45   : > { %712 = vmatpush1.bf16.msra.mxu0 %v1115_v40 }
  0x46   : > { %663 = vmatpush1.bf16.msra.mxu1 %v1076_v33  ;;  %713 = vmatprep.subr.bf16.mxu0 %v1119_v43  ;;  %v774_v33 = vlaneseq (!%p998_p11) }
  0x47   : > { %664 = vmatprep.subr.bf16.mxu1 %v1080_v35  ;;  %v772_v35 = vld [vmem:[%s1343_s2] sm:$0x3] (!%p998_p11) }
  0x48   : > { %v775_v34 = vshrl.u32 (!%p998_p11), %v774_v33, 7 }
  0x49   : > { %714 = vmatpush1.bf16.msra.mxu0 %v1121_v45 }
  0x4a   : > { %665 = vmatpush1.bf16.msra.mxu1 %v1082_v37  ;;  %v776_v37 = vsub.s32 (!%p998_p11), 0, %v775_v34  ;;  %v780_v38 = vsub.s32 (!%p998_p11), 1, %v775_v34 }
  0x4b   : > { %666 = vmatprep.subr.bf16.mxu1 %v1086_v39 }
  0x4c   : > { %732 = vmatmul.mubr.bf16.vlgmr.msra.gmra.mrb[0].mxu0 %v1125_v48  ;;  %v781_v43 = vrot.slane (!%p998_p11), %v772_v35, %v780_v38 }
  0x4d   : > { %741 = vmatprep.mubr.bf16.mxu0 %v1173_v9 }
  0x4e   : > { %667 = vmatpush1.bf16.msra.mxu1 %v1088_v42  ;;  %v777_v42 = vrot.slane (!%p998_p11), %v772_v35, %v776_v37 }
  0x4f   : > { %668 = vmatprep.subr.bf16.mxu1 %v1092_v44 }
  0x52   : > { %669 = vmatpush1.bf16.msra.mxu1 %v1094_v46 }
  0x53   : > { %670 = vmatprep.subr.bf16.mxu1 %v1098_v47 }
  0x54   : > { %742 = vmatmul.mubr.bf16.gmra.mrb[4].mxu0 %v1129_v53 }
  0x56   : > { %671 = vmatpush1.bf16.msra.mxu1 %v1100_v49 }
  0x57   : > { %672 = vmatprep.subr.bf16.mxu1 %v1104_v50 }
  0x5a   : > { %673 = vmatpush1.bf16.msra.mxu1 %v1106_v51 }
  0x5b   : > { %674 = vmatprep.subr.bf16.mxu1 %v1110_v52 }
  0x5e   : > { %675 = vmatpush1.bf16.msra.mxu1 %v1112_v54 }
  0x5f   : > { %676 = vmatprep.subr.bf16.mxu1 %v1116_v55 }
  0x62   : > { %677 = vmatpush1.bf16.msra.mxu1 %v1118_v56 }
  0x63   : > { %678 = vmatprep.subr.bf16.mxu1 %v1122_v57 }
  0x66   : > { %679 = vmatpush1.bf16.msra.mxu1 %v1124_v58 }
  0x69   : > { %681 = vmatmul.mubr.bf16.vlgmr.msra.gmra.mrb[0].mxu1 %v1126_v60 }
  0x6a   : > { %690 = vmatprep.mubr.bf16.mxu1 %v948_v61 }
  0x71   : > { %691 = vmatmul.mubr.bf16.gmra.mrb[4].mxu1 %v947_v62 }
 0x11f   : > { %v733_v63 = vpop.f32.mrb[0].mxu0 }
 0x120   : > { %v735_v0 = vpop.f32.mrb[1].mxu0 }
 0x121   : > { %v737_v1 = vpop.f32.mrb[2].mxu0 }
 0x122   : > { %v739_v2 = vpop.f32.mrb[3].mxu0 }
 0x127   : > { %v743_v3 = vpop.f32.mrb[4].mxu0 }
 0x128   : > { %v745_v4 = vpop.f32.mrb[5].mxu0 }
 0x129   : > { %v747_v5 = vpop.f32.mrb[6].mxu0 }
 0x12a   : > { %v748_v6 = vpop.f32.mrb[7].mxu0 }
 0x13c   : > { %v682_v8 = vpop.f32.mrb[0].mxu1 }
 0x13d   : > { %v734_v9 = vadd.f32 %v733_v63, %v682_v8  ;;  %v684_v11 = vpop.f32.mrb[1].mxu1 }
 0x13e   : > { %v736_v12 = vadd.f32 %v735_v0, %v684_v11  ;;  %v686_v14 = vpop.f32.mrb[2].mxu1 }
 0x13f   : > { %v750_v15 = vadd.f32 %v734_v9, %v321_v7  ;;  %v738_v16 = vadd.f32 %v737_v1, %v686_v14  ;;  %v688_v18 = vpop.f32.mrb[3].mxu1 }
 0x140   : > { %v751_v19 = vadd.f32 %v736_v12, %v322_v10  ;;  %v740_v20 = vadd.f32 %v739_v2, %v688_v18 }
 0x141   : > { %756 = vst [vmem:[#allocation2] sm:$0xff] %v750_v15  ;;  %v752_v21 = vadd.f32 %v738_v16, %v323_v13 }
 0x142   : > { %757 = vst [vmem:[#allocation2 + $0x8] sm:$0xff] %v751_v19  ;;  %v753_v22 = vadd.f32 %v740_v20, %v324_v17 }
 0x143   : > { %758 = vst [vmem:[#allocation2 + $0x10] sm:$0xff] %v752_v21 }
 0x144   : > { %759 = vst [vmem:[#allocation2 + $0x18] sm:$0xff] %v753_v22  ;;  %v692_v24 = vpop.f32.mrb[4].mxu1  ;;  %765 = sbr.rel (%p998_p11) target bundleno = 343 (0x157), region = 66 }
 0x145   : > { %v744_v25 = vadd.f32 %v743_v3, %v692_v24  ;;  %v694_v27 = vpop.f32.mrb[5].mxu1 }
 0x146   : > { %v746_v28 = vadd.f32 %v745_v4, %v694_v27  ;;  %v696_v29 = vpop.f32.mrb[6].mxu1 }
 0x147   : > { %v754_v30 = vadd.f32 %v744_v25, %v325_v23  ;;  %v697_v31 = vpop.f32.mrb[7].mxu1 }
 0x148   : > { %v755_v32 = vadd.f32 %v746_v28, %v326_v26  ;;  %v766_v36 = vld [vmem:[#allocation2] sm:$0xff] (!%p998_p11) }
 0x149   : > { %760 = vst [vmem:[#allocation2 + $0x20] sm:$0xff] %v754_v30  ;;  %v767_v39 = vld [vmem:[#allocation2 + $0x8] sm:$0xff] (!%p998_p11)  ;;  %v784_v46 = vadd.f32 (!%p998_p11), %v777_v42, %v766_v36 }
 0x14a   : > { %761 = vst [vmem:[#allocation2 + $0x28] sm:$0xff] %v755_v32  ;;  %v768_v40 = vld [vmem:[#allocation2 + $0x10] sm:$0xff] (!%p998_p11)  ;;  %v785_v47 = vadd.f32 (!%p998_p11), %v781_v43, %v767_v39 }
 0x14b   : > { %v769_v41 = vld [vmem:[#allocation2 + $0x18] sm:$0xff]  ;;  %v786_v48 = vadd.f32 %v777_v42, %v768_v40  ;;  %v790_v52 = vmax.f32 %v784_v46, 0.0 }
 0x14c   : > { %v787_v49 = vadd.f32 %v781_v43, %v769_v41  ;;  %v791_v53 = vmax.f32 %v785_v47, 0.0 }
 0x14d   : > { %v792_v54 = vmax.f32 %v786_v48, 0.0  ;;  %796 = vst [vmem:[%s1344_s3] sm:$0xff] %v790_v52 }
 0x14e   : > { %v793_v55 = vmax.f32 %v787_v49, 0.0  ;;  %797 = vst [vmem:[%s1344_s3 + $0x8] sm:$0xff] %v791_v53 }
 0x14f   : > { %798 = vst [vmem:[%s1344_s3 + $0x10] sm:$0xff] %v792_v54 }
 0x150   : > { %v770_v44 = vld [vmem:[#allocation2 + $0x20] sm:$0xff]  ;;  %799 = vst [vmem:[%s1344_s3 + $0x18] sm:$0xff] %v793_v55 }
 0x151   : > { %v771_v45 = vld [vmem:[#allocation2 + $0x28] sm:$0xff]  ;;  %v788_v50 = vadd.f32 %v777_v42, %v770_v44 }
 0x152   : > { %v789_v51 = vadd.f32 %v781_v43, %v771_v45 }
 0x153   : > { %v794_v56 = vmax.f32 %v788_v50, 0.0 }
 0x154   : > { %v795_v57 = vmax.f32 %v789_v51, 0.0 }
 0x155   : > { %800 = vst [vmem:[%s1344_s3 + $0x20] sm:$0xff] %v794_v56 }
 0x156   : > { %801 = vst [vmem:[%s1344_s3 + $0x28] sm:$0xff] %v795_v57 }
 0x157 PF: > { %s13_s16 = sadd.s32 1, %s1170_s16   ;;  %s1345_s12 = smov %s1158_s13 }
 0x158   : > { %p10_p12 = scmp.ge.s32.totalorder %s13_s16, 8   ;;  %s1346_s13 = smov %s1229_s20 }
 0x159   : > { %s1347_s14 = smov %s1166_s15  ;;  %s1348_s15 = smov %s1350_s17 }
 0x15a   :  { %12 = sbr.rel (!%p10_p12) target bundleno = 3 (0x3), region = 113 }

// kernel: alexnet_forward.13
= control target key start
LH: loop header
LB: loop body
LE: loop exit
PB: predicated region body
PF: predicated region fallthrough
CT: control target
= control target key end

     0   :  { %s4223_s0 = inlined_call_operand.hbm [shape: bf16[8,9216], index: 0, kind: input, shape index: {}]   ;;  %s4224_s1 = inlined_call_operand.hbm [shape: bf16[9216,4096], index: 1, kind: input, shape index: {}]   ;;  %s4225_s2 = inlined_call_operand.hbm [shape: f32[1,4096], index: 2, kind: input, shape index: {}]   ;;  %s4226_s3 = inlined_call_operand.hbm [shape: f32[8,4096], index: 3, kind: output, shape index: {}]  }
   0x1   :  { %4239 = sst [smem:[#allocation20_spill]] %s4223_s0 }
   0x2   :  { %4240 = sst [smem:[#allocation21_spill]] %s4224_s1 }
   0x3   :  { %4241 = sst [smem:[#allocation22_spill]] %s4226_s3 }
   0x4   :  { %8 = vsyncpa [#allocation4], 0 }
   0x5   :  { %10 = vsyncpa [#allocation4 + $0x1], 0 }
   0x6   :  { %11 = vsyncpa [#allocation7], 0 }
   0x7   :  { %13 = vsyncpa [#allocation7 + $0x1], 0 }
   0x8   :  { %14 = vsyncpa [#allocation5], 0 }
   0x9   :  { %16 = vsyncpa [#allocation5 + $0x1], 0  ;;  %s3509_s12 = smov 0   ;;  %s3511_s13 = smov 0  }
   0xa   :  { %s3513_s14 = smov 0   ;;  %s3515_s15 = smov 0  }
   0xb   :  { %s3517_s16 = smov 0   ;;  %s3519_s17 = smov 0  }
   0xc   :  { %s3521_s18 = smov 0   ;;  %s3523_s19 = smov 0  }
   0xd   :  { %s3525_s20 = smov 0   ;;  %s3527_s21 = smov 0  }
   0xe   :  { %s3529_s22 = smov 0   ;;  %s3531_s23 = smov 0  }
   0xf   :  { %s3533_s24 = smov 0   ;;  %s3535_s25 = smov 0  }
  0x10 LB: > { %4242 = sst [smem:[#allocation14_spill]] %s3459_s20  ;;  %p4228_p0 = scmp.eq.s32.totalorder %s3479_s25, 0  ;;  %s3479_s25 = sphi %s3535_s25, %s22_s25   ;;  %s3475_s24 = sphi %s3533_s24, %s4283_s24   ;;  %s3471_s23 = sphi %s3531_s23, %s4293_s23   ;;  %s3467_s22 = sphi %s3529_s22, %s4281_s22   ;;  %s3463_s21 = sphi %s3527_s21, %s4292_s21   ;;  %s3459_s20 = sphi %s3525_s20, %s4280_s20   ;;  %s3455_s19 = sphi %s3523_s19, %s4291_s19   ;;  %s3451_s18 = sphi %s3521_s18, %s4290_s18   ;;  %s3447_s17 = sphi %s3519_s17, %s4289_s17   ;;  %s3443_s16 = sphi %s3517_s16, %s4288_s16   ;;  %s3439_s15 = sphi %s3515_s15, %s4287_s15   ;;  %s3435_s14 = sphi %s3513_s14, %s4286_s14   ;;  %s3431_s13 = sphi %s3511_s13, %s4285_s13   ;;  %s3427_s12 = sphi %s3509_s12, %s4284_s12  }
  0x11   : > { %4243 = sst [smem:[#allocation15_spill]] %s3467_s22  ;;  %p85_p1 = scmp.ne.s32.totalorder %s3447_s17, %s3443_s16 }
  0x12   : > { %4244 = sst [smem:[#allocation16_spill]] %s3475_s24  ;;  %p4227_p4 = scmp.lt.s32.totalorder %s3479_s25, 72 }
  0x13   : > { %p87_p3 = por %p85_p1, %p4228_p0  ;;  %s190_s28 = sand.u32 1, %s3479_s25  }
  0x14   : > { %s192_s29 = sand.u32 1, %s3447_s17   ;;  %s2417_s4 = sshll.u32 %s3475_s24, 2 }
  0x15   : > { %s2415_s30 = sshll.u32 %s192_s29, 11  ;;  %s2700_s5 = sshll.u32 %s3471_s23, 12 }
  0x16   : > { %s194_s6 = scalar_lea.vmem [#allocation6], %s2415_s30  ;;  %s201_s8 = sadd.s32 %s2700_s5, %s2417_s4 }
  0x17   : > { %s204_s7 = sshll.u32 %s194_s6, 4  ;;  %s2419_s9 = sshll.u32 %s201_s8, 6  ;;  %s3593_s7 = int_to_ptr.vmem [resolvable:$true] %s204_s7 }
  0x18   : > { %p3597_p5 = pnand %p4227_p4, %p87_p3  ;;  %s4246_s1 = sld [smem:[#allocation21_spill]] }
  0x19   : > { %p2423_p6 = scmp.ge.s32.totalorder %s3479_s25, 1  ;;  %s3607_s29 = scalar_lea.sflag [#allocation7], %s190_s28 }
  0x1a   : > { %p3237_p8 = pneg %p3597_p5 }
  0x1e   : > { %s3604_s26 = scalar_lea.hbm %s4246_s1, %s2419_s9  ;;  %s3240_s5 = scalar_lea.hbm %s4246_s1, 2359296 }
  0x1f   : > { %s3235_s30 = scalar_lea.hbm %s3604_s26, 32768  ;;  %p3241_p11 = scmp.lt.u32.totalorder %s3604_s26, %s4246_s1 }
  0x20   : > { %p3236_p7 = scmp.ne.s32.totalorder %s3604_s26, %s3235_s30  ;;  %p3242_p12 = scmp.lt.u32.totalorder %s3240_s5, %s3235_s30 }
  0x21   : > { %p3244_p1 = scmp.lt.u32.totalorder %s3235_s30, %s3604_s26 }
  0x22   : > { %p3238_p9 = pnand %p3237_p8, %p3236_p7  ;;  %p3243_p13 = por %p3242_p12, %p3241_p11 }
  0x24   : > { %p3239_p10 = pneg %p3238_p9  ;;  %p3245_p3 = por %p3244_p1, %p3243_p13 }
  0x26   : > { %p3246_p4 = pnand %p3245_p3, %p3239_p10 }
  0x28   : > { %3249 = shalt.err (!%p3246_p4)
}
  0x29   : > { %s3250_s28 = scalar_lea.vmem %s3593_s7, 32768  ;;  %s3481_s9 = smov [#allocation6]  }
  0x2a   : > { %p3251_p7 = scmp.ne.s32.totalorder %s3593_s7, %s3250_s28  ;;  %s3255_s11 = sshll.u32 %s3481_s9, 4  ;;  %s3256_s11 = int_to_ptr.vmem [resolvable:$false] %s3255_s11 }
  0x2b   : > { %s3257_s27 = scalar_lea.vmem %s3256_s11, 65536  ;;  %p3258_p0 = scmp.lt.s32.totalorder %s3593_s7, %s3256_s11 }
  0x2c   : > { %p3253_p9 = pnand %p3251_p7, %p3237_p8  ;;  %p3259_p11 = scmp.lt.s32.totalorder %s3257_s27, %s3250_s28 }
  0x2e   : > { %p3254_p2 = pneg %p3253_p9  ;;  %p3260_p12 = por %p3259_p11, %p3258_p0 }
  0x30   : > { %p3261_p13 = pnand %p3260_p12, %p3254_p2 }
  0x32   : > { %3264 = shalt.err (!%p3261_p13)
}
  0x33   : > { %s3482_s30 = smov 2048   ;;  %s3483_s4 = smov 256  }
  0x34   : > { %s3484_s5 = smov 16   ;;  %p231_p0 = scmp.lt.s32.totalorder %s3479_s25, 73 }
  0x35   : > { %2717 = dma.hbm_to_vmem [thread:$0]  (!%p3597_p5), %s3604_s26, 32768, %s3593_s7, %s3607_s29, %s3482_s30, %s3483_s4, %s3484_s5  }
  0x36   : > { %p3638_p2 = pnand %p2423_p6, %p231_p0  ;;  %s3643_s8 = sadd.s32 4294967295, %s3479_s25  }
  0x37   : > { %s34_s28 = sadd.s32 1, %s3471_s23  ;;  %s50_s9 = sadd.s32 1, %s3459_s20 }
  0x38   : > { %s4247_s6 = scalar_select %p3638_p2, 1, 0 }
  0x39   : > { %p35_p4 = scmp.ge.s32.totalorder %s34_s28, 9  ;;  %p57_p5 = scmp.ne.s32.totalorder %s3459_s20, %s3455_s19 }
  0x3a   : > { %p63_p8 = scmp.ne.s32.totalorder %s3455_s19, %s3451_s18  ;;  %s4249_s26 = sadd.s32 1, %s3475_s24 }
  0x3b   : > { %s4295_s28 = smov (%p35_p4, %s34_s28), 0  ;;  %s4297_s26 = smov (!%p35_p4, %s4249_s26), %s3475_s24 }
  0x3c   : > { %4248 = sst [smem:[#allocation17_spill]] %s4295_s28  ;;  %s46_s7 = ssub.s32 %s3471_s23, %s4295_s28 }
  0x3d   : > { %p4250_p6 = scmp.eq.s32.totalorder %s3479_s25, 0  ;;  %p39_p1 = scmp.ge.s32.totalorder %s4297_s26, 8 }
  0x3e   : > { %p48_p3 = scmp.eq.s32.totalorder %s46_s7, 0  ;;  %p4232_p7 = scmp.eq.s32.totalorder %s3643_s8, 0 }
  0x3f   : > { %p3660_p10 = por %p4250_p6, %p57_p5  ;;  %s169_s18 = sand.u32 1, %s3459_s20  }
  0x40   : > { %s4299_s26 = smov (%p39_p1, %s4297_s26), 0  ;;  %p3673_p9 = por %p4232_p7, %p63_p8 }
  0x41   : > { %4252 = sst [smem:[#allocation18_spill]] %s4299_s26  ;;  %s3679_s30 = ssub.s32 %s3475_s24, %s4299_s26 }
  0x42   : > { %s3669_s11 = scalar_select %p48_p3, %s3459_s20, %s50_s9  }
  0x43   : > { %s4254_s27 = scalar_select %p3673_p9, 1, 0 }
  0x44   : > { %4253 = sst [smem:[#allocation19_spill]] %s3669_s11  ;;  %s75_s4 = sor.u32 %s3679_s30, %s46_s7 }
  0x45   : > { %p4255_p11 = scmp.ne.s32.totalorder %s3443_s16, %s3439_s15  ;;  %p76_p13 = scmp.eq.s32.totalorder %s75_s4, 0 }
  0x46   : > { %s2412_s1 = sshll.u32 %s169_s18, 5  ;;  %s2699_s28 = sshll.u32 %s3471_s23, 9 }
  0x47   : > { %p3687_p12 = por %p4255_p11, %p4232_p7  ;;  %s4257_s9 = sadd.s32 1, %s3447_s17 }
  0x48   : > { %s3695_s11 = scalar_select %p76_p13, %s3447_s17, %s4257_s9  }
  0x49   : > { %s4256_s5 = scalar_select %p3687_p12, 1, 0 }
  0x4a   : > { %s4258_s0 = sld [smem:[#allocation20_spill]]  ;;  %s173_s15 = scalar_lea.vmem [#allocation3], %s2412_s1 }
  0x4b   : > { %s183_s7 = sshll.u32 %s173_s15, 4  ;;  %p4259_p0 = scmp.lt.s32.totalorder %s3479_s25, 72  ;;  %s3710_s7 = int_to_ptr.vmem [resolvable:$true] %s183_s7 }
  0x4c   : > { %s170_s9 = scalar_lea.sflag [#allocation4], %s169_s18 }
  0x4d   : > { %p3706_p4 = pnand %p4259_p0, %p3660_p10 }
  0x4f   : > { %p3267_p8 = pneg %p3706_p4 }
  0x50   : > { %s3700_s22 = scalar_lea.hbm %s4258_s0, %s2699_s28  ;;  %s3270_s28 = scalar_lea.hbm %s4258_s0, 4608 }
  0x51   : > { %s3265_s3 = scalar_lea.hbm %s3700_s22, 512  ;;  %p3271_p10 = scmp.lt.u32.totalorder %s3700_s22, %s4258_s0 }
  0x52   : > { %p3266_p5 = scmp.ne.s32.totalorder %s3700_s22, %s3265_s3  ;;  %p3272_p3 = scmp.lt.u32.totalorder %s3270_s28, %s3265_s3 }
  0x53   : > { %p3274_p13 = scmp.lt.u32.totalorder %s3265_s3, %s3700_s22 }
  0x54   : > { %p3268_p6 = pnand %p3267_p8, %p3266_p5  ;;  %p3273_p11 = por %p3272_p3, %p3271_p10 }
  0x56   : > { %p3269_p1 = pneg %p3268_p6  ;;  %p3275_p0 = por %p3274_p13, %p3273_p11 }
  0x58   : > { %p3276_p7 = pnand %p3275_p0, %p3269_p1 }
  0x5a   : > { %3279 = shalt.err (!%p3276_p7)
}
  0x5b   : > { %s3280_s18 = scalar_lea.vmem %s3710_s7, 512  ;;  %s3485_s1 = smov [#allocation3]  }
  0x5c   : > { %p3281_p5 = scmp.ne.s32.totalorder %s3710_s7, %s3280_s18  ;;  %s3285_s20 = sshll.u32 %s3485_s1, 4  ;;  %s3286_s20 = int_to_ptr.vmem [resolvable:$false] %s3285_s20 }
  0x5d   : > { %s3287_s10 = scalar_lea.vmem %s3286_s20, 1024  ;;  %p3288_p9 = scmp.lt.s32.totalorder %s3710_s7, %s3286_s20 }
  0x5e   : > { %p3283_p6 = pnand %p3281_p5, %p3267_p8  ;;  %p3289_p10 = scmp.lt.s32.totalorder %s3287_s10, %s3280_s18 }
  0x60   : > { %p3284_p12 = pneg %p3283_p6  ;;  %p3290_p3 = por %p3289_p10, %p3288_p9 }
  0x62   : > { %p3291_p11 = pnand %p3290_p3, %p3284_p12 }
  0x64   : > { %3294 = shalt.err (!%p3291_p11)
}
  0x65   : > { %2714 = dma.hbm_to_vmem [thread:$0]  (!%p3706_p4), %s3700_s22, 512, %s3710_s7, %s170_s9  }
  0x66   : > { %s2409_s3 = sadd.s32 4294967294, %s3479_s25   ;;  %p102_p7 = scmp.eq.s32.totalorder %s3679_s30, 0 }
  0x67   : > { %s104_s28 = sadd.s32 1, %s3435_s14  ;;  %p111_p9 = scmp.ne.s32.totalorder %s3435_s14, %s3431_s13 }
  0x68   : > { %s3743_s4 = scalar_select %p102_p7, %s3435_s14, %s104_s28  }
  0x69   : > { %p4261_p12 = scmp.eq.s32.totalorder %s3479_s25, 0  ;;  %p117_p1 = scmp.ne.s32.totalorder %s3431_s13, %s3427_s12 }
  0x6a   : > { %p143_p13 = scmp.eq.s32.totalorder %s3643_s8, 71  ;;  %p149_p0 = scmp.eq.s32.totalorder %s2409_s3, 71 }
  0x6b   : > { %p3747_p8 = por %p111_p9, %p4261_p12  ;;  %p4263_p5 = scmp.eq.s32.totalorder %s3643_s8, 0 }
  0x6c   : > { %s216_s22 = sand.u32 1, %s3435_s14   ;;  %p3761_p4 = por %p143_p13, %p111_p9 }
  0x6d   : > { %p3756_p6 = por %p117_p1, %p4263_p5  ;;  %p3765_p10 = por %p149_p0, %p117_p1 }
  0x6e   : > { %s4265_s30 = scalar_select %p3761_p4, 1, 0 }
  0x6f   : > { %s4264_s18 = scalar_select %p3756_p6, 1, 0 }
  0x70   : > { %s4266_s7 = scalar_select %p3765_p10, 1, 0 }
  0x71   : > { %s2420_s9 = sshll.u32 %s216_s22, 2  ;;  %s2701_s1 = sshll.u32 %s3475_s24, 6 }
  0x72   : > { %s3773_s3 = scalar_lea.hbm %s4225_s2, %s2701_s1  ;;  %s218_s28 = scalar_lea.vmem [#allocation8], %s2420_s9 }
  0x73   : > { %s226_s0 = sshll.u32 %s218_s28, 4  ;;  %p4267_p3 = scmp.lt.s32.totalorder %s3479_s25, 72  ;;  %s227_s0 = int_to_ptr.vmem [resolvable:$true] %s226_s0 }
  0x74   : > { %s3295_s22 = scalar_lea.hbm %s3773_s3, 64  ;;  %s3300_s15 = scalar_lea.hbm %s4225_s2, 512 }
  0x75   : > { %p3779_p11 = pnand %p4267_p3, %p3747_p8  ;;  %p3296_p7 = scmp.ne.s32.totalorder %s3773_s3, %s3295_s22 }
  0x76   : > { %p3301_p8 = scmp.lt.u32.totalorder %s3773_s3, %s4225_s2  ;;  %p3302_p13 = scmp.lt.u32.totalorder %s3300_s15, %s3295_s22 }
  0x77   : > { %p3297_p9 = pneg %p3779_p11  ;;  %p3304_p5 = scmp.lt.u32.totalorder %s3295_s22, %s3773_s3 }
  0x78   : > { %p3303_p0 = por %p3302_p13, %p3301_p8 }
  0x79   : > { %p3298_p12 = pnand %p3297_p9, %p3296_p7 }
  0x7a   : > { %p3305_p3 = por %p3304_p5, %p3303_p0 }
  0x7b   : > { %p3299_p1 = pneg %p3298_p12 }
  0x7d   : > { %p3306_p10 = pnand %p3305_p3, %p3299_p1 }
  0x7f   : > { %3309 = shalt.err (!%p3306_p10)
}
  0x80   : > { %s3310_s28 = scalar_lea.vmem %s227_s0, 64  ;;  %s3486_s24 = smov [#allocation8]  }
  0x81   : > { %p3311_p4 = scmp.ne.s32.totalorder %s227_s0, %s3310_s28  ;;  %s3315_s1 = sshll.u32 %s3486_s24, 4  ;;  %s3316_s1 = int_to_ptr.vmem [resolvable:$false] %s3315_s1 }
  0x82   : > { %s3317_s9 = scalar_lea.vmem %s3316_s1, 128  ;;  %p3318_p6 = scmp.lt.s32.totalorder %s227_s0, %s3316_s1 }
  0x83   : > { %p3313_p7 = pnand %p3311_p4, %p3297_p9  ;;  %p3319_p2 = scmp.lt.s32.totalorder %s3317_s9, %s3310_s28 }
  0x85   : > { %p3314_p12 = pneg %p3313_p7  ;;  %p3320_p8 = por %p3319_p2, %p3318_p6 }
  0x87   : > { %p3321_p13 = pnand %p3320_p8, %p3314_p12 }
  0x89   : > { %3324 = shalt.err (!%p3321_p13)
}
  0x8a   : > { %2720 = dma.hbm_to_vmem [thread:$0]  (!%p3779_p11), %s3773_s3, 64, %s227_s0, %s3607_s29  }
  0x8b   : > { %p4269_p10 = scmp.ne.s32.totalorder %s4247_s6, 0 }
  0x8c   : > { %s237_s22 = sand.u32 (!%p4269_p10), 1, %s3455_s19   ;;  %p4270_p4 = scmp.ne.s32.totalorder (!%p4269_p10), %s4254_s27, 0 }
  0x8d   : > { %235 = sbr.rel (%p4269_p10) target bundleno = 683 (0x2ab), region = 32  ;;  %s2424_s15 = sshll.u32 (!%p4269_p10), %s237_s22, 5 }
  0x8e   : > { %s238_s24 = scalar_lea.sflag (!%p4269_p10), [#allocation4], %s237_s22  ;;  %s3808_s20 = scalar_lea.vmem (!%p4269_p10), [#allocation3], %s2424_s15 }
  0x94   : > { %3410 = dma.done.wait (%p4270_p4), %s238_s24, 512  }
  0x95   : > { %3412 = vsyncadd (%p4270_p4), %s238_s24, 4294966784  ;;  %s246_s26 = sand.u32 1, %s3643_s8   ;;  %s248_s0 = sand.u32 1, %s3443_s16  }
  0x96   : > { %s2425_s29 = sshll.u32 %s248_s0, 11  ;;  %s247_s6 = scalar_lea.sflag [#allocation7], %s246_s26 }
  0x97   : > { %s3816_s3 = scalar_lea.vmem [#allocation6], %s2425_s29  ;;  %p4271_p2 = scmp.ne.s32.totalorder %s4256_s5, 0 }
  0x99   : > { %3414 = dma.done.wait (%p4271_p2), %s247_s6, 32768  }
  0x9a   : > { %3416 = vsyncadd (%p4271_p2), %s247_s6, 4294934528  ;;  %s3823_s10 = sand.u32 1, %s3431_s13   ;;  %p4272_p6 = scmp.ne.s32.totalorder %s4264_s18, 0 }
  0x9b   : > { %s2426_s27 = sshll.u32 %s3823_s10, 2 }
  0x9c   : > { %s3826_s28 = scalar_lea.vmem [#allocation8], %s2426_s27 }
  0x9d   : > { %3418 = dma.done.wait (%p4272_p6), %s247_s6, 64  }
  0x9e   : > { %3420 = vsyncadd (%p4272_p6), %s247_s6, 4294967232  ;;  %s2427_s8 = sshll.u32 %s3823_s10, 5  ;;  %p2428_p11 = scmp.ne.s32.totalorder %s3463_s21, 0 }
  0x9f   : > { %s3833_s1 = scalar_lea.vmem [#allocation9], %s2427_s8  ;;  %v3487_v0 = vmov (!%p2428_p11), 0.0  }
  0xa0   : > { %300 = sbr.rel (%p2428_p11) target bundleno = 167 (0xa7), region = 48  ;;  %301 = vst [vmem:[#allocation2] sm:$0xff] (!%p2428_p11), %v3487_v0  ;;  %302 = vst [vmem:[#allocation2 + $0x8] sm:$0xff] (!%p2428_p11), %v3487_v0 }
  0xa1   : > { %303 = vst [vmem:[#allocation2 + $0x10] sm:$0xff] (!%p2428_p11), %v3487_v0  ;;  %304 = vst [vmem:[#allocation2 + $0x18] sm:$0xff] (!%p2428_p11), %v3487_v0 }
  0xa7 PF: > { %v2843_v1 = vld [vmem:[%s3816_s3 + $0x4] ss:$16 sps:$4 sm:$0xff]   ;;  %v2847_v3 = vld [vmem:[%s3816_s3] ss:$16 sps:$4 sm:$0xff]   ;;  %v310_v49 = vld [vmem:[%s3808_s20 + $0x8] sm:$0xff]  ;;  %p2693_p9 = scmp.ne.s32.totalorder %s3463_s21, 8 }
  0xa8   : > { %v2845_v2 = vld [vmem:[%s3816_s3 + $0x204] ss:$16 sps:$4 sm:$0xff]   ;;  %1877 = vmatprep.subr.bf16.mxu0 %v2843_v1  ;;  %v2848_v4 = vld [vmem:[%s3816_s3 + $0x200] ss:$16 sps:$4 sm:$0xff]   ;;  %v3888_v52 = vcombine.high %v310_v49, %v310_v49 }
  0xa9   : > { %1918 = vmatprep.subr.bf16.mxu1 %v2845_v2  ;;  %v2849_v5 = vld [vmem:[%s3816_s3 + $0x24] ss:$16 sps:$4 sm:$0xff]   ;;  %1878 = vmatpush1.bf16.msra.mxu0 %v2847_v3  ;;  %v2853_v7 = vld [vmem:[%s3816_s3 + $0x20] ss:$16 sps:$4 sm:$0xff]  }
  0xaa   : > { %1919 = vmatpush1.bf16.msra.mxu1 %v2848_v4  ;;  %v2851_v6 = vld [vmem:[%s3816_s3 + $0x224] ss:$16 sps:$4 sm:$0xff]   ;;  %1879 = vmatprep.subr.bf16.mxu0 %v2849_v5  ;;  %v2854_v8 = vld [vmem:[%s3816_s3 + $0x220] ss:$16 sps:$4 sm:$0xff]  }
  0xab   : > { %1920 = vmatprep.subr.bf16.mxu1 %v2851_v6  ;;  %v2855_v9 = vld [vmem:[%s3816_s3 + $0x44] ss:$16 sps:$4 sm:$0xff]   ;;  %v2859_v11 = vld [vmem:[%s3816_s3 + $0x40] ss:$16 sps:$4 sm:$0xff]   ;;  %1950 = vmatprep.mubr.bf16.mxu1 %v3888_v52 }
  0xac   : > { %v2857_v10 = vld [vmem:[%s3816_s3 + $0x244] ss:$16 sps:$4 sm:$0xff]   ;;  %v2860_v12 = vld [vmem:[%s3816_s3 + $0x240] ss:$16 sps:$4 sm:$0xff]  }
  0xad   : > { %1880 = vmatpush1.bf16.msra.mxu0 %v2853_v7  ;;  %v2861_v13 = vld [vmem:[%s3816_s3 + $0x64] ss:$16 sps:$4 sm:$0xff]   ;;  %v2865_v15 = vld [vmem:[%s3816_s3 + $0x60] ss:$16 sps:$4 sm:$0xff]  }
  0xae   : > { %1921 = vmatpush1.bf16.msra.mxu1 %v2854_v8  ;;  %1881 = vmatprep.subr.bf16.mxu0 %v2855_v9  ;;  %v2863_v14 = vld [vmem:[%s3816_s3 + $0x264] ss:$16 sps:$4 sm:$0xff]   ;;  %v2866_v16 = vld [vmem:[%s3816_s3 + $0x260] ss:$16 sps:$4 sm:$0xff]   ;;  %v3912_v8 = vcombine.low %v310_v49, %v310_v49 }
  0xaf   : > { %1922 = vmatprep.subr.bf16.mxu1 %v2857_v10  ;;  %v2867_v17 = vld [vmem:[%s3816_s3 + $0x84] ss:$16 sps:$4 sm:$0xff]   ;;  %v2871_v19 = vld [vmem:[%s3816_s3 + $0x80] ss:$16 sps:$4 sm:$0xff]  }
  0xb0   : > { %v2869_v18 = vld [vmem:[%s3816_s3 + $0x284] ss:$16 sps:$4 sm:$0xff]   ;;  %v2872_v20 = vld [vmem:[%s3816_s3 + $0x280] ss:$16 sps:$4 sm:$0xff]  }
  0xb1   : > { %1882 = vmatpush1.bf16.msra.mxu0 %v2859_v11  ;;  %v2873_v21 = vld [vmem:[%s3816_s3 + $0xa4] ss:$16 sps:$4 sm:$0xff]   ;;  %v2877_v23 = vld [vmem:[%s3816_s3 + $0xa0] ss:$16 sps:$4 sm:$0xff]  }
  0xb2   : > { %1923 = vmatpush1.bf16.msra.mxu1 %v2860_v12  ;;  %1883 = vmatprep.subr.bf16.mxu0 %v2861_v13  ;;  %v2875_v22 = vld [vmem:[%s3816_s3 + $0x2a4] ss:$16 sps:$4 sm:$0xff]   ;;  %v2878_v24 = vld [vmem:[%s3816_s3 + $0x2a0] ss:$16 sps:$4 sm:$0xff]  }
  0xb3   : > { %1924 = vmatprep.subr.bf16.mxu1 %v2863_v14  ;;  %v2879_v25 = vld [vmem:[%s3816_s3 + $0xc4] ss:$16 sps:$4 sm:$0xff]   ;;  %v2883_v27 = vld [vmem:[%s3816_s3 + $0xc0] ss:$16 sps:$4 sm:$0xff]  }
  0xb4   : > { %v2881_v26 = vld [vmem:[%s3816_s3 + $0x2c4] ss:$16 sps:$4 sm:$0xff]   ;;  %v2884_v28 = vld [vmem:[%s3816_s3 + $0x2c0] ss:$16 sps:$4 sm:$0xff]  }
  0xb5   : > { %1884 = vmatpush1.bf16.msra.mxu0 %v2865_v15  ;;  %v2885_v29 = vld [vmem:[%s3816_s3 + $0xe4] ss:$16 sps:$4 sm:$0xff]   ;;  %v2889_v31 = vld [vmem:[%s3816_s3 + $0xe0] ss:$16 sps:$4 sm:$0xff]  }
  0xb6   : > { %1925 = vmatpush1.bf16.msra.mxu1 %v2866_v16  ;;  %1885 = vmatprep.subr.bf16.mxu0 %v2867_v17  ;;  %v2887_v30 = vld [vmem:[%s3816_s3 + $0x2e4] ss:$16 sps:$4 sm:$0xff]   ;;  %v2890_v32 = vld [vmem:[%s3816_s3 + $0x2e0] ss:$16 sps:$4 sm:$0xff]  }
  0xb7   : > { %1926 = vmatprep.subr.bf16.mxu1 %v2869_v18  ;;  %v2891_v33 = vld [vmem:[%s3816_s3 + $0x104] ss:$16 sps:$4 sm:$0xff]   ;;  %v2895_v35 = vld [vmem:[%s3816_s3 + $0x100] ss:$16 sps:$4 sm:$0xff]  }
  0xb8   : > { %v2893_v34 = vld [vmem:[%s3816_s3 + $0x304] ss:$16 sps:$4 sm:$0xff]   ;;  %v2896_v36 = vld [vmem:[%s3816_s3 + $0x300] ss:$16 sps:$4 sm:$0xff]  }
  0xb9   : > { %1886 = vmatpush1.bf16.msra.mxu0 %v2871_v19  ;;  %v2897_v37 = vld [vmem:[%s3816_s3 + $0x124] ss:$16 sps:$4 sm:$0xff]   ;;  %v2901_v39 = vld [vmem:[%s3816_s3 + $0x120] ss:$16 sps:$4 sm:$0xff]  }
  0xba   : > { %1927 = vmatpush1.bf16.msra.mxu1 %v2872_v20  ;;  %1887 = vmatprep.subr.bf16.mxu0 %v2873_v21  ;;  %v2899_v38 = vld [vmem:[%s3816_s3 + $0x324] ss:$16 sps:$4 sm:$0xff]   ;;  %v2902_v40 = vld [vmem:[%s3816_s3 + $0x320] ss:$16 sps:$4 sm:$0xff]  }
  0xbb   : > { %1928 = vmatprep.subr.bf16.mxu1 %v2875_v22  ;;  %v2903_v41 = vld [vmem:[%s3816_s3 + $0x144] ss:$16 sps:$4 sm:$0xff]   ;;  %v2907_v43 = vld [vmem:[%s3816_s3 + $0x140] ss:$16 sps:$4 sm:$0xff]  }
  0xbc   : > { %v2905_v42 = vld [vmem:[%s3816_s3 + $0x344] ss:$16 sps:$4 sm:$0xff]   ;;  %v2908_v44 = vld [vmem:[%s3816_s3 + $0x340] ss:$16 sps:$4 sm:$0xff]  }
  0xbd   : > { %1888 = vmatpush1.bf16.msra.mxu0 %v2877_v23  ;;  %v2909_v45 = vld [vmem:[%s3816_s3 + $0x164] ss:$16 sps:$4 sm:$0xff]   ;;  %v2913_v50 = vld [vmem:[%s3816_s3 + $0x160] ss:$16 sps:$4 sm:$0xff]  }
  0xbe   : > { %1929 = vmatpush1.bf16.msra.mxu1 %v2878_v24  ;;  %1889 = vmatprep.subr.bf16.mxu0 %v2879_v25  ;;  %v2911_v46 = vld [vmem:[%s3816_s3 + $0x364] ss:$16 sps:$4 sm:$0xff]   ;;  %v2914_v51 = vld [vmem:[%s3816_s3 + $0x360] ss:$16 sps:$4 sm:$0xff]  }
  0xbf   : > { %1930 = vmatprep.subr.bf16.mxu1 %v2881_v26  ;;  %v309_v47 = vld [vmem:[%s3808_s20] sm:$0xff] }
  0xc0   : > { %v3883_v48 = vcombine.high %v309_v47, %v309_v47  ;;  %v2915_v53 = vld [vmem:[%s3816_s3 + $0x184] ss:$16 sps:$4 sm:$0xff]   ;;  %v2919_v55 = vld [vmem:[%s3816_s3 + $0x180] ss:$16 sps:$4 sm:$0xff]   ;;  %v3910_v7 = vcombine.low %v309_v47, %v309_v47 }
  0xc1   : > { %1890 = vmatpush1.bf16.msra.mxu0 %v2883_v27  ;;  %v2917_v54 = vld [vmem:[%s3816_s3 + $0x384] ss:$16 sps:$4 sm:$0xff]   ;;  %v2920_v56 = vld [vmem:[%s3816_s3 + $0x380] ss:$16 sps:$4 sm:$0xff]  }
  0xc2   : > { %1931 = vmatpush1.bf16.msra.mxu1 %v2884_v28  ;;  %1891 = vmatprep.subr.bf16.mxu0 %v2885_v29  ;;  %v2921_v57 = vld [vmem:[%s3816_s3 + $0x1a4] ss:$16 sps:$4 sm:$0xff]   ;;  %v2925_v59 = vld [vmem:[%s3816_s3 + $0x1a0] ss:$16 sps:$4 sm:$0xff]  }
  0xc3   : > { %1932 = vmatprep.subr.bf16.mxu1 %v2887_v30  ;;  %1909 = vmatprep.mubr.bf16.mxu0 %v3883_v48  ;;  %v2923_v58 = vld [vmem:[%s3816_s3 + $0x3a4] ss:$16 sps:$4 sm:$0xff]   ;;  %v2926_v60 = vld [vmem:[%s3816_s3 + $0x3a0] ss:$16 sps:$4 sm:$0xff]  }
  0xc4   : > { %v2927_v61 = vld [vmem:[%s3816_s3 + $0x1c4] ss:$16 sps:$4 sm:$0xff]   ;;  %v2931_v63 = vld [vmem:[%s3816_s3 + $0x1c0] ss:$16 sps:$4 sm:$0xff]  }
  0xc5   : > { %1892 = vmatpush1.bf16.msra.mxu0 %v2889_v31  ;;  %v2929_v62 = vld [vmem:[%s3816_s3 + $0x3c4] ss:$16 sps:$4 sm:$0xff]   ;;  %v2932_v0 = vld [vmem:[%s3816_s3 + $0x3c0] ss:$16 sps:$4 sm:$0xff]  }
  0xc6   : > { %1933 = vmatpush1.bf16.msra.mxu1 %v2890_v32  ;;  %1893 = vmatprep.subr.bf16.mxu0 %v2891_v33  ;;  %v2933_v1 = vld [vmem:[%s3816_s3 + $0x1e4] ss:$16 sps:$4 sm:$0xff]   ;;  %v2937_v3 = vld [vmem:[%s3816_s3 + $0x1e0] ss:$16 sps:$4 sm:$0xff]  }
  0xc7   : > { %1934 = vmatprep.subr.bf16.mxu1 %v2893_v34  ;;  %v2935_v2 = vld [vmem:[%s3816_s3 + $0x3e4] ss:$16 sps:$4 sm:$0xff]   ;;  %v2938_v4 = vld [vmem:[%s3816_s3 + $0x3e0] ss:$16 sps:$4 sm:$0xff]   ;;  %v3944_v34 = vld [vmem:[%s3808_s20 + $0x18] sm:$0xff] }
  0xc8   : > { %v2945_v5 = vld [vmem:[%s3816_s3 + $0x404] ss:$16 sps:$4 sm:$0xff]   ;;  %v2943_v9 = vld [vmem:[%s3816_s3 + $0x400] ss:$16 sps:$4 sm:$0xff]  }
  0xc9   : > { %1894 = vmatpush1.bf16.msra.mxu0 %v2895_v35  ;;  %v2948_v6 = vld [vmem:[%s3816_s3 + $0x604] ss:$16 sps:$4 sm:$0xff]   ;;  %v2946_v10 = vld [vmem:[%s3816_s3 + $0x600] ss:$16 sps:$4 sm:$0xff]  }
  0xca   : > { %1935 = vmatpush1.bf16.msra.mxu1 %v2896_v36  ;;  %1895 = vmatprep.subr.bf16.mxu0 %v2897_v37  ;;  %v2951_v11 = vld [vmem:[%s3816_s3 + $0x424] ss:$16 sps:$4 sm:$0xff]   ;;  %v2949_v13 = vld [vmem:[%s3816_s3 + $0x420] ss:$16 sps:$4 sm:$0xff]  }
  0xcb   : > { %1936 = vmatprep.subr.bf16.mxu1 %v2899_v38  ;;  %v2954_v12 = vld [vmem:[%s3816_s3 + $0x624] ss:$16 sps:$4 sm:$0xff]   ;;  %v2952_v14 = vld [vmem:[%s3816_s3 + $0x620] ss:$16 sps:$4 sm:$0xff]   ;;  %v3954_v38 = vcombine.high %v3944_v34, %v3944_v34 }
  0xcc   : > { %v2957_v15 = vld [vmem:[%s3816_s3 + $0x444] ss:$16 sps:$4 sm:$0xff]   ;;  %v2955_v17 = vld [vmem:[%s3816_s3 + $0x440] ss:$16 sps:$4 sm:$0xff]  }
  0xcd   : > { %1896 = vmatpush1.bf16.msra.mxu0 %v2901_v39  ;;  %v2960_v16 = vld [vmem:[%s3816_s3 + $0x644] ss:$16 sps:$4 sm:$0xff]   ;;  %v2958_v18 = vld [vmem:[%s3816_s3 + $0x640] ss:$16 sps:$4 sm:$0xff]  }
  0xce   : > { %1937 = vmatpush1.bf16.msra.mxu1 %v2902_v40  ;;  %1897 = vmatprep.subr.bf16.mxu0 %v2903_v41  ;;  %v2963_v19 = vld [vmem:[%s3816_s3 + $0x464] ss:$16 sps:$4 sm:$0xff]   ;;  %v2961_v21 = vld [vmem:[%s3816_s3 + $0x460] ss:$16 sps:$4 sm:$0xff]  }
  0xcf   : > { %1938 = vmatprep.subr.bf16.mxu1 %v2905_v42  ;;  %v2966_v20 = vld [vmem:[%s3816_s3 + $0x664] ss:$16 sps:$4 sm:$0xff]   ;;  %v2964_v22 = vld [vmem:[%s3816_s3 + $0x660] ss:$16 sps:$4 sm:$0xff]  }
  0xd0   : > { %v2969_v23 = vld [vmem:[%s3816_s3 + $0x484] ss:$16 sps:$4 sm:$0xff]   ;;  %v2967_v25 = vld [vmem:[%s3816_s3 + $0x480] ss:$16 sps:$4 sm:$0xff]  }
  0xd1   : > { %1898 = vmatpush1.bf16.msra.mxu0 %v2907_v43  ;;  %v2972_v24 = vld [vmem:[%s3816_s3 + $0x684] ss:$16 sps:$4 sm:$0xff]   ;;  %v2970_v26 = vld [vmem:[%s3816_s3 + $0x680] ss:$16 sps:$4 sm:$0xff]  }
  0xd2   : > { %1939 = vmatpush1.bf16.msra.mxu1 %v2908_v44  ;;  %1899 = vmatprep.subr.bf16.mxu0 %v2909_v45  ;;  %v2975_v27 = vld [vmem:[%s3816_s3 + $0x4a4] ss:$16 sps:$4 sm:$0xff]   ;;  %v2973_v29 = vld [vmem:[%s3816_s3 + $0x4a0] ss:$16 sps:$4 sm:$0xff]  }
  0xd3   : > { %1940 = vmatprep.subr.bf16.mxu1 %v2911_v46  ;;  %v2978_v28 = vld [vmem:[%s3816_s3 + $0x6a4] ss:$16 sps:$4 sm:$0xff]   ;;  %v2976_v30 = vld [vmem:[%s3816_s3 + $0x6a0] ss:$16 sps:$4 sm:$0xff]  }
  0xd4   : > { %v2981_v31 = vld [vmem:[%s3816_s3 + $0x4c4] ss:$16 sps:$4 sm:$0xff]   ;;  %v2979_v35 = vld [vmem:[%s3816_s3 + $0x4c0] ss:$16 sps:$4 sm:$0xff]  }
  0xd5   : > { %1900 = vmatpush1.bf16.msra.mxu0 %v2913_v50  ;;  %v2984_v32 = vld [vmem:[%s3816_s3 + $0x6c4] ss:$16 sps:$4 sm:$0xff]   ;;  %v2982_v36 = vld [vmem:[%s3816_s3 + $0x6c0] ss:$16 sps:$4 sm:$0xff]  }
  0xd6   : > { %1941 = vmatpush1.bf16.msra.mxu1 %v2914_v51  ;;  %1901 = vmatprep.subr.bf16.mxu0 %v2915_v53  ;;  %v3941_v33 = vld [vmem:[%s3808_s20 + $0x10] sm:$0xff] }
  0xd7   : > { %1942 = vmatprep.subr.bf16.mxu1 %v2917_v54  ;;  %v3950_v37 = vcombine.high %v3941_v33, %v3941_v33  ;;  %v2987_v39 = vld [vmem:[%s3816_s3 + $0x4e4] ss:$16 sps:$4 sm:$0xff]   ;;  %v2985_v41 = vld [vmem:[%s3816_s3 + $0x4e0] ss:$16 sps:$4 sm:$0xff]  }
  0xd8   : > { %v2990_v40 = vld [vmem:[%s3816_s3 + $0x6e4] ss:$16 sps:$4 sm:$0xff]   ;;  %v2988_v42 = vld [vmem:[%s3816_s3 + $0x6e0] ss:$16 sps:$4 sm:$0xff]  }
  0xd9   : > { %1902 = vmatpush1.bf16.msra.mxu0 %v2919_v55  ;;  %v2993_v43 = vld [vmem:[%s3816_s3 + $0x504] ss:$16 sps:$4 sm:$0xff]   ;;  %v2991_v45 = vld [vmem:[%s3816_s3 + $0x500] ss:$16 sps:$4 sm:$0xff]  }
  0xda   : > { %1943 = vmatpush1.bf16.msra.mxu1 %v2920_v56  ;;  %1903 = vmatprep.subr.bf16.mxu0 %v2921_v57  ;;  %v2996_v44 = vld [vmem:[%s3816_s3 + $0x704] ss:$16 sps:$4 sm:$0xff]   ;;  %v2994_v46 = vld [vmem:[%s3816_s3 + $0x700] ss:$16 sps:$4 sm:$0xff]  }
  0xdb   : > { %1944 = vmatprep.subr.bf16.mxu1 %v2923_v58  ;;  %v2999_v47 = vld [vmem:[%s3816_s3 + $0x524] ss:$16 sps:$4 sm:$0xff]   ;;  %v2997_v50 = vld [vmem:[%s3816_s3 + $0x520] ss:$16 sps:$4 sm:$0xff]  }
  0xdc   : > { %v3002_v49 = vld [vmem:[%s3816_s3 + $0x724] ss:$16 sps:$4 sm:$0xff]   ;;  %v3000_v51 = vld [vmem:[%s3816_s3 + $0x720] ss:$16 sps:$4 sm:$0xff]  }
  0xdd   : > { %1904 = vmatpush1.bf16.msra.mxu0 %v2925_v59  ;;  %v3005_v53 = vld [vmem:[%s3816_s3 + $0x544] ss:$16 sps:$4 sm:$0xff]   ;;  %v3003_v55 = vld [vmem:[%s3816_s3 + $0x540] ss:$16 sps:$4 sm:$0xff]  }
  0xde   : > { %1945 = vmatpush1.bf16.msra.mxu1 %v2926_v60  ;;  %1905 = vmatprep.subr.bf16.mxu0 %v2927_v61  ;;  %v3008_v54 = vld [vmem:[%s3816_s3 + $0x744] ss:$16 sps:$4 sm:$0xff]   ;;  %v3006_v56 = vld [vmem:[%s3816_s3 + $0x740] ss:$16 sps:$4 sm:$0xff]  }
  0xdf   : > { %1946 = vmatprep.subr.bf16.mxu1 %v2929_v62  ;;  %v3011_v57 = vld [vmem:[%s3816_s3 + $0x564] ss:$16 sps:$4 sm:$0xff]   ;;  %v3009_v59 = vld [vmem:[%s3816_s3 + $0x560] ss:$16 sps:$4 sm:$0xff]  }
  0xe0   : > { %v3014_v58 = vld [vmem:[%s3816_s3 + $0x764] ss:$16 sps:$4 sm:$0xff]   ;;  %v3012_v60 = vld [vmem:[%s3816_s3 + $0x760] ss:$16 sps:$4 sm:$0xff]  }
  0xe1   : > { %1906 = vmatpush1.bf16.msra.mxu0 %v2931_v63  ;;  %v3017_v61 = vld [vmem:[%s3816_s3 + $0x584] ss:$16 sps:$4 sm:$0xff]   ;;  %v3015_v63 = vld [vmem:[%s3816_s3 + $0x580] ss:$16 sps:$4 sm:$0xff]  }
  0xe2   : > { %1947 = vmatpush1.bf16.msra.mxu1 %v2932_v0  ;;  %1907 = vmatprep.subr.bf16.mxu0 %v2933_v1  ;;  %v3020_v62 = vld [vmem:[%s3816_s3 + $0x784] ss:$16 sps:$4 sm:$0xff]   ;;  %v3018_v0 = vld [vmem:[%s3816_s3 + $0x780] ss:$16 sps:$4 sm:$0xff]  }
  0xe3   : > { %1948 = vmatprep.subr.bf16.mxu1 %v2935_v2  ;;  %v3023_v1 = vld [vmem:[%s3816_s3 + $0x5a4] ss:$16 sps:$4 sm:$0xff]  }
  0xe4   : > { %v3026_v2 = vld [vmem:[%s3816_s3 + $0x7a4] ss:$16 sps:$4 sm:$0xff]  }
  0xe5   : > { %1908 = vmatpush1.bf16.msra.mxu0 %v2937_v3  ;;  %v3021_v3 = vld [vmem:[%s3816_s3 + $0x5a0] ss:$16 sps:$4 sm:$0xff]  }
  0xe6   : > { %1949 = vmatpush1.bf16.msra.mxu1 %v2938_v4  ;;  %1959 = vmatprep.subr.bf16.mxu0 %v2945_v5  ;;  %v3024_v4 = vld [vmem:[%s3816_s3 + $0x7a0] ss:$16 sps:$4 sm:$0xff]   ;;  %v3029_v5 = vld [vmem:[%s3816_s3 + $0x5c4] ss:$16 sps:$4 sm:$0xff]  }
  0xe7   : > { %2000 = vmatprep.subr.bf16.mxu1 %v2948_v6  ;;  %v3032_v6 = vld [vmem:[%s3816_s3 + $0x7c4] ss:$16 sps:$4 sm:$0xff]  }
  0xe8   : > { %1910 = vmatmul.mubr.bf16.vlgmr.msra.gmra.mrb[0].mxu0 %v3910_v7 }
  0xe9   : > { %1951 = vmatmul.mubr.bf16.vlgmr.msra.gmra.mrb[0].mxu1 %v3912_v8  ;;  %1960 = vmatpush1.bf16.msra.mxu0 %v2943_v9  ;;  %v3027_v9 = vld [vmem:[%s3816_s3 + $0x5c0] ss:$16 sps:$4 sm:$0xff]  }
  0xea   : > { %2001 = vmatpush1.bf16.msra.mxu1 %v2946_v10  ;;  %1961 = vmatprep.subr.bf16.mxu0 %v2951_v11  ;;  %v3030_v10 = vld [vmem:[%s3816_s3 + $0x7c0] ss:$16 sps:$4 sm:$0xff]   ;;  %v3035_v11 = vld [vmem:[%s3816_s3 + $0x5e4] ss:$16 sps:$4 sm:$0xff]  }
  0xeb   : > { %2002 = vmatprep.subr.bf16.mxu1 %v2954_v12  ;;  %1991 = vmatprep.mubr.bf16.mxu0 %v3950_v37  ;;  %v3038_v12 = vld [vmem:[%s3816_s3 + $0x7e4] ss:$16 sps:$4 sm:$0xff]  }
  0xec   : > { %2032 = vmatprep.mubr.bf16.mxu1 %v3954_v38 }
  0xed   : > { %1962 = vmatpush1.bf16.msra.mxu0 %v2949_v13  ;;  %v3033_v13 = vld [vmem:[%s3816_s3 + $0x5e0] ss:$16 sps:$4 sm:$0xff]  }
  0xee   : > { %2003 = vmatpush1.bf16.msra.mxu1 %v2952_v14  ;;  %1963 = vmatprep.subr.bf16.mxu0 %v2957_v15  ;;  %v3036_v14 = vld [vmem:[%s3816_s3 + $0x7e0] ss:$16 sps:$4 sm:$0xff]   ;;  %v3045_v15 = vld [vmem:[%s3816_s3 + $0xc] ss:$16 sps:$4 sm:$0xff]  }
  0xef   : > { %2004 = vmatprep.subr.bf16.mxu1 %v2960_v16  ;;  %v3048_v16 = vld [vmem:[%s3816_s3 + $0x20c] ss:$16 sps:$4 sm:$0xff]  }
  0xf1   : > { %1964 = vmatpush1.bf16.msra.mxu0 %v2955_v17  ;;  %v3998_v17 = vcombine.low %v3941_v33, %v3941_v33  ;;  %v3067_v33 = vld [vmem:[%s3816_s3 + $0x88] ss:$16 sps:$4 sm:$0xff]  }
  0xf2   : > { %2005 = vmatpush1.bf16.msra.mxu1 %v2958_v18  ;;  %1965 = vmatprep.subr.bf16.mxu0 %v2963_v19  ;;  %v4002_v18 = vcombine.low %v3944_v34, %v3944_v34  ;;  %v3043_v19 = vld [vmem:[%s3816_s3 + $0x8] ss:$16 sps:$4 sm:$0xff]  }
  0xf3   : > { %2006 = vmatprep.subr.bf16.mxu1 %v2966_v20  ;;  %v3046_v20 = vld [vmem:[%s3816_s3 + $0x208] ss:$16 sps:$4 sm:$0xff]  }
  0xf4   : > { %v3070_v34 = vld [vmem:[%s3816_s3 + $0x288] ss:$16 sps:$4 sm:$0xff]  }
  0xf5   : > { %1966 = vmatpush1.bf16.msra.mxu0 %v2961_v21  ;;  %v3051_v21 = vld [vmem:[%s3816_s3 + $0x2c] ss:$16 sps:$4 sm:$0xff]  }
  0xf6   : > { %2007 = vmatpush1.bf16.msra.mxu1 %v2964_v22  ;;  %1967 = vmatprep.subr.bf16.mxu0 %v2969_v23  ;;  %v3054_v22 = vld [vmem:[%s3816_s3 + $0x22c] ss:$16 sps:$4 sm:$0xff]   ;;  %v3049_v23 = vld [vmem:[%s3816_s3 + $0x28] ss:$16 sps:$4 sm:$0xff]  }
  0xf7   : > { %2008 = vmatprep.subr.bf16.mxu1 %v2972_v24  ;;  %v3052_v24 = vld [vmem:[%s3816_s3 + $0x228] ss:$16 sps:$4 sm:$0xff]  }
  0xf9   : > { %1968 = vmatpush1.bf16.msra.mxu0 %v2967_v25  ;;  %v3057_v25 = vld [vmem:[%s3816_s3 + $0x4c] ss:$16 sps:$4 sm:$0xff]  }
  0xfa   : > { %2009 = vmatpush1.bf16.msra.mxu1 %v2970_v26  ;;  %1969 = vmatprep.subr.bf16.mxu0 %v2975_v27  ;;  %v3060_v26 = vld [vmem:[%s3816_s3 + $0x24c] ss:$16 sps:$4 sm:$0xff]   ;;  %v3055_v27 = vld [vmem:[%s3816_s3 + $0x48] ss:$16 sps:$4 sm:$0xff]  }
  0xfb   : > { %2010 = vmatprep.subr.bf16.mxu1 %v2978_v28  ;;  %v3058_v28 = vld [vmem:[%s3816_s3 + $0x248] ss:$16 sps:$4 sm:$0xff]  }
  0xfd   : > { %1970 = vmatpush1.bf16.msra.mxu0 %v2973_v29  ;;  %v3063_v29 = vld [vmem:[%s3816_s3 + $0x6c] ss:$16 sps:$4 sm:$0xff]  }
  0xfe   : > { %2011 = vmatpush1.bf16.msra.mxu1 %v2976_v30  ;;  %1971 = vmatprep.subr.bf16.mxu0 %v2981_v31  ;;  %v3066_v30 = vld [vmem:[%s3816_s3 + $0x26c] ss:$16 sps:$4 sm:$0xff]   ;;  %v3061_v31 = vld [vmem:[%s3816_s3 + $0x68] ss:$16 sps:$4 sm:$0xff]  }
  0xff   : > { %2012 = vmatprep.subr.bf16.mxu1 %v2984_v32  ;;  %v3064_v32 = vld [vmem:[%s3816_s3 + $0x268] ss:$16 sps:$4 sm:$0xff]  }
 0x101   : > { %1972 = vmatpush1.bf16.msra.mxu0 %v2979_v35  ;;  %v3075_v35 = vld [vmem:[%s3816_s3 + $0xac] ss:$16 sps:$4 sm:$0xff]  }
 0x102   : > { %2013 = vmatpush1.bf16.msra.mxu1 %v2982_v36  ;;  %1973 = vmatprep.subr.bf16.mxu0 %v2987_v39  ;;  %v3078_v36 = vld [vmem:[%s3816_s3 + $0x2ac] ss:$16 sps:$4 sm:$0xff]   ;;  %v3073_v39 = vld [vmem:[%s3816_s3 + $0xa8] ss:$16 sps:$4 sm:$0xff]  }
 0x103   : > { %2014 = vmatprep.subr.bf16.mxu1 %v2990_v40  ;;  %v3076_v40 = vld [vmem:[%s3816_s3 + $0x2a8] ss:$16 sps:$4 sm:$0xff]  }
 0x105   : > { %1974 = vmatpush1.bf16.msra.mxu0 %v2985_v41  ;;  %v3081_v41 = vld [vmem:[%s3816_s3 + $0xcc] ss:$16 sps:$4 sm:$0xff]  }
 0x106   : > { %2015 = vmatpush1.bf16.msra.mxu1 %v2988_v42  ;;  %1975 = vmatprep.subr.bf16.mxu0 %v2993_v43  ;;  %v3084_v42 = vld [vmem:[%s3816_s3 + $0x2cc] ss:$16 sps:$4 sm:$0xff]   ;;  %v3079_v43 = vld [vmem:[%s3816_s3 + $0xc8] ss:$16 sps:$4 sm:$0xff]  }
 0x107   : > { %2016 = vmatprep.subr.bf16.mxu1 %v2996_v44  ;;  %v3082_v44 = vld [vmem:[%s3816_s3 + $0x2c8] ss:$16 sps:$4 sm:$0xff]  }
 0x109   : > { %1976 = vmatpush1.bf16.msra.mxu0 %v2991_v45  ;;  %v3087_v45 = vld [vmem:[%s3816_s3 + $0xec] ss:$16 sps:$4 sm:$0xff]  }
 0x10a   : > { %2017 = vmatpush1.bf16.msra.mxu1 %v2994_v46  ;;  %1977 = vmatprep.subr.bf16.mxu0 %v2999_v47  ;;  %v3090_v46 = vld [vmem:[%s3816_s3 + $0x2ec] ss:$16 sps:$4 sm:$0xff]   ;;  %v3085_v47 = vld [vmem:[%s3816_s3 + $0xe8] ss:$16 sps:$4 sm:$0xff]  }
 0x10b   : > { %2018 = vmatprep.subr.bf16.mxu1 %v3002_v49  ;;  %v3088_v49 = vld [vmem:[%s3816_s3 + $0x2e8] ss:$16 sps:$4 sm:$0xff]  }
 0x10d   : > { %1978 = vmatpush1.bf16.msra.mxu0 %v2997_v50  ;;  %v3093_v50 = vld [vmem:[%s3816_s3 + $0x10c] ss:$16 sps:$4 sm:$0xff]  }
 0x10e   : > { %2019 = vmatpush1.bf16.msra.mxu1 %v3000_v51  ;;  %1979 = vmatprep.subr.bf16.mxu0 %v3005_v53  ;;  %v3096_v51 = vld [vmem:[%s3816_s3 + $0x30c] ss:$16 sps:$4 sm:$0xff]   ;;  %v3091_v53 = vld [vmem:[%s3816_s3 + $0x108] ss:$16 sps:$4 sm:$0xff]  }
 0x10f   : > { %2020 = vmatprep.subr.bf16.mxu1 %v3008_v54  ;;  %v3094_v54 = vld [vmem:[%s3816_s3 + $0x308] ss:$16 sps:$4 sm:$0xff]  }
 0x111   : > { %1980 = vmatpush1.bf16.msra.mxu0 %v3003_v55  ;;  %v3099_v55 = vld [vmem:[%s3816_s3 + $0x12c] ss:$16 sps:$4 sm:$0xff]  }
 0x112   : > { %2021 = vmatpush1.bf16.msra.mxu1 %v3006_v56  ;;  %1981 = vmatprep.subr.bf16.mxu0 %v3011_v57  ;;  %v3102_v56 = vld [vmem:[%s3816_s3 + $0x32c] ss:$16 sps:$4 sm:$0xff]   ;;  %v3097_v57 = vld [vmem:[%s3816_s3 + $0x128] ss:$16 sps:$4 sm:$0xff]  }
 0x113   : > { %2022 = vmatprep.subr.bf16.mxu1 %v3014_v58  ;;  %v3100_v58 = vld [vmem:[%s3816_s3 + $0x328] ss:$16 sps:$4 sm:$0xff]  }
 0x115   : > { %1982 = vmatpush1.bf16.msra.mxu0 %v3009_v59  ;;  %v3105_v59 = vld [vmem:[%s3816_s3 + $0x14c] ss:$16 sps:$4 sm:$0xff]  }
 0x116   : > { %2023 = vmatpush1.bf16.msra.mxu1 %v3012_v60  ;;  %1983 = vmatprep.subr.bf16.mxu0 %v3017_v61  ;;  %v3108_v60 = vld [vmem:[%s3816_s3 + $0x34c] ss:$16 sps:$4 sm:$0xff]   ;;  %v3103_v61 = vld [vmem:[%s3816_s3 + $0x148] ss:$16 sps:$4 sm:$0xff]  }
 0x117   : > { %2024 = vmatprep.subr.bf16.mxu1 %v3020_v62  ;;  %v3106_v62 = vld [vmem:[%s3816_s3 + $0x348] ss:$16 sps:$4 sm:$0xff]  }
 0x119   : > { %1984 = vmatpush1.bf16.msra.mxu0 %v3015_v63  ;;  %v3111_v63 = vld [vmem:[%s3816_s3 + $0x16c] ss:$16 sps:$4 sm:$0xff]  }
 0x11a   : > { %2025 = vmatpush1.bf16.msra.mxu1 %v3018_v0  ;;  %1985 = vmatprep.subr.bf16.mxu0 %v3023_v1  ;;  %v3114_v0 = vld [vmem:[%s3816_s3 + $0x36c] ss:$16 sps:$4 sm:$0xff]   ;;  %v3109_v1 = vld [vmem:[%s3816_s3 + $0x168] ss:$16 sps:$4 sm:$0xff]  }
 0x11b   : > { %2026 = vmatprep.subr.bf16.mxu1 %v3026_v2  ;;  %v3112_v2 = vld [vmem:[%s3816_s3 + $0x368] ss:$16 sps:$4 sm:$0xff]  }
 0x11d   : > { %1986 = vmatpush1.bf16.msra.mxu0 %v3021_v3  ;;  %v3117_v3 = vld [vmem:[%s3816_s3 + $0x18c] ss:$16 sps:$4 sm:$0xff]  }
 0x11e   : > { %2027 = vmatpush1.bf16.msra.mxu1 %v3024_v4  ;;  %1987 = vmatprep.subr.bf16.mxu0 %v3029_v5  ;;  %v3120_v4 = vld [vmem:[%s3816_s3 + $0x38c] ss:$16 sps:$4 sm:$0xff]   ;;  %v3115_v5 = vld [vmem:[%s3816_s3 + $0x188] ss:$16 sps:$4 sm:$0xff]  }
 0x11f   : > { %2028 = vmatprep.subr.bf16.mxu1 %v3032_v6  ;;  %v3118_v6 = vld [vmem:[%s3816_s3 + $0x388] ss:$16 sps:$4 sm:$0xff]  }
 0x121   : > { %1988 = vmatpush1.bf16.msra.mxu0 %v3027_v9  ;;  %v3123_v9 = vld [vmem:[%s3816_s3 + $0x1ac] ss:$16 sps:$4 sm:$0xff]  }
 0x122   : > { %2029 = vmatpush1.bf16.msra.mxu1 %v3030_v10  ;;  %1989 = vmatprep.subr.bf16.mxu0 %v3035_v11  ;;  %v3126_v10 = vld [vmem:[%s3816_s3 + $0x3ac] ss:$16 sps:$4 sm:$0xff]   ;;  %v3121_v11 = vld [vmem:[%s3816_s3 + $0x1a8] ss:$16 sps:$4 sm:$0xff]  }
 0x123   : > { %2030 = vmatprep.subr.bf16.mxu1 %v3038_v12  ;;  %v3124_v12 = vld [vmem:[%s3816_s3 + $0x3a8] ss:$16 sps:$4 sm:$0xff]  }
 0x125   : > { %1990 = vmatpush1.bf16.msra.mxu0 %v3033_v13  ;;  %v3129_v13 = vld [vmem:[%s3816_s3 + $0x1cc] ss:$16 sps:$4 sm:$0xff]  }
 0x126   : > { %2031 = vmatpush1.bf16.msra.mxu1 %v3036_v14  ;;  %2041 = vmatprep.subr.bf16.mxu0 %v3045_v15  ;;  %v3132_v14 = vld [vmem:[%s3816_s3 + $0x3cc] ss:$16 sps:$4 sm:$0xff]   ;;  %v3127_v15 = vld [vmem:[%s3816_s3 + $0x1c8] ss:$16 sps:$4 sm:$0xff]  }
 0x127   : > { %2082 = vmatprep.subr.bf16.mxu1 %v3048_v16  ;;  %v3130_v16 = vld [vmem:[%s3816_s3 + $0x3c8] ss:$16 sps:$4 sm:$0xff]  }
 0x128   : > { %1992 = vmatmul.mubr.bf16.vlgmr.msra.gmra.mrb[4].mxu0 %v3998_v17 }
 0x129   : > { %2033 = vmatmul.mubr.bf16.vlgmr.msra.gmra.mrb[4].mxu1 %v4002_v18  ;;  %2042 = vmatpush1.bf16.msra.mxu0 %v3043_v19  ;;  %v3135_v19 = vld [vmem:[%s3816_s3 + $0x1ec] ss:$16 sps:$4 sm:$0xff]  }
 0x12a   : > { %2083 = vmatpush1.bf16.msra.mxu1 %v3046_v20  ;;  %2043 = vmatprep.subr.bf16.mxu0 %v3051_v21  ;;  %v3138_v20 = vld [vmem:[%s3816_s3 + $0x3ec] ss:$16 sps:$4 sm:$0xff]   ;;  %v3133_v21 = vld [vmem:[%s3816_s3 + $0x1e8] ss:$16 sps:$4 sm:$0xff]  }
 0x12b   : > { %2084 = vmatprep.subr.bf16.mxu1 %v3054_v22  ;;  %2073 = vmatprep.mubr.bf16.mxu0 %v3883_v48  ;;  %v3069_v48 = vld [vmem:[%s3816_s3 + $0x8c] ss:$16 sps:$4 sm:$0xff]   ;;  %v3136_v22 = vld [vmem:[%s3816_s3 + $0x3e8] ss:$16 sps:$4 sm:$0xff]  }
 0x12c   : > { %2114 = vmatprep.mubr.bf16.mxu1 %v3888_v52  ;;  %v3072_v52 = vld [vmem:[%s3816_s3 + $0x28c] ss:$16 sps:$4 sm:$0xff]  }
 0x12d   : > { %2044 = vmatpush1.bf16.msra.mxu0 %v3049_v23  ;;  %v3141_v23 = vld [vmem:[%s3816_s3 + $0x40c] ss:$16 sps:$4 sm:$0xff]  }
 0x12e   : > { %2085 = vmatpush1.bf16.msra.mxu1 %v3052_v24  ;;  %2045 = vmatprep.subr.bf16.mxu0 %v3057_v25  ;;  %v3144_v24 = vld [vmem:[%s3816_s3 + $0x60c] ss:$16 sps:$4 sm:$0xff]   ;;  %v3139_v25 = vld [vmem:[%s3816_s3 + $0x408] ss:$16 sps:$4 sm:$0xff]  }
 0x12f   : > { %2086 = vmatprep.subr.bf16.mxu1 %v3060_v26  ;;  %v3142_v26 = vld [vmem:[%s3816_s3 + $0x608] ss:$16 sps:$4 sm:$0xff]  }
 0x131   : > { %2046 = vmatpush1.bf16.msra.mxu0 %v3055_v27  ;;  %v3147_v27 = vld [vmem:[%s3816_s3 + $0x42c] ss:$16 sps:$4 sm:$0xff]  }
 0x132   : > { %2087 = vmatpush1.bf16.msra.mxu1 %v3058_v28  ;;  %2047 = vmatprep.subr.bf16.mxu0 %v3063_v29  ;;  %v3150_v28 = vld [vmem:[%s3816_s3 + $0x62c] ss:$16 sps:$4 sm:$0xff]   ;;  %v3145_v29 = vld [vmem:[%s3816_s3 + $0x428] ss:$16 sps:$4 sm:$0xff]  }
 0x133   : > { %2088 = vmatprep.subr.bf16.mxu1 %v3066_v30  ;;  %v3148_v30 = vld [vmem:[%s3816_s3 + $0x628] ss:$16 sps:$4 sm:$0xff]  }
 0x135   : > { %2048 = vmatpush1.bf16.msra.mxu0 %v3061_v31  ;;  %v3153_v31 = vld [vmem:[%s3816_s3 + $0x44c] ss:$16 sps:$4 sm:$0xff]  }
 0x136   : > { %2089 = vmatpush1.bf16.msra.mxu1 %v3064_v32  ;;  %2049 = vmatprep.subr.bf16.mxu0 %v3069_v48  ;;  %v3156_v32 = vld [vmem:[%s3816_s3 + $0x64c] ss:$16 sps:$4 sm:$0xff]  }
 0x137   : > { %2090 = vmatprep.subr.bf16.mxu1 %v3072_v52  ;;  %v3159_v48 = vld [vmem:[%s3816_s3 + $0x46c] ss:$16 sps:$4 sm:$0xff]  }
 0x138   : > { %v3162_v52 = vld [vmem:[%s3816_s3 + $0x66c] ss:$16 sps:$4 sm:$0xff]  }
 0x139   : > { %2050 = vmatpush1.bf16.msra.mxu0 %v3067_v33  ;;  %v3157_v33 = vld [vmem:[%s3816_s3 + $0x468] ss:$16 sps:$4 sm:$0xff]  }
 0x13a   : > { %2091 = vmatpush1.bf16.msra.mxu1 %v3070_v34  ;;  %2051 = vmatprep.subr.bf16.mxu0 %v3075_v35  ;;  %v3168_v34 = vld [vmem:[%s3816_s3 + $0x68c] ss:$16 sps:$4 sm:$0xff]   ;;  %v3163_v35 = vld [vmem:[%s3816_s3 + $0x488] ss:$16 sps:$4 sm:$0xff]  }
 0x13b   : > { %2092 = vmatprep.subr.bf16.mxu1 %v3078_v36  ;;  %v3166_v36 = vld [vmem:[%s3816_s3 + $0x688] ss:$16 sps:$4 sm:$0xff]  }
 0x13d   : > { %2052 = vmatpush1.bf16.msra.mxu0 %v3073_v39  ;;  %v3171_v39 = vld [vmem:[%s3816_s3 + $0x4ac] ss:$16 sps:$4 sm:$0xff]  }
 0x13e   : > { %2093 = vmatpush1.bf16.msra.mxu1 %v3076_v40  ;;  %2053 = vmatprep.subr.bf16.mxu0 %v3081_v41  ;;  %v3174_v40 = vld [vmem:[%s3816_s3 + $0x6ac] ss:$16 sps:$4 sm:$0xff]   ;;  %v3169_v41 = vld [vmem:[%s3816_s3 + $0x4a8] ss:$16 sps:$4 sm:$0xff]  }
 0x13f   : > { %2094 = vmatprep.subr.bf16.mxu1 %v3084_v42  ;;  %v3172_v42 = vld [vmem:[%s3816_s3 + $0x6a8] ss:$16 sps:$4 sm:$0xff]  }
 0x141   : > { %2054 = vmatpush1.bf16.msra.mxu0 %v3079_v43  ;;  %v3177_v43 = vld [vmem:[%s3816_s3 + $0x4cc] ss:$16 sps:$4 sm:$0xff]  }
 0x142   : > { %2095 = vmatpush1.bf16.msra.mxu1 %v3082_v44  ;;  %2055 = vmatprep.subr.bf16.mxu0 %v3087_v45  ;;  %v3180_v44 = vld [vmem:[%s3816_s3 + $0x6cc] ss:$16 sps:$4 sm:$0xff]   ;;  %v3175_v45 = vld [vmem:[%s3816_s3 + $0x4c8] ss:$16 sps:$4 sm:$0xff]  }
 0x143   : > { %2096 = vmatprep.subr.bf16.mxu1 %v3090_v46  ;;  %v3178_v46 = vld [vmem:[%s3816_s3 + $0x6c8] ss:$16 sps:$4 sm:$0xff]  }
 0x145   : > { %2056 = vmatpush1.bf16.msra.mxu0 %v3085_v47  ;;  %v3183_v47 = vld [vmem:[%s3816_s3 + $0x4ec] ss:$16 sps:$4 sm:$0xff]  }
 0x146   : > { %2097 = vmatpush1.bf16.msra.mxu1 %v3088_v49  ;;  %2057 = vmatprep.subr.bf16.mxu0 %v3093_v50  ;;  %v3186_v49 = vld [vmem:[%s3816_s3 + $0x6ec] ss:$16 sps:$4 sm:$0xff]   ;;  %v3181_v50 = vld [vmem:[%s3816_s3 + $0x4e8] ss:$16 sps:$4 sm:$0xff]  }
 0x147   : > { %2098 = vmatprep.subr.bf16.mxu1 %v3096_v51  ;;  %v3184_v51 = vld [vmem:[%s3816_s3 + $0x6e8] ss:$16 sps:$4 sm:$0xff]  }
 0x149   : > { %2058 = vmatpush1.bf16.msra.mxu0 %v3091_v53  ;;  %v3189_v53 = vld [vmem:[%s3816_s3 + $0x50c] ss:$16 sps:$4 sm:$0xff]  }
 0x14a   : > { %2099 = vmatpush1.bf16.msra.mxu1 %v3094_v54  ;;  %2059 = vmatprep.subr.bf16.mxu0 %v3099_v55  ;;  %v3192_v54 = vld [vmem:[%s3816_s3 + $0x70c] ss:$16 sps:$4 sm:$0xff]   ;;  %v3187_v55 = vld [vmem:[%s3816_s3 + $0x508] ss:$16 sps:$4 sm:$0xff]  }
 0x14b   : > { %2100 = vmatprep.subr.bf16.mxu1 %v3102_v56  ;;  %v3190_v56 = vld [vmem:[%s3816_s3 + $0x708] ss:$16 sps:$4 sm:$0xff]  }
 0x14d   : > { %2060 = vmatpush1.bf16.msra.mxu0 %v3097_v57  ;;  %v3195_v57 = vld [vmem:[%s3816_s3 + $0x52c] ss:$16 sps:$4 sm:$0xff]  }
 0x14e   : > { %2101 = vmatpush1.bf16.msra.mxu1 %v3100_v58  ;;  %2061 = vmatprep.subr.bf16.mxu0 %v3105_v59  ;;  %v3198_v58 = vld [vmem:[%s3816_s3 + $0x72c] ss:$16 sps:$4 sm:$0xff]   ;;  %v3193_v59 = vld [vmem:[%s3816_s3 + $0x528] ss:$16 sps:$4 sm:$0xff]  }
 0x14f   : > { %2102 = vmatprep.subr.bf16.mxu1 %v3108_v60  ;;  %v3196_v60 = vld [vmem:[%s3816_s3 + $0x728] ss:$16 sps:$4 sm:$0xff]  }
 0x151   : > { %2062 = vmatpush1.bf16.msra.mxu0 %v3103_v61  ;;  %v3201_v61 = vld [vmem:[%s3816_s3 + $0x54c] ss:$16 sps:$4 sm:$0xff]  }
 0x152   : > { %2103 = vmatpush1.bf16.msra.mxu1 %v3106_v62  ;;  %2063 = vmatprep.subr.bf16.mxu0 %v3111_v63  ;;  %v3204_v62 = vld [vmem:[%s3816_s3 + $0x74c] ss:$16 sps:$4 sm:$0xff]   ;;  %v3199_v63 = vld [vmem:[%s3816_s3 + $0x548] ss:$16 sps:$4 sm:$0xff]  }
 0x153   : > { %2104 = vmatprep.subr.bf16.mxu1 %v3114_v0  ;;  %v3202_v0 = vld [vmem:[%s3816_s3 + $0x748] ss:$16 sps:$4 sm:$0xff]  }
 0x155   : > { %2064 = vmatpush1.bf16.msra.mxu0 %v3109_v1  ;;  %v3207_v1 = vld [vmem:[%s3816_s3 + $0x56c] ss:$16 sps:$4 sm:$0xff]  }
 0x156   : > { %2105 = vmatpush1.bf16.msra.mxu1 %v3112_v2  ;;  %2065 = vmatprep.subr.bf16.mxu0 %v3117_v3  ;;  %v3210_v2 = vld [vmem:[%s3816_s3 + $0x76c] ss:$16 sps:$4 sm:$0xff]   ;;  %v3205_v3 = vld [vmem:[%s3816_s3 + $0x568] ss:$16 sps:$4 sm:$0xff]  }
 0x157   : > { %2106 = vmatprep.subr.bf16.mxu1 %v3120_v4  ;;  %v3208_v4 = vld [vmem:[%s3816_s3 + $0x768] ss:$16 sps:$4 sm:$0xff]  }
 0x159   : > { %2066 = vmatpush1.bf16.msra.mxu0 %v3115_v5  ;;  %v3213_v5 = vld [vmem:[%s3816_s3 + $0x58c] ss:$16 sps:$4 sm:$0xff]  }
 0x15a   : > { %2107 = vmatpush1.bf16.msra.mxu1 %v3118_v6  ;;  %2067 = vmatprep.subr.bf16.mxu0 %v3123_v9  ;;  %v3216_v6 = vld [vmem:[%s3816_s3 + $0x78c] ss:$16 sps:$4 sm:$0xff]   ;;  %v3211_v9 = vld [vmem:[%s3816_s3 + $0x588] ss:$16 sps:$4 sm:$0xff]  }
 0x15b   : > { %2108 = vmatprep.subr.bf16.mxu1 %v3126_v10  ;;  %v3214_v10 = vld [vmem:[%s3816_s3 + $0x788] ss:$16 sps:$4 sm:$0xff]  }
 0x15d   : > { %2068 = vmatpush1.bf16.msra.mxu0 %v3121_v11  ;;  %v3219_v11 = vld [vmem:[%s3816_s3 + $0x5ac] ss:$16 sps:$4 sm:$0xff]  }
 0x15e   : > { %2109 = vmatpush1.bf16.msra.mxu1 %v3124_v12  ;;  %2069 = vmatprep.subr.bf16.mxu0 %v3129_v13  ;;  %v3222_v12 = vld [vmem:[%s3816_s3 + $0x7ac] ss:$16 sps:$4 sm:$0xff]   ;;  %v3217_v13 = vld [vmem:[%s3816_s3 + $0x5a8] ss:$16 sps:$4 sm:$0xff]  }
 0x15f   : > { %2110 = vmatprep.subr.bf16.mxu1 %v3132_v14  ;;  %v3220_v14 = vld [vmem:[%s3816_s3 + $0x7a8] ss:$16 sps:$4 sm:$0xff]  }
 0x161   : > { %2070 = vmatpush1.bf16.msra.mxu0 %v3127_v15  ;;  %v3225_v15 = vld [vmem:[%s3816_s3 + $0x5cc] ss:$16 sps:$4 sm:$0xff]  }
 0x162   : > { %2111 = vmatpush1.bf16.msra.mxu1 %v3130_v16  ;;  %2071 = vmatprep.subr.bf16.mxu0 %v3135_v19  ;;  %v3228_v16 = vld [vmem:[%s3816_s3 + $0x7cc] ss:$16 sps:$4 sm:$0xff]   ;;  %v3223_v19 = vld [vmem:[%s3816_s3 + $0x5c8] ss:$16 sps:$4 sm:$0xff]  }
 0x163   : > { %2112 = vmatprep.subr.bf16.mxu1 %v3138_v20  ;;  %v3226_v20 = vld [vmem:[%s3816_s3 + $0x7c8] ss:$16 sps:$4 sm:$0xff]  }
 0x165   : > { %2072 = vmatpush1.bf16.msra.mxu0 %v3133_v21  ;;  %v3231_v21 = vld [vmem:[%s3816_s3 + $0x5ec] ss:$16 sps:$4 sm:$0xff]  }
 0x166   : > { %2113 = vmatpush1.bf16.msra.mxu1 %v3136_v22  ;;  %2123 = vmatprep.subr.bf16.mxu0 %v3141_v23  ;;  %v3234_v22 = vld [vmem:[%s3816_s3 + $0x7ec] ss:$16 sps:$4 sm:$0xff]   ;;  %v3229_v23 = vld [vmem:[%s3816_s3 + $0x5e8] ss:$16 sps:$4 sm:$0xff]  }
 0x167   : > { %2164 = vmatprep.subr.bf16.mxu1 %v3144_v24  ;;  %v3232_v24 = vld [vmem:[%s3816_s3 + $0x7e8] ss:$16 sps:$4 sm:$0xff]  }
 0x168   : > { %2074 = vmatmul.mubr.bf16.vlgmr.msra.gmra.mrb[8].mxu0 %v3910_v7  ;;  %v3151_v7 = vld [vmem:[%s3816_s3 + $0x448] ss:$16 sps:$4 sm:$0xff]  }
 0x169   : > { %2115 = vmatmul.mubr.bf16.vlgmr.msra.gmra.mrb[8].mxu1 %v3912_v8  ;;  %2124 = vmatpush1.bf16.msra.mxu0 %v3139_v25  ;;  %v3154_v8 = vld [vmem:[%s3816_s3 + $0x648] ss:$16 sps:$4 sm:$0xff]  }
 0x16a   : > { %2165 = vmatpush1.bf16.msra.mxu1 %v3142_v26  ;;  %2125 = vmatprep.subr.bf16.mxu0 %v3147_v27 }
 0x16b   : > { %2166 = vmatprep.subr.bf16.mxu1 %v3150_v28  ;;  %2155 = vmatprep.mubr.bf16.mxu0 %v3950_v37  ;;  %v3160_v37 = vld [vmem:[%s3816_s3 + $0x668] ss:$16 sps:$4 sm:$0xff]  }
 0x16c   : > { %2196 = vmatprep.mubr.bf16.mxu1 %v3954_v38  ;;  %v3165_v38 = vld [vmem:[%s3816_s3 + $0x48c] ss:$16 sps:$4 sm:$0xff]  }
 0x16d   : > { %2126 = vmatpush1.bf16.msra.mxu0 %v3145_v29 }
 0x16e   : > { %2167 = vmatpush1.bf16.msra.mxu1 %v3148_v30  ;;  %2127 = vmatprep.subr.bf16.mxu0 %v3153_v31 }
 0x16f   : > { %2168 = vmatprep.subr.bf16.mxu1 %v3156_v32 }
 0x171   : > { %2128 = vmatpush1.bf16.msra.mxu0 %v3151_v7 }
 0x172   : > { %2169 = vmatpush1.bf16.msra.mxu1 %v3154_v8  ;;  %2129 = vmatprep.subr.bf16.mxu0 %v3159_v48 }
 0x173   : > { %2170 = vmatprep.subr.bf16.mxu1 %v3162_v52 }
 0x175   : > { %2130 = vmatpush1.bf16.msra.mxu0 %v3157_v33 }
 0x176   : > { %2171 = vmatpush1.bf16.msra.mxu1 %v3160_v37  ;;  %2131 = vmatprep.subr.bf16.mxu0 %v3165_v38 }
 0x177   : > { %2172 = vmatprep.subr.bf16.mxu1 %v3168_v34  ;;  %v305_v34 = vld [vmem:[#allocation2] sm:$0xff] }
 0x179   : > { %2132 = vmatpush1.bf16.msra.mxu0 %v3163_v35 }
 0x17a   : > { %2173 = vmatpush1.bf16.msra.mxu1 %v3166_v36  ;;  %2133 = vmatprep.subr.bf16.mxu0 %v3171_v39  ;;  %v306_v39 = vld [vmem:[#allocation2 + $0x8] sm:$0xff] }
 0x17b   : > { %2174 = vmatprep.subr.bf16.mxu1 %v3174_v40 }
 0x17d   : > { %2134 = vmatpush1.bf16.msra.mxu0 %v3169_v41 }
 0x17e   : > { %2175 = vmatpush1.bf16.msra.mxu1 %v3172_v42  ;;  %2135 = vmatprep.subr.bf16.mxu0 %v3177_v43 }
 0x17f   : > { %2176 = vmatprep.subr.bf16.mxu1 %v3180_v44 }
 0x181   : > { %2136 = vmatpush1.bf16.msra.mxu0 %v3175_v45 }
 0x182   : > { %2177 = vmatpush1.bf16.msra.mxu1 %v3178_v46  ;;  %2137 = vmatprep.subr.bf16.mxu0 %v3183_v47 }
 0x183   : > { %2178 = vmatprep.subr.bf16.mxu1 %v3186_v49 }
 0x185   : > { %2138 = vmatpush1.bf16.msra.mxu0 %v3181_v50 }
 0x186   : > { %2179 = vmatpush1.bf16.msra.mxu1 %v3184_v51  ;;  %2139 = vmatprep.subr.bf16.mxu0 %v3189_v53 }
 0x187   : > { %2180 = vmatprep.subr.bf16.mxu1 %v3192_v54 }
 0x189   : > { %2140 = vmatpush1.bf16.msra.mxu0 %v3187_v55 }
 0x18a   : > { %2181 = vmatpush1.bf16.msra.mxu1 %v3190_v56  ;;  %2141 = vmatprep.subr.bf16.mxu0 %v3195_v57 }
 0x18b   : > { %2182 = vmatprep.subr.bf16.mxu1 %v3198_v58 }
 0x18d   : > { %2142 = vmatpush1.bf16.msra.mxu0 %v3193_v59 }
 0x18e   : > { %2183 = vmatpush1.bf16.msra.mxu1 %v3196_v60  ;;  %2143 = vmatprep.subr.bf16.mxu0 %v3201_v61 }
 0x18f   : > { %2184 = vmatprep.subr.bf16.mxu1 %v3204_v62  ;;  %v307_v62 = vld [vmem:[#allocation2 + $0x10] sm:$0xff] }
 0x191   : > { %2144 = vmatpush1.bf16.msra.mxu0 %v3199_v63 }
 0x192   : > { %2185 = vmatpush1.bf16.msra.mxu1 %v3202_v0  ;;  %2145 = vmatprep.subr.bf16.mxu0 %v3207_v1 }
 0x193   : > { %2186 = vmatprep.subr.bf16.mxu1 %v3210_v2 }
 0x195   : > { %2146 = vmatpush1.bf16.msra.mxu0 %v3205_v3  ;;  %v308_v3 = vld [vmem:[#allocation2 + $0x18] sm:$0xff] }
 0x196   : > { %2187 = vmatpush1.bf16.msra.mxu1 %v3208_v4  ;;  %2147 = vmatprep.subr.bf16.mxu0 %v3213_v5 }
 0x197   : > { %2188 = vmatprep.subr.bf16.mxu1 %v3216_v6 }
 0x199   : > { %2148 = vmatpush1.bf16.msra.mxu0 %v3211_v9 }
 0x19a   : > { %2189 = vmatpush1.bf16.msra.mxu1 %v3214_v10  ;;  %2149 = vmatprep.subr.bf16.mxu0 %v3219_v11  ;;  %v2223_v11 = vlaneseq (!%p2693_p9) }
 0x19b   : > { %2190 = vmatprep.subr.bf16.mxu1 %v3222_v12 }
 0x19c   : > { %v2224_v12 = vshrl.u32 (!%p2693_p9), %v2223_v11, 7 }
 0x19d   : > { %2150 = vmatpush1.bf16.msra.mxu0 %v3217_v13  ;;  %v2221_v13 = vld [vmem:[%s3826_s28] sm:$0xf] (!%p2693_p9) }
 0x19e   : > { %2191 = vmatpush1.bf16.msra.mxu1 %v3220_v14  ;;  %2151 = vmatprep.subr.bf16.mxu0 %v3225_v15  ;;  %v2225_v15 = vsub.s32 (!%p2693_p9), 0, %v2224_v12 }
 0x19f   : > { %2192 = vmatprep.subr.bf16.mxu1 %v3228_v16  ;;  %v2229_v16 = vsub.s32 (!%p2693_p9), 1, %v2224_v12 }
 0x1a1   : > { %2152 = vmatpush1.bf16.msra.mxu0 %v3223_v19  ;;  %v2233_v19 = vsub.s32 (!%p2693_p9), 2, %v2224_v12 }
 0x1a2   : > { %2193 = vmatpush1.bf16.msra.mxu1 %v3226_v20  ;;  %2153 = vmatprep.subr.bf16.mxu0 %v3231_v21  ;;  %v2237_v20 = vsub.s32 (!%p2693_p9), 3, %v2224_v12 }
 0x1a3   : > { %2194 = vmatprep.subr.bf16.mxu1 %v3234_v22 }
 0x1a5   : > { %2154 = vmatpush1.bf16.msra.mxu0 %v3229_v23 }
 0x1a6   : > { %2195 = vmatpush1.bf16.msra.mxu1 %v3232_v24  ;;  %v2226_v24 = vrot.slane (!%p2693_p9), %v2221_v13, %v2225_v15 }
 0x1a8   : > { %2156 = vmatmul.mubr.bf16.vlgmr.msra.gmra.mrb[12].mxu0 %v3998_v17 }
 0x1a9   : > { %2197 = vmatmul.mubr.bf16.vlgmr.msra.gmra.mrb[12].mxu1 %v4002_v18 }
 0x1bb   : > { %v1911_v25 = vpop.f32.mrb[0].mxu0 }
 0x1bc   : > { %v1952_v26 = vpop.f32.mrb[0].mxu1  ;;  %v1913_v28 = vpop.f32.mrb[1].mxu0 }
 0x1bd   : > { %v1953_v27 = vadd.f32 %v1952_v26, %v1911_v25  ;;  %v1954_v29 = vpop.f32.mrb[1].mxu1  ;;  %v1915_v31 = vpop.f32.mrb[2].mxu0  ;;  %v2230_v25 = vrot.slane (!%p2693_p9), %v2221_v13, %v2229_v16  ;;  %v2234_v26 = vrot.slane (!%p2693_p9), %v2221_v13, %v2233_v19 }
 0x1be   : > { %v1955_v30 = vadd.f32 %v1954_v29, %v1913_v28  ;;  %v1956_v32 = vpop.f32.mrb[2].mxu1  ;;  %v1916_v7 = vpop.f32.mrb[3].mxu0 }
 0x1bf   : > { %v1957_v8 = vpop.f32.mrb[3].mxu1 }
 0x1fb   : > { %v1993_v48 = vpop.f32.mrb[4].mxu0 }
 0x1fc   : > { %v2034_v52 = vpop.f32.mrb[4].mxu1  ;;  %v1994_v33 = vadd.f32 %v1993_v48, %v1953_v27  ;;  %v1995_v37 = vpop.f32.mrb[5].mxu0  ;;  %v2238_v27 = vrot.slane (!%p2693_p9), %v2221_v13, %v2237_v20 }
 0x1fd   : > { %v2036_v38 = vpop.f32.mrb[5].mxu1  ;;  %v1996_v35 = vadd.f32 %v1995_v37, %v1955_v30  ;;  %v1997_v17 = vpop.f32.mrb[6].mxu0 }
 0x1fe   : > { %v2038_v36 = vpop.f32.mrb[6].mxu1  ;;  %v2035_v18 = vadd.f32 %v2034_v52, %v1994_v33  ;;  %v1998_v40 = vpop.f32.mrb[7].mxu0 }
 0x1ff   : > { %v2039_v41 = vpop.f32.mrb[7].mxu1  ;;  %v2037_v42 = vadd.f32 %v2036_v38, %v1996_v35 }
 0x200   : > { %v2205_v43 = vadd.f32 %v2035_v18, %v305_v34 }
 0x201   : > { %v2206_v44 = vadd.f32 %v2037_v42, %v306_v39 }
 0x202   : > { %2209 = vst [vmem:[#allocation2] sm:$0xff] %v2205_v43 }
 0x203   : > { %2210 = vst [vmem:[#allocation2 + $0x8] sm:$0xff] %v2206_v44 }
 0x209   : > { %v2217_v14 = vld [vmem:[#allocation2] sm:$0xff] (!%p2693_p9) }
 0x20a   : > { %v2218_v21 = vld [vmem:[#allocation2 + $0x8] sm:$0xff] (!%p2693_p9)  ;;  %v2243_v28 = vadd.f32 (!%p2693_p9), %v2226_v24, %v2217_v14 }
 0x20b   : > { %v2244_v29 = vadd.f32 (!%p2693_p9), %v2230_v25, %v2218_v21 }
 0x20c   : > { %v2247_v32 = vmax.f32 (!%p2693_p9), %v2243_v28, 0.0 }
 0x20d   : > { %v2248_v7 = vmax.f32 (!%p2693_p9), %v2244_v29, 0.0 }
 0x20e   : > { %2251 = vst [vmem:[%s3833_s1] sm:$0xff] (!%p2693_p9), %v2247_v32 }
 0x20f   : > { %2252 = vst [vmem:[%s3833_s1 + $0x8] sm:$0xff] (!%p2693_p9), %v2248_v7 }
 0x23b   : > { %v2075_v45 = vpop.f32.mrb[8].mxu0 }
 0x23c   : > { %v2116_v46 = vpop.f32.mrb[8].mxu1  ;;  %v2077_v49 = vpop.f32.mrb[9].mxu0 }
 0x23d   : > { %v2117_v47 = vadd.f32 %v2116_v46, %v2075_v45  ;;  %v2118_v50 = vpop.f32.mrb[9].mxu1  ;;  %v2079_v53 = vpop.f32.mrb[10].mxu0 }
 0x23e   : > { %v2119_v51 = vadd.f32 %v2118_v50, %v2077_v49  ;;  %v2120_v54 = vpop.f32.mrb[10].mxu1  ;;  %v2080_v55 = vpop.f32.mrb[11].mxu0 }
 0x23f   : > { %v2121_v56 = vpop.f32.mrb[11].mxu1 }
 0x27b   : > { %v2157_v57 = vpop.f32.mrb[12].mxu0 }
 0x27c   : > { %v2198_v58 = vpop.f32.mrb[12].mxu1  ;;  %v2158_v59 = vadd.f32 %v2157_v57, %v2117_v47  ;;  %v2159_v60 = vpop.f32.mrb[13].mxu0 }
 0x27d   : > { %v2200_v61 = vpop.f32.mrb[13].mxu1  ;;  %v2160_v63 = vadd.f32 %v2159_v60, %v2119_v51  ;;  %v2161_v0 = vpop.f32.mrb[14].mxu0  ;;  %2216 = sbr.rel (%p2693_p9) target bundleno = 656 (0x290), region = 52 }
 0x27e   : > { %v2202_v1 = vpop.f32.mrb[14].mxu1  ;;  %v2199_v2 = vadd.f32 %v2198_v58, %v2158_v59  ;;  %v2162_v4 = vpop.f32.mrb[15].mxu0 }
 0x27f   : > { %v2203_v5 = vpop.f32.mrb[15].mxu1  ;;  %v2201_v6 = vadd.f32 %v2200_v61, %v2160_v63 }
 0x280   : > { %v2207_v9 = vadd.f32 %v2199_v2, %v307_v62 }
 0x281   : > { %v2208_v10 = vadd.f32 %v2201_v6, %v308_v3 }
 0x282   : > { %2211 = vst [vmem:[#allocation2 + $0x10] sm:$0xff] %v2207_v9 }
 0x283   : > { %2212 = vst [vmem:[#allocation2 + $0x18] sm:$0xff] %v2208_v10 }
 0x289   : > { %v2219_v22 = vld [vmem:[#allocation2 + $0x10] sm:$0xff] }
 0x28a   : > { %v2220_v23 = vld [vmem:[#allocation2 + $0x18] sm:$0xff]  ;;  %v2245_v30 = vadd.f32 %v2234_v26, %v2219_v22 }
 0x28b   : > { %v2246_v31 = vadd.f32 %v2238_v27, %v2220_v23 }
 0x28c   : > { %v2249_v8 = vmax.f32 %v2245_v30, 0.0 }
 0x28d   : > { %v2250_v48 = vmax.f32 %v2246_v31, 0.0 }
 0x28e   : > { %2253 = vst [vmem:[%s3833_s1 + $0x10] sm:$0xff] %v2249_v8 }
 0x28f   : > { %2254 = vst [vmem:[%s3833_s1 + $0x18] sm:$0xff] %v2250_v48 }
 0x290 PF: > { %s4273_s21 = sld [smem:[#allocation15_spill]]  ;;  %s4274_s22 = sld [smem:[#allocation22_spill]] }
 0x291   : > { %s2272_s24 = sshll.u32 %s3833_s1, 4  ;;  %s2256_s20 = scalar_lea.sflag [#allocation5], %s3823_s10  ;;  %s2273_s24 = int_to_ptr.vmem [resolvable:$true] %s2272_s24 }
 0x292   : > { %s3325_s0 = scalar_lea.vmem %s2273_s24, 512  ;;  %p4276_p0 = scmp.ne.s32.totalorder %s4265_s30, 0 }
 0x293   : > { %p3326_p1 = scmp.ne.s32.totalorder %s2273_s24, %s3325_s0  ;;  %s3488_s29 = smov [#allocation9]  }
 0x294   : > { %s3329_s6 = sshll.u32 %s3488_s29, 4  ;;  %s3330_s6 = int_to_ptr.vmem [resolvable:$false] %s3329_s6 }
 0x295   : > { %p3327_p5 = pnand %p3326_p1, %p4276_p0  ;;  %s3331_s3 = scalar_lea.vmem %s3330_s6, 1024 }
 0x296   : > { %s2702_s5 = sshll.u32 %s4273_s21, 9  ;;  %s4275_s26 = smov %s4274_s22 }
 0x297   : > { %s4150_s15 = scalar_lea.hbm %s4274_s22, %s2702_s5  ;;  %p3328_p3 = pneg %p3327_p5 }
 0x298   : > { %p3332_p7 = scmp.lt.s32.totalorder %s2273_s24, %s3330_s6  ;;  %p3333_p12 = scmp.lt.s32.totalorder %s3331_s3, %s3325_s0 }
 0x29a   : > { %p3334_p8 = por %p3333_p12, %p3332_p7 }
 0x29c   : > { %p3335_p13 = pnand %p3334_p8, %p3328_p3 }
 0x29e   : > { %3338 = shalt.err (!%p3335_p13)
}
 0x29f   : > { %s3339_s10 = scalar_lea.hbm %s4150_s15, 512  ;;  %s3343_s8 = scalar_lea.hbm %s4275_s26, 4096 }
 0x2a0   : > { %p3340_p10 = scmp.ne.s32.totalorder %s4150_s15, %s3339_s10  ;;  %p3344_p6 = scmp.lt.u32.totalorder %s4150_s15, %s4275_s26 }
 0x2a1   : > { %p3345_p11 = scmp.lt.u32.totalorder %s3343_s8, %s3339_s10  ;;  %p3347_p1 = scmp.lt.u32.totalorder %s3339_s10, %s4150_s15 }
 0x2a2   : > { %p3341_p4 = pnand %p3340_p10, %p4276_p0 }
 0x2a3   : > { %p3346_p9 = por %p3345_p11, %p3344_p6 }
 0x2a4   : > { %p3342_p2 = pneg %p3341_p4 }
 0x2a5   : > { %p3348_p5 = por %p3347_p1, %p3346_p9 }
 0x2a7   : > { %p3349_p3 = pnand %p3348_p5, %p3342_p2 }
 0x2a9   : > { %3352 = shalt.err (!%p3349_p3)
}
 0x2aa   : > { %2709 = dma.vmem_to_hbm [thread:$0]  (%p4276_p0), %s2273_s24, 512, %s4150_s15, %s2256_s20  }
 0x2ab PF: > { %p2726_p7 = scmp.ge.s32.totalorder %s3479_s25, 2  ;;  %s2284_s5 = sand.u32 1, %s3427_s12  }
 0x2ac   : > { %p4277_p12 = scmp.ne.s32.totalorder %s4266_s7, 0  ;;  %s2285_s18 = scalar_lea.sflag [#allocation5], %s2284_s5 }
 0x2ae   : > { %p2722_p8 = pnand %p2726_p7, %p4277_p12 }
 0x2b0   : > { %3422 = dma.done.wait (!%p2722_p8), %s2285_s18, 512  }
 0x2b1   : > { %3424 = vsyncadd (!%p2722_p8), %s2285_s18, 4294966784  ;;  %s22_s25 = sadd.s32 1, %s3479_s25   ;;  %s4279_s30 = sld [smem:[#allocation14_spill]] }
 0x2b2   : > { %p4176_p13 = scmp.ge.s32.totalorder %s22_s25, 74   ;;  %s4280_s20 = sld [smem:[#allocation19_spill]] }
 0x2b3   : > { %s4281_s22 = sld [smem:[#allocation16_spill]]  ;;  %s4282_s7 = sld [smem:[#allocation17_spill]] }
 0x2b4   : > { %s4283_s24 = sld [smem:[#allocation18_spill]]  ;;  %s4284_s12 = smov %s3431_s13 }
 0x2b5   : > { %s4285_s13 = smov %s3435_s14  ;;  %s4286_s14 = smov %s3743_s4 }
 0x2b6   : > { %s4287_s15 = smov %s3443_s16  ;;  %s4288_s16 = smov %s3447_s17 }
 0x2b7   : > { %s4289_s17 = smov %s3695_s11  ;;  %s4290_s18 = smov %s3455_s19 }
 0x2b8   : > { %s4291_s19 = smov %s4279_s30  ;;  %s4292_s21 = smov %s3471_s23 }
 0x2b9   : > { %s4293_s23 = smov %s4282_s7  ;;  %21 = sbr.rel (!%p4176_p13) target bundleno = 16 (0x10), region = 109 }
 0x2c0   :  { %2290 = vsyncpa [#allocation4], 1 }
 0x2c1   :  { %2292 = vsyncpa [#allocation4 + $0x1], 1 }
 0x2c2   :  { %2293 = vsyncpa [#allocation7], 1 }
 0x2c3   :  { %2295 = vsyncpa [#allocation7 + $0x1], 1 }
 0x2c4   :  { %2296 = vsyncpa [#allocation5], 1 }
 0x2c5   :  { %2298 = vsyncpa [#allocation5 + $0x1], 1 }

// kernel: alexnet_forward.14
= control target key start
LH: loop header
LB: loop body
LE: loop exit
PB: predicated region body
PF: predicated region fallthrough
CT: control target
= control target key end

     0   :  { %s5076_s0 = inlined_call_operand.hbm [shape: bf16[8,4096], index: 0, kind: input, shape index: {}]   ;;  %s5077_s1 = inlined_call_operand.vmem [shape: bf16[4096,4096], index: 1, kind: input, shape index: {}]   ;;  %s5078_s2 = inlined_call_operand.hbm [shape: f32[1,4096], index: 2, kind: input, shape index: {}]   ;;  %s5079_s3 = inlined_call_operand.hbm [shape: f32[8,4096], index: 3, kind: output, shape index: {}]  }
   0x1   :  { %5093 = sst [smem:[#allocation22_spill]] %s5079_s3 }
   0x2   :  { %8 = vsyncpa [#allocation4], 0 }
   0x3   :  { %10 = vsyncpa [#allocation4 + $0x1], 0 }
   0x4   :  { %11 = vsyncpa [#allocation8], 0 }
   0x5   :  { %13 = vsyncpa [#allocation8 + $0x1], 0 }
   0x6   :  { %14 = vsyncpa [#allocation5], 0 }
   0x7   :  { %16 = vsyncpa [#allocation5 + $0x1], 0  ;;  %s3946_s12 = smov 0   ;;  %s3948_s13 = smov 0  }
   0x8   :  { %s3950_s14 = smov 0   ;;  %s3952_s15 = smov 0  }
   0x9   :  { %s3954_s16 = smov 0   ;;  %s3956_s17 = smov 0  }
   0xa   :  { %s3958_s18 = smov 0   ;;  %s3960_s19 = smov 0  }
   0xb   :  { %s3962_s20 = smov 0   ;;  %s3964_s21 = smov 0  }
   0xc   :  { %s3966_s22 = smov 0   ;;  %s3968_s23 = smov 0  }
   0xd   :  { %s3970_s24 = smov 0  }
   0xe LB: > { %5094 = sst [smem:[#allocation13_spill]] %s3872_s12  ;;  %s5080_s25 = sadd.s32 4294967295, %s3920_s24   ;;  %s3920_s24 = sphi %s3970_s24, %s22_s24   ;;  %s3916_s23 = sphi %s3968_s23, %s5140_s23   ;;  %s3912_s22 = sphi %s3966_s22, %s5139_s22   ;;  %s3908_s21 = sphi %s3964_s21, %s5138_s21   ;;  %s3904_s20 = sphi %s3962_s20, %s5137_s20   ;;  %s3900_s19 = sphi %s3960_s19, %s5127_s19   ;;  %s3896_s18 = sphi %s3958_s18, %s5136_s18   ;;  %s3892_s17 = sphi %s3956_s17, %s5135_s17   ;;  %s3888_s16 = sphi %s3954_s16, %s5134_s16   ;;  %s3884_s15 = sphi %s3952_s15, %s5133_s15   ;;  %s3880_s14 = sphi %s3950_s14, %s5132_s14   ;;  %s3876_s13 = sphi %s3948_s13, %s5131_s13   ;;  %s3872_s12 = sphi %s3946_s12, %s5130_s12  }
   0xf   : > { %5095 = sst [smem:[#allocation14_spill]] %s3900_s19  ;;  %s34_s27 = sadd.s32 1, %s3912_s22 }
  0x10   : > { %s37_s28 = sadd.s32 1, %s3916_s23  ;;  %p35_p0 = scmp.ge.s32.totalorder %s34_s27, 4 }
  0x11   : > { %s50_s29 = sadd.s32 1, %s3900_s19  ;;  %p57_p1 = scmp.ne.s32.totalorder %s3900_s19, %s3896_s18 }
  0x12   : > { %p58_p2 = scmp.eq.s32.totalorder %s3920_s24, 0  ;;  %s5142_s27 = smov (%p35_p0, %s34_s27), 0 }
  0x13   : > { %5096 = sst [smem:[#allocation15_spill]] %s5142_s27  ;;  %s5144_s28 = smov (!%p35_p0, %s37_s28), %s3916_s23 }
  0x14   : > { %s46_s30 = ssub.s32 %s3912_s22, %s5142_s27  ;;  %p4024_p3 = por %p58_p2, %p57_p1 }
  0x15   : > { %p39_p4 = scmp.ge.s32.totalorder %s5144_s28, 8  ;;  %p48_p5 = scmp.eq.s32.totalorder %s46_s30, 0 }
  0x16   : > { %p63_p6 = scmp.ne.s32.totalorder %s3896_s18, %s3892_s17  ;;  %p4031_p7 = scmp.eq.s32.totalorder %s5080_s25, 0 }
  0x17   : > { %s5146_s28 = smov (%p39_p4, %s5144_s28), 0  ;;  %s78_s10 = sadd.s32 1, %s3888_s16 }
  0x18   : > { %5099 = sst [smem:[#allocation16_spill]] %s5146_s28  ;;  %p4042_p8 = por %p4031_p7, %p63_p6 }
  0x19   : > { %s4038_s6 = scalar_select %p48_p5, %s3900_s19, %s50_s29  }
  0x1a   : > { %s5101_s7 = scalar_select %p4042_p8, 1, 0 }
  0x1b   : > { %5100 = sst [smem:[#allocation17_spill]] %s4038_s6  ;;  %s74_s8 = ssub.s32 %s3916_s23, %s5146_s28 }
  0x1c   : > { %s75_s9 = sor.u32 %s74_s8, %s46_s30  ;;  %p85_p10 = scmp.ne.s32.totalorder %s3888_s16, %s3884_s15 }
  0x1d   : > { %p76_p9 = scmp.eq.s32.totalorder %s75_s9, 0  ;;  %p102_p11 = scmp.eq.s32.totalorder %s74_s8, 0 }
  0x1e   : > { %s104_s11 = sadd.s32 1, %s3880_s14  ;;  %p4057_p12 = por %p85_p10, %p58_p2 }
  0x1f   : > { %s4053_s17 = scalar_select %p76_p9, %s3888_s16, %s78_s10  }
  0x20   : > { %s5103_s29 = scalar_select %p4057_p12, 1, 0 }
  0x21   : > { %5102 = sst [smem:[#allocation18_spill]] %s4053_s17  ;;  %p111_p13 = scmp.ne.s32.totalorder %s3880_s14, %s3876_s13 }
  0x22   : > { %s4064_s26 = scalar_select %p102_p11, %s3880_s14, %s104_s11  }
  0x23   : > { %p4068_p0 = por %p111_p13, %p58_p2  ;;  %p117_p1 = scmp.ne.s32.totalorder %s3876_s13, %s3872_s12 }
  0x24   : > { %5104 = sst [smem:[#allocation19_spill]] %s4064_s26  ;;  %s5106_s30 = sadd.s32 4294967295, %s3920_s24  }
  0x25   : > { %s5105_s25 = scalar_select %p4068_p0, 1, 0 }
  0x26   : > { %p143_p4 = scmp.eq.s32.totalorder %s5106_s30, 31  ;;  %s5107_s8 = sadd.s32 4294967294, %s3920_s24  }
  0x27   : > { %p149_p5 = scmp.eq.s32.totalorder %s5107_s8, 31  ;;  %p4080_p6 = por %p117_p1, %p4031_p7 }
  0x28   : > { %p4084_p9 = por %p143_p4, %p111_p13  ;;  %p2922_p2 = scmp.ge.s32.totalorder %s3920_s24, 32 }
  0x29   : > { %s5108_s9 = scalar_select %p4080_p6, 1, 0 }
  0x2a   : > { %s5109_s10 = scalar_select %p4084_p9, 1, 0 }
  0x2b   : > { %p4088_p10 = por %p149_p5, %p117_p1  ;;  %165 = sbr.rel (%p2922_p2) target bundleno = 233 (0xe9), region = 16 }
  0x2c   : > { %5110 = sst [smem:[#allocation20_spill]] %s5109_s10  ;;  %s169_s30 = sand.u32 (!%p2922_p2), 1, %s3900_s19  }
  0x2d   : > { %s5111_s11 = scalar_select %p4088_p10, 1, 0 }
  0x2e   : > { %s3210_s5 = sshll.u32 (!%p2922_p2), %s3912_s22, 9  ;;  %s2923_s8 = sshll.u32 (!%p2922_p2), %s169_s30, 5 }
  0x2f   : > { %5112 = sst [smem:[#allocation21_spill]] %s5111_s11  ;;  %s4098_s6 = scalar_lea.hbm (!%p2922_p2), %s5076_s0, %s3210_s5 }
  0x30   : > { %s173_s17 = scalar_lea.vmem (!%p2922_p2), [#allocation3], %s2923_s8  ;;  %s170_s11 = scalar_lea.sflag (!%p2922_p2), [#allocation4], %s169_s30 }
  0x31   : > { %s183_s26 = sshll.u32 (!%p2922_p2), %s173_s17, 4  ;;  %s3722_s12 = scalar_lea.hbm (!%p2922_p2), %s4098_s6, 512  ;;  %s184_s26 = int_to_ptr.vmem [resolvable:$true] %s183_s26 }
  0x32   : > { %p3723_p7 = scmp.ne.s32.totalorder %s4098_s6, %s3722_s12  ;;  %s3726_s10 = scalar_lea.hbm %s5076_s0, 2048 }
  0x33   : > { %p3727_p1 = scmp.lt.u32.totalorder %s4098_s6, %s5076_s0  ;;  %p3728_p4 = scmp.lt.u32.totalorder %s3726_s10, %s3722_s12 }
  0x34   : > { %p3724_p11 = pnand %p3723_p7, %p4024_p3  ;;  %p3730_p2 = scmp.lt.u32.totalorder %s3722_s12, %s4098_s6 }
  0x35   : > { %p3729_p5 = por %p3728_p4, %p3727_p1 }
  0x36   : > { %p3725_p13 = pneg %p3724_p11 }
  0x37   : > { %p3731_p10 = por %p3730_p2, %p3729_p5 }
  0x39   : > { %p3732_p9 = pnand %p3731_p10, %p3725_p13 }
  0x3b   : > { %3735 = shalt.err (!%p3732_p9)
}
  0x3c   : > { %s3736_s17 = scalar_lea.vmem %s184_s26, 512  ;;  %s3922_s30 = smov [#allocation3]  }
  0x3d   : > { %p3737_p6 = scmp.ne.s32.totalorder %s184_s26, %s3736_s17  ;;  %s3740_s5 = sshll.u32 %s3922_s30, 4  ;;  %s3741_s5 = int_to_ptr.vmem [resolvable:$false] %s3740_s5 }
  0x3e   : > { %s3742_s3 = scalar_lea.vmem %s3741_s5, 1024  ;;  %p3743_p8 = scmp.lt.s32.totalorder %s184_s26, %s3741_s5 }
  0x3f   : > { %p3738_p7 = pnand %p3737_p6, %p4024_p3  ;;  %p3744_p0 = scmp.lt.s32.totalorder %s3742_s3, %s3736_s17 }
  0x41   : > { %p3739_p11 = pneg %p3738_p7  ;;  %p3745_p12 = por %p3744_p0, %p3743_p8 }
  0x43   : > { %p3746_p1 = pnand %p3745_p12, %p3739_p11 }
  0x45   : > { %3749 = shalt.err (!%p3746_p1)
}
  0x46   : > { %3214 = dma.hbm_to_vmem [thread:$0]  (%p4024_p3), %s4098_s6, 512, %s184_s26, %s170_s11  }
  0x47   : > { %p5113_p9 = scmp.ne.s32.totalorder %s5103_s29, 0 }
  0x48   : > { %s191_s12 = sand.u32 (%p5113_p9), 1, %s3888_s16   ;;  %s2928_s19 = sshll.u32 (%p5113_p9), %s3916_s23, 2 }
  0x49   : > { %189 = sbr.rel (!%p5113_p9) target bundleno = 207 (0xcf), region = 24  ;;  %s2926_s10 = sshll.u32 (%p5113_p9), %s191_s12, 11 }
  0x4a   : > { %s3211_s8 = sshll.u32 (%p5113_p9), %s3912_s22, 12  ;;  %s4130_s26 = scalar_lea.vmem (%p5113_p9), [#allocation6], %s2926_s10 }
  0x4b   : > { %s197_s27 = sadd.s32 (%p5113_p9), %s3211_s8, %s2928_s19 }
  0x4c   : > { %s2930_s28 = sshll.u32 (%p5113_p9), %s197_s27, 2 }
  0x4d   : > { %s4125_s5 = scalar_lea.vmem (%p5113_p9), %s5077_s1, %s2930_s28 }
  0x4e   : > { %v212_v0 = vld [vmem:[%s4125_s5] sm:$0xff] (%p5113_p9)  ;;  %v214_v1 = vld [vmem:[%s4125_s5 + $0x8] sm:$0xff] (%p5113_p9) }
  0x4f   : > { %v216_v2 = vld [vmem:[%s4125_s5 + $0x80] sm:$0xff] (%p5113_p9)  ;;  %213 = vst [vmem:[%s4130_s26] sm:$0xff] (%p5113_p9), %v212_v0  ;;  %215 = vst [vmem:[%s4130_s26 + $0x8] sm:$0xff] (%p5113_p9), %v214_v1  ;;  %v218_v3 = vld [vmem:[%s4125_s5 + $0x88] sm:$0xff] (%p5113_p9) }
  0x50   : > { %217 = vst [vmem:[%s4130_s26 + $0x10] sm:$0xff] %v216_v2  ;;  %v220_v4 = vld [vmem:[%s4125_s5 + $0x100] sm:$0xff]  ;;  %v222_v5 = vld [vmem:[%s4125_s5 + $0x108] sm:$0xff]  ;;  %219 = vst [vmem:[%s4130_s26 + $0x18] sm:$0xff] %v218_v3 }
  0x51   : > { %221 = vst [vmem:[%s4130_s26 + $0x20] sm:$0xff] %v220_v4  ;;  %223 = vst [vmem:[%s4130_s26 + $0x28] sm:$0xff] %v222_v5  ;;  %v224_v6 = vld [vmem:[%s4125_s5 + $0x180] sm:$0xff]  ;;  %v226_v7 = vld [vmem:[%s4125_s5 + $0x188] sm:$0xff] }
  0x52   : > { %v228_v8 = vld [vmem:[%s4125_s5 + $0x200] sm:$0xff]  ;;  %225 = vst [vmem:[%s4130_s26 + $0x30] sm:$0xff] %v224_v6  ;;  %227 = vst [vmem:[%s4130_s26 + $0x38] sm:$0xff] %v226_v7  ;;  %v230_v9 = vld [vmem:[%s4125_s5 + $0x208] sm:$0xff] }
  0x53   : > { %229 = vst [vmem:[%s4130_s26 + $0x40] sm:$0xff] %v228_v8  ;;  %v232_v10 = vld [vmem:[%s4125_s5 + $0x280] sm:$0xff]  ;;  %v234_v11 = vld [vmem:[%s4125_s5 + $0x288] sm:$0xff]  ;;  %231 = vst [vmem:[%s4130_s26 + $0x48] sm:$0xff] %v230_v9 }
  0x54   : > { %233 = vst [vmem:[%s4130_s26 + $0x50] sm:$0xff] %v232_v10  ;;  %235 = vst [vmem:[%s4130_s26 + $0x58] sm:$0xff] %v234_v11  ;;  %v236_v12 = vld [vmem:[%s4125_s5 + $0x300] sm:$0xff]  ;;  %v238_v13 = vld [vmem:[%s4125_s5 + $0x308] sm:$0xff] }
  0x55   : > { %v240_v14 = vld [vmem:[%s4125_s5 + $0x380] sm:$0xff]  ;;  %237 = vst [vmem:[%s4130_s26 + $0x60] sm:$0xff] %v236_v12  ;;  %239 = vst [vmem:[%s4130_s26 + $0x68] sm:$0xff] %v238_v13  ;;  %v242_v15 = vld [vmem:[%s4125_s5 + $0x388] sm:$0xff] }
  0x56   : > { %241 = vst [vmem:[%s4130_s26 + $0x70] sm:$0xff] %v240_v14  ;;  %v244_v16 = vld [vmem:[%s4125_s5 + $0x400] sm:$0xff]  ;;  %v246_v17 = vld [vmem:[%s4125_s5 + $0x408] sm:$0xff]  ;;  %243 = vst [vmem:[%s4130_s26 + $0x78] sm:$0xff] %v242_v15 }
  0x57   : > { %245 = vst [vmem:[%s4130_s26 + $0x80] sm:$0xff] %v244_v16  ;;  %247 = vst [vmem:[%s4130_s26 + $0x88] sm:$0xff] %v246_v17  ;;  %v248_v18 = vld [vmem:[%s4125_s5 + $0x480] sm:$0xff]  ;;  %v250_v19 = vld [vmem:[%s4125_s5 + $0x488] sm:$0xff] }
  0x58   : > { %v252_v20 = vld [vmem:[%s4125_s5 + $0x500] sm:$0xff]  ;;  %249 = vst [vmem:[%s4130_s26 + $0x90] sm:$0xff] %v248_v18  ;;  %251 = vst [vmem:[%s4130_s26 + $0x98] sm:$0xff] %v250_v19  ;;  %v254_v21 = vld [vmem:[%s4125_s5 + $0x508] sm:$0xff] }
  0x59   : > { %253 = vst [vmem:[%s4130_s26 + $0xa0] sm:$0xff] %v252_v20  ;;  %v256_v22 = vld [vmem:[%s4125_s5 + $0x580] sm:$0xff]  ;;  %v258_v23 = vld [vmem:[%s4125_s5 + $0x588] sm:$0xff]  ;;  %255 = vst [vmem:[%s4130_s26 + $0xa8] sm:$0xff] %v254_v21 }
  0x5a   : > { %257 = vst [vmem:[%s4130_s26 + $0xb0] sm:$0xff] %v256_v22  ;;  %259 = vst [vmem:[%s4130_s26 + $0xb8] sm:$0xff] %v258_v23  ;;  %v260_v24 = vld [vmem:[%s4125_s5 + $0x600] sm:$0xff]  ;;  %v262_v25 = vld [vmem:[%s4125_s5 + $0x608] sm:$0xff] }
  0x5b   : > { %v264_v26 = vld [vmem:[%s4125_s5 + $0x680] sm:$0xff]  ;;  %261 = vst [vmem:[%s4130_s26 + $0xc0] sm:$0xff] %v260_v24  ;;  %263 = vst [vmem:[%s4130_s26 + $0xc8] sm:$0xff] %v262_v25  ;;  %v266_v27 = vld [vmem:[%s4125_s5 + $0x688] sm:$0xff] }
  0x5c   : > { %265 = vst [vmem:[%s4130_s26 + $0xd0] sm:$0xff] %v264_v26  ;;  %v268_v28 = vld [vmem:[%s4125_s5 + $0x700] sm:$0xff]  ;;  %v270_v29 = vld [vmem:[%s4125_s5 + $0x708] sm:$0xff]  ;;  %267 = vst [vmem:[%s4130_s26 + $0xd8] sm:$0xff] %v266_v27 }
  0x5d   : > { %269 = vst [vmem:[%s4130_s26 + $0xe0] sm:$0xff] %v268_v28  ;;  %271 = vst [vmem:[%s4130_s26 + $0xe8] sm:$0xff] %v270_v29  ;;  %v272_v30 = vld [vmem:[%s4125_s5 + $0x780] sm:$0xff]  ;;  %v274_v31 = vld [vmem:[%s4125_s5 + $0x788] sm:$0xff] }
  0x5e   : > { %v276_v32 = vld [vmem:[%s4125_s5 + $0x800] sm:$0xff]  ;;  %273 = vst [vmem:[%s4130_s26 + $0xf0] sm:$0xff] %v272_v30  ;;  %275 = vst [vmem:[%s4130_s26 + $0xf8] sm:$0xff] %v274_v31  ;;  %v278_v33 = vld [vmem:[%s4125_s5 + $0x808] sm:$0xff] }
  0x5f   : > { %277 = vst [vmem:[%s4130_s26 + $0x100] sm:$0xff] %v276_v32  ;;  %v280_v34 = vld [vmem:[%s4125_s5 + $0x880] sm:$0xff]  ;;  %v282_v35 = vld [vmem:[%s4125_s5 + $0x888] sm:$0xff]  ;;  %279 = vst [vmem:[%s4130_s26 + $0x108] sm:$0xff] %v278_v33 }
  0x60   : > { %281 = vst [vmem:[%s4130_s26 + $0x110] sm:$0xff] %v280_v34  ;;  %283 = vst [vmem:[%s4130_s26 + $0x118] sm:$0xff] %v282_v35  ;;  %v284_v36 = vld [vmem:[%s4125_s5 + $0x900] sm:$0xff]  ;;  %v286_v37 = vld [vmem:[%s4125_s5 + $0x908] sm:$0xff] }
  0x61   : > { %v288_v38 = vld [vmem:[%s4125_s5 + $0x980] sm:$0xff]  ;;  %285 = vst [vmem:[%s4130_s26 + $0x120] sm:$0xff] %v284_v36  ;;  %287 = vst [vmem:[%s4130_s26 + $0x128] sm:$0xff] %v286_v37  ;;  %v290_v39 = vld [vmem:[%s4125_s5 + $0x988] sm:$0xff] }
  0x62   : > { %289 = vst [vmem:[%s4130_s26 + $0x130] sm:$0xff] %v288_v38  ;;  %v292_v40 = vld [vmem:[%s4125_s5 + $0xa00] sm:$0xff]  ;;  %v294_v41 = vld [vmem:[%s4125_s5 + $0xa08] sm:$0xff]  ;;  %291 = vst [vmem:[%s4130_s26 + $0x138] sm:$0xff] %v290_v39 }
  0x63   : > { %293 = vst [vmem:[%s4130_s26 + $0x140] sm:$0xff] %v292_v40  ;;  %295 = vst [vmem:[%s4130_s26 + $0x148] sm:$0xff] %v294_v41  ;;  %v296_v42 = vld [vmem:[%s4125_s5 + $0xa80] sm:$0xff]  ;;  %v298_v43 = vld [vmem:[%s4125_s5 + $0xa88] sm:$0xff] }
  0x64   : > { %v300_v44 = vld [vmem:[%s4125_s5 + $0xb00] sm:$0xff]  ;;  %297 = vst [vmem:[%s4130_s26 + $0x150] sm:$0xff] %v296_v42  ;;  %299 = vst [vmem:[%s4130_s26 + $0x158] sm:$0xff] %v298_v43  ;;  %v302_v45 = vld [vmem:[%s4125_s5 + $0xb08] sm:$0xff] }
  0x65   : > { %301 = vst [vmem:[%s4130_s26 + $0x160] sm:$0xff] %v300_v44  ;;  %v304_v46 = vld [vmem:[%s4125_s5 + $0xb80] sm:$0xff]  ;;  %v306_v47 = vld [vmem:[%s4125_s5 + $0xb88] sm:$0xff]  ;;  %303 = vst [vmem:[%s4130_s26 + $0x168] sm:$0xff] %v302_v45 }
  0x66   : > { %305 = vst [vmem:[%s4130_s26 + $0x170] sm:$0xff] %v304_v46  ;;  %307 = vst [vmem:[%s4130_s26 + $0x178] sm:$0xff] %v306_v47  ;;  %v308_v48 = vld [vmem:[%s4125_s5 + $0xc00] sm:$0xff]  ;;  %v310_v49 = vld [vmem:[%s4125_s5 + $0xc08] sm:$0xff] }
  0x67   : > { %v312_v50 = vld [vmem:[%s4125_s5 + $0xc80] sm:$0xff]  ;;  %309 = vst [vmem:[%s4130_s26 + $0x180] sm:$0xff] %v308_v48  ;;  %311 = vst [vmem:[%s4130_s26 + $0x188] sm:$0xff] %v310_v49  ;;  %v314_v51 = vld [vmem:[%s4125_s5 + $0xc88] sm:$0xff] }
  0x68   : > { %313 = vst [vmem:[%s4130_s26 + $0x190] sm:$0xff] %v312_v50  ;;  %v316_v52 = vld [vmem:[%s4125_s5 + $0xd00] sm:$0xff]  ;;  %v318_v53 = vld [vmem:[%s4125_s5 + $0xd08] sm:$0xff]  ;;  %315 = vst [vmem:[%s4130_s26 + $0x198] sm:$0xff] %v314_v51 }
  0x69   : > { %317 = vst [vmem:[%s4130_s26 + $0x1a0] sm:$0xff] %v316_v52  ;;  %319 = vst [vmem:[%s4130_s26 + $0x1a8] sm:$0xff] %v318_v53  ;;  %v320_v54 = vld [vmem:[%s4125_s5 + $0xd80] sm:$0xff]  ;;  %v322_v55 = vld [vmem:[%s4125_s5 + $0xd88] sm:$0xff] }
  0x6a   : > { %v324_v56 = vld [vmem:[%s4125_s5 + $0xe00] sm:$0xff]  ;;  %321 = vst [vmem:[%s4130_s26 + $0x1b0] sm:$0xff] %v320_v54  ;;  %323 = vst [vmem:[%s4130_s26 + $0x1b8] sm:$0xff] %v322_v55  ;;  %v326_v57 = vld [vmem:[%s4125_s5 + $0xe08] sm:$0xff] }
  0x6b   : > { %325 = vst [vmem:[%s4130_s26 + $0x1c0] sm:$0xff] %v324_v56  ;;  %v328_v58 = vld [vmem:[%s4125_s5 + $0xe80] sm:$0xff]  ;;  %v330_v59 = vld [vmem:[%s4125_s5 + $0xe88] sm:$0xff]  ;;  %327 = vst [vmem:[%s4130_s26 + $0x1c8] sm:$0xff] %v326_v57 }
  0x6c   : > { %329 = vst [vmem:[%s4130_s26 + $0x1d0] sm:$0xff] %v328_v58  ;;  %331 = vst [vmem:[%s4130_s26 + $0x1d8] sm:$0xff] %v330_v59  ;;  %v332_v60 = vld [vmem:[%s4125_s5 + $0xf00] sm:$0xff]  ;;  %v334_v61 = vld [vmem:[%s4125_s5 + $0xf08] sm:$0xff] }
  0x6d   : > { %v336_v62 = vld [vmem:[%s4125_s5 + $0xf80] sm:$0xff]  ;;  %333 = vst [vmem:[%s4130_s26 + $0x1e0] sm:$0xff] %v332_v60  ;;  %335 = vst [vmem:[%s4130_s26 + $0x1e8] sm:$0xff] %v334_v61  ;;  %v338_v63 = vld [vmem:[%s4125_s5 + $0xf88] sm:$0xff] }
  0x6e   : > { %337 = vst [vmem:[%s4130_s26 + $0x1f0] sm:$0xff] %v336_v62  ;;  %v340_v0 = vld [vmem:[%s4125_s5 + $0x1000] sm:$0xff]  ;;  %v342_v1 = vld [vmem:[%s4125_s5 + $0x1008] sm:$0xff]  ;;  %339 = vst [vmem:[%s4130_s26 + $0x1f8] sm:$0xff] %v338_v63 }
  0x6f   : > { %341 = vst [vmem:[%s4130_s26 + $0x200] sm:$0xff] %v340_v0  ;;  %343 = vst [vmem:[%s4130_s26 + $0x208] sm:$0xff] %v342_v1  ;;  %v344_v2 = vld [vmem:[%s4125_s5 + $0x1080] sm:$0xff]  ;;  %v346_v3 = vld [vmem:[%s4125_s5 + $0x1088] sm:$0xff] }
  0x70   : > { %v348_v4 = vld [vmem:[%s4125_s5 + $0x1100] sm:$0xff]  ;;  %345 = vst [vmem:[%s4130_s26 + $0x210] sm:$0xff] %v344_v2  ;;  %347 = vst [vmem:[%s4130_s26 + $0x218] sm:$0xff] %v346_v3  ;;  %v350_v5 = vld [vmem:[%s4125_s5 + $0x1108] sm:$0xff] }
  0x71   : > { %349 = vst [vmem:[%s4130_s26 + $0x220] sm:$0xff] %v348_v4  ;;  %v352_v6 = vld [vmem:[%s4125_s5 + $0x1180] sm:$0xff]  ;;  %v354_v7 = vld [vmem:[%s4125_s5 + $0x1188] sm:$0xff]  ;;  %351 = vst [vmem:[%s4130_s26 + $0x228] sm:$0xff] %v350_v5 }
  0x72   : > { %353 = vst [vmem:[%s4130_s26 + $0x230] sm:$0xff] %v352_v6  ;;  %355 = vst [vmem:[%s4130_s26 + $0x238] sm:$0xff] %v354_v7  ;;  %v356_v8 = vld [vmem:[%s4125_s5 + $0x1200] sm:$0xff]  ;;  %v358_v9 = vld [vmem:[%s4125_s5 + $0x1208] sm:$0xff] }
  0x73   : > { %v360_v10 = vld [vmem:[%s4125_s5 + $0x1280] sm:$0xff]  ;;  %357 = vst [vmem:[%s4130_s26 + $0x240] sm:$0xff] %v356_v8  ;;  %359 = vst [vmem:[%s4130_s26 + $0x248] sm:$0xff] %v358_v9  ;;  %v362_v11 = vld [vmem:[%s4125_s5 + $0x1288] sm:$0xff] }
  0x74   : > { %361 = vst [vmem:[%s4130_s26 + $0x250] sm:$0xff] %v360_v10  ;;  %v364_v12 = vld [vmem:[%s4125_s5 + $0x1300] sm:$0xff]  ;;  %v366_v13 = vld [vmem:[%s4125_s5 + $0x1308] sm:$0xff]  ;;  %363 = vst [vmem:[%s4130_s26 + $0x258] sm:$0xff] %v362_v11 }
  0x75   : > { %365 = vst [vmem:[%s4130_s26 + $0x260] sm:$0xff] %v364_v12  ;;  %367 = vst [vmem:[%s4130_s26 + $0x268] sm:$0xff] %v366_v13  ;;  %v368_v14 = vld [vmem:[%s4125_s5 + $0x1380] sm:$0xff]  ;;  %v370_v15 = vld [vmem:[%s4125_s5 + $0x1388] sm:$0xff] }
  0x76   : > { %v372_v16 = vld [vmem:[%s4125_s5 + $0x1400] sm:$0xff]  ;;  %369 = vst [vmem:[%s4130_s26 + $0x270] sm:$0xff] %v368_v14  ;;  %371 = vst [vmem:[%s4130_s26 + $0x278] sm:$0xff] %v370_v15  ;;  %v374_v17 = vld [vmem:[%s4125_s5 + $0x1408] sm:$0xff] }
  0x77   : > { %373 = vst [vmem:[%s4130_s26 + $0x280] sm:$0xff] %v372_v16  ;;  %v376_v18 = vld [vmem:[%s4125_s5 + $0x1480] sm:$0xff]  ;;  %v378_v19 = vld [vmem:[%s4125_s5 + $0x1488] sm:$0xff]  ;;  %375 = vst [vmem:[%s4130_s26 + $0x288] sm:$0xff] %v374_v17 }
  0x78   : > { %377 = vst [vmem:[%s4130_s26 + $0x290] sm:$0xff] %v376_v18  ;;  %379 = vst [vmem:[%s4130_s26 + $0x298] sm:$0xff] %v378_v19  ;;  %v380_v20 = vld [vmem:[%s4125_s5 + $0x1500] sm:$0xff]  ;;  %v382_v21 = vld [vmem:[%s4125_s5 + $0x1508] sm:$0xff] }
  0x79   : > { %v384_v22 = vld [vmem:[%s4125_s5 + $0x1580] sm:$0xff]  ;;  %381 = vst [vmem:[%s4130_s26 + $0x2a0] sm:$0xff] %v380_v20  ;;  %383 = vst [vmem:[%s4130_s26 + $0x2a8] sm:$0xff] %v382_v21  ;;  %v386_v23 = vld [vmem:[%s4125_s5 + $0x1588] sm:$0xff] }
  0x7a   : > { %385 = vst [vmem:[%s4130_s26 + $0x2b0] sm:$0xff] %v384_v22  ;;  %v388_v24 = vld [vmem:[%s4125_s5 + $0x1600] sm:$0xff]  ;;  %v390_v25 = vld [vmem:[%s4125_s5 + $0x1608] sm:$0xff]  ;;  %387 = vst [vmem:[%s4130_s26 + $0x2b8] sm:$0xff] %v386_v23 }
  0x7b   : > { %389 = vst [vmem:[%s4130_s26 + $0x2c0] sm:$0xff] %v388_v24  ;;  %391 = vst [vmem:[%s4130_s26 + $0x2c8] sm:$0xff] %v390_v25  ;;  %v392_v26 = vld [vmem:[%s4125_s5 + $0x1680] sm:$0xff]  ;;  %v394_v27 = vld [vmem:[%s4125_s5 + $0x1688] sm:$0xff] }
  0x7c   : > { %v396_v28 = vld [vmem:[%s4125_s5 + $0x1700] sm:$0xff]  ;;  %393 = vst [vmem:[%s4130_s26 + $0x2d0] sm:$0xff] %v392_v26  ;;  %395 = vst [vmem:[%s4130_s26 + $0x2d8] sm:$0xff] %v394_v27  ;;  %v398_v29 = vld [vmem:[%s4125_s5 + $0x1708] sm:$0xff] }
  0x7d   : > { %397 = vst [vmem:[%s4130_s26 + $0x2e0] sm:$0xff] %v396_v28  ;;  %v400_v30 = vld [vmem:[%s4125_s5 + $0x1780] sm:$0xff]  ;;  %v402_v31 = vld [vmem:[%s4125_s5 + $0x1788] sm:$0xff]  ;;  %399 = vst [vmem:[%s4130_s26 + $0x2e8] sm:$0xff] %v398_v29 }
  0x7e   : > { %401 = vst [vmem:[%s4130_s26 + $0x2f0] sm:$0xff] %v400_v30  ;;  %403 = vst [vmem:[%s4130_s26 + $0x2f8] sm:$0xff] %v402_v31  ;;  %v404_v32 = vld [vmem:[%s4125_s5 + $0x1800] sm:$0xff]  ;;  %v406_v33 = vld [vmem:[%s4125_s5 + $0x1808] sm:$0xff] }
  0x7f   : > { %v408_v34 = vld [vmem:[%s4125_s5 + $0x1880] sm:$0xff]  ;;  %405 = vst [vmem:[%s4130_s26 + $0x300] sm:$0xff] %v404_v32  ;;  %407 = vst [vmem:[%s4130_s26 + $0x308] sm:$0xff] %v406_v33  ;;  %v410_v35 = vld [vmem:[%s4125_s5 + $0x1888] sm:$0xff] }
  0x80   : > { %409 = vst [vmem:[%s4130_s26 + $0x310] sm:$0xff] %v408_v34  ;;  %v412_v36 = vld [vmem:[%s4125_s5 + $0x1900] sm:$0xff]  ;;  %v414_v37 = vld [vmem:[%s4125_s5 + $0x1908] sm:$0xff]  ;;  %411 = vst [vmem:[%s4130_s26 + $0x318] sm:$0xff] %v410_v35 }
  0x81   : > { %413 = vst [vmem:[%s4130_s26 + $0x320] sm:$0xff] %v412_v36  ;;  %415 = vst [vmem:[%s4130_s26 + $0x328] sm:$0xff] %v414_v37  ;;  %v416_v38 = vld [vmem:[%s4125_s5 + $0x1980] sm:$0xff]  ;;  %v418_v39 = vld [vmem:[%s4125_s5 + $0x1988] sm:$0xff] }
  0x82   : > { %v420_v40 = vld [vmem:[%s4125_s5 + $0x1a00] sm:$0xff]  ;;  %417 = vst [vmem:[%s4130_s26 + $0x330] sm:$0xff] %v416_v38  ;;  %419 = vst [vmem:[%s4130_s26 + $0x338] sm:$0xff] %v418_v39  ;;  %v422_v41 = vld [vmem:[%s4125_s5 + $0x1a08] sm:$0xff] }
  0x83   : > { %421 = vst [vmem:[%s4130_s26 + $0x340] sm:$0xff] %v420_v40  ;;  %v424_v42 = vld [vmem:[%s4125_s5 + $0x1a80] sm:$0xff]  ;;  %v426_v43 = vld [vmem:[%s4125_s5 + $0x1a88] sm:$0xff]  ;;  %423 = vst [vmem:[%s4130_s26 + $0x348] sm:$0xff] %v422_v41 }
  0x84   : > { %425 = vst [vmem:[%s4130_s26 + $0x350] sm:$0xff] %v424_v42  ;;  %427 = vst [vmem:[%s4130_s26 + $0x358] sm:$0xff] %v426_v43  ;;  %v428_v44 = vld [vmem:[%s4125_s5 + $0x1b00] sm:$0xff]  ;;  %v430_v45 = vld [vmem:[%s4125_s5 + $0x1b08] sm:$0xff] }
  0x85   : > { %v432_v46 = vld [vmem:[%s4125_s5 + $0x1b80] sm:$0xff]  ;;  %429 = vst [vmem:[%s4130_s26 + $0x360] sm:$0xff] %v428_v44  ;;  %431 = vst [vmem:[%s4130_s26 + $0x368] sm:$0xff] %v430_v45  ;;  %v434_v47 = vld [vmem:[%s4125_s5 + $0x1b88] sm:$0xff] }
  0x86   : > { %433 = vst [vmem:[%s4130_s26 + $0x370] sm:$0xff] %v432_v46  ;;  %v436_v48 = vld [vmem:[%s4125_s5 + $0x1c00] sm:$0xff]  ;;  %v438_v49 = vld [vmem:[%s4125_s5 + $0x1c08] sm:$0xff]  ;;  %435 = vst [vmem:[%s4130_s26 + $0x378] sm:$0xff] %v434_v47 }
  0x87   : > { %437 = vst [vmem:[%s4130_s26 + $0x380] sm:$0xff] %v436_v48  ;;  %439 = vst [vmem:[%s4130_s26 + $0x388] sm:$0xff] %v438_v49  ;;  %v440_v50 = vld [vmem:[%s4125_s5 + $0x1c80] sm:$0xff]  ;;  %v442_v51 = vld [vmem:[%s4125_s5 + $0x1c88] sm:$0xff] }
  0x88   : > { %v444_v52 = vld [vmem:[%s4125_s5 + $0x1d00] sm:$0xff]  ;;  %441 = vst [vmem:[%s4130_s26 + $0x390] sm:$0xff] %v440_v50  ;;  %443 = vst [vmem:[%s4130_s26 + $0x398] sm:$0xff] %v442_v51  ;;  %v446_v53 = vld [vmem:[%s4125_s5 + $0x1d08] sm:$0xff] }
  0x89   : > { %445 = vst [vmem:[%s4130_s26 + $0x3a0] sm:$0xff] %v444_v52  ;;  %v448_v54 = vld [vmem:[%s4125_s5 + $0x1d80] sm:$0xff]  ;;  %v450_v55 = vld [vmem:[%s4125_s5 + $0x1d88] sm:$0xff]  ;;  %447 = vst [vmem:[%s4130_s26 + $0x3a8] sm:$0xff] %v446_v53 }
  0x8a   : > { %449 = vst [vmem:[%s4130_s26 + $0x3b0] sm:$0xff] %v448_v54  ;;  %451 = vst [vmem:[%s4130_s26 + $0x3b8] sm:$0xff] %v450_v55  ;;  %v452_v56 = vld [vmem:[%s4125_s5 + $0x1e00] sm:$0xff]  ;;  %v454_v57 = vld [vmem:[%s4125_s5 + $0x1e08] sm:$0xff] }
  0x8b   : > { %v456_v58 = vld [vmem:[%s4125_s5 + $0x1e80] sm:$0xff]  ;;  %453 = vst [vmem:[%s4130_s26 + $0x3c0] sm:$0xff] %v452_v56  ;;  %455 = vst [vmem:[%s4130_s26 + $0x3c8] sm:$0xff] %v454_v57  ;;  %v458_v59 = vld [vmem:[%s4125_s5 + $0x1e88] sm:$0xff] }
  0x8c   : > { %457 = vst [vmem:[%s4130_s26 + $0x3d0] sm:$0xff] %v456_v58  ;;  %v460_v60 = vld [vmem:[%s4125_s5 + $0x1f00] sm:$0xff]  ;;  %v462_v61 = vld [vmem:[%s4125_s5 + $0x1f08] sm:$0xff]  ;;  %459 = vst [vmem:[%s4130_s26 + $0x3d8] sm:$0xff] %v458_v59 }
  0x8d   : > { %461 = vst [vmem:[%s4130_s26 + $0x3e0] sm:$0xff] %v460_v60  ;;  %463 = vst [vmem:[%s4130_s26 + $0x3e8] sm:$0xff] %v462_v61  ;;  %v464_v62 = vld [vmem:[%s4125_s5 + $0x1f80] sm:$0xff]  ;;  %v466_v63 = vld [vmem:[%s4125_s5 + $0x1f88] sm:$0xff] }
  0x8e   : > { %v468_v0 = vld [vmem:[%s4125_s5 + $0x2000] sm:$0xff]  ;;  %465 = vst [vmem:[%s4130_s26 + $0x3f0] sm:$0xff] %v464_v62  ;;  %467 = vst [vmem:[%s4130_s26 + $0x3f8] sm:$0xff] %v466_v63  ;;  %v470_v1 = vld [vmem:[%s4125_s5 + $0x2008] sm:$0xff] }
  0x8f   : > { %469 = vst [vmem:[%s4130_s26 + $0x400] sm:$0xff] %v468_v0  ;;  %v472_v2 = vld [vmem:[%s4125_s5 + $0x2080] sm:$0xff]  ;;  %v474_v3 = vld [vmem:[%s4125_s5 + $0x2088] sm:$0xff]  ;;  %471 = vst [vmem:[%s4130_s26 + $0x408] sm:$0xff] %v470_v1 }
  0x90   : > { %473 = vst [vmem:[%s4130_s26 + $0x410] sm:$0xff] %v472_v2  ;;  %475 = vst [vmem:[%s4130_s26 + $0x418] sm:$0xff] %v474_v3  ;;  %v476_v4 = vld [vmem:[%s4125_s5 + $0x2100] sm:$0xff]  ;;  %v478_v5 = vld [vmem:[%s4125_s5 + $0x2108] sm:$0xff] }
  0x91   : > { %v480_v6 = vld [vmem:[%s4125_s5 + $0x2180] sm:$0xff]  ;;  %477 = vst [vmem:[%s4130_s26 + $0x420] sm:$0xff] %v476_v4  ;;  %479 = vst [vmem:[%s4130_s26 + $0x428] sm:$0xff] %v478_v5  ;;  %v482_v7 = vld [vmem:[%s4125_s5 + $0x2188] sm:$0xff] }
  0x92   : > { %481 = vst [vmem:[%s4130_s26 + $0x430] sm:$0xff] %v480_v6  ;;  %v484_v8 = vld [vmem:[%s4125_s5 + $0x2200] sm:$0xff]  ;;  %v486_v9 = vld [vmem:[%s4125_s5 + $0x2208] sm:$0xff]  ;;  %483 = vst [vmem:[%s4130_s26 + $0x438] sm:$0xff] %v482_v7 }
  0x93   : > { %485 = vst [vmem:[%s4130_s26 + $0x440] sm:$0xff] %v484_v8  ;;  %487 = vst [vmem:[%s4130_s26 + $0x448] sm:$0xff] %v486_v9  ;;  %v488_v10 = vld [vmem:[%s4125_s5 + $0x2280] sm:$0xff]  ;;  %v490_v11 = vld [vmem:[%s4125_s5 + $0x2288] sm:$0xff] }
  0x94   : > { %v492_v12 = vld [vmem:[%s4125_s5 + $0x2300] sm:$0xff]  ;;  %489 = vst [vmem:[%s4130_s26 + $0x450] sm:$0xff] %v488_v10  ;;  %491 = vst [vmem:[%s4130_s26 + $0x458] sm:$0xff] %v490_v11  ;;  %v494_v13 = vld [vmem:[%s4125_s5 + $0x2308] sm:$0xff] }
  0x95   : > { %493 = vst [vmem:[%s4130_s26 + $0x460] sm:$0xff] %v492_v12  ;;  %v496_v14 = vld [vmem:[%s4125_s5 + $0x2380] sm:$0xff]  ;;  %v498_v15 = vld [vmem:[%s4125_s5 + $0x2388] sm:$0xff]  ;;  %495 = vst [vmem:[%s4130_s26 + $0x468] sm:$0xff] %v494_v13 }
  0x96   : > { %497 = vst [vmem:[%s4130_s26 + $0x470] sm:$0xff] %v496_v14  ;;  %499 = vst [vmem:[%s4130_s26 + $0x478] sm:$0xff] %v498_v15  ;;  %v500_v16 = vld [vmem:[%s4125_s5 + $0x2400] sm:$0xff]  ;;  %v502_v17 = vld [vmem:[%s4125_s5 + $0x2408] sm:$0xff] }
  0x97   : > { %v504_v18 = vld [vmem:[%s4125_s5 + $0x2480] sm:$0xff]  ;;  %501 = vst [vmem:[%s4130_s26 + $0x480] sm:$0xff] %v500_v16  ;;  %503 = vst [vmem:[%s4130_s26 + $0x488] sm:$0xff] %v502_v17  ;;  %v506_v19 = vld [vmem:[%s4125_s5 + $0x2488] sm:$0xff] }
  0x98   : > { %505 = vst [vmem:[%s4130_s26 + $0x490] sm:$0xff] %v504_v18  ;;  %v508_v20 = vld [vmem:[%s4125_s5 + $0x2500] sm:$0xff]  ;;  %v510_v21 = vld [vmem:[%s4125_s5 + $0x2508] sm:$0xff]  ;;  %507 = vst [vmem:[%s4130_s26 + $0x498] sm:$0xff] %v506_v19 }
  0x99   : > { %509 = vst [vmem:[%s4130_s26 + $0x4a0] sm:$0xff] %v508_v20  ;;  %511 = vst [vmem:[%s4130_s26 + $0x4a8] sm:$0xff] %v510_v21  ;;  %v512_v22 = vld [vmem:[%s4125_s5 + $0x2580] sm:$0xff]  ;;  %v514_v23 = vld [vmem:[%s4125_s5 + $0x2588] sm:$0xff] }
  0x9a   : > { %v516_v24 = vld [vmem:[%s4125_s5 + $0x2600] sm:$0xff]  ;;  %513 = vst [vmem:[%s4130_s26 + $0x4b0] sm:$0xff] %v512_v22  ;;  %515 = vst [vmem:[%s4130_s26 + $0x4b8] sm:$0xff] %v514_v23  ;;  %v518_v25 = vld [vmem:[%s4125_s5 + $0x2608] sm:$0xff] }
  0x9b   : > { %517 = vst [vmem:[%s4130_s26 + $0x4c0] sm:$0xff] %v516_v24  ;;  %v520_v26 = vld [vmem:[%s4125_s5 + $0x2680] sm:$0xff]  ;;  %v522_v27 = vld [vmem:[%s4125_s5 + $0x2688] sm:$0xff]  ;;  %519 = vst [vmem:[%s4130_s26 + $0x4c8] sm:$0xff] %v518_v25 }
  0x9c   : > { %521 = vst [vmem:[%s4130_s26 + $0x4d0] sm:$0xff] %v520_v26  ;;  %523 = vst [vmem:[%s4130_s26 + $0x4d8] sm:$0xff] %v522_v27  ;;  %v524_v28 = vld [vmem:[%s4125_s5 + $0x2700] sm:$0xff]  ;;  %v526_v29 = vld [vmem:[%s4125_s5 + $0x2708] sm:$0xff] }
  0x9d   : > { %v528_v30 = vld [vmem:[%s4125_s5 + $0x2780] sm:$0xff]  ;;  %525 = vst [vmem:[%s4130_s26 + $0x4e0] sm:$0xff] %v524_v28  ;;  %527 = vst [vmem:[%s4130_s26 + $0x4e8] sm:$0xff] %v526_v29  ;;  %v530_v31 = vld [vmem:[%s4125_s5 + $0x2788] sm:$0xff] }
  0x9e   : > { %529 = vst [vmem:[%s4130_s26 + $0x4f0] sm:$0xff] %v528_v30  ;;  %v532_v32 = vld [vmem:[%s4125_s5 + $0x2800] sm:$0xff]  ;;  %v534_v33 = vld [vmem:[%s4125_s5 + $0x2808] sm:$0xff]  ;;  %531 = vst [vmem:[%s4130_s26 + $0x4f8] sm:$0xff] %v530_v31 }
  0x9f   : > { %533 = vst [vmem:[%s4130_s26 + $0x500] sm:$0xff] %v532_v32  ;;  %535 = vst [vmem:[%s4130_s26 + $0x508] sm:$0xff] %v534_v33  ;;  %v536_v34 = vld [vmem:[%s4125_s5 + $0x2880] sm:$0xff]  ;;  %v538_v35 = vld [vmem:[%s4125_s5 + $0x2888] sm:$0xff] }
  0xa0   : > { %v540_v36 = vld [vmem:[%s4125_s5 + $0x2900] sm:$0xff]  ;;  %537 = vst [vmem:[%s4130_s26 + $0x510] sm:$0xff] %v536_v34  ;;  %539 = vst [vmem:[%s4130_s26 + $0x518] sm:$0xff] %v538_v35  ;;  %v542_v37 = vld [vmem:[%s4125_s5 + $0x2908] sm:$0xff] }
  0xa1   : > { %541 = vst [vmem:[%s4130_s26 + $0x520] sm:$0xff] %v540_v36  ;;  %v544_v38 = vld [vmem:[%s4125_s5 + $0x2980] sm:$0xff]  ;;  %v546_v39 = vld [vmem:[%s4125_s5 + $0x2988] sm:$0xff]  ;;  %543 = vst [vmem:[%s4130_s26 + $0x528] sm:$0xff] %v542_v37 }
  0xa2   : > { %545 = vst [vmem:[%s4130_s26 + $0x530] sm:$0xff] %v544_v38  ;;  %547 = vst [vmem:[%s4130_s26 + $0x538] sm:$0xff] %v546_v39  ;;  %v548_v40 = vld [vmem:[%s4125_s5 + $0x2a00] sm:$0xff]  ;;  %v550_v41 = vld [vmem:[%s4125_s5 + $0x2a08] sm:$0xff] }
  0xa3   : > { %v552_v42 = vld [vmem:[%s4125_s5 + $0x2a80] sm:$0xff]  ;;  %549 = vst [vmem:[%s4130_s26 + $0x540] sm:$0xff] %v548_v40  ;;  %551 = vst [vmem:[%s4130_s26 + $0x548] sm:$0xff] %v550_v41  ;;  %v554_v43 = vld [vmem:[%s4125_s5 + $0x2a88] sm:$0xff] }
  0xa4   : > { %553 = vst [vmem:[%s4130_s26 + $0x550] sm:$0xff] %v552_v42  ;;  %v556_v44 = vld [vmem:[%s4125_s5 + $0x2b00] sm:$0xff]  ;;  %v558_v45 = vld [vmem:[%s4125_s5 + $0x2b08] sm:$0xff]  ;;  %555 = vst [vmem:[%s4130_s26 + $0x558] sm:$0xff] %v554_v43 }
  0xa5   : > { %557 = vst [vmem:[%s4130_s26 + $0x560] sm:$0xff] %v556_v44  ;;  %559 = vst [vmem:[%s4130_s26 + $0x568] sm:$0xff] %v558_v45  ;;  %v560_v46 = vld [vmem:[%s4125_s5 + $0x2b80] sm:$0xff]  ;;  %v562_v47 = vld [vmem:[%s4125_s5 + $0x2b88] sm:$0xff] }
  0xa6   : > { %v564_v48 = vld [vmem:[%s4125_s5 + $0x2c00] sm:$0xff]  ;;  %561 = vst [vmem:[%s4130_s26 + $0x570] sm:$0xff] %v560_v46  ;;  %563 = vst [vmem:[%s4130_s26 + $0x578] sm:$0xff] %v562_v47  ;;  %v566_v49 = vld [vmem:[%s4125_s5 + $0x2c08] sm:$0xff] }
  0xa7   : > { %565 = vst [vmem:[%s4130_s26 + $0x580] sm:$0xff] %v564_v48  ;;  %v568_v50 = vld [vmem:[%s4125_s5 + $0x2c80] sm:$0xff]  ;;  %v570_v51 = vld [vmem:[%s4125_s5 + $0x2c88] sm:$0xff]  ;;  %567 = vst [vmem:[%s4130_s26 + $0x588] sm:$0xff] %v566_v49 }
  0xa8   : > { %569 = vst [vmem:[%s4130_s26 + $0x590] sm:$0xff] %v568_v50  ;;  %571 = vst [vmem:[%s4130_s26 + $0x598] sm:$0xff] %v570_v51  ;;  %v572_v52 = vld [vmem:[%s4125_s5 + $0x2d00] sm:$0xff]  ;;  %v574_v53 = vld [vmem:[%s4125_s5 + $0x2d08] sm:$0xff] }
  0xa9   : > { %v576_v54 = vld [vmem:[%s4125_s5 + $0x2d80] sm:$0xff]  ;;  %573 = vst [vmem:[%s4130_s26 + $0x5a0] sm:$0xff] %v572_v52  ;;  %575 = vst [vmem:[%s4130_s26 + $0x5a8] sm:$0xff] %v574_v53  ;;  %v578_v55 = vld [vmem:[%s4125_s5 + $0x2d88] sm:$0xff] }
  0xaa   : > { %577 = vst [vmem:[%s4130_s26 + $0x5b0] sm:$0xff] %v576_v54  ;;  %v580_v56 = vld [vmem:[%s4125_s5 + $0x2e00] sm:$0xff]  ;;  %v582_v57 = vld [vmem:[%s4125_s5 + $0x2e08] sm:$0xff]  ;;  %579 = vst [vmem:[%s4130_s26 + $0x5b8] sm:$0xff] %v578_v55 }
  0xab   : > { %581 = vst [vmem:[%s4130_s26 + $0x5c0] sm:$0xff] %v580_v56  ;;  %583 = vst [vmem:[%s4130_s26 + $0x5c8] sm:$0xff] %v582_v57  ;;  %v584_v58 = vld [vmem:[%s4125_s5 + $0x2e80] sm:$0xff]  ;;  %v586_v59 = vld [vmem:[%s4125_s5 + $0x2e88] sm:$0xff] }
  0xac   : > { %v588_v60 = vld [vmem:[%s4125_s5 + $0x2f00] sm:$0xff]  ;;  %585 = vst [vmem:[%s4130_s26 + $0x5d0] sm:$0xff] %v584_v58  ;;  %587 = vst [vmem:[%s4130_s26 + $0x5d8] sm:$0xff] %v586_v59  ;;  %v590_v61 = vld [vmem:[%s4125_s5 + $0x2f08] sm:$0xff] }
  0xad   : > { %589 = vst [vmem:[%s4130_s26 + $0x5e0] sm:$0xff] %v588_v60  ;;  %v592_v62 = vld [vmem:[%s4125_s5 + $0x2f80] sm:$0xff]  ;;  %v594_v63 = vld [vmem:[%s4125_s5 + $0x2f88] sm:$0xff]  ;;  %591 = vst [vmem:[%s4130_s26 + $0x5e8] sm:$0xff] %v590_v61 }
  0xae   : > { %593 = vst [vmem:[%s4130_s26 + $0x5f0] sm:$0xff] %v592_v62  ;;  %595 = vst [vmem:[%s4130_s26 + $0x5f8] sm:$0xff] %v594_v63  ;;  %v596_v0 = vld [vmem:[%s4125_s5 + $0x3000] sm:$0xff]  ;;  %v598_v1 = vld [vmem:[%s4125_s5 + $0x3008] sm:$0xff] }
  0xaf   : > { %v600_v2 = vld [vmem:[%s4125_s5 + $0x3080] sm:$0xff]  ;;  %597 = vst [vmem:[%s4130_s26 + $0x600] sm:$0xff] %v596_v0  ;;  %599 = vst [vmem:[%s4130_s26 + $0x608] sm:$0xff] %v598_v1  ;;  %v602_v3 = vld [vmem:[%s4125_s5 + $0x3088] sm:$0xff] }
  0xb0   : > { %601 = vst [vmem:[%s4130_s26 + $0x610] sm:$0xff] %v600_v2  ;;  %v604_v4 = vld [vmem:[%s4125_s5 + $0x3100] sm:$0xff]  ;;  %v606_v5 = vld [vmem:[%s4125_s5 + $0x3108] sm:$0xff]  ;;  %603 = vst [vmem:[%s4130_s26 + $0x618] sm:$0xff] %v602_v3 }
  0xb1   : > { %605 = vst [vmem:[%s4130_s26 + $0x620] sm:$0xff] %v604_v4  ;;  %607 = vst [vmem:[%s4130_s26 + $0x628] sm:$0xff] %v606_v5  ;;  %v608_v6 = vld [vmem:[%s4125_s5 + $0x3180] sm:$0xff]  ;;  %v610_v7 = vld [vmem:[%s4125_s5 + $0x3188] sm:$0xff] }
  0xb2   : > { %v612_v8 = vld [vmem:[%s4125_s5 + $0x3200] sm:$0xff]  ;;  %609 = vst [vmem:[%s4130_s26 + $0x630] sm:$0xff] %v608_v6  ;;  %611 = vst [vmem:[%s4130_s26 + $0x638] sm:$0xff] %v610_v7  ;;  %v614_v9 = vld [vmem:[%s4125_s5 + $0x3208] sm:$0xff] }
  0xb3   : > { %613 = vst [vmem:[%s4130_s26 + $0x640] sm:$0xff] %v612_v8  ;;  %v616_v10 = vld [vmem:[%s4125_s5 + $0x3280] sm:$0xff]  ;;  %v618_v11 = vld [vmem:[%s4125_s5 + $0x3288] sm:$0xff]  ;;  %615 = vst [vmem:[%s4130_s26 + $0x648] sm:$0xff] %v614_v9 }
  0xb4   : > { %617 = vst [vmem:[%s4130_s26 + $0x650] sm:$0xff] %v616_v10  ;;  %619 = vst [vmem:[%s4130_s26 + $0x658] sm:$0xff] %v618_v11  ;;  %v620_v12 = vld [vmem:[%s4125_s5 + $0x3300] sm:$0xff]  ;;  %v622_v13 = vld [vmem:[%s4125_s5 + $0x3308] sm:$0xff] }
  0xb5   : > { %v624_v14 = vld [vmem:[%s4125_s5 + $0x3380] sm:$0xff]  ;;  %621 = vst [vmem:[%s4130_s26 + $0x660] sm:$0xff] %v620_v12  ;;  %623 = vst [vmem:[%s4130_s26 + $0x668] sm:$0xff] %v622_v13  ;;  %v626_v15 = vld [vmem:[%s4125_s5 + $0x3388] sm:$0xff] }
  0xb6   : > { %625 = vst [vmem:[%s4130_s26 + $0x670] sm:$0xff] %v624_v14  ;;  %v628_v16 = vld [vmem:[%s4125_s5 + $0x3400] sm:$0xff]  ;;  %v630_v17 = vld [vmem:[%s4125_s5 + $0x3408] sm:$0xff]  ;;  %627 = vst [vmem:[%s4130_s26 + $0x678] sm:$0xff] %v626_v15 }
  0xb7   : > { %629 = vst [vmem:[%s4130_s26 + $0x680] sm:$0xff] %v628_v16  ;;  %631 = vst [vmem:[%s4130_s26 + $0x688] sm:$0xff] %v630_v17  ;;  %v632_v18 = vld [vmem:[%s4125_s5 + $0x3480] sm:$0xff]  ;;  %v634_v19 = vld [vmem:[%s4125_s5 + $0x3488] sm:$0xff] }
  0xb8   : > { %v636_v20 = vld [vmem:[%s4125_s5 + $0x3500] sm:$0xff]  ;;  %633 = vst [vmem:[%s4130_s26 + $0x690] sm:$0xff] %v632_v18  ;;  %635 = vst [vmem:[%s4130_s26 + $0x698] sm:$0xff] %v634_v19  ;;  %v638_v21 = vld [vmem:[%s4125_s5 + $0x3508] sm:$0xff] }
  0xb9   : > { %637 = vst [vmem:[%s4130_s26 + $0x6a0] sm:$0xff] %v636_v20  ;;  %v640_v22 = vld [vmem:[%s4125_s5 + $0x3580] sm:$0xff]  ;;  %v642_v23 = vld [vmem:[%s4125_s5 + $0x3588] sm:$0xff]  ;;  %639 = vst [vmem:[%s4130_s26 + $0x6a8] sm:$0xff] %v638_v21 }
  0xba   : > { %641 = vst [vmem:[%s4130_s26 + $0x6b0] sm:$0xff] %v640_v22  ;;  %643 = vst [vmem:[%s4130_s26 + $0x6b8] sm:$0xff] %v642_v23  ;;  %v644_v24 = vld [vmem:[%s4125_s5 + $0x3600] sm:$0xff]  ;;  %v646_v25 = vld [vmem:[%s4125_s5 + $0x3608] sm:$0xff] }
  0xbb   : > { %v648_v26 = vld [vmem:[%s4125_s5 + $0x3680] sm:$0xff]  ;;  %645 = vst [vmem:[%s4130_s26 + $0x6c0] sm:$0xff] %v644_v24  ;;  %647 = vst [vmem:[%s4130_s26 + $0x6c8] sm:$0xff] %v646_v25  ;;  %v650_v27 = vld [vmem:[%s4125_s5 + $0x3688] sm:$0xff] }
  0xbc   : > { %649 = vst [vmem:[%s4130_s26 + $0x6d0] sm:$0xff] %v648_v26  ;;  %v652_v28 = vld [vmem:[%s4125_s5 + $0x3700] sm:$0xff]  ;;  %v654_v29 = vld [vmem:[%s4125_s5 + $0x3708] sm:$0xff]  ;;  %651 = vst [vmem:[%s4130_s26 + $0x6d8] sm:$0xff] %v650_v27 }
  0xbd   : > { %653 = vst [vmem:[%s4130_s26 + $0x6e0] sm:$0xff] %v652_v28  ;;  %655 = vst [vmem:[%s4130_s26 + $0x6e8] sm:$0xff] %v654_v29  ;;  %v656_v30 = vld [vmem:[%s4125_s5 + $0x3780] sm:$0xff]  ;;  %v658_v31 = vld [vmem:[%s4125_s5 + $0x3788] sm:$0xff] }
  0xbe   : > { %v660_v32 = vld [vmem:[%s4125_s5 + $0x3800] sm:$0xff]  ;;  %657 = vst [vmem:[%s4130_s26 + $0x6f0] sm:$0xff] %v656_v30  ;;  %659 = vst [vmem:[%s4130_s26 + $0x6f8] sm:$0xff] %v658_v31  ;;  %v662_v33 = vld [vmem:[%s4125_s5 + $0x3808] sm:$0xff] }
  0xbf   : > { %661 = vst [vmem:[%s4130_s26 + $0x700] sm:$0xff] %v660_v32  ;;  %v664_v34 = vld [vmem:[%s4125_s5 + $0x3880] sm:$0xff]  ;;  %v666_v35 = vld [vmem:[%s4125_s5 + $0x3888] sm:$0xff]  ;;  %663 = vst [vmem:[%s4130_s26 + $0x708] sm:$0xff] %v662_v33 }
  0xc0   : > { %665 = vst [vmem:[%s4130_s26 + $0x710] sm:$0xff] %v664_v34  ;;  %667 = vst [vmem:[%s4130_s26 + $0x718] sm:$0xff] %v666_v35  ;;  %v668_v36 = vld [vmem:[%s4125_s5 + $0x3900] sm:$0xff]  ;;  %v670_v37 = vld [vmem:[%s4125_s5 + $0x3908] sm:$0xff] }
  0xc1   : > { %v672_v38 = vld [vmem:[%s4125_s5 + $0x3980] sm:$0xff]  ;;  %669 = vst [vmem:[%s4130_s26 + $0x720] sm:$0xff] %v668_v36  ;;  %671 = vst [vmem:[%s4130_s26 + $0x728] sm:$0xff] %v670_v37  ;;  %v674_v39 = vld [vmem:[%s4125_s5 + $0x3988] sm:$0xff] }
  0xc2   : > { %673 = vst [vmem:[%s4130_s26 + $0x730] sm:$0xff] %v672_v38  ;;  %v676_v40 = vld [vmem:[%s4125_s5 + $0x3a00] sm:$0xff]  ;;  %v678_v41 = vld [vmem:[%s4125_s5 + $0x3a08] sm:$0xff]  ;;  %675 = vst [vmem:[%s4130_s26 + $0x738] sm:$0xff] %v674_v39 }
  0xc3   : > { %677 = vst [vmem:[%s4130_s26 + $0x740] sm:$0xff] %v676_v40  ;;  %679 = vst [vmem:[%s4130_s26 + $0x748] sm:$0xff] %v678_v41  ;;  %v680_v42 = vld [vmem:[%s4125_s5 + $0x3a80] sm:$0xff]  ;;  %v682_v43 = vld [vmem:[%s4125_s5 + $0x3a88] sm:$0xff] }
  0xc4   : > { %v684_v44 = vld [vmem:[%s4125_s5 + $0x3b00] sm:$0xff]  ;;  %681 = vst [vmem:[%s4130_s26 + $0x750] sm:$0xff] %v680_v42  ;;  %683 = vst [vmem:[%s4130_s26 + $0x758] sm:$0xff] %v682_v43  ;;  %v686_v45 = vld [vmem:[%s4125_s5 + $0x3b08] sm:$0xff] }
  0xc5   : > { %685 = vst [vmem:[%s4130_s26 + $0x760] sm:$0xff] %v684_v44  ;;  %v688_v46 = vld [vmem:[%s4125_s5 + $0x3b80] sm:$0xff]  ;;  %v690_v47 = vld [vmem:[%s4125_s5 + $0x3b88] sm:$0xff]  ;;  %687 = vst [vmem:[%s4130_s26 + $0x768] sm:$0xff] %v686_v45 }
  0xc6   : > { %689 = vst [vmem:[%s4130_s26 + $0x770] sm:$0xff] %v688_v46  ;;  %691 = vst [vmem:[%s4130_s26 + $0x778] sm:$0xff] %v690_v47  ;;  %v692_v48 = vld [vmem:[%s4125_s5 + $0x3c00] sm:$0xff]  ;;  %v694_v49 = vld [vmem:[%s4125_s5 + $0x3c08] sm:$0xff] }
  0xc7   : > { %v696_v50 = vld [vmem:[%s4125_s5 + $0x3c80] sm:$0xff]  ;;  %693 = vst [vmem:[%s4130_s26 + $0x780] sm:$0xff] %v692_v48  ;;  %695 = vst [vmem:[%s4130_s26 + $0x788] sm:$0xff] %v694_v49  ;;  %v698_v51 = vld [vmem:[%s4125_s5 + $0x3c88] sm:$0xff] }
  0xc8   : > { %697 = vst [vmem:[%s4130_s26 + $0x790] sm:$0xff] %v696_v50  ;;  %v700_v52 = vld [vmem:[%s4125_s5 + $0x3d00] sm:$0xff]  ;;  %v702_v53 = vld [vmem:[%s4125_s5 + $0x3d08] sm:$0xff]  ;;  %699 = vst [vmem:[%s4130_s26 + $0x798] sm:$0xff] %v698_v51 }
  0xc9   : > { %701 = vst [vmem:[%s4130_s26 + $0x7a0] sm:$0xff] %v700_v52  ;;  %703 = vst [vmem:[%s4130_s26 + $0x7a8] sm:$0xff] %v702_v53  ;;  %v704_v54 = vld [vmem:[%s4125_s5 + $0x3d80] sm:$0xff]  ;;  %v706_v55 = vld [vmem:[%s4125_s5 + $0x3d88] sm:$0xff] }
  0xca   : > { %v708_v56 = vld [vmem:[%s4125_s5 + $0x3e00] sm:$0xff]  ;;  %705 = vst [vmem:[%s4130_s26 + $0x7b0] sm:$0xff] %v704_v54  ;;  %707 = vst [vmem:[%s4130_s26 + $0x7b8] sm:$0xff] %v706_v55  ;;  %v710_v57 = vld [vmem:[%s4125_s5 + $0x3e08] sm:$0xff] }
  0xcb   : > { %709 = vst [vmem:[%s4130_s26 + $0x7c0] sm:$0xff] %v708_v56  ;;  %v712_v58 = vld [vmem:[%s4125_s5 + $0x3e80] sm:$0xff]  ;;  %v714_v59 = vld [vmem:[%s4125_s5 + $0x3e88] sm:$0xff]  ;;  %711 = vst [vmem:[%s4130_s26 + $0x7c8] sm:$0xff] %v710_v57 }
  0xcc   : > { %713 = vst [vmem:[%s4130_s26 + $0x7d0] sm:$0xff] %v712_v58  ;;  %715 = vst [vmem:[%s4130_s26 + $0x7d8] sm:$0xff] %v714_v59  ;;  %v716_v60 = vld [vmem:[%s4125_s5 + $0x3f00] sm:$0xff]  ;;  %v718_v61 = vld [vmem:[%s4125_s5 + $0x3f08] sm:$0xff] }
  0xcd   : > { %v720_v62 = vld [vmem:[%s4125_s5 + $0x3f80] sm:$0xff]  ;;  %717 = vst [vmem:[%s4130_s26 + $0x7e0] sm:$0xff] %v716_v60  ;;  %719 = vst [vmem:[%s4130_s26 + $0x7e8] sm:$0xff] %v718_v61  ;;  %v722_v63 = vld [vmem:[%s4125_s5 + $0x3f88] sm:$0xff] }
  0xce   : > { %721 = vst [vmem:[%s4130_s26 + $0x7f0] sm:$0xff] %v720_v62  ;;  %723 = vst [vmem:[%s4130_s26 + $0x7f8] sm:$0xff] %v722_v63 }
  0xcf PF: > { %s730_s4 = sand.u32 1, %s3880_s14   ;;  %s3212_s6 = sshll.u32 %s3916_s23, 6 }
  0xd0   : > { %s2931_s29 = sshll.u32 %s730_s4, 2  ;;  %s4646_s12 = scalar_lea.hbm %s5078_s2, %s3212_s6 }
  0xd1   : > { %s734_s19 = scalar_lea.vmem [#allocation7], %s2931_s29  ;;  %s731_s8 = scalar_lea.sflag [#allocation8], %s730_s4 }
  0xd2   : > { %s742_s10 = sshll.u32 %s734_s19, 4  ;;  %s3750_s27 = scalar_lea.hbm %s4646_s12, 64  ;;  %s743_s10 = int_to_ptr.vmem [resolvable:$true] %s742_s10 }
  0xd3   : > { %p3751_p3 = scmp.ne.s32.totalorder %s4646_s12, %s3750_s27  ;;  %p5114_p8 = scmp.ne.s32.totalorder %s5105_s25, 0 }
  0xd4   : > { %s3754_s30 = scalar_lea.hbm %s5078_s2, 512  ;;  %p3755_p6 = scmp.lt.u32.totalorder %s4646_s12, %s5078_s2 }
  0xd5   : > { %p3752_p12 = pnand %p3751_p3, %p5114_p8  ;;  %p3756_p10 = scmp.lt.u32.totalorder %s3754_s30, %s3750_s27 }
  0xd6   : > { %p3758_p4 = scmp.lt.u32.totalorder %s3750_s27, %s4646_s12 }
  0xd7   : > { %p3753_p0 = pneg %p3752_p12  ;;  %p3757_p13 = por %p3756_p10, %p3755_p6 }
  0xd9   : > { %p3759_p5 = por %p3758_p4, %p3757_p13 }
  0xdb   : > { %p3760_p2 = pnand %p3759_p5, %p3753_p0 }
  0xdd   : > { %3763 = shalt.err (!%p3760_p2)
}
  0xde   : > { %s3764_s4 = scalar_lea.vmem %s743_s10, 64  ;;  %s3923_s6 = smov [#allocation7]  }
  0xdf   : > { %p3765_p7 = scmp.ne.s32.totalorder %s743_s10, %s3764_s4  ;;  %s3768_s29 = sshll.u32 %s3923_s6, 4  ;;  %s3769_s29 = int_to_ptr.vmem [resolvable:$false] %s3768_s29 }
  0xe0   : > { %s3770_s11 = scalar_lea.vmem %s3769_s29, 128  ;;  %p3771_p9 = scmp.lt.s32.totalorder %s743_s10, %s3769_s29 }
  0xe1   : > { %p3766_p11 = pnand %p3765_p7, %p5114_p8  ;;  %p3772_p3 = scmp.lt.s32.totalorder %s3770_s11, %s3764_s4 }
  0xe3   : > { %p3767_p1 = pneg %p3766_p11  ;;  %p3773_p12 = por %p3772_p3, %p3771_p9 }
  0xe5   : > { %p3774_p6 = pnand %p3773_p12, %p3767_p1 }
  0xe7   : > { %3777 = shalt.err (!%p3774_p6)
}
  0xe8   : > { %3215 = dma.hbm_to_vmem [thread:$0]  (%p5114_p8), %s4646_s12, 64, %s743_s10, %s731_s8  }
  0xe9 PF: > { %p2934_p0 = scmp.ge.s32.totalorder %s3920_s24, 1  ;;  %p747_p10 = scmp.lt.s32.totalorder %s3920_s24, 33 }
  0xeb   : > { %p748_p13 = pnand %p2934_p0, %p747_p10 }
  0xec   : > { %s753_s3 = sand.u32 (!%p748_p13), 1, %s3896_s18   ;;  %p5115_p4 = scmp.ne.s32.totalorder (!%p748_p13), %s5101_s7, 0 }
  0xed   : > { %751 = sbr.rel (%p748_p13) target bundleno = 776 (0x308), region = 51  ;;  %s2935_s19 = sshll.u32 (!%p748_p13), %s753_s3, 5 }
  0xee   : > { %s754_s27 = scalar_lea.sflag (!%p748_p13), [#allocation4], %s753_s3  ;;  %s4668_s28 = scalar_lea.vmem (!%p748_p13), [#allocation3], %s2935_s19 }
  0xf4   : > { %3859 = dma.done.wait (%p5115_p4), %s754_s27, 512  }
  0xf5   : > { %3861 = vsyncadd (%p5115_p4), %s754_s27, 4294966784  ;;  %s763_s25 = sand.u32 1, %s3884_s15   ;;  %s4676_s12 = sand.u32 1, %s3876_s13  }
  0xf6   : > { %s2936_s10 = sshll.u32 %s763_s25, 11  ;;  %s2937_s8 = sshll.u32 %s4676_s12, 2 }
  0xf7   : > { %s4679_s17 = scalar_lea.vmem [#allocation6], %s2936_s10  ;;  %s770_s30 = scalar_lea.sflag [#allocation8], %s4676_s12 }
  0xf8   : > { %s4682_s5 = scalar_lea.vmem [#allocation7], %s2937_s8  ;;  %p5116_p8 = scmp.ne.s32.totalorder %s5108_s9, 0 }
  0xfa   : > { %3863 = dma.done.wait (%p5116_p8), %s770_s30, 64  }
  0xfb   : > { %3865 = vsyncadd (%p5116_p8), %s770_s30, 4294967232  ;;  %s2938_s7 = sshll.u32 %s4676_s12, 5  ;;  %p2939_p5 = scmp.ne.s32.totalorder %s3904_s20, 0 }
  0xfc   : > { %s4689_s26 = scalar_lea.vmem [#allocation9], %s2938_s7  ;;  %v3924_v0 = vmov (!%p2939_p5), 0.0  }
  0xfd   : > { %813 = sbr.rel (%p2939_p5) target bundleno = 260 (0x104), region = 67  ;;  %814 = vst [vmem:[#allocation2] sm:$0xff] (!%p2939_p5), %v3924_v0  ;;  %815 = vst [vmem:[#allocation2 + $0x8] sm:$0xff] (!%p2939_p5), %v3924_v0 }
  0xfe   : > { %816 = vst [vmem:[#allocation2 + $0x10] sm:$0xff] (!%p2939_p5), %v3924_v0  ;;  %817 = vst [vmem:[#allocation2 + $0x18] sm:$0xff] (!%p2939_p5), %v3924_v0 }
 0x104 PF: > { %v3330_v1 = vld [vmem:[%s4679_s17 + $0x4] ss:$16 sps:$4 sm:$0xff]   ;;  %v3334_v3 = vld [vmem:[%s4679_s17] ss:$16 sps:$4 sm:$0xff]   ;;  %v823_v49 = vld [vmem:[%s4668_s28 + $0x8] sm:$0xff]  ;;  %p3204_p2 = scmp.ne.s32.totalorder %s3904_s20, 3 }
 0x105   : > { %v3332_v2 = vld [vmem:[%s4679_s17 + $0x204] ss:$16 sps:$4 sm:$0xff]   ;;  %2390 = vmatprep.subr.bf16.mxu0 %v3330_v1  ;;  %v3335_v4 = vld [vmem:[%s4679_s17 + $0x200] ss:$16 sps:$4 sm:$0xff]   ;;  %v4744_v52 = vcombine.high %v823_v49, %v823_v49 }
 0x106   : > { %2431 = vmatprep.subr.bf16.mxu1 %v3332_v2  ;;  %v3336_v5 = vld [vmem:[%s4679_s17 + $0x24] ss:$16 sps:$4 sm:$0xff]   ;;  %2391 = vmatpush1.bf16.msra.mxu0 %v3334_v3  ;;  %v3340_v7 = vld [vmem:[%s4679_s17 + $0x20] ss:$16 sps:$4 sm:$0xff]  }
 0x107   : > { %2432 = vmatpush1.bf16.msra.mxu1 %v3335_v4  ;;  %v3338_v6 = vld [vmem:[%s4679_s17 + $0x224] ss:$16 sps:$4 sm:$0xff]   ;;  %2392 = vmatprep.subr.bf16.mxu0 %v3336_v5  ;;  %v3341_v8 = vld [vmem:[%s4679_s17 + $0x220] ss:$16 sps:$4 sm:$0xff]  }
 0x108   : > { %2433 = vmatprep.subr.bf16.mxu1 %v3338_v6  ;;  %v3342_v9 = vld [vmem:[%s4679_s17 + $0x44] ss:$16 sps:$4 sm:$0xff]   ;;  %v3346_v11 = vld [vmem:[%s4679_s17 + $0x40] ss:$16 sps:$4 sm:$0xff]   ;;  %2463 = vmatprep.mubr.bf16.mxu1 %v4744_v52 }
 0x109   : > { %v3344_v10 = vld [vmem:[%s4679_s17 + $0x244] ss:$16 sps:$4 sm:$0xff]   ;;  %v3347_v12 = vld [vmem:[%s4679_s17 + $0x240] ss:$16 sps:$4 sm:$0xff]  }
 0x10a   : > { %2393 = vmatpush1.bf16.msra.mxu0 %v3340_v7  ;;  %v3348_v13 = vld [vmem:[%s4679_s17 + $0x64] ss:$16 sps:$4 sm:$0xff]   ;;  %v3352_v15 = vld [vmem:[%s4679_s17 + $0x60] ss:$16 sps:$4 sm:$0xff]  }
 0x10b   : > { %2434 = vmatpush1.bf16.msra.mxu1 %v3341_v8  ;;  %2394 = vmatprep.subr.bf16.mxu0 %v3342_v9  ;;  %v3350_v14 = vld [vmem:[%s4679_s17 + $0x264] ss:$16 sps:$4 sm:$0xff]   ;;  %v3353_v16 = vld [vmem:[%s4679_s17 + $0x260] ss:$16 sps:$4 sm:$0xff]   ;;  %v4768_v8 = vcombine.low %v823_v49, %v823_v49 }
 0x10c   : > { %2435 = vmatprep.subr.bf16.mxu1 %v3344_v10  ;;  %v3354_v17 = vld [vmem:[%s4679_s17 + $0x84] ss:$16 sps:$4 sm:$0xff]   ;;  %v3358_v19 = vld [vmem:[%s4679_s17 + $0x80] ss:$16 sps:$4 sm:$0xff]  }
 0x10d   : > { %v3356_v18 = vld [vmem:[%s4679_s17 + $0x284] ss:$16 sps:$4 sm:$0xff]   ;;  %v3359_v20 = vld [vmem:[%s4679_s17 + $0x280] ss:$16 sps:$4 sm:$0xff]  }
 0x10e   : > { %2395 = vmatpush1.bf16.msra.mxu0 %v3346_v11  ;;  %v3360_v21 = vld [vmem:[%s4679_s17 + $0xa4] ss:$16 sps:$4 sm:$0xff]   ;;  %v3364_v23 = vld [vmem:[%s4679_s17 + $0xa0] ss:$16 sps:$4 sm:$0xff]  }
 0x10f   : > { %2436 = vmatpush1.bf16.msra.mxu1 %v3347_v12  ;;  %2396 = vmatprep.subr.bf16.mxu0 %v3348_v13  ;;  %v3362_v22 = vld [vmem:[%s4679_s17 + $0x2a4] ss:$16 sps:$4 sm:$0xff]   ;;  %v3365_v24 = vld [vmem:[%s4679_s17 + $0x2a0] ss:$16 sps:$4 sm:$0xff]  }
 0x110   : > { %2437 = vmatprep.subr.bf16.mxu1 %v3350_v14  ;;  %v3366_v25 = vld [vmem:[%s4679_s17 + $0xc4] ss:$16 sps:$4 sm:$0xff]   ;;  %v3370_v27 = vld [vmem:[%s4679_s17 + $0xc0] ss:$16 sps:$4 sm:$0xff]  }
 0x111   : > { %v3368_v26 = vld [vmem:[%s4679_s17 + $0x2c4] ss:$16 sps:$4 sm:$0xff]   ;;  %v3371_v28 = vld [vmem:[%s4679_s17 + $0x2c0] ss:$16 sps:$4 sm:$0xff]  }
 0x112   : > { %2397 = vmatpush1.bf16.msra.mxu0 %v3352_v15  ;;  %v3372_v29 = vld [vmem:[%s4679_s17 + $0xe4] ss:$16 sps:$4 sm:$0xff]   ;;  %v3376_v31 = vld [vmem:[%s4679_s17 + $0xe0] ss:$16 sps:$4 sm:$0xff]  }
 0x113   : > { %2438 = vmatpush1.bf16.msra.mxu1 %v3353_v16  ;;  %2398 = vmatprep.subr.bf16.mxu0 %v3354_v17  ;;  %v3374_v30 = vld [vmem:[%s4679_s17 + $0x2e4] ss:$16 sps:$4 sm:$0xff]   ;;  %v3377_v32 = vld [vmem:[%s4679_s17 + $0x2e0] ss:$16 sps:$4 sm:$0xff]  }
 0x114   : > { %2439 = vmatprep.subr.bf16.mxu1 %v3356_v18  ;;  %v3378_v33 = vld [vmem:[%s4679_s17 + $0x104] ss:$16 sps:$4 sm:$0xff]   ;;  %v3382_v35 = vld [vmem:[%s4679_s17 + $0x100] ss:$16 sps:$4 sm:$0xff]  }
 0x115   : > { %v3380_v34 = vld [vmem:[%s4679_s17 + $0x304] ss:$16 sps:$4 sm:$0xff]   ;;  %v3383_v36 = vld [vmem:[%s4679_s17 + $0x300] ss:$16 sps:$4 sm:$0xff]  }
 0x116   : > { %2399 = vmatpush1.bf16.msra.mxu0 %v3358_v19  ;;  %v3384_v37 = vld [vmem:[%s4679_s17 + $0x124] ss:$16 sps:$4 sm:$0xff]   ;;  %v3388_v39 = vld [vmem:[%s4679_s17 + $0x120] ss:$16 sps:$4 sm:$0xff]  }
 0x117   : > { %2440 = vmatpush1.bf16.msra.mxu1 %v3359_v20  ;;  %2400 = vmatprep.subr.bf16.mxu0 %v3360_v21  ;;  %v3386_v38 = vld [vmem:[%s4679_s17 + $0x324] ss:$16 sps:$4 sm:$0xff]   ;;  %v3389_v40 = vld [vmem:[%s4679_s17 + $0x320] ss:$16 sps:$4 sm:$0xff]  }
 0x118   : > { %2441 = vmatprep.subr.bf16.mxu1 %v3362_v22  ;;  %v3390_v41 = vld [vmem:[%s4679_s17 + $0x144] ss:$16 sps:$4 sm:$0xff]   ;;  %v3394_v43 = vld [vmem:[%s4679_s17 + $0x140] ss:$16 sps:$4 sm:$0xff]  }
 0x119   : > { %v3392_v42 = vld [vmem:[%s4679_s17 + $0x344] ss:$16 sps:$4 sm:$0xff]   ;;  %v3395_v44 = vld [vmem:[%s4679_s17 + $0x340] ss:$16 sps:$4 sm:$0xff]  }
 0x11a   : > { %2401 = vmatpush1.bf16.msra.mxu0 %v3364_v23  ;;  %v3396_v45 = vld [vmem:[%s4679_s17 + $0x164] ss:$16 sps:$4 sm:$0xff]   ;;  %v3400_v50 = vld [vmem:[%s4679_s17 + $0x160] ss:$16 sps:$4 sm:$0xff]  }
 0x11b   : > { %2442 = vmatpush1.bf16.msra.mxu1 %v3365_v24  ;;  %2402 = vmatprep.subr.bf16.mxu0 %v3366_v25  ;;  %v3398_v46 = vld [vmem:[%s4679_s17 + $0x364] ss:$16 sps:$4 sm:$0xff]   ;;  %v3401_v51 = vld [vmem:[%s4679_s17 + $0x360] ss:$16 sps:$4 sm:$0xff]  }
 0x11c   : > { %2443 = vmatprep.subr.bf16.mxu1 %v3368_v26  ;;  %v822_v47 = vld [vmem:[%s4668_s28] sm:$0xff] }
 0x11d   : > { %v4739_v48 = vcombine.high %v822_v47, %v822_v47  ;;  %v3402_v53 = vld [vmem:[%s4679_s17 + $0x184] ss:$16 sps:$4 sm:$0xff]   ;;  %v3406_v55 = vld [vmem:[%s4679_s17 + $0x180] ss:$16 sps:$4 sm:$0xff]   ;;  %v4766_v7 = vcombine.low %v822_v47, %v822_v47 }
 0x11e   : > { %2403 = vmatpush1.bf16.msra.mxu0 %v3370_v27  ;;  %v3404_v54 = vld [vmem:[%s4679_s17 + $0x384] ss:$16 sps:$4 sm:$0xff]   ;;  %v3407_v56 = vld [vmem:[%s4679_s17 + $0x380] ss:$16 sps:$4 sm:$0xff]  }
 0x11f   : > { %2444 = vmatpush1.bf16.msra.mxu1 %v3371_v28  ;;  %2404 = vmatprep.subr.bf16.mxu0 %v3372_v29  ;;  %v3408_v57 = vld [vmem:[%s4679_s17 + $0x1a4] ss:$16 sps:$4 sm:$0xff]   ;;  %v3412_v59 = vld [vmem:[%s4679_s17 + $0x1a0] ss:$16 sps:$4 sm:$0xff]  }
 0x120   : > { %2445 = vmatprep.subr.bf16.mxu1 %v3374_v30  ;;  %2422 = vmatprep.mubr.bf16.mxu0 %v4739_v48  ;;  %v3410_v58 = vld [vmem:[%s4679_s17 + $0x3a4] ss:$16 sps:$4 sm:$0xff]   ;;  %v3413_v60 = vld [vmem:[%s4679_s17 + $0x3a0] ss:$16 sps:$4 sm:$0xff]  }
 0x121   : > { %v3414_v61 = vld [vmem:[%s4679_s17 + $0x1c4] ss:$16 sps:$4 sm:$0xff]   ;;  %v3418_v63 = vld [vmem:[%s4679_s17 + $0x1c0] ss:$16 sps:$4 sm:$0xff]  }
 0x122   : > { %2405 = vmatpush1.bf16.msra.mxu0 %v3376_v31  ;;  %v3416_v62 = vld [vmem:[%s4679_s17 + $0x3c4] ss:$16 sps:$4 sm:$0xff]   ;;  %v3419_v0 = vld [vmem:[%s4679_s17 + $0x3c0] ss:$16 sps:$4 sm:$0xff]  }
 0x123   : > { %2446 = vmatpush1.bf16.msra.mxu1 %v3377_v32  ;;  %2406 = vmatprep.subr.bf16.mxu0 %v3378_v33  ;;  %v3420_v1 = vld [vmem:[%s4679_s17 + $0x1e4] ss:$16 sps:$4 sm:$0xff]   ;;  %v3424_v3 = vld [vmem:[%s4679_s17 + $0x1e0] ss:$16 sps:$4 sm:$0xff]  }
 0x124   : > { %2447 = vmatprep.subr.bf16.mxu1 %v3380_v34  ;;  %v3422_v2 = vld [vmem:[%s4679_s17 + $0x3e4] ss:$16 sps:$4 sm:$0xff]   ;;  %v3425_v4 = vld [vmem:[%s4679_s17 + $0x3e0] ss:$16 sps:$4 sm:$0xff]   ;;  %v4800_v34 = vld [vmem:[%s4668_s28 + $0x18] sm:$0xff] }
 0x125   : > { %v3432_v5 = vld [vmem:[%s4679_s17 + $0x404] ss:$16 sps:$4 sm:$0xff]   ;;  %v3430_v9 = vld [vmem:[%s4679_s17 + $0x400] ss:$16 sps:$4 sm:$0xff]  }
 0x126   : > { %2407 = vmatpush1.bf16.msra.mxu0 %v3382_v35  ;;  %v3435_v6 = vld [vmem:[%s4679_s17 + $0x604] ss:$16 sps:$4 sm:$0xff]   ;;  %v3433_v10 = vld [vmem:[%s4679_s17 + $0x600] ss:$16 sps:$4 sm:$0xff]  }
 0x127   : > { %2448 = vmatpush1.bf16.msra.mxu1 %v3383_v36  ;;  %2408 = vmatprep.subr.bf16.mxu0 %v3384_v37  ;;  %v3438_v11 = vld [vmem:[%s4679_s17 + $0x424] ss:$16 sps:$4 sm:$0xff]   ;;  %v3436_v13 = vld [vmem:[%s4679_s17 + $0x420] ss:$16 sps:$4 sm:$0xff]  }
 0x128   : > { %2449 = vmatprep.subr.bf16.mxu1 %v3386_v38  ;;  %v3441_v12 = vld [vmem:[%s4679_s17 + $0x624] ss:$16 sps:$4 sm:$0xff]   ;;  %v3439_v14 = vld [vmem:[%s4679_s17 + $0x620] ss:$16 sps:$4 sm:$0xff]   ;;  %v4810_v38 = vcombine.high %v4800_v34, %v4800_v34 }
 0x129   : > { %v3444_v15 = vld [vmem:[%s4679_s17 + $0x444] ss:$16 sps:$4 sm:$0xff]   ;;  %v3442_v17 = vld [vmem:[%s4679_s17 + $0x440] ss:$16 sps:$4 sm:$0xff]  }
 0x12a   : > { %2409 = vmatpush1.bf16.msra.mxu0 %v3388_v39  ;;  %v3447_v16 = vld [vmem:[%s4679_s17 + $0x644] ss:$16 sps:$4 sm:$0xff]   ;;  %v3445_v18 = vld [vmem:[%s4679_s17 + $0x640] ss:$16 sps:$4 sm:$0xff]  }
 0x12b   : > { %2450 = vmatpush1.bf16.msra.mxu1 %v3389_v40  ;;  %2410 = vmatprep.subr.bf16.mxu0 %v3390_v41  ;;  %v3450_v19 = vld [vmem:[%s4679_s17 + $0x464] ss:$16 sps:$4 sm:$0xff]   ;;  %v3448_v21 = vld [vmem:[%s4679_s17 + $0x460] ss:$16 sps:$4 sm:$0xff]  }
 0x12c   : > { %2451 = vmatprep.subr.bf16.mxu1 %v3392_v42  ;;  %v3453_v20 = vld [vmem:[%s4679_s17 + $0x664] ss:$16 sps:$4 sm:$0xff]   ;;  %v3451_v22 = vld [vmem:[%s4679_s17 + $0x660] ss:$16 sps:$4 sm:$0xff]  }
 0x12d   : > { %v3456_v23 = vld [vmem:[%s4679_s17 + $0x484] ss:$16 sps:$4 sm:$0xff]   ;;  %v3454_v25 = vld [vmem:[%s4679_s17 + $0x480] ss:$16 sps:$4 sm:$0xff]  }
 0x12e   : > { %2411 = vmatpush1.bf16.msra.mxu0 %v3394_v43  ;;  %v3459_v24 = vld [vmem:[%s4679_s17 + $0x684] ss:$16 sps:$4 sm:$0xff]   ;;  %v3457_v26 = vld [vmem:[%s4679_s17 + $0x680] ss:$16 sps:$4 sm:$0xff]  }
 0x12f   : > { %2452 = vmatpush1.bf16.msra.mxu1 %v3395_v44  ;;  %2412 = vmatprep.subr.bf16.mxu0 %v3396_v45  ;;  %v3462_v27 = vld [vmem:[%s4679_s17 + $0x4a4] ss:$16 sps:$4 sm:$0xff]   ;;  %v3460_v29 = vld [vmem:[%s4679_s17 + $0x4a0] ss:$16 sps:$4 sm:$0xff]  }
 0x130   : > { %2453 = vmatprep.subr.bf16.mxu1 %v3398_v46  ;;  %v3465_v28 = vld [vmem:[%s4679_s17 + $0x6a4] ss:$16 sps:$4 sm:$0xff]   ;;  %v3463_v30 = vld [vmem:[%s4679_s17 + $0x6a0] ss:$16 sps:$4 sm:$0xff]  }
 0x131   : > { %v3468_v31 = vld [vmem:[%s4679_s17 + $0x4c4] ss:$16 sps:$4 sm:$0xff]   ;;  %v3466_v35 = vld [vmem:[%s4679_s17 + $0x4c0] ss:$16 sps:$4 sm:$0xff]  }
 0x132   : > { %2413 = vmatpush1.bf16.msra.mxu0 %v3400_v50  ;;  %v3471_v32 = vld [vmem:[%s4679_s17 + $0x6c4] ss:$16 sps:$4 sm:$0xff]   ;;  %v3469_v36 = vld [vmem:[%s4679_s17 + $0x6c0] ss:$16 sps:$4 sm:$0xff]  }
 0x133   : > { %2454 = vmatpush1.bf16.msra.mxu1 %v3401_v51  ;;  %2414 = vmatprep.subr.bf16.mxu0 %v3402_v53  ;;  %v4797_v33 = vld [vmem:[%s4668_s28 + $0x10] sm:$0xff] }
 0x134   : > { %2455 = vmatprep.subr.bf16.mxu1 %v3404_v54  ;;  %v4806_v37 = vcombine.high %v4797_v33, %v4797_v33  ;;  %v3474_v39 = vld [vmem:[%s4679_s17 + $0x4e4] ss:$16 sps:$4 sm:$0xff]   ;;  %v3472_v41 = vld [vmem:[%s4679_s17 + $0x4e0] ss:$16 sps:$4 sm:$0xff]  }
 0x135   : > { %v3477_v40 = vld [vmem:[%s4679_s17 + $0x6e4] ss:$16 sps:$4 sm:$0xff]   ;;  %v3475_v42 = vld [vmem:[%s4679_s17 + $0x6e0] ss:$16 sps:$4 sm:$0xff]  }
 0x136   : > { %2415 = vmatpush1.bf16.msra.mxu0 %v3406_v55  ;;  %v3480_v43 = vld [vmem:[%s4679_s17 + $0x504] ss:$16 sps:$4 sm:$0xff]   ;;  %v3478_v45 = vld [vmem:[%s4679_s17 + $0x500] ss:$16 sps:$4 sm:$0xff]  }
 0x137   : > { %2456 = vmatpush1.bf16.msra.mxu1 %v3407_v56  ;;  %2416 = vmatprep.subr.bf16.mxu0 %v3408_v57  ;;  %v3483_v44 = vld [vmem:[%s4679_s17 + $0x704] ss:$16 sps:$4 sm:$0xff]   ;;  %v3481_v46 = vld [vmem:[%s4679_s17 + $0x700] ss:$16 sps:$4 sm:$0xff]  }
 0x138   : > { %2457 = vmatprep.subr.bf16.mxu1 %v3410_v58  ;;  %v3486_v47 = vld [vmem:[%s4679_s17 + $0x524] ss:$16 sps:$4 sm:$0xff]   ;;  %v3484_v50 = vld [vmem:[%s4679_s17 + $0x520] ss:$16 sps:$4 sm:$0xff]  }
 0x139   : > { %v3489_v49 = vld [vmem:[%s4679_s17 + $0x724] ss:$16 sps:$4 sm:$0xff]   ;;  %v3487_v51 = vld [vmem:[%s4679_s17 + $0x720] ss:$16 sps:$4 sm:$0xff]  }
 0x13a   : > { %2417 = vmatpush1.bf16.msra.mxu0 %v3412_v59  ;;  %v3492_v53 = vld [vmem:[%s4679_s17 + $0x544] ss:$16 sps:$4 sm:$0xff]   ;;  %v3490_v55 = vld [vmem:[%s4679_s17 + $0x540] ss:$16 sps:$4 sm:$0xff]  }
 0x13b   : > { %2458 = vmatpush1.bf16.msra.mxu1 %v3413_v60  ;;  %2418 = vmatprep.subr.bf16.mxu0 %v3414_v61  ;;  %v3495_v54 = vld [vmem:[%s4679_s17 + $0x744] ss:$16 sps:$4 sm:$0xff]   ;;  %v3493_v56 = vld [vmem:[%s4679_s17 + $0x740] ss:$16 sps:$4 sm:$0xff]  }
 0x13c   : > { %2459 = vmatprep.subr.bf16.mxu1 %v3416_v62  ;;  %v3498_v57 = vld [vmem:[%s4679_s17 + $0x564] ss:$16 sps:$4 sm:$0xff]   ;;  %v3496_v59 = vld [vmem:[%s4679_s17 + $0x560] ss:$16 sps:$4 sm:$0xff]  }
 0x13d   : > { %v3501_v58 = vld [vmem:[%s4679_s17 + $0x764] ss:$16 sps:$4 sm:$0xff]   ;;  %v3499_v60 = vld [vmem:[%s4679_s17 + $0x760] ss:$16 sps:$4 sm:$0xff]  }
 0x13e   : > { %2419 = vmatpush1.bf16.msra.mxu0 %v3418_v63  ;;  %v3504_v61 = vld [vmem:[%s4679_s17 + $0x584] ss:$16 sps:$4 sm:$0xff]   ;;  %v3502_v63 = vld [vmem:[%s4679_s17 + $0x580] ss:$16 sps:$4 sm:$0xff]  }
 0x13f   : > { %2460 = vmatpush1.bf16.msra.mxu1 %v3419_v0  ;;  %2420 = vmatprep.subr.bf16.mxu0 %v3420_v1  ;;  %v3507_v62 = vld [vmem:[%s4679_s17 + $0x784] ss:$16 sps:$4 sm:$0xff]   ;;  %v3505_v0 = vld [vmem:[%s4679_s17 + $0x780] ss:$16 sps:$4 sm:$0xff]  }
 0x140   : > { %2461 = vmatprep.subr.bf16.mxu1 %v3422_v2  ;;  %v3510_v1 = vld [vmem:[%s4679_s17 + $0x5a4] ss:$16 sps:$4 sm:$0xff]  }
 0x141   : > { %v3513_v2 = vld [vmem:[%s4679_s17 + $0x7a4] ss:$16 sps:$4 sm:$0xff]  }
 0x142   : > { %2421 = vmatpush1.bf16.msra.mxu0 %v3424_v3  ;;  %v3508_v3 = vld [vmem:[%s4679_s17 + $0x5a0] ss:$16 sps:$4 sm:$0xff]  }
 0x143   : > { %2462 = vmatpush1.bf16.msra.mxu1 %v3425_v4  ;;  %2472 = vmatprep.subr.bf16.mxu0 %v3432_v5  ;;  %v3511_v4 = vld [vmem:[%s4679_s17 + $0x7a0] ss:$16 sps:$4 sm:$0xff]   ;;  %v3516_v5 = vld [vmem:[%s4679_s17 + $0x5c4] ss:$16 sps:$4 sm:$0xff]  }
 0x144   : > { %2513 = vmatprep.subr.bf16.mxu1 %v3435_v6  ;;  %v3519_v6 = vld [vmem:[%s4679_s17 + $0x7c4] ss:$16 sps:$4 sm:$0xff]  }
 0x145   : > { %2423 = vmatmul.mubr.bf16.vlgmr.msra.gmra.mrb[0].mxu0 %v4766_v7 }
 0x146   : > { %2464 = vmatmul.mubr.bf16.vlgmr.msra.gmra.mrb[0].mxu1 %v4768_v8  ;;  %2473 = vmatpush1.bf16.msra.mxu0 %v3430_v9  ;;  %v3514_v9 = vld [vmem:[%s4679_s17 + $0x5c0] ss:$16 sps:$4 sm:$0xff]  }
 0x147   : > { %2514 = vmatpush1.bf16.msra.mxu1 %v3433_v10  ;;  %2474 = vmatprep.subr.bf16.mxu0 %v3438_v11  ;;  %v3517_v10 = vld [vmem:[%s4679_s17 + $0x7c0] ss:$16 sps:$4 sm:$0xff]   ;;  %v3522_v11 = vld [vmem:[%s4679_s17 + $0x5e4] ss:$16 sps:$4 sm:$0xff]  }
 0x148   : > { %2515 = vmatprep.subr.bf16.mxu1 %v3441_v12  ;;  %2504 = vmatprep.mubr.bf16.mxu0 %v4806_v37  ;;  %v3525_v12 = vld [vmem:[%s4679_s17 + $0x7e4] ss:$16 sps:$4 sm:$0xff]  }
 0x149   : > { %2545 = vmatprep.mubr.bf16.mxu1 %v4810_v38 }
 0x14a   : > { %2475 = vmatpush1.bf16.msra.mxu0 %v3436_v13  ;;  %v3520_v13 = vld [vmem:[%s4679_s17 + $0x5e0] ss:$16 sps:$4 sm:$0xff]  }
 0x14b   : > { %2516 = vmatpush1.bf16.msra.mxu1 %v3439_v14  ;;  %2476 = vmatprep.subr.bf16.mxu0 %v3444_v15  ;;  %v3523_v14 = vld [vmem:[%s4679_s17 + $0x7e0] ss:$16 sps:$4 sm:$0xff]   ;;  %v3532_v15 = vld [vmem:[%s4679_s17 + $0xc] ss:$16 sps:$4 sm:$0xff]  }
 0x14c   : > { %2517 = vmatprep.subr.bf16.mxu1 %v3447_v16  ;;  %v3535_v16 = vld [vmem:[%s4679_s17 + $0x20c] ss:$16 sps:$4 sm:$0xff]  }
 0x14e   : > { %2477 = vmatpush1.bf16.msra.mxu0 %v3442_v17  ;;  %v4854_v17 = vcombine.low %v4797_v33, %v4797_v33  ;;  %v3554_v33 = vld [vmem:[%s4679_s17 + $0x88] ss:$16 sps:$4 sm:$0xff]  }
 0x14f   : > { %2518 = vmatpush1.bf16.msra.mxu1 %v3445_v18  ;;  %2478 = vmatprep.subr.bf16.mxu0 %v3450_v19  ;;  %v4858_v18 = vcombine.low %v4800_v34, %v4800_v34  ;;  %v3530_v19 = vld [vmem:[%s4679_s17 + $0x8] ss:$16 sps:$4 sm:$0xff]  }
 0x150   : > { %2519 = vmatprep.subr.bf16.mxu1 %v3453_v20  ;;  %v3533_v20 = vld [vmem:[%s4679_s17 + $0x208] ss:$16 sps:$4 sm:$0xff]  }
 0x151   : > { %v3557_v34 = vld [vmem:[%s4679_s17 + $0x288] ss:$16 sps:$4 sm:$0xff]  }
 0x152   : > { %2479 = vmatpush1.bf16.msra.mxu0 %v3448_v21  ;;  %v3538_v21 = vld [vmem:[%s4679_s17 + $0x2c] ss:$16 sps:$4 sm:$0xff]  }
 0x153   : > { %2520 = vmatpush1.bf16.msra.mxu1 %v3451_v22  ;;  %2480 = vmatprep.subr.bf16.mxu0 %v3456_v23  ;;  %v3541_v22 = vld [vmem:[%s4679_s17 + $0x22c] ss:$16 sps:$4 sm:$0xff]   ;;  %v3536_v23 = vld [vmem:[%s4679_s17 + $0x28] ss:$16 sps:$4 sm:$0xff]  }
 0x154   : > { %2521 = vmatprep.subr.bf16.mxu1 %v3459_v24  ;;  %v3539_v24 = vld [vmem:[%s4679_s17 + $0x228] ss:$16 sps:$4 sm:$0xff]  }
 0x156   : > { %2481 = vmatpush1.bf16.msra.mxu0 %v3454_v25  ;;  %v3544_v25 = vld [vmem:[%s4679_s17 + $0x4c] ss:$16 sps:$4 sm:$0xff]  }
 0x157   : > { %2522 = vmatpush1.bf16.msra.mxu1 %v3457_v26  ;;  %2482 = vmatprep.subr.bf16.mxu0 %v3462_v27  ;;  %v3547_v26 = vld [vmem:[%s4679_s17 + $0x24c] ss:$16 sps:$4 sm:$0xff]   ;;  %v3542_v27 = vld [vmem:[%s4679_s17 + $0x48] ss:$16 sps:$4 sm:$0xff]  }
 0x158   : > { %2523 = vmatprep.subr.bf16.mxu1 %v3465_v28  ;;  %v3545_v28 = vld [vmem:[%s4679_s17 + $0x248] ss:$16 sps:$4 sm:$0xff]  }
 0x15a   : > { %2483 = vmatpush1.bf16.msra.mxu0 %v3460_v29  ;;  %v3550_v29 = vld [vmem:[%s4679_s17 + $0x6c] ss:$16 sps:$4 sm:$0xff]  }
 0x15b   : > { %2524 = vmatpush1.bf16.msra.mxu1 %v3463_v30  ;;  %2484 = vmatprep.subr.bf16.mxu0 %v3468_v31  ;;  %v3553_v30 = vld [vmem:[%s4679_s17 + $0x26c] ss:$16 sps:$4 sm:$0xff]   ;;  %v3548_v31 = vld [vmem:[%s4679_s17 + $0x68] ss:$16 sps:$4 sm:$0xff]  }
 0x15c   : > { %2525 = vmatprep.subr.bf16.mxu1 %v3471_v32  ;;  %v3551_v32 = vld [vmem:[%s4679_s17 + $0x268] ss:$16 sps:$4 sm:$0xff]  }
 0x15e   : > { %2485 = vmatpush1.bf16.msra.mxu0 %v3466_v35  ;;  %v3562_v35 = vld [vmem:[%s4679_s17 + $0xac] ss:$16 sps:$4 sm:$0xff]  }
 0x15f   : > { %2526 = vmatpush1.bf16.msra.mxu1 %v3469_v36  ;;  %2486 = vmatprep.subr.bf16.mxu0 %v3474_v39  ;;  %v3565_v36 = vld [vmem:[%s4679_s17 + $0x2ac] ss:$16 sps:$4 sm:$0xff]   ;;  %v3560_v39 = vld [vmem:[%s4679_s17 + $0xa8] ss:$16 sps:$4 sm:$0xff]  }
 0x160   : > { %2527 = vmatprep.subr.bf16.mxu1 %v3477_v40  ;;  %v3563_v40 = vld [vmem:[%s4679_s17 + $0x2a8] ss:$16 sps:$4 sm:$0xff]  }
 0x162   : > { %2487 = vmatpush1.bf16.msra.mxu0 %v3472_v41  ;;  %v3568_v41 = vld [vmem:[%s4679_s17 + $0xcc] ss:$16 sps:$4 sm:$0xff]  }
 0x163   : > { %2528 = vmatpush1.bf16.msra.mxu1 %v3475_v42  ;;  %2488 = vmatprep.subr.bf16.mxu0 %v3480_v43  ;;  %v3571_v42 = vld [vmem:[%s4679_s17 + $0x2cc] ss:$16 sps:$4 sm:$0xff]   ;;  %v3566_v43 = vld [vmem:[%s4679_s17 + $0xc8] ss:$16 sps:$4 sm:$0xff]  }
 0x164   : > { %2529 = vmatprep.subr.bf16.mxu1 %v3483_v44  ;;  %v3569_v44 = vld [vmem:[%s4679_s17 + $0x2c8] ss:$16 sps:$4 sm:$0xff]  }
 0x166   : > { %2489 = vmatpush1.bf16.msra.mxu0 %v3478_v45  ;;  %v3574_v45 = vld [vmem:[%s4679_s17 + $0xec] ss:$16 sps:$4 sm:$0xff]  }
 0x167   : > { %2530 = vmatpush1.bf16.msra.mxu1 %v3481_v46  ;;  %2490 = vmatprep.subr.bf16.mxu0 %v3486_v47  ;;  %v3577_v46 = vld [vmem:[%s4679_s17 + $0x2ec] ss:$16 sps:$4 sm:$0xff]   ;;  %v3572_v47 = vld [vmem:[%s4679_s17 + $0xe8] ss:$16 sps:$4 sm:$0xff]  }
 0x168   : > { %2531 = vmatprep.subr.bf16.mxu1 %v3489_v49  ;;  %v3575_v49 = vld [vmem:[%s4679_s17 + $0x2e8] ss:$16 sps:$4 sm:$0xff]  }
 0x16a   : > { %2491 = vmatpush1.bf16.msra.mxu0 %v3484_v50  ;;  %v3580_v50 = vld [vmem:[%s4679_s17 + $0x10c] ss:$16 sps:$4 sm:$0xff]  }
 0x16b   : > { %2532 = vmatpush1.bf16.msra.mxu1 %v3487_v51  ;;  %2492 = vmatprep.subr.bf16.mxu0 %v3492_v53  ;;  %v3583_v51 = vld [vmem:[%s4679_s17 + $0x30c] ss:$16 sps:$4 sm:$0xff]   ;;  %v3578_v53 = vld [vmem:[%s4679_s17 + $0x108] ss:$16 sps:$4 sm:$0xff]  }
 0x16c   : > { %2533 = vmatprep.subr.bf16.mxu1 %v3495_v54  ;;  %v3581_v54 = vld [vmem:[%s4679_s17 + $0x308] ss:$16 sps:$4 sm:$0xff]  }
 0x16e   : > { %2493 = vmatpush1.bf16.msra.mxu0 %v3490_v55  ;;  %v3586_v55 = vld [vmem:[%s4679_s17 + $0x12c] ss:$16 sps:$4 sm:$0xff]  }
 0x16f   : > { %2534 = vmatpush1.bf16.msra.mxu1 %v3493_v56  ;;  %2494 = vmatprep.subr.bf16.mxu0 %v3498_v57  ;;  %v3589_v56 = vld [vmem:[%s4679_s17 + $0x32c] ss:$16 sps:$4 sm:$0xff]   ;;  %v3584_v57 = vld [vmem:[%s4679_s17 + $0x128] ss:$16 sps:$4 sm:$0xff]  }
 0x170   : > { %2535 = vmatprep.subr.bf16.mxu1 %v3501_v58  ;;  %v3587_v58 = vld [vmem:[%s4679_s17 + $0x328] ss:$16 sps:$4 sm:$0xff]  }
 0x172   : > { %2495 = vmatpush1.bf16.msra.mxu0 %v3496_v59  ;;  %v3592_v59 = vld [vmem:[%s4679_s17 + $0x14c] ss:$16 sps:$4 sm:$0xff]  }
 0x173   : > { %2536 = vmatpush1.bf16.msra.mxu1 %v3499_v60  ;;  %2496 = vmatprep.subr.bf16.mxu0 %v3504_v61  ;;  %v3595_v60 = vld [vmem:[%s4679_s17 + $0x34c] ss:$16 sps:$4 sm:$0xff]   ;;  %v3590_v61 = vld [vmem:[%s4679_s17 + $0x148] ss:$16 sps:$4 sm:$0xff]  }
 0x174   : > { %2537 = vmatprep.subr.bf16.mxu1 %v3507_v62  ;;  %v3593_v62 = vld [vmem:[%s4679_s17 + $0x348] ss:$16 sps:$4 sm:$0xff]  }
 0x176   : > { %2497 = vmatpush1.bf16.msra.mxu0 %v3502_v63  ;;  %v3598_v63 = vld [vmem:[%s4679_s17 + $0x16c] ss:$16 sps:$4 sm:$0xff]  }
 0x177   : > { %2538 = vmatpush1.bf16.msra.mxu1 %v3505_v0  ;;  %2498 = vmatprep.subr.bf16.mxu0 %v3510_v1  ;;  %v3601_v0 = vld [vmem:[%s4679_s17 + $0x36c] ss:$16 sps:$4 sm:$0xff]   ;;  %v3596_v1 = vld [vmem:[%s4679_s17 + $0x168] ss:$16 sps:$4 sm:$0xff]  }
 0x178   : > { %2539 = vmatprep.subr.bf16.mxu1 %v3513_v2  ;;  %v3599_v2 = vld [vmem:[%s4679_s17 + $0x368] ss:$16 sps:$4 sm:$0xff]  }
 0x17a   : > { %2499 = vmatpush1.bf16.msra.mxu0 %v3508_v3  ;;  %v3604_v3 = vld [vmem:[%s4679_s17 + $0x18c] ss:$16 sps:$4 sm:$0xff]  }
 0x17b   : > { %2540 = vmatpush1.bf16.msra.mxu1 %v3511_v4  ;;  %2500 = vmatprep.subr.bf16.mxu0 %v3516_v5  ;;  %v3607_v4 = vld [vmem:[%s4679_s17 + $0x38c] ss:$16 sps:$4 sm:$0xff]   ;;  %v3602_v5 = vld [vmem:[%s4679_s17 + $0x188] ss:$16 sps:$4 sm:$0xff]  }
 0x17c   : > { %2541 = vmatprep.subr.bf16.mxu1 %v3519_v6  ;;  %v3605_v6 = vld [vmem:[%s4679_s17 + $0x388] ss:$16 sps:$4 sm:$0xff]  }
 0x17e   : > { %2501 = vmatpush1.bf16.msra.mxu0 %v3514_v9  ;;  %v3610_v9 = vld [vmem:[%s4679_s17 + $0x1ac] ss:$16 sps:$4 sm:$0xff]  }
 0x17f   : > { %2542 = vmatpush1.bf16.msra.mxu1 %v3517_v10  ;;  %2502 = vmatprep.subr.bf16.mxu0 %v3522_v11  ;;  %v3613_v10 = vld [vmem:[%s4679_s17 + $0x3ac] ss:$16 sps:$4 sm:$0xff]   ;;  %v3608_v11 = vld [vmem:[%s4679_s17 + $0x1a8] ss:$16 sps:$4 sm:$0xff]  }
 0x180   : > { %2543 = vmatprep.subr.bf16.mxu1 %v3525_v12  ;;  %v3611_v12 = vld [vmem:[%s4679_s17 + $0x3a8] ss:$16 sps:$4 sm:$0xff]  }
 0x182   : > { %2503 = vmatpush1.bf16.msra.mxu0 %v3520_v13  ;;  %v3616_v13 = vld [vmem:[%s4679_s17 + $0x1cc] ss:$16 sps:$4 sm:$0xff]  }
 0x183   : > { %2544 = vmatpush1.bf16.msra.mxu1 %v3523_v14  ;;  %2554 = vmatprep.subr.bf16.mxu0 %v3532_v15  ;;  %v3619_v14 = vld [vmem:[%s4679_s17 + $0x3cc] ss:$16 sps:$4 sm:$0xff]   ;;  %v3614_v15 = vld [vmem:[%s4679_s17 + $0x1c8] ss:$16 sps:$4 sm:$0xff]  }
 0x184   : > { %2595 = vmatprep.subr.bf16.mxu1 %v3535_v16  ;;  %v3617_v16 = vld [vmem:[%s4679_s17 + $0x3c8] ss:$16 sps:$4 sm:$0xff]  }
 0x185   : > { %2505 = vmatmul.mubr.bf16.vlgmr.msra.gmra.mrb[4].mxu0 %v4854_v17 }
 0x186   : > { %2546 = vmatmul.mubr.bf16.vlgmr.msra.gmra.mrb[4].mxu1 %v4858_v18  ;;  %2555 = vmatpush1.bf16.msra.mxu0 %v3530_v19  ;;  %v3622_v19 = vld [vmem:[%s4679_s17 + $0x1ec] ss:$16 sps:$4 sm:$0xff]  }
 0x187   : > { %2596 = vmatpush1.bf16.msra.mxu1 %v3533_v20  ;;  %2556 = vmatprep.subr.bf16.mxu0 %v3538_v21  ;;  %v3625_v20 = vld [vmem:[%s4679_s17 + $0x3ec] ss:$16 sps:$4 sm:$0xff]   ;;  %v3620_v21 = vld [vmem:[%s4679_s17 + $0x1e8] ss:$16 sps:$4 sm:$0xff]  }
 0x188   : > { %2597 = vmatprep.subr.bf16.mxu1 %v3541_v22  ;;  %2586 = vmatprep.mubr.bf16.mxu0 %v4739_v48  ;;  %v3556_v48 = vld [vmem:[%s4679_s17 + $0x8c] ss:$16 sps:$4 sm:$0xff]   ;;  %v3623_v22 = vld [vmem:[%s4679_s17 + $0x3e8] ss:$16 sps:$4 sm:$0xff]  }
 0x189   : > { %2627 = vmatprep.mubr.bf16.mxu1 %v4744_v52  ;;  %v3559_v52 = vld [vmem:[%s4679_s17 + $0x28c] ss:$16 sps:$4 sm:$0xff]  }
 0x18a   : > { %2557 = vmatpush1.bf16.msra.mxu0 %v3536_v23  ;;  %v3628_v23 = vld [vmem:[%s4679_s17 + $0x40c] ss:$16 sps:$4 sm:$0xff]  }
 0x18b   : > { %2598 = vmatpush1.bf16.msra.mxu1 %v3539_v24  ;;  %2558 = vmatprep.subr.bf16.mxu0 %v3544_v25  ;;  %v3631_v24 = vld [vmem:[%s4679_s17 + $0x60c] ss:$16 sps:$4 sm:$0xff]   ;;  %v3626_v25 = vld [vmem:[%s4679_s17 + $0x408] ss:$16 sps:$4 sm:$0xff]  }
 0x18c   : > { %2599 = vmatprep.subr.bf16.mxu1 %v3547_v26  ;;  %v3629_v26 = vld [vmem:[%s4679_s17 + $0x608] ss:$16 sps:$4 sm:$0xff]  }
 0x18e   : > { %2559 = vmatpush1.bf16.msra.mxu0 %v3542_v27  ;;  %v3634_v27 = vld [vmem:[%s4679_s17 + $0x42c] ss:$16 sps:$4 sm:$0xff]  }
 0x18f   : > { %2600 = vmatpush1.bf16.msra.mxu1 %v3545_v28  ;;  %2560 = vmatprep.subr.bf16.mxu0 %v3550_v29  ;;  %v3637_v28 = vld [vmem:[%s4679_s17 + $0x62c] ss:$16 sps:$4 sm:$0xff]   ;;  %v3632_v29 = vld [vmem:[%s4679_s17 + $0x428] ss:$16 sps:$4 sm:$0xff]  }
 0x190   : > { %2601 = vmatprep.subr.bf16.mxu1 %v3553_v30  ;;  %v3635_v30 = vld [vmem:[%s4679_s17 + $0x628] ss:$16 sps:$4 sm:$0xff]  }
 0x192   : > { %2561 = vmatpush1.bf16.msra.mxu0 %v3548_v31  ;;  %v3640_v31 = vld [vmem:[%s4679_s17 + $0x44c] ss:$16 sps:$4 sm:$0xff]  }
 0x193   : > { %2602 = vmatpush1.bf16.msra.mxu1 %v3551_v32  ;;  %2562 = vmatprep.subr.bf16.mxu0 %v3556_v48  ;;  %v3643_v32 = vld [vmem:[%s4679_s17 + $0x64c] ss:$16 sps:$4 sm:$0xff]  }
 0x194   : > { %2603 = vmatprep.subr.bf16.mxu1 %v3559_v52  ;;  %v3646_v48 = vld [vmem:[%s4679_s17 + $0x46c] ss:$16 sps:$4 sm:$0xff]  }
 0x195   : > { %v3649_v52 = vld [vmem:[%s4679_s17 + $0x66c] ss:$16 sps:$4 sm:$0xff]  }
 0x196   : > { %2563 = vmatpush1.bf16.msra.mxu0 %v3554_v33  ;;  %v3644_v33 = vld [vmem:[%s4679_s17 + $0x468] ss:$16 sps:$4 sm:$0xff]  }
 0x197   : > { %2604 = vmatpush1.bf16.msra.mxu1 %v3557_v34  ;;  %2564 = vmatprep.subr.bf16.mxu0 %v3562_v35  ;;  %v3655_v34 = vld [vmem:[%s4679_s17 + $0x68c] ss:$16 sps:$4 sm:$0xff]   ;;  %v3650_v35 = vld [vmem:[%s4679_s17 + $0x488] ss:$16 sps:$4 sm:$0xff]  }
 0x198   : > { %2605 = vmatprep.subr.bf16.mxu1 %v3565_v36  ;;  %v3653_v36 = vld [vmem:[%s4679_s17 + $0x688] ss:$16 sps:$4 sm:$0xff]  }
 0x19a   : > { %2565 = vmatpush1.bf16.msra.mxu0 %v3560_v39  ;;  %v3658_v39 = vld [vmem:[%s4679_s17 + $0x4ac] ss:$16 sps:$4 sm:$0xff]  }
 0x19b   : > { %2606 = vmatpush1.bf16.msra.mxu1 %v3563_v40  ;;  %2566 = vmatprep.subr.bf16.mxu0 %v3568_v41  ;;  %v3661_v40 = vld [vmem:[%s4679_s17 + $0x6ac] ss:$16 sps:$4 sm:$0xff]   ;;  %v3656_v41 = vld [vmem:[%s4679_s17 + $0x4a8] ss:$16 sps:$4 sm:$0xff]  }
 0x19c   : > { %2607 = vmatprep.subr.bf16.mxu1 %v3571_v42  ;;  %v3659_v42 = vld [vmem:[%s4679_s17 + $0x6a8] ss:$16 sps:$4 sm:$0xff]  }
 0x19e   : > { %2567 = vmatpush1.bf16.msra.mxu0 %v3566_v43  ;;  %v3664_v43 = vld [vmem:[%s4679_s17 + $0x4cc] ss:$16 sps:$4 sm:$0xff]  }
 0x19f   : > { %2608 = vmatpush1.bf16.msra.mxu1 %v3569_v44  ;;  %2568 = vmatprep.subr.bf16.mxu0 %v3574_v45  ;;  %v3667_v44 = vld [vmem:[%s4679_s17 + $0x6cc] ss:$16 sps:$4 sm:$0xff]   ;;  %v3662_v45 = vld [vmem:[%s4679_s17 + $0x4c8] ss:$16 sps:$4 sm:$0xff]  }
 0x1a0   : > { %2609 = vmatprep.subr.bf16.mxu1 %v3577_v46  ;;  %v3665_v46 = vld [vmem:[%s4679_s17 + $0x6c8] ss:$16 sps:$4 sm:$0xff]  }
 0x1a2   : > { %2569 = vmatpush1.bf16.msra.mxu0 %v3572_v47  ;;  %v3670_v47 = vld [vmem:[%s4679_s17 + $0x4ec] ss:$16 sps:$4 sm:$0xff]  }
 0x1a3   : > { %2610 = vmatpush1.bf16.msra.mxu1 %v3575_v49  ;;  %2570 = vmatprep.subr.bf16.mxu0 %v3580_v50  ;;  %v3673_v49 = vld [vmem:[%s4679_s17 + $0x6ec] ss:$16 sps:$4 sm:$0xff]   ;;  %v3668_v50 = vld [vmem:[%s4679_s17 + $0x4e8] ss:$16 sps:$4 sm:$0xff]  }
 0x1a4   : > { %2611 = vmatprep.subr.bf16.mxu1 %v3583_v51  ;;  %v3671_v51 = vld [vmem:[%s4679_s17 + $0x6e8] ss:$16 sps:$4 sm:$0xff]  }
 0x1a6   : > { %2571 = vmatpush1.bf16.msra.mxu0 %v3578_v53  ;;  %v3676_v53 = vld [vmem:[%s4679_s17 + $0x50c] ss:$16 sps:$4 sm:$0xff]  }
 0x1a7   : > { %2612 = vmatpush1.bf16.msra.mxu1 %v3581_v54  ;;  %2572 = vmatprep.subr.bf16.mxu0 %v3586_v55  ;;  %v3679_v54 = vld [vmem:[%s4679_s17 + $0x70c] ss:$16 sps:$4 sm:$0xff]   ;;  %v3674_v55 = vld [vmem:[%s4679_s17 + $0x508] ss:$16 sps:$4 sm:$0xff]  }
 0x1a8   : > { %2613 = vmatprep.subr.bf16.mxu1 %v3589_v56  ;;  %v3677_v56 = vld [vmem:[%s4679_s17 + $0x708] ss:$16 sps:$4 sm:$0xff]  }
 0x1aa   : > { %2573 = vmatpush1.bf16.msra.mxu0 %v3584_v57  ;;  %v3682_v57 = vld [vmem:[%s4679_s17 + $0x52c] ss:$16 sps:$4 sm:$0xff]  }
 0x1ab   : > { %2614 = vmatpush1.bf16.msra.mxu1 %v3587_v58  ;;  %2574 = vmatprep.subr.bf16.mxu0 %v3592_v59  ;;  %v3685_v58 = vld [vmem:[%s4679_s17 + $0x72c] ss:$16 sps:$4 sm:$0xff]   ;;  %v3680_v59 = vld [vmem:[%s4679_s17 + $0x528] ss:$16 sps:$4 sm:$0xff]  }
 0x1ac   : > { %2615 = vmatprep.subr.bf16.mxu1 %v3595_v60  ;;  %v3683_v60 = vld [vmem:[%s4679_s17 + $0x728] ss:$16 sps:$4 sm:$0xff]  }
 0x1ae   : > { %2575 = vmatpush1.bf16.msra.mxu0 %v3590_v61  ;;  %v3688_v61 = vld [vmem:[%s4679_s17 + $0x54c] ss:$16 sps:$4 sm:$0xff]  }
 0x1af   : > { %2616 = vmatpush1.bf16.msra.mxu1 %v3593_v62  ;;  %2576 = vmatprep.subr.bf16.mxu0 %v3598_v63  ;;  %v3691_v62 = vld [vmem:[%s4679_s17 + $0x74c] ss:$16 sps:$4 sm:$0xff]   ;;  %v3686_v63 = vld [vmem:[%s4679_s17 + $0x548] ss:$16 sps:$4 sm:$0xff]  }
 0x1b0   : > { %2617 = vmatprep.subr.bf16.mxu1 %v3601_v0  ;;  %v3689_v0 = vld [vmem:[%s4679_s17 + $0x748] ss:$16 sps:$4 sm:$0xff]  }
 0x1b2   : > { %2577 = vmatpush1.bf16.msra.mxu0 %v3596_v1  ;;  %v3694_v1 = vld [vmem:[%s4679_s17 + $0x56c] ss:$16 sps:$4 sm:$0xff]  }
 0x1b3   : > { %2618 = vmatpush1.bf16.msra.mxu1 %v3599_v2  ;;  %2578 = vmatprep.subr.bf16.mxu0 %v3604_v3  ;;  %v3697_v2 = vld [vmem:[%s4679_s17 + $0x76c] ss:$16 sps:$4 sm:$0xff]   ;;  %v3692_v3 = vld [vmem:[%s4679_s17 + $0x568] ss:$16 sps:$4 sm:$0xff]  }
 0x1b4   : > { %2619 = vmatprep.subr.bf16.mxu1 %v3607_v4  ;;  %v3695_v4 = vld [vmem:[%s4679_s17 + $0x768] ss:$16 sps:$4 sm:$0xff]  }
 0x1b6   : > { %2579 = vmatpush1.bf16.msra.mxu0 %v3602_v5  ;;  %v3700_v5 = vld [vmem:[%s4679_s17 + $0x58c] ss:$16 sps:$4 sm:$0xff]  }
 0x1b7   : > { %2620 = vmatpush1.bf16.msra.mxu1 %v3605_v6  ;;  %2580 = vmatprep.subr.bf16.mxu0 %v3610_v9  ;;  %v3703_v6 = vld [vmem:[%s4679_s17 + $0x78c] ss:$16 sps:$4 sm:$0xff]   ;;  %v3698_v9 = vld [vmem:[%s4679_s17 + $0x588] ss:$16 sps:$4 sm:$0xff]  }
 0x1b8   : > { %2621 = vmatprep.subr.bf16.mxu1 %v3613_v10  ;;  %v3701_v10 = vld [vmem:[%s4679_s17 + $0x788] ss:$16 sps:$4 sm:$0xff]  }
 0x1ba   : > { %2581 = vmatpush1.bf16.msra.mxu0 %v3608_v11  ;;  %v3706_v11 = vld [vmem:[%s4679_s17 + $0x5ac] ss:$16 sps:$4 sm:$0xff]  }
 0x1bb   : > { %2622 = vmatpush1.bf16.msra.mxu1 %v3611_v12  ;;  %2582 = vmatprep.subr.bf16.mxu0 %v3616_v13  ;;  %v3709_v12 = vld [vmem:[%s4679_s17 + $0x7ac] ss:$16 sps:$4 sm:$0xff]   ;;  %v3704_v13 = vld [vmem:[%s4679_s17 + $0x5a8] ss:$16 sps:$4 sm:$0xff]  }
 0x1bc   : > { %2623 = vmatprep.subr.bf16.mxu1 %v3619_v14  ;;  %v3707_v14 = vld [vmem:[%s4679_s17 + $0x7a8] ss:$16 sps:$4 sm:$0xff]  }
 0x1be   : > { %2583 = vmatpush1.bf16.msra.mxu0 %v3614_v15  ;;  %v3712_v15 = vld [vmem:[%s4679_s17 + $0x5cc] ss:$16 sps:$4 sm:$0xff]  }
 0x1bf   : > { %2624 = vmatpush1.bf16.msra.mxu1 %v3617_v16  ;;  %2584 = vmatprep.subr.bf16.mxu0 %v3622_v19  ;;  %v3715_v16 = vld [vmem:[%s4679_s17 + $0x7cc] ss:$16 sps:$4 sm:$0xff]   ;;  %v3710_v19 = vld [vmem:[%s4679_s17 + $0x5c8] ss:$16 sps:$4 sm:$0xff]  }
 0x1c0   : > { %2625 = vmatprep.subr.bf16.mxu1 %v3625_v20  ;;  %v3713_v20 = vld [vmem:[%s4679_s17 + $0x7c8] ss:$16 sps:$4 sm:$0xff]  }
 0x1c2   : > { %2585 = vmatpush1.bf16.msra.mxu0 %v3620_v21  ;;  %v3718_v21 = vld [vmem:[%s4679_s17 + $0x5ec] ss:$16 sps:$4 sm:$0xff]  }
 0x1c3   : > { %2626 = vmatpush1.bf16.msra.mxu1 %v3623_v22  ;;  %2636 = vmatprep.subr.bf16.mxu0 %v3628_v23  ;;  %v3721_v22 = vld [vmem:[%s4679_s17 + $0x7ec] ss:$16 sps:$4 sm:$0xff]   ;;  %v3716_v23 = vld [vmem:[%s4679_s17 + $0x5e8] ss:$16 sps:$4 sm:$0xff]  }
 0x1c4   : > { %2677 = vmatprep.subr.bf16.mxu1 %v3631_v24  ;;  %v3719_v24 = vld [vmem:[%s4679_s17 + $0x7e8] ss:$16 sps:$4 sm:$0xff]  }
 0x1c5   : > { %2587 = vmatmul.mubr.bf16.vlgmr.msra.gmra.mrb[8].mxu0 %v4766_v7  ;;  %v3638_v7 = vld [vmem:[%s4679_s17 + $0x448] ss:$16 sps:$4 sm:$0xff]  }
 0x1c6   : > { %2628 = vmatmul.mubr.bf16.vlgmr.msra.gmra.mrb[8].mxu1 %v4768_v8  ;;  %2637 = vmatpush1.bf16.msra.mxu0 %v3626_v25  ;;  %v3641_v8 = vld [vmem:[%s4679_s17 + $0x648] ss:$16 sps:$4 sm:$0xff]  }
 0x1c7   : > { %2678 = vmatpush1.bf16.msra.mxu1 %v3629_v26  ;;  %2638 = vmatprep.subr.bf16.mxu0 %v3634_v27 }
 0x1c8   : > { %2679 = vmatprep.subr.bf16.mxu1 %v3637_v28  ;;  %2668 = vmatprep.mubr.bf16.mxu0 %v4806_v37  ;;  %v3647_v37 = vld [vmem:[%s4679_s17 + $0x668] ss:$16 sps:$4 sm:$0xff]  }
 0x1c9   : > { %2709 = vmatprep.mubr.bf16.mxu1 %v4810_v38  ;;  %v3652_v38 = vld [vmem:[%s4679_s17 + $0x48c] ss:$16 sps:$4 sm:$0xff]  }
 0x1ca   : > { %2639 = vmatpush1.bf16.msra.mxu0 %v3632_v29 }
 0x1cb   : > { %2680 = vmatpush1.bf16.msra.mxu1 %v3635_v30  ;;  %2640 = vmatprep.subr.bf16.mxu0 %v3640_v31 }
 0x1cc   : > { %2681 = vmatprep.subr.bf16.mxu1 %v3643_v32 }
 0x1ce   : > { %2641 = vmatpush1.bf16.msra.mxu0 %v3638_v7 }
 0x1cf   : > { %2682 = vmatpush1.bf16.msra.mxu1 %v3641_v8  ;;  %2642 = vmatprep.subr.bf16.mxu0 %v3646_v48 }
 0x1d0   : > { %2683 = vmatprep.subr.bf16.mxu1 %v3649_v52 }
 0x1d2   : > { %2643 = vmatpush1.bf16.msra.mxu0 %v3644_v33 }
 0x1d3   : > { %2684 = vmatpush1.bf16.msra.mxu1 %v3647_v37  ;;  %2644 = vmatprep.subr.bf16.mxu0 %v3652_v38 }
 0x1d4   : > { %2685 = vmatprep.subr.bf16.mxu1 %v3655_v34  ;;  %v818_v34 = vld [vmem:[#allocation2] sm:$0xff] }
 0x1d6   : > { %2645 = vmatpush1.bf16.msra.mxu0 %v3650_v35 }
 0x1d7   : > { %2686 = vmatpush1.bf16.msra.mxu1 %v3653_v36  ;;  %2646 = vmatprep.subr.bf16.mxu0 %v3658_v39  ;;  %v819_v39 = vld [vmem:[#allocation2 + $0x8] sm:$0xff] }
 0x1d8   : > { %2687 = vmatprep.subr.bf16.mxu1 %v3661_v40 }
 0x1da   : > { %2647 = vmatpush1.bf16.msra.mxu0 %v3656_v41 }
 0x1db   : > { %2688 = vmatpush1.bf16.msra.mxu1 %v3659_v42  ;;  %2648 = vmatprep.subr.bf16.mxu0 %v3664_v43 }
 0x1dc   : > { %2689 = vmatprep.subr.bf16.mxu1 %v3667_v44 }
 0x1de   : > { %2649 = vmatpush1.bf16.msra.mxu0 %v3662_v45 }
 0x1df   : > { %2690 = vmatpush1.bf16.msra.mxu1 %v3665_v46  ;;  %2650 = vmatprep.subr.bf16.mxu0 %v3670_v47 }
 0x1e0   : > { %2691 = vmatprep.subr.bf16.mxu1 %v3673_v49 }
 0x1e2   : > { %2651 = vmatpush1.bf16.msra.mxu0 %v3668_v50 }
 0x1e3   : > { %2692 = vmatpush1.bf16.msra.mxu1 %v3671_v51  ;;  %2652 = vmatprep.subr.bf16.mxu0 %v3676_v53 }
 0x1e4   : > { %2693 = vmatprep.subr.bf16.mxu1 %v3679_v54 }
 0x1e6   : > { %2653 = vmatpush1.bf16.msra.mxu0 %v3674_v55 }
 0x1e7   : > { %2694 = vmatpush1.bf16.msra.mxu1 %v3677_v56  ;;  %2654 = vmatprep.subr.bf16.mxu0 %v3682_v57 }
 0x1e8   : > { %2695 = vmatprep.subr.bf16.mxu1 %v3685_v58 }
 0x1ea   : > { %2655 = vmatpush1.bf16.msra.mxu0 %v3680_v59 }
 0x1eb   : > { %2696 = vmatpush1.bf16.msra.mxu1 %v3683_v60  ;;  %2656 = vmatprep.subr.bf16.mxu0 %v3688_v61 }
 0x1ec   : > { %2697 = vmatprep.subr.bf16.mxu1 %v3691_v62  ;;  %v820_v62 = vld [vmem:[#allocation2 + $0x10] sm:$0xff] }
 0x1ee   : > { %2657 = vmatpush1.bf16.msra.mxu0 %v3686_v63 }
 0x1ef   : > { %2698 = vmatpush1.bf16.msra.mxu1 %v3689_v0  ;;  %2658 = vmatprep.subr.bf16.mxu0 %v3694_v1 }
 0x1f0   : > { %2699 = vmatprep.subr.bf16.mxu1 %v3697_v2 }
 0x1f2   : > { %2659 = vmatpush1.bf16.msra.mxu0 %v3692_v3  ;;  %v821_v3 = vld [vmem:[#allocation2 + $0x18] sm:$0xff] }
 0x1f3   : > { %2700 = vmatpush1.bf16.msra.mxu1 %v3695_v4  ;;  %2660 = vmatprep.subr.bf16.mxu0 %v3700_v5 }
 0x1f4   : > { %2701 = vmatprep.subr.bf16.mxu1 %v3703_v6 }
 0x1f6   : > { %2661 = vmatpush1.bf16.msra.mxu0 %v3698_v9 }
 0x1f7   : > { %2702 = vmatpush1.bf16.msra.mxu1 %v3701_v10  ;;  %2662 = vmatprep.subr.bf16.mxu0 %v3706_v11  ;;  %v2736_v11 = vlaneseq (!%p3204_p2) }
 0x1f8   : > { %2703 = vmatprep.subr.bf16.mxu1 %v3709_v12 }
 0x1f9   : > { %v2737_v12 = vshrl.u32 (!%p3204_p2), %v2736_v11, 7 }
 0x1fa   : > { %2663 = vmatpush1.bf16.msra.mxu0 %v3704_v13  ;;  %v2734_v13 = vld [vmem:[%s4682_s5] sm:$0xf] (!%p3204_p2) }
 0x1fb   : > { %2704 = vmatpush1.bf16.msra.mxu1 %v3707_v14  ;;  %2664 = vmatprep.subr.bf16.mxu0 %v3712_v15  ;;  %v2738_v15 = vsub.s32 (!%p3204_p2), 0, %v2737_v12 }
 0x1fc   : > { %2705 = vmatprep.subr.bf16.mxu1 %v3715_v16  ;;  %v2742_v16 = vsub.s32 (!%p3204_p2), 1, %v2737_v12 }
 0x1fe   : > { %2665 = vmatpush1.bf16.msra.mxu0 %v3710_v19  ;;  %v2746_v19 = vsub.s32 (!%p3204_p2), 2, %v2737_v12 }
 0x1ff   : > { %2706 = vmatpush1.bf16.msra.mxu1 %v3713_v20  ;;  %2666 = vmatprep.subr.bf16.mxu0 %v3718_v21  ;;  %v2750_v20 = vsub.s32 (!%p3204_p2), 3, %v2737_v12 }
 0x200   : > { %2707 = vmatprep.subr.bf16.mxu1 %v3721_v22 }
 0x202   : > { %2667 = vmatpush1.bf16.msra.mxu0 %v3716_v23 }
 0x203   : > { %2708 = vmatpush1.bf16.msra.mxu1 %v3719_v24  ;;  %v2739_v24 = vrot.slane (!%p3204_p2), %v2734_v13, %v2738_v15 }
 0x205   : > { %2669 = vmatmul.mubr.bf16.vlgmr.msra.gmra.mrb[12].mxu0 %v4854_v17 }
 0x206   : > { %2710 = vmatmul.mubr.bf16.vlgmr.msra.gmra.mrb[12].mxu1 %v4858_v18 }
 0x218   : > { %v2424_v25 = vpop.f32.mrb[0].mxu0 }
 0x219   : > { %v2465_v26 = vpop.f32.mrb[0].mxu1  ;;  %v2426_v28 = vpop.f32.mrb[1].mxu0 }
 0x21a   : > { %v2466_v27 = vadd.f32 %v2465_v26, %v2424_v25  ;;  %v2467_v29 = vpop.f32.mrb[1].mxu1  ;;  %v2428_v31 = vpop.f32.mrb[2].mxu0  ;;  %v2743_v25 = vrot.slane (!%p3204_p2), %v2734_v13, %v2742_v16  ;;  %v2747_v26 = vrot.slane (!%p3204_p2), %v2734_v13, %v2746_v19 }
 0x21b   : > { %v2468_v30 = vadd.f32 %v2467_v29, %v2426_v28  ;;  %v2469_v32 = vpop.f32.mrb[2].mxu1  ;;  %v2429_v7 = vpop.f32.mrb[3].mxu0 }
 0x21c   : > { %v2470_v8 = vpop.f32.mrb[3].mxu1 }
 0x258   : > { %v2506_v48 = vpop.f32.mrb[4].mxu0 }
 0x259   : > { %v2547_v52 = vpop.f32.mrb[4].mxu1  ;;  %v2507_v33 = vadd.f32 %v2506_v48, %v2466_v27  ;;  %v2508_v37 = vpop.f32.mrb[5].mxu0  ;;  %v2751_v27 = vrot.slane (!%p3204_p2), %v2734_v13, %v2750_v20 }
 0x25a   : > { %v2549_v38 = vpop.f32.mrb[5].mxu1  ;;  %v2509_v35 = vadd.f32 %v2508_v37, %v2468_v30  ;;  %v2510_v17 = vpop.f32.mrb[6].mxu0 }
 0x25b   : > { %v2551_v36 = vpop.f32.mrb[6].mxu1  ;;  %v2548_v18 = vadd.f32 %v2547_v52, %v2507_v33  ;;  %v2511_v40 = vpop.f32.mrb[7].mxu0 }
 0x25c   : > { %v2552_v41 = vpop.f32.mrb[7].mxu1  ;;  %v2550_v42 = vadd.f32 %v2549_v38, %v2509_v35 }
 0x25d   : > { %v2718_v43 = vadd.f32 %v2548_v18, %v818_v34 }
 0x25e   : > { %v2719_v44 = vadd.f32 %v2550_v42, %v819_v39 }
 0x25f   : > { %2722 = vst [vmem:[#allocation2] sm:$0xff] %v2718_v43 }
 0x260   : > { %2723 = vst [vmem:[#allocation2 + $0x8] sm:$0xff] %v2719_v44 }
 0x266   : > { %v2730_v14 = vld [vmem:[#allocation2] sm:$0xff] (!%p3204_p2) }
 0x267   : > { %v2731_v21 = vld [vmem:[#allocation2 + $0x8] sm:$0xff] (!%p3204_p2)  ;;  %v2756_v28 = vadd.f32 (!%p3204_p2), %v2739_v24, %v2730_v14 }
 0x268   : > { %v2757_v29 = vadd.f32 (!%p3204_p2), %v2743_v25, %v2731_v21 }
 0x269   : > { %v2760_v32 = vmax.f32 (!%p3204_p2), %v2756_v28, 0.0 }
 0x26a   : > { %v2761_v7 = vmax.f32 (!%p3204_p2), %v2757_v29, 0.0 }
 0x26b   : > { %2764 = vst [vmem:[%s4689_s26] sm:$0xff] (!%p3204_p2), %v2760_v32 }
 0x26c   : > { %2765 = vst [vmem:[%s4689_s26 + $0x8] sm:$0xff] (!%p3204_p2), %v2761_v7 }
 0x298   : > { %v2588_v45 = vpop.f32.mrb[8].mxu0 }
 0x299   : > { %v2629_v46 = vpop.f32.mrb[8].mxu1  ;;  %v2590_v49 = vpop.f32.mrb[9].mxu0 }
 0x29a   : > { %v2630_v47 = vadd.f32 %v2629_v46, %v2588_v45  ;;  %v2631_v50 = vpop.f32.mrb[9].mxu1  ;;  %v2592_v53 = vpop.f32.mrb[10].mxu0 }
 0x29b   : > { %v2632_v51 = vadd.f32 %v2631_v50, %v2590_v49  ;;  %v2633_v54 = vpop.f32.mrb[10].mxu1  ;;  %v2593_v55 = vpop.f32.mrb[11].mxu0 }
 0x29c   : > { %v2634_v56 = vpop.f32.mrb[11].mxu1 }
 0x2d8   : > { %v2670_v57 = vpop.f32.mrb[12].mxu0 }
 0x2d9   : > { %v2711_v58 = vpop.f32.mrb[12].mxu1  ;;  %v2671_v59 = vadd.f32 %v2670_v57, %v2630_v47  ;;  %v2672_v60 = vpop.f32.mrb[13].mxu0 }
 0x2da   : > { %v2713_v61 = vpop.f32.mrb[13].mxu1  ;;  %v2673_v63 = vadd.f32 %v2672_v60, %v2632_v51  ;;  %v2674_v0 = vpop.f32.mrb[14].mxu0  ;;  %2729 = sbr.rel (%p3204_p2) target bundleno = 749 (0x2ed), region = 71 }
 0x2db   : > { %v2715_v1 = vpop.f32.mrb[14].mxu1  ;;  %v2712_v2 = vadd.f32 %v2711_v58, %v2671_v59  ;;  %v2675_v4 = vpop.f32.mrb[15].mxu0 }
 0x2dc   : > { %v2716_v5 = vpop.f32.mrb[15].mxu1  ;;  %v2714_v6 = vadd.f32 %v2713_v61, %v2673_v63 }
 0x2dd   : > { %v2720_v9 = vadd.f32 %v2712_v2, %v820_v62 }
 0x2de   : > { %v2721_v10 = vadd.f32 %v2714_v6, %v821_v3 }
 0x2df   : > { %2724 = vst [vmem:[#allocation2 + $0x10] sm:$0xff] %v2720_v9 }
 0x2e0   : > { %2725 = vst [vmem:[#allocation2 + $0x18] sm:$0xff] %v2721_v10 }
 0x2e6   : > { %v2732_v22 = vld [vmem:[#allocation2 + $0x10] sm:$0xff] }
 0x2e7   : > { %v2733_v23 = vld [vmem:[#allocation2 + $0x18] sm:$0xff]  ;;  %v2758_v30 = vadd.f32 %v2747_v26, %v2732_v22 }
 0x2e8   : > { %v2759_v31 = vadd.f32 %v2751_v27, %v2733_v23 }
 0x2e9   : > { %v2762_v8 = vmax.f32 %v2758_v30, 0.0 }
 0x2ea   : > { %v2763_v48 = vmax.f32 %v2759_v31, 0.0 }
 0x2eb   : > { %2766 = vst [vmem:[%s4689_s26 + $0x10] sm:$0xff] %v2762_v8 }
 0x2ec   : > { %2767 = vst [vmem:[%s4689_s26 + $0x18] sm:$0xff] %v2763_v48 }
 0x2ed PF: > { %s5117_s15 = sld [smem:[#allocation20_spill]]  ;;  %s3213_s20 = sshll.u32 %s3908_s21, 9 }
 0x2ee   : > { %s5118_s6 = sld [smem:[#allocation22_spill]]  ;;  %s2785_s11 = sshll.u32 %s4689_s26, 4  ;;  %s2786_s11 = int_to_ptr.vmem [resolvable:$true] %s2785_s11 }
 0x2ef   : > { %s2769_s3 = scalar_lea.sflag [#allocation5], %s4676_s12  ;;  %s3778_s19 = scalar_lea.vmem %s2786_s11, 512 }
 0x2f0   : > { %p3779_p7 = scmp.ne.s32.totalorder %s2786_s11, %s3778_s19  ;;  %s3925_s27 = smov [#allocation9]  }
 0x2f1   : > { %s3782_s28 = sshll.u32 %s3925_s27, 4  ;;  %s3783_s28 = int_to_ptr.vmem [resolvable:$false] %s3782_s28 }
 0x2f2   : > { %s3784_s25 = scalar_lea.vmem %s3783_s28, 1024  ;;  %p3785_p3 = scmp.lt.s32.totalorder %s2786_s11, %s3783_s28 }
 0x2f3   : > { %p5119_p11 = scmp.ne.s32.totalorder %s5117_s15, 0  ;;  %p3786_p12 = scmp.lt.s32.totalorder %s3784_s25, %s3778_s19 }
 0x2f4   : > { %s5006_s29 = scalar_lea.hbm %s5118_s6, %s3213_s20 }
 0x2f5   : > { %p3780_p1 = pnand %p3779_p7, %p5119_p11  ;;  %p3787_p6 = por %p3786_p12, %p3785_p3 }
 0x2f7   : > { %p3781_p9 = pneg %p3780_p1 }
 0x2f9   : > { %p3788_p0 = pnand %p3787_p6, %p3781_p9 }
 0x2fb   : > { %3791 = shalt.err (!%p3788_p0)
}
 0x2fc   : > { %s3792_s21 = scalar_lea.hbm %s5006_s29, 512  ;;  %s3796_s8 = scalar_lea.hbm %s5118_s6, 4096 }
 0x2fd   : > { %p3793_p10 = scmp.ne.s32.totalorder %s5006_s29, %s3792_s21  ;;  %p3797_p8 = scmp.lt.u32.totalorder %s5006_s29, %s5118_s6 }
 0x2fe   : > { %p3798_p5 = scmp.lt.u32.totalorder %s3796_s8, %s3792_s21  ;;  %p3800_p7 = scmp.lt.u32.totalorder %s3792_s21, %s5006_s29 }
 0x2ff   : > { %p3794_p13 = pnand %p3793_p10, %p5119_p11 }
 0x300   : > { %p3799_p2 = por %p3798_p5, %p3797_p8 }
 0x301   : > { %p3795_p4 = pneg %p3794_p13 }
 0x302   : > { %p3801_p1 = por %p3800_p7, %p3799_p2 }
 0x304   : > { %p3802_p9 = pnand %p3801_p1, %p3795_p4 }
 0x306   : > { %3805 = shalt.err (!%p3802_p9)
}
 0x307   : > { %3218 = dma.vmem_to_hbm [thread:$0]  (%p5119_p11), %s2786_s11, 512, %s5006_s29, %s2769_s3  }
 0x308 PF: > { %s5120_s5 = sld [smem:[#allocation13_spill]]  ;;  %s5121_s7 = sld [smem:[#allocation21_spill]] }
 0x309   : > { %p3224_p3 = scmp.ge.s32.totalorder %s3920_s24, 2 }
 0x30e   : > { %s2797_s26 = sand.u32 1, %s5120_s5   ;;  %p5122_p12 = scmp.ne.s32.totalorder %s5121_s7, 0 }
 0x30f   : > { %s2798_s20 = scalar_lea.sflag [#allocation5], %s2797_s26 }
 0x310   : > { %p3221_p6 = pnand %p3224_p3, %p5122_p12 }
 0x312   : > { %3867 = dma.done.wait (!%p3221_p6), %s2798_s20, 512  }
 0x313   : > { %3869 = vsyncadd (!%p3221_p6), %s2798_s20, 4294966784  ;;  %s22_s24 = sadd.s32 1, %s3920_s24   ;;  %s5124_s15 = sld [smem:[#allocation19_spill]] }
 0x314   : > { %p5032_p0 = scmp.ge.s32.totalorder %s22_s24, 34   ;;  %s5125_s4 = sld [smem:[#allocation18_spill]] }
 0x315   : > { %s5126_s29 = sld [smem:[#allocation14_spill]]  ;;  %s5127_s19 = sld [smem:[#allocation17_spill]] }
 0x316   : > { %s5128_s11 = sld [smem:[#allocation15_spill]]  ;;  %s5129_s3 = sld [smem:[#allocation16_spill]] }
 0x317   : > { %s5130_s12 = smov %s3876_s13  ;;  %s5131_s13 = smov %s3880_s14 }
 0x318   : > { %s5135_s17 = smov %s3896_s18  ;;  %s5137_s20 = smov %s3912_s22 }
 0x319   : > { %s5132_s14 = smov %s5124_s15  ;;  %s5133_s15 = smov %s3888_s16 }
 0x31a   : > { %s5134_s16 = smov %s5125_s4  ;;  %s5138_s21 = smov %s3916_s23 }
 0x31b   : > { %s5136_s18 = smov %s5126_s29  ;;  %21 = sbr.rel (!%p5032_p0) target bundleno = 14 (0xe), region = 129 }
 0x31c   : > { %s5139_s22 = smov %s5128_s11  ;;  %s5140_s23 = smov %s5129_s3 }
 0x322   :  { %2803 = vsyncpa [#allocation4], 1 }
 0x323   :  { %2805 = vsyncpa [#allocation4 + $0x1], 1 }
 0x324   :  { %2806 = vsyncpa [#allocation8], 1 }
 0x325   :  { %2808 = vsyncpa [#allocation8 + $0x1], 1 }
 0x326   :  { %2809 = vsyncpa [#allocation5], 1 }
 0x327   :  { %2811 = vsyncpa [#allocation5 + $0x1], 1 }

// kernel: alexnet_forward.15
= control target key start
LH: loop header
LB: loop body
LE: loop exit
PB: predicated region body
PF: predicated region fallthrough
CT: control target
= control target key end

     0   :  { %8 = vsyncpa [#allocation4], 0  ;;  %s1823_s0 = inlined_call_operand.vmem [shape: bf16[8,4096], index: 0, kind: input, shape index: {}]   ;;  %s1824_s1 = inlined_call_operand.hbm [shape: bf16[4096,128], index: 1, kind: input, shape index: {}]   ;;  %s1825_s2 = inlined_call_operand.hbm [shape: f32[1,128], index: 2, kind: input, shape index: {}]   ;;  %s1826_s3 = inlined_call_operand.vmem [shape: f32[8,128], index: 3, kind: output, shape index: {}]  }
   0x1   :  { %10 = vsyncpa [#allocation4 + $0x1], 0 }
   0x2   :  { %11 = vsyncpa [#allocation6], 0  ;;  %s1577_s12 = smov 0   ;;  %s1579_s13 = smov 0  }
   0x3   :  { %s1581_s14 = smov 0   ;;  %s1583_s15 = smov 0  }
   0x4   :  { %s1585_s16 = smov 0   ;;  %s1587_s17 = smov 0  }
   0x5 LB: > { %s1118_s18 = sadd.s32 4294967295, %s1550_s17   ;;  %s73_s19 = sadd.s32 1, %s1538_s14  ;;  %s1550_s17 = sphi %s1587_s17, %s17_s17   ;;  %s1546_s16 = sphi %s1585_s16, %s1847_s16   ;;  %s1542_s15 = sphi %s1583_s15, %s1846_s15   ;;  %s1538_s14 = sphi %s1581_s14, %s1845_s14   ;;  %s1534_s13 = sphi %s1579_s13, %s1844_s13   ;;  %s1530_s12 = sphi %s1577_s12, %s1843_s12  }
   0x6   : > { %p80_p0 = scmp.ne.s32.totalorder %s1538_s14, %s1534_s13  ;;  %p81_p1 = scmp.eq.s32.totalorder %s1550_s17, 0 }
   0x7   : > { %p86_p2 = scmp.ne.s32.totalorder %s1534_s13, %s1530_s12  ;;  %p1611_p3 = scmp.eq.s32.totalorder %s1118_s18, 0 }
   0x8   : > { %p82_p4 = por %p81_p1, %p80_p0  ;;  %p1119_p5 = scmp.ge.s32.totalorder %s1550_s17, 1 }
   0x9   : > { %s1832_s20 = scalar_select %p1611_p3, 1, 0 }
   0xa   : > { %p1618_p6 = por %p1611_p3, %p86_p2  ;;  %p151_p7 = scmp.lt.s32.totalorder %s1550_s17, 5 }
   0xb   : > { %s1552_s23 = smov [#allocation5]   ;;  %p1312_p10 = scmp.lt.s32.totalorder %s1550_s17, 4 }
   0xc   : > { %s1833_s21 = scalar_select %p1618_p6, 1, 0 }
   0xd   : > { %p1623_p8 = pnand %p1119_p5, %p151_p7  ;;  %s166_s24 = sshll.u32 %s1552_s23, 4  ;;  %s167_s24 = int_to_ptr.vmem [resolvable:$true] %s166_s24 }
   0xe   : > { %s190_s25 = sand.u32 1, %s1538_s14   ;;  %p1637_p12 = pnand %p1312_p10, %p82_p4 }
   0xf   : > { %s1834_s22 = scalar_select %p1623_p8, 1, 0 }
  0x10   : > { %p1303_p9 = pneg %p1623_p8  ;;  %s1438_s30 = scalar_lea.hbm %s1825_s2, 16 }
  0x11   : > { %s1836_s27 = scalar_select %p1637_p12, 1, 0 }
  0x12   : > { %p1633_p11 = pnand %p1303_p9, %p1611_p3  ;;  %p1439_p13 = scmp.ne.s32.totalorder %s1825_s2, %s1438_s30 }
  0x13   : > { %p1445_p5 = scmp.lt.u32.totalorder %s1438_s30, %s1825_s2 }
  0x14   : > { %p1440_p0 = pneg %p1633_p11 }
  0x16   : > { %p1441_p1 = pnand %p1440_p0, %p1439_p13 }
  0x18   : > { %p1442_p2 = pneg %p1441_p1 }
  0x1a   : > { %p1447_p4 = pnand %p1445_p5, %p1442_p2 }
  0x1c   : > { %1450 = shalt.err (!%p1447_p4)
}
  0x1d   : > { %s1451_s8 = scalar_lea.vmem %s167_s24, 16  ;;  %s1458_s9 = scalar_lea.vmem %s167_s24, 32 }
  0x1e   : > { %p1452_p7 = scmp.ne.s32.totalorder %s167_s24, %s1451_s8  ;;  %p1459_p3 = scmp.lt.s32.totalorder %s167_s24, %s167_s24 }
  0x1f   : > { %p1460_p6 = scmp.lt.s32.totalorder %s1458_s9, %s1451_s8 }
  0x20   : > { %p1454_p9 = pnand %p1452_p7, %p1440_p0 }
  0x21   : > { %p1461_p8 = por %p1460_p6, %p1459_p3 }
  0x22   : > { %p1455_p10 = pneg %p1454_p9 }
  0x24   : > { %p1462_p12 = pnand %p1461_p8, %p1455_p10 }
  0x26   : > { %1465 = shalt.err (!%p1462_p12)
}
  0x27   : > { %1306 = dma.hbm_to_vmem [thread:$0]  (!%p1633_p11), %s1825_s2, 16, %s167_s24, [#allocation6]  }
  0x28   : > { %s29_s12 = sadd.s32 1, %s1546_s16  ;;  %s1122_s18 = sshll.u32 %s190_s25, 9 }
  0x29   : > { %p30_p13 = scmp.ge.s32.totalorder %s29_s12, 4  ;;  %s1208_s23 = sshll.u32 %s1546_s16, 13 }
  0x2a   : > { %s194_s28 = scalar_lea.vmem [#allocation3], %s1122_s18  ;;  %s1666_s4 = scalar_lea.hbm %s1824_s1, %s1208_s23 }
  0x2b   : > { %s202_s29 = sshll.u32 %s194_s28, 4  ;;  %s1849_s12 = smov (%p30_p13, %s29_s12), 0  ;;  %s1668_s29 = int_to_ptr.vmem [resolvable:$true] %s202_s29 }
  0x2c   : > { %s68_s24 = ssub.s32 %s1546_s16, %s1849_s12  ;;  %s1678_s6 = scalar_lea.sflag [#allocation4], %s190_s25 }
  0x2d   : > { %p1672_p3 = scmp.eq.s32.totalorder %s68_s24, 0  ;;  %s1466_s7 = scalar_lea.hbm %s1666_s4, 8192 }
  0x2e   : > { %p1467_p6 = scmp.ne.s32.totalorder %s1666_s4, %s1466_s7  ;;  %p1838_p8 = scmp.ne.s32.totalorder %s1836_s27, 0 }
  0x2f   : > { %s1471_s10 = scalar_lea.hbm %s1824_s1, 32768  ;;  %p1472_p1 = scmp.lt.u32.totalorder %s1666_s4, %s1824_s1 }
  0x30   : > { %p1468_p11 = pneg %p1838_p8  ;;  %p1473_p2 = scmp.lt.u32.totalorder %s1471_s10, %s1466_s7 }
  0x31   : > { %p1475_p4 = scmp.lt.u32.totalorder %s1466_s7, %s1666_s4 }
  0x32   : > { %p1469_p12 = pnand %p1468_p11, %p1467_p6  ;;  %p1474_p5 = por %p1473_p2, %p1472_p1 }
  0x34   : > { %p1470_p0 = pneg %p1469_p12  ;;  %p1476_p7 = por %p1475_p4, %p1474_p5 }
  0x36   : > { %p1477_p9 = pnand %p1476_p7, %p1470_p0 }
  0x38   : > { %1480 = shalt.err (!%p1477_p9)
}
  0x39   : > { %s1481_s25 = scalar_lea.vmem %s1668_s29, 8192  ;;  %s1553_s23 = smov [#allocation3]  }
  0x3a   : > { %p1482_p10 = scmp.ne.s32.totalorder %s1668_s29, %s1481_s25  ;;  %s1486_s28 = sshll.u32 %s1553_s23, 4  ;;  %s1487_s28 = int_to_ptr.vmem [resolvable:$false] %s1486_s28 }
  0x3b   : > { %s1488_s26 = scalar_lea.vmem %s1487_s28, 16384  ;;  %p1489_p12 = scmp.lt.s32.totalorder %s1668_s29, %s1487_s28 }
  0x3c   : > { %p1484_p13 = pnand %p1482_p10, %p1468_p11  ;;  %p1490_p1 = scmp.lt.s32.totalorder %s1488_s26, %s1481_s25 }
  0x3e   : > { %p1485_p6 = pneg %p1484_p13  ;;  %p1491_p2 = por %p1490_p1, %p1489_p12 }
  0x40   : > { %p1492_p5 = pnand %p1491_p2, %p1485_p6 }
  0x42   : > { %1495 = shalt.err (!%p1492_p5)
}
  0x43   : > { %s1554_s30 = smov 64   ;;  %s1555_s24 = smov 4  }
  0x44   : > { %1310 = dma.hbm_to_vmem [thread:$0]  (!%p1838_p8), %s1666_s4, 8192, %s1668_s29, %s1678_s6, %s1554_s30, %s1554_s30, %s1555_s24  }
  0x45   : > { %s1711_s7 = scalar_select %p1672_p3, %s1538_s14, %s73_s19  }
  0x46   : > { %p1839_p11 = scmp.ne.s32.totalorder %s1834_s22, 0 }
  0x47   : > { %s216_s8 = sand.u32 (!%p1839_p11), 1, %s1534_s13   ;;  %p1840_p0 = scmp.ne.s32.totalorder (!%p1839_p11), %s1833_s21, 0 }
  0x48   : > { %214 = sbr.rel (%p1839_p11) target bundleno = 390 (0x186), region = 32  ;;  %s1126_s9 = sshll.u32 (!%p1839_p11), %s216_s8, 9 }
  0x49   : > { %s217_s10 = scalar_lea.sflag (!%p1839_p11), [#allocation4], %s216_s8  ;;  %s1716_s11 = scalar_lea.vmem (!%p1839_p11), [#allocation3], %s1126_s9 }
  0x4f   : > { %1521 = dma.done.wait (%p1840_p0), %s217_s10, 8192  }
  0x50   : > { %1523 = vsyncadd (%p1840_p0), %s217_s10, 4294959104  ;;  %p1841_p8 = scmp.ne.s32.totalorder %s1832_s20, 0 }
  0x52   : > { %1525 = dma.done.wait (%p1841_p8), [#allocation6], 16  }
  0x53   : > { %1527 = vsyncadd (%p1841_p8), [#allocation6], 4294967280  ;;  %s1128_s19 = sshll.u32 %s1542_s15, 3  ;;  %p1130_p4 = scmp.ne.s32.totalorder %s1542_s15, 0 }
  0x54   : > { %p261_p3 = scmp.lt.s32.totalorder %s1128_s19, 31  ;;  %v1556_v0 = vmov (!%p1130_p4), 0.0  }
  0x55   : > { %280 = sbr.rel (%p1130_p4) target bundleno = 92 (0x5c), region = 44  ;;  %281 = vst [vmem:[#allocation2] sm:$0xff] (!%p1130_p4), %v1556_v0 }
  0x56   : > { %s1851_s19 = smov (!%p261_p3, %s1128_s19), 31 }
  0x57   : > { %s1129_s22 = sshll.u32 %s1851_s19, 2 }
  0x58   : > { %s1730_s4 = scalar_lea.vmem %s1823_s0, %s1129_s22 }
  0x5c PF: > { %v1366_v1 = vld [vmem:[%s1716_s11 + $0x40] sm:$0xff]   ;;  %v1370_v5 = vld [vmem:[%s1716_s11 + $0x48] sm:$0xff]   ;;  %v1374_v9 = vld [vmem:[%s1716_s11 + $0x50] sm:$0xff]   ;;  %p1203_p7 = scmp.ne.s32.totalorder %s1542_s15, 3 }
  0x5d   : > { %v1367_v2 = vld [vmem:[%s1716_s11 + $0xc0] sm:$0xff]   ;;  %1209 = vmatprep.subr.bf16.mxu0 %v1366_v1  ;;  %v1371_v6 = vld [vmem:[%s1716_s11 + $0xc8] sm:$0xff]   ;;  %v1375_v10 = vld [vmem:[%s1716_s11 + $0xd0] sm:$0xff]  }
  0x5e   : > { %v1368_v3 = vld [vmem:[%s1716_s11] sm:$0xff]   ;;  %1231 = vmatprep.subr.bf16.mxu1 %v1367_v2  ;;  %v1372_v7 = vld [vmem:[%s1716_s11 + $0x8] sm:$0xff]   ;;  %v1376_v11 = vld [vmem:[%s1716_s11 + $0x10] sm:$0xff]  }
  0x5f   : > { %v1369_v4 = vld [vmem:[%s1716_s11 + $0x80] sm:$0xff]   ;;  %1210 = vmatpush3.bf16.msra.mxu0 %v1368_v3  ;;  %v1373_v8 = vld [vmem:[%s1716_s11 + $0x88] sm:$0xff]   ;;  %v1377_v12 = vld [vmem:[%s1716_s11 + $0x90] sm:$0xff]  }
  0x60   : > { %1232 = vmatpush3.bf16.msra.mxu1 %v1369_v4  ;;  %1211 = vmatprep.subr.bf16.mxu0 %v1370_v5  ;;  %v1378_v13 = vld [vmem:[%s1716_s11 + $0x58] sm:$0xff]   ;;  %v1382_v17 = vld [vmem:[%s1716_s11 + $0x60] sm:$0xff]   ;;  %v1386_v21 = vld [vmem:[%s1716_s11 + $0x68] sm:$0xff]  }
  0x61   : > { %1233 = vmatprep.subr.bf16.mxu1 %v1371_v6  ;;  %v1379_v14 = vld [vmem:[%s1716_s11 + $0xd8] sm:$0xff]   ;;  %v1383_v18 = vld [vmem:[%s1716_s11 + $0xe0] sm:$0xff]   ;;  %v1387_v22 = vld [vmem:[%s1716_s11 + $0xe8] sm:$0xff]  }
  0x62   : > { %v1380_v15 = vld [vmem:[%s1716_s11 + $0x18] sm:$0xff]   ;;  %v1384_v19 = vld [vmem:[%s1716_s11 + $0x20] sm:$0xff]   ;;  %v1388_v23 = vld [vmem:[%s1716_s11 + $0x28] sm:$0xff]  }
  0x63   : > { %1212 = vmatpush3.bf16.msra.mxu0 %v1372_v7  ;;  %v1381_v16 = vld [vmem:[%s1716_s11 + $0x98] sm:$0xff]   ;;  %v1385_v20 = vld [vmem:[%s1716_s11 + $0xa0] sm:$0xff]   ;;  %v1389_v24 = vld [vmem:[%s1716_s11 + $0xa8] sm:$0xff]  }
  0x64   : > { %1234 = vmatpush3.bf16.msra.mxu1 %v1373_v8  ;;  %1213 = vmatprep.subr.bf16.mxu0 %v1374_v9  ;;  %v1390_v25 = vld [vmem:[%s1716_s11 + $0x70] sm:$0xff]   ;;  %v1394_v29 = vld [vmem:[%s1716_s11 + $0x78] sm:$0xff]   ;;  %v284_v34 = vld [vmem:[%s1730_s4 + $0x8] sm:$0xff] }
  0x65   : > { %1235 = vmatprep.subr.bf16.mxu1 %v1375_v10  ;;  %v1391_v26 = vld [vmem:[%s1716_s11 + $0xf0] sm:$0xff]   ;;  %v1395_v30 = vld [vmem:[%s1716_s11 + $0xf8] sm:$0xff]   ;;  %v1133_v37 = vcombine.low %v284_v34, %v284_v34  ;;  %v1134_v38 = vcombine.high %v284_v34, %v284_v34  ;;  %v1402_v39 = vld [vmem:[%s1716_s11 + $0x140] sm:$0xff]  }
  0x66   : > { %v1392_v27 = vld [vmem:[%s1716_s11 + $0x30] sm:$0xff]   ;;  %v1396_v31 = vld [vmem:[%s1716_s11 + $0x38] sm:$0xff]   ;;  %v1403_v40 = vld [vmem:[%s1716_s11 + $0x1c0] sm:$0xff]  }
  0x67   : > { %1214 = vmatpush3.bf16.msra.mxu0 %v1376_v11  ;;  %v1393_v28 = vld [vmem:[%s1716_s11 + $0xb0] sm:$0xff]   ;;  %v1397_v32 = vld [vmem:[%s1716_s11 + $0xb8] sm:$0xff]   ;;  %899 = vmatprep.mubr.bf16.mxu1 %v1134_v38  ;;  %v1404_v41 = vld [vmem:[%s1716_s11 + $0x100] sm:$0xff]  }
  0x68   : > { %1236 = vmatpush3.bf16.msra.mxu1 %v1377_v12  ;;  %1215 = vmatprep.subr.bf16.mxu0 %v1378_v13  ;;  %v283_v33 = vld [vmem:[%s1730_s4] sm:$0xff]  ;;  %v1405_v42 = vld [vmem:[%s1716_s11 + $0x180] sm:$0xff]   ;;  %v1406_v43 = vld [vmem:[%s1716_s11 + $0x148] sm:$0xff]  }
  0x69   : > { %1237 = vmatprep.subr.bf16.mxu1 %v1379_v14  ;;  %v1131_v35 = vcombine.low %v283_v33, %v283_v33  ;;  %v1132_v36 = vcombine.high %v283_v33, %v283_v33  ;;  %v1407_v44 = vld [vmem:[%s1716_s11 + $0x1c8] sm:$0xff]   ;;  %v1410_v47 = vld [vmem:[%s1716_s11 + $0x150] sm:$0xff]   ;;  %v1414_v51 = vld [vmem:[%s1716_s11 + $0x158] sm:$0xff]  }
  0x6a   : > { %v1408_v45 = vld [vmem:[%s1716_s11 + $0x108] sm:$0xff]   ;;  %v1411_v48 = vld [vmem:[%s1716_s11 + $0x1d0] sm:$0xff]   ;;  %v1415_v52 = vld [vmem:[%s1716_s11 + $0x1d8] sm:$0xff]  }
  0x6b   : > { %1216 = vmatpush3.bf16.msra.mxu0 %v1380_v15  ;;  %859 = vmatprep.mubr.bf16.mxu0 %v1132_v36  ;;  %v1409_v46 = vld [vmem:[%s1716_s11 + $0x188] sm:$0xff]   ;;  %v1412_v49 = vld [vmem:[%s1716_s11 + $0x110] sm:$0xff]   ;;  %v1416_v53 = vld [vmem:[%s1716_s11 + $0x118] sm:$0xff]  }
  0x6c   : > { %1238 = vmatpush3.bf16.msra.mxu1 %v1381_v16  ;;  %1217 = vmatprep.subr.bf16.mxu0 %v1382_v17  ;;  %v1413_v50 = vld [vmem:[%s1716_s11 + $0x190] sm:$0xff]   ;;  %v1417_v54 = vld [vmem:[%s1716_s11 + $0x198] sm:$0xff]   ;;  %v1418_v55 = vld [vmem:[%s1716_s11 + $0x160] sm:$0xff]  }
  0x6d   : > { %1239 = vmatprep.subr.bf16.mxu1 %v1383_v18  ;;  %v1419_v56 = vld [vmem:[%s1716_s11 + $0x1e0] sm:$0xff]   ;;  %v1422_v59 = vld [vmem:[%s1716_s11 + $0x168] sm:$0xff]   ;;  %v1426_v63 = vld [vmem:[%s1716_s11 + $0x170] sm:$0xff]  }
  0x6e   : > { %v1420_v57 = vld [vmem:[%s1716_s11 + $0x120] sm:$0xff]   ;;  %v1423_v60 = vld [vmem:[%s1716_s11 + $0x1e8] sm:$0xff]   ;;  %v1427_v0 = vld [vmem:[%s1716_s11 + $0x1f0] sm:$0xff]  }
  0x6f   : > { %1218 = vmatpush3.bf16.msra.mxu0 %v1384_v19  ;;  %v1421_v58 = vld [vmem:[%s1716_s11 + $0x1a0] sm:$0xff]   ;;  %v1424_v61 = vld [vmem:[%s1716_s11 + $0x128] sm:$0xff]   ;;  %v1428_v1 = vld [vmem:[%s1716_s11 + $0x130] sm:$0xff]  }
  0x70   : > { %1240 = vmatpush3.bf16.msra.mxu1 %v1385_v20  ;;  %1219 = vmatprep.subr.bf16.mxu0 %v1386_v21  ;;  %v1425_v62 = vld [vmem:[%s1716_s11 + $0x1a8] sm:$0xff]   ;;  %v1429_v2 = vld [vmem:[%s1716_s11 + $0x1b0] sm:$0xff]   ;;  %v1430_v3 = vld [vmem:[%s1716_s11 + $0x178] sm:$0xff]  }
  0x71   : > { %1241 = vmatprep.subr.bf16.mxu1 %v1387_v22  ;;  %v1431_v4 = vld [vmem:[%s1716_s11 + $0x1f8] sm:$0xff]   ;;  %v285_v7 = vld [vmem:[%s1730_s4 + $0x10] sm:$0xff]  ;;  %v286_v10 = vld [vmem:[%s1730_s4 + $0x18] sm:$0xff] }
  0x72   : > { %v1432_v5 = vld [vmem:[%s1716_s11 + $0x138] sm:$0xff]   ;;  %v1135_v8 = vcombine.low %v285_v7, %v285_v7  ;;  %v1136_v9 = vcombine.high %v285_v7, %v285_v7  ;;  %v1137_v11 = vcombine.low %v286_v10, %v286_v10  ;;  %v1138_v12 = vcombine.high %v286_v10, %v286_v10 }
  0x73   : > { %1220 = vmatpush3.bf16.msra.mxu0 %v1388_v23  ;;  %v1433_v6 = vld [vmem:[%s1716_s11 + $0x1b8] sm:$0xff]  }
  0x74   : > { %1242 = vmatpush3.bf16.msra.mxu1 %v1389_v24  ;;  %1221 = vmatprep.subr.bf16.mxu0 %v1390_v25 }
  0x75   : > { %1243 = vmatprep.subr.bf16.mxu1 %v1391_v26 }
  0x77   : > { %1222 = vmatpush3.bf16.msra.mxu0 %v1392_v27 }
  0x78   : > { %1244 = vmatpush3.bf16.msra.mxu1 %v1393_v28  ;;  %1223 = vmatprep.subr.bf16.mxu0 %v1394_v29 }
  0x79   : > { %1245 = vmatprep.subr.bf16.mxu1 %v1395_v30 }
  0x7b   : > { %1224 = vmatpush3.bf16.msra.mxu0 %v1396_v31 }
  0x7c   : > { %1246 = vmatpush3.bf16.msra.mxu1 %v1397_v32  ;;  %1253 = vmatprep.subr.bf16.mxu0 %v1402_v39  ;;  %v1204_v39 = vld [vmem:[#allocation5] ss:$0 sm:$0xff] (!%p1203_p7) }
  0x7d   : > { %1275 = vmatprep.subr.bf16.mxu1 %v1403_v40 }
  0x7e   : > { %860 = vmatmul.mubr.bf16.vlgmr.msra.gmra.mrb[0].mxu0 %v1131_v35  ;;  %v282_v35 = vld [vmem:[#allocation2] sm:$0xff] }
  0x7f   : > { %900 = vmatmul.mubr.bf16.vlgmr.msra.gmra.mrb[0].mxu1 %v1133_v37  ;;  %1254 = vmatpush3.bf16.msra.mxu0 %v1404_v41 }
  0x80   : > { %1276 = vmatpush3.bf16.msra.mxu1 %v1405_v42  ;;  %1255 = vmatprep.subr.bf16.mxu0 %v1406_v43 }
  0x81   : > { %1277 = vmatprep.subr.bf16.mxu1 %v1407_v44  ;;  %939 = vmatprep.mubr.bf16.mxu0 %v1136_v9 }
  0x82   : > { %979 = vmatprep.mubr.bf16.mxu1 %v1138_v12 }
  0x83   : > { %1256 = vmatpush3.bf16.msra.mxu0 %v1408_v45 }
  0x84   : > { %1278 = vmatpush3.bf16.msra.mxu1 %v1409_v46  ;;  %1257 = vmatprep.subr.bf16.mxu0 %v1410_v47 }
  0x85   : > { %1279 = vmatprep.subr.bf16.mxu1 %v1411_v48 }
  0x87   : > { %1258 = vmatpush3.bf16.msra.mxu0 %v1412_v49 }
  0x88   : > { %1280 = vmatpush3.bf16.msra.mxu1 %v1413_v50  ;;  %1259 = vmatprep.subr.bf16.mxu0 %v1414_v51 }
  0x89   : > { %1281 = vmatprep.subr.bf16.mxu1 %v1415_v52 }
  0x8b   : > { %1260 = vmatpush3.bf16.msra.mxu0 %v1416_v53 }
  0x8c   : > { %1282 = vmatpush3.bf16.msra.mxu1 %v1417_v54  ;;  %1261 = vmatprep.subr.bf16.mxu0 %v1418_v55 }
  0x8d   : > { %1283 = vmatprep.subr.bf16.mxu1 %v1419_v56 }
  0x8f   : > { %1262 = vmatpush3.bf16.msra.mxu0 %v1420_v57 }
  0x90   : > { %1284 = vmatpush3.bf16.msra.mxu1 %v1421_v58  ;;  %1263 = vmatprep.subr.bf16.mxu0 %v1422_v59 }
  0x91   : > { %1285 = vmatprep.subr.bf16.mxu1 %v1423_v60 }
  0x93   : > { %1264 = vmatpush3.bf16.msra.mxu0 %v1424_v61 }
  0x94   : > { %1286 = vmatpush3.bf16.msra.mxu1 %v1425_v62  ;;  %1265 = vmatprep.subr.bf16.mxu0 %v1426_v63 }
  0x95   : > { %1287 = vmatprep.subr.bf16.mxu1 %v1427_v0 }
  0x97   : > { %1266 = vmatpush3.bf16.msra.mxu0 %v1428_v1 }
  0x98   : > { %1288 = vmatpush3.bf16.msra.mxu1 %v1429_v2  ;;  %1267 = vmatprep.subr.bf16.mxu0 %v1430_v3 }
  0x99   : > { %1289 = vmatprep.subr.bf16.mxu1 %v1431_v4 }
  0x9b   : > { %1268 = vmatpush3.bf16.msra.mxu0 %v1432_v5 }
  0x9c   : > { %1290 = vmatpush3.bf16.msra.mxu1 %v1433_v6 }
  0x9e   : > { %940 = vmatmul.mubr.bf16.vlgmr.msra.gmra.mrb[4].mxu0 %v1135_v8 }
  0x9f   : > { %980 = vmatmul.mubr.bf16.vlgmr.msra.gmra.mrb[4].mxu1 %v1137_v11 }
 0x151   : > { %v1225_v13 = vpop.f32.mrb[0].mxu0 }
 0x152   : > { %v1247_v14 = vpop.f32.mrb[0].mxu1  ;;  %v1226_v15 = vpop.f32.mrb[1].mxu0 }
 0x153   : > { %v1248_v16 = vpop.f32.mrb[1].mxu1  ;;  %v1227_v17 = vadd.f32 %v1226_v15, %v1225_v13  ;;  %v1228_v19 = vpop.f32.mrb[2].mxu0 }
 0x154   : > { %v1249_v18 = vadd.f32 %v1248_v16, %v1247_v14  ;;  %v1250_v20 = vpop.f32.mrb[2].mxu1  ;;  %v1229_v21 = vpop.f32.mrb[3].mxu0 }
 0x155   : > { %v1251_v22 = vpop.f32.mrb[3].mxu1 }
 0x156   : > { %v902_v23 = vadd.f32 %v1249_v18, %v1227_v17 }
 0x171   : > { %v1269_v24 = vpop.f32.mrb[4].mxu0 }
 0x172   : > { %v1291_v25 = vpop.f32.mrb[4].mxu1  ;;  %v1270_v26 = vpop.f32.mrb[5].mxu0 }
 0x173   : > { %v1292_v27 = vpop.f32.mrb[5].mxu1  ;;  %v1271_v28 = vadd.f32 %v1270_v26, %v1269_v24  ;;  %v1272_v30 = vpop.f32.mrb[6].mxu0 }
 0x174   : > { %v1293_v29 = vadd.f32 %v1292_v27, %v1291_v25  ;;  %v1294_v31 = vpop.f32.mrb[6].mxu1  ;;  %v1273_v32 = vpop.f32.mrb[7].mxu0 }
 0x175   : > { %v1295_v33 = vpop.f32.mrb[7].mxu1  ;;  %v942_v34 = vadd.f32 %v1271_v28, %v902_v23  ;;  %992 = sbr.rel (%p1203_p7) target bundleno = 390 (0x186), region = 48 }
 0x177   : > { %v982_v36 = vadd.f32 %v1293_v29, %v942_v34 }
 0x179   : > { %v987_v37 = vadd.f32 %v982_v36, %v282_v35 }
 0x17b   : > { %988 = vst [vmem:[#allocation2] sm:$0xff] %v987_v37 }
 0x182   : > { %v993_v38 = vld [vmem:[#allocation2] sm:$0xff] }
 0x183   : > { %v1001_v40 = vadd.f32 %v1204_v39, %v993_v38 }
 0x185   : > { %1002 = vst [vmem:[%s1826_s3] sm:$0xff] %v1001_v40 }
 0x186 PF: > { %s17_s17 = sadd.s32 1, %s1550_s17   ;;  %s1842_s5 = smov %s1849_s12 }
 0x187   : > { %p14_p9 = scmp.ge.s32.totalorder %s17_s17, 6   ;;  %s1843_s12 = smov %s1534_s13 }
 0x188   : > { %s1844_s13 = smov %s1538_s14  ;;  %s1845_s14 = smov %s1711_s7 }
 0x189   : > { %s1846_s15 = smov %s1546_s16  ;;  %s1847_s16 = smov %s1842_s5 }
 0x18a   :  { %16 = sbr.rel (!%p14_p9) target bundleno = 5 (0x5), region = 88 }
 0x191   :  { %1028 = vsyncpa [#allocation4], 1 }
 0x192   :  { %1030 = vsyncpa [#allocation4 + $0x1], 1 }
 0x193   :  { %1031 = vsyncpa [#allocation6], 1 }

</bundles_post_ra>
